<compile_context>
chip_gen: v7x
topology: tpu7x:2x2x1
jax: 0.10.0
libtpu: 0.0.40
codegen_flags: <defaults>
</compile_context>

<pallas_src>
import functools

import jax
import jax.numpy as jnp
from jax.experimental import pallas as pl
from jax.experimental.pallas import tpu as pltpu


# ----------------------------------------------------------------------------
# helpers
# ----------------------------------------------------------------------------

def _round_up(x, m):
    return ((x + m - 1) // m) * m


def _pick_tile(m, base, mult):
    return min(base, _round_up(max(m, 1), mult))


def _row_chunk(hh, ww):
    """Rows of output processed per inner-loop step (target ~128 M-rows)."""
    rh = min(hh, max(1, 128 // ww))
    while hh % rh:
        rh -= 1
    return rh


# ----------------------------------------------------------------------------
# Pallas kernels
# ----------------------------------------------------------------------------

def _conv3x3_kernel(a_ref, b_ref, wa_ref, wb_ref, o_ref, sum_ref, sq_ref,
                    *, hh, ww, rh, cpad):
    """Direct 3x3 / stride-1 / pad-1 conv over two channel-groups (a, b) with
    fused per-image column sum / sum-of-squares (BatchNorm statistics).

    a_ref: (hh+2, ww+2, Ca) bf16 (spatially pre-padded image)
    b_ref: (hh+2, ww+2, Cb) bf16
    wa_ref/wb_ref: (9, C*, cpad) bf16 tap-major weights
    o_ref: (hh*ww, cpad) f32;  sum_ref/sq_ref: (1, cpad) f32
    """
    ca = a_ref.shape[-1]
    cb = b_ref.shape[-1]
    sum_ref[...] = jnp.zeros_like(sum_ref)
    sq_ref[...] = jnp.zeros_like(sq_ref)

    def chunk(r, carry):
        row0 = r * rh
        acc = jnp.zeros((rh * ww, cpad), jnp.float32)
        for ty in range(3):
            a_rows = a_ref[pl.ds(row0 + ty, rh), :, :]      # (rh, ww+2, ca)
            b_rows = b_ref[pl.ds(row0 + ty, rh), :, :]
            for tx in range(3):
                t = ty * 3 + tx
                xa = a_rows[:, tx:tx + ww, :].reshape(rh * ww, ca)
                acc = acc + jnp.dot(xa, wa_ref[t],
                                    preferred_element_type=jnp.float32)
                xb = b_rows[:, tx:tx + ww, :].reshape(rh * ww, cb)
                acc = acc + jnp.dot(xb, wb_ref[t],
                                    preferred_element_type=jnp.float32)
        out_start = pl.multiple_of(row0 * ww, rh * ww)
        o_ref[pl.ds(out_start, rh * ww), :] = acc
        # fused BN statistics (free VPU/XLU slack in an MXU/DMA-bound pass)
        sum_ref[...] += jnp.sum(acc, axis=0, keepdims=True)
        sq_ref[...] += jnp.sum(acc * acc, axis=0, keepdims=True)
        return carry

    jax.lax.fori_loop(0, hh // rh, chunk, 0)


def pallas_conv3x3(a_pad, b_pad, wa, wb):
    """a_pad: (N, hh+2, ww+2, Ca) bf16, b_pad: (N, hh+2, ww+2, Cb) bf16,
    wa: (9, Ca, cpad) bf16, wb: (9, Cb, cpad) bf16 (cpad % 128 == 0).
    Returns (out (N, hh*ww, cpad) f32, col_sum (1, cpad), col_sumsq (1, cpad))."""
    N, hp, wp, ca = a_pad.shape
    cb = b_pad.shape[-1]
    hh, ww = hp - 2, wp - 2
    cpad = wa.shape[-1]
    rh = _row_chunk(hh, ww)
    kernel = functools.partial(_conv3x3_kernel, hh=hh, ww=ww, rh=rh, cpad=cpad)
    out, s, q = pl.pallas_call(
        kernel,
        out_shape=(jax.ShapeDtypeStruct((N, hh * ww, cpad), jnp.float32),
                   jax.ShapeDtypeStruct((N, 1, cpad), jnp.float32),
                   jax.ShapeDtypeStruct((N, 1, cpad), jnp.float32)),
        grid=(N,),
        in_specs=[
            pl.BlockSpec((None, hp, wp, ca), lambda n: (n, 0, 0, 0)),
            pl.BlockSpec((None, hp, wp, cb), lambda n: (n, 0, 0, 0)),
            pl.BlockSpec((9, ca, cpad), lambda n: (0, 0, 0)),
            pl.BlockSpec((9, cb, cpad), lambda n: (0, 0, 0)),
        ],
        out_specs=(
            pl.BlockSpec((None, hh * ww, cpad), lambda n: (n, 0, 0)),
            pl.BlockSpec((None, 1, cpad), lambda n: (n, 0, 0)),
            pl.BlockSpec((None, 1, cpad), lambda n: (n, 0, 0)),
        ),
        compiler_params=pltpu.CompilerParams(
            dimension_semantics=("parallel",)),
    )(a_pad, b_pad, wa, wb)
    # tiny (N, 1, 128) partial-sum reduction (keeps the conv grid "parallel")
    return out, jnp.sum(s, axis=0), jnp.sum(q, axis=0)


def _gates_kernel(rz_ref, sh_ref, scale_ref, shift_ref, ns_ref, z_ref, *, c):
    # fused: BN(rz conv, precomputed scale/shift) -> sigmoid -> split r|z
    #        -> new_state = r * state_hat
    y = rz_ref[...] * scale_ref[...] + shift_ref[...]
    s = pl.reciprocal(1.0 + jnp.exp(-y), approx=True)     # sigmoid via EUP
    ns_ref[...] = s[:, :c] * sh_ref[...]
    z_ref[...] = s[:, c:2 * c]


def pallas_gru_gates(rz, sh, scale, shift, c, tm_base=1024):
    M, cpad = rz.shape
    tm = _pick_tile(M, tm_base, 8)
    m_pad = _round_up(M, tm)
    if m_pad != M:
        rz = jnp.pad(rz, ((0, m_pad - M), (0, 0)))
        sh = jnp.pad(sh, ((0, m_pad - M), (0, 0)))
    kernel = functools.partial(_gates_kernel, c=c)
    ns, z = pl.pallas_call(
        kernel,
        out_shape=(jax.ShapeDtypeStruct((m_pad, c), jnp.float32),
                   jax.ShapeDtypeStruct((m_pad, c), jnp.float32)),
        grid=(m_pad // tm,),
        in_specs=[pl.BlockSpec((tm, cpad), lambda i: (i, 0)),
                  pl.BlockSpec((tm, c), lambda i: (i, 0)),
                  pl.BlockSpec((1, cpad), lambda i: (0, 0)),
                  pl.BlockSpec((1, cpad), lambda i: (0, 0))],
        out_specs=(pl.BlockSpec((tm, c), lambda i: (i, 0)),
                   pl.BlockSpec((tm, c), lambda i: (i, 0))),
        compiler_params=pltpu.CompilerParams(dimension_semantics=("parallel",)),
    )(rz, sh, scale, shift)
    return ns[:M], z[:M]


def _hidden_out_kernel(hc_ref, scale_ref, shift_ref, z_ref, sh_ref, o_ref, *, c):
    # fused: BN(hidden conv) -> tanh -> (1 - z)*state_hat + z*hidden
    y = hc_ref[...] * scale_ref[...] + shift_ref[...]
    hcand = jnp.tanh(y[:, :c])
    z = z_ref[...]
    o_ref[...] = (1.0 - z) * sh_ref[...] + z * hcand


def pallas_hidden_out(hc, scale, shift, z, sh, c, tm_base=1024):
    M, cpad = hc.shape
    tm = _pick_tile(M, tm_base, 8)
    m_pad = _round_up(M, tm)
    if m_pad != M:
        hc = jnp.pad(hc, ((0, m_pad - M), (0, 0)))
        z = jnp.pad(z, ((0, m_pad - M), (0, 0)))
        sh = jnp.pad(sh, ((0, m_pad - M), (0, 0)))
    kernel = functools.partial(_hidden_out_kernel, c=c)
    out = pl.pallas_call(
        kernel,
        out_shape=jax.ShapeDtypeStruct((m_pad, c), jnp.float32),
        grid=(m_pad // tm,),
        in_specs=[pl.BlockSpec((tm, cpad), lambda i: (i, 0)),
                  pl.BlockSpec((1, cpad), lambda i: (0, 0)),
                  pl.BlockSpec((1, cpad), lambda i: (0, 0)),
                  pl.BlockSpec((tm, c), lambda i: (i, 0)),
                  pl.BlockSpec((tm, c), lambda i: (i, 0))],
        out_specs=pl.BlockSpec((tm, c), lambda i: (i, 0)),
        compiler_params=pltpu.CompilerParams(dimension_semantics=("parallel",)),
    )(hc, scale, shift, z, sh)
    return out[:M]


# ----------------------------------------------------------------------------
# BN scale/shift (tiny (1, 128) op, computed once per conv)
# ----------------------------------------------------------------------------

def _bn_scale_shift(col_sum, col_sq, gamma, beta, m_rows, eps=1e-5):
    mean = col_sum / m_rows
    var = jnp.maximum(col_sq / m_rows - mean * mean, 0.0)   # biased batch var
    scale = gamma * jax.lax.rsqrt(var + eps)
    return scale, beta - mean * scale


# ----------------------------------------------------------------------------
# Weight reshaping (PyTorch layouts -> tap-major padded bf16 matrices)
# ----------------------------------------------------------------------------

def _conv_w_to_taps(w):
    """PyTorch Conv2d weight (Cout, Cin, kh, kw) -> (kh*kw, Cin, Cout)."""
    co, ci, kh, kw = w.shape
    return jnp.transpose(w, (2, 3, 1, 0)).reshape(kh * kw, ci, co)


def _pad_last_to(w, mult=128):
    c = w.shape[-1]
    cp = _round_up(c, mult)
    if cp != c:
        pad = [(0, 0)] * (w.ndim - 1) + [(0, cp - c)]
        w = jnp.pad(w, pad)
    return w


def _subpixel_up_weight_taps(w_t):
    """ConvTranspose2d weight (Cin, Cout, 4, 4), stride 2, pad 1 ->
    (9, Cin, 4*Cout) taps acting on stride-1 3x3/pad-1 windows of the LOW-res
    input.  Output block q = ry*2 + rx holds sub-pixel (row-parity ry,
    col-parity rx) output channels."""
    cin, cout = w_t.shape[0], w_t.shape[1]
    w3 = jnp.zeros((3, 3, cin, 4 * cout), jnp.float32)
    for ty in range(3):
        dy = ty - 1
        for tx in range(3):
            dx = tx - 1
            for ry in range(2):
                for rx in range(2):
                    ky = ry - 2 * dy + 1
                    kx = rx - 2 * dx + 1
                    if 0 <= ky < 4 and 0 <= kx < 4:
                        q = ry * 2 + rx
                        w3 = w3.at[ty, tx, :, q * cout:(q + 1) * cout].set(
                            w_t[:, :, ky, kx])
    return w3.reshape(9, cin, 4 * cout)


def build_params(w_up_t, w_r, w_z, w_h, cfg):
    C = cfg["out_dim"]
    in_dim = cfg["in_dim"]
    in_state = cfg["in_state_dim"]
    n_attrs = cfg["n_attrs"]
    attr_pad = _round_up(n_attrs, 8)

    w_up = _pad_last_to(_subpixel_up_weight_taps(w_up_t), 128)
    wa_up = w_up[:, :in_state, :]
    wb_up = jnp.pad(w_up[:, in_state:, :],
                    ((0, 0), (0, attr_pad - n_attrs), (0, 0)))

    # reset + update gate convs share one matmul: Cout = 2*C (padded to 128)
    w_rz = _pad_last_to(jnp.concatenate(
        [_conv_w_to_taps(w_r), _conv_w_to_taps(w_z)], axis=-1), 128)
    w_hh = _pad_last_to(_conv_w_to_taps(w_h), 128)

    cpad_rz = w_rz.shape[-1]
    cpad_h = w_hh.shape[-1]
    # BatchNorm2d affine params (PyTorch defaults weight=1, bias=0).
    # Padded channels get gamma=0 so they normalize to exactly 0 (benign).
    g_rz = jnp.zeros((1, cpad_rz), jnp.float32).at[:, :2 * C].set(1.0)
    g_h = jnp.zeros((1, cpad_h), jnp.float32).at[:, :C].set(1.0)

    bf = lambda a: a.astype(jnp.bfloat16)
    return dict(
        wa_up=bf(wa_up), wb_up=bf(wb_up),
        wa_rz=bf(w_rz[:, :in_dim, :]), wb_rz=bf(w_rz[:, in_dim:, :]),
        wa_h=bf(w_hh[:, :in_dim, :]), wb_h=bf(w_hh[:, in_dim:, :]),
        g_rz=g_rz, b_rz=jnp.zeros((1, cpad_rz), jnp.float32),
        g_h=g_h, b_h=jnp.zeros((1, cpad_h), jnp.float32),
    )


# ----------------------------------------------------------------------------
# ConvGRUCell forward (PyTorch NCHW at the boundary)
# ----------------------------------------------------------------------------

def conv_gru_cell_forward(params, cfg, inp_nchw, old_state_nchw, attr):
    assert cfg["kernel_size"] == 3  # direct-conv kernel implements 3x3/pad 1
    n_attrs = cfg["n_attrs"]
    C = cfg["out_dim"]
    eps = 1e-5

    inp = jnp.transpose(inp_nchw, (0, 2, 3, 1)).astype(jnp.float32)        # NHWC
    old = jnp.transpose(old_state_nchw, (0, 2, 3, 1)).astype(jnp.float32)  # NHWC
    N, h, w, _ = old.shape
    H, W = 2 * h, 2 * w
    M = N * H * W

    def pad_hw(x):  # spatial pad-1 + bf16 cast (conv input prep)
        return jnp.pad(x, ((0, 0), (1, 1), (1, 1), (0, 0))).astype(jnp.bfloat16)

    # ---- state_hat = ConvTranspose2d(cat[old_state, attr]) via sub-pixel conv
    attr_cpad = params["wb_up"].shape[1]
    attr_map = jnp.broadcast_to(attr.reshape(N, 1, 1, n_attrs), (N, h, w, n_attrs))
    attr_map = jnp.pad(attr_map, ((0, 0), (0, 0), (0, 0), (0, attr_cpad - n_attrs)))
    up_out, _, _ = pallas_conv3x3(pad_hw(old), pad_hw(attr_map),
                                  params["wa_up"], params["wb_up"])
    cpad_up = up_out.shape[-1]
    sub = up_out.reshape(N, h, w, cpad_up)[..., :4 * C].reshape(N, h, w, 2, 2, C)
    state_hat = jnp.transpose(sub, (0, 1, 3, 2, 4, 5)).reshape(N, H, W, C)
    sh_flat = state_hat.reshape(M, C)

    inp_p = pad_hw(inp)          # prepared once, shared by gate + hidden convs
    sh_p = pad_hw(state_hat)

    # ---- fused reset/update gate conv (BN stats fused into the conv pass)
    rz_out, rz_sum, rz_sq = pallas_conv3x3(inp_p, sh_p,
                                           params["wa_rz"], params["wb_rz"])
    scale_rz, shift_rz = _bn_scale_shift(rz_sum, rz_sq,
                                         params["g_rz"], params["b_rz"],
                                         float(M), eps)
    ns_flat, z_flat = pallas_gru_gates(rz_out.reshape(M, -1), sh_flat,
                                       scale_rz, shift_rz, C)
    new_state = ns_flat.reshape(N, H, W, C)

    # ---- hidden conv (+fused stats) and BN+tanh+GRU-combine epilogue
    hc_out, h_sum, h_sq = pallas_conv3x3(inp_p, pad_hw(new_state),
                                         params["wa_h"], params["wb_h"])
    scale_h, shift_h = _bn_scale_shift(h_sum, h_sq,
                                       params["g_h"], params["b_h"],
                                       float(M), eps)
    out_flat = pallas_hidden_out(hc_out.reshape(M, -1), scale_h, shift_h,
                                 z_flat, sh_flat, C)
    output = out_flat.reshape(N, H, W, C)

    # TODO(synk): boundary NCHW<->NHWC transposes, the attr broadcast/pad and
    # the sub-pixel interleave transpose remain XLA glue; they could be folded
    # into the conv kernels' index maps / an SMEM attr read for another cut in
    # HBM passes.
    return (jnp.transpose(output, (0, 3, 1, 2)),
            jnp.transpose(new_state, (0, 3, 1, 2)))


# ----------------------------------------------------------------------------
# Main
# ----------------------------------------------------------------------------

if __name__ == "__main__":
    cfg = dict(n_attrs=4, in_dim=32, out_dim=32, in_state_dim=64, kernel_size=3)
    C, k = cfg["out_dim"], cfg["kernel_size"]
    cin_gate = cfg["in_dim"] + C
    cin_state = cfg["in_state_dim"] + cfg["n_attrs"]

    key = jax.random.PRNGKey(0)
    k1, k2, k3, k4, k5, k6, k7 = jax.random.split(key, 7)

    # PyTorch-layout weights (all convs bias=False per the module definition).
    w_up_t = 0.05 * jax.random.normal(k1, (cin_state, C, 4, 4), jnp.float32)
    w_r = 0.05 * jax.random.normal(k2, (C, cin_gate, k, k), jnp.float32)
    w_z = 0.05 * jax.random.normal(k3, (C, cin_gate, k, k), jnp.float32)
    w_h = 0.05 * jax.random.normal(k4, (C, cin_gate, k, k), jnp.float32)
    params = build_params(w_up_t, w_r, w_z, w_h, cfg)

    # Inputs (NCHW boundary, matching PyTorch): input at HxW, old_state at H/2.
    N, H, W = 2, 16, 16
    x = jax.random.normal(k5, (N, cfg["in_dim"], H, W), jnp.float32)
    old_state = jax.random.normal(k6, (N, cfg["in_state_dim"], H // 2, W // 2),
                                  jnp.float32)
    attr = jax.random.normal(k7, (N, cfg["n_attrs"]), jnp.float32)

    fwd = jax.jit(lambda p, xx, ss, aa: conv_gru_cell_forward(p, cfg, xx, ss, aa))
    out, new_state = fwd(params, x, old_state, attr)
    out = jax.block_until_ready(out)
    new_state = jax.block_until_ready(new_state)

    assert out.shape == (N, C, H, W), out.shape
    assert new_state.shape == (N, C, H, W), new_state.shape
    assert jnp.all(jnp.isfinite(out)) and jnp.all(jnp.isfinite(new_state))
    print("KERNEL_OK")
</pallas_src>

<mosaic_0001>
module attributes {stable_mosaic.version = 11 : i64} {
  func.func @_conv3x3_kernel(%arg0: i32, %arg1: memref<1x10x10x64xbf16, #tpu.memory_space<vmem>>, %arg2: memref<1x10x10x8xbf16, #tpu.memory_space<vmem>>, %arg3: memref<9x64x128xbf16, #tpu.memory_space<vmem>>, %arg4: memref<9x8x128xbf16, #tpu.memory_space<vmem>>, %arg5: memref<1x64x128xf32, #tpu.memory_space<vmem>>, %arg6: memref<1x1x128xf32, #tpu.memory_space<vmem>>, %arg7: memref<1x1x128xf32, #tpu.memory_space<vmem>>) attributes {dimension_semantics = [#tpu.dimension_semantics<parallel>], iteration_bounds = array<i64: 2>, scalar_prefetch = 0 : i64, scratch_operands = 0 : i64, tpu.core_type = #tpu.core_type<tc>, window_params = [{transform_indices = @transform_0, window_bounds = array<i64: 1, 10, 10, 64>}, {transform_indices = @transform_1, window_bounds = array<i64: 1, 10, 10, 8>}, {pipeline_mode = #tpu.pipeline_mode<synchronous>, transform_indices = @transform_2, window_bounds = array<i64: 9, 64, 128>}, {pipeline_mode = #tpu.pipeline_mode<synchronous>, transform_indices = @transform_3, window_bounds = array<i64: 9, 8, 128>}, {transform_indices = @transform_4, window_bounds = array<i64: 1, 64, 128>}, {transform_indices = @transform_5, window_bounds = array<i64: 1, 1, 128>}, {transform_indices = @transform_6, window_bounds = array<i64: 1, 1, 128>}]} {
    %cst = arith.constant 0.000000e+00 : f32
    %0 = vector.broadcast %cst : f32 to vector<1x128xf32>
    %c0 = arith.constant 0 : index
    %c0_0 = arith.constant 0 : index
    %c0_1 = arith.constant 0 : index
    %1 = vector.load %arg6[%c0, %c0_0, %c0_1] : memref<1x1x128xf32, #tpu.memory_space<vmem>>, vector<1x1x128xf32>
    %2 = vector.shape_cast %1 : vector<1x1x128xf32> to vector<1x128xf32>
    %3 = vector.shape_cast %0 : vector<1x128xf32> to vector<1x1x128xf32>
    tpu.vector_store %arg6[%c0, %c0_0, %c0_1], %3 {strides = array<i32>} : memref<1x1x128xf32, #tpu.memory_space<vmem>>, vector<1x1x128xf32>,
    %cst_2 = arith.constant 0.000000e+00 : f32
    %4 = vector.broadcast %cst_2 : f32 to vector<1x128xf32>
    %c0_3 = arith.constant 0 : index
    %c0_4 = arith.constant 0 : index
    %c0_5 = arith.constant 0 : index
    %5 = vector.load %arg7[%c0_3, %c0_4, %c0_5] : memref<1x1x128xf32, #tpu.memory_space<vmem>>, vector<1x1x128xf32>
    %6 = vector.shape_cast %5 : vector<1x1x128xf32> to vector<1x128xf32>
    %7 = vector.shape_cast %4 : vector<1x128xf32> to vector<1x1x128xf32>
    tpu.vector_store %arg7[%c0_3, %c0_4, %c0_5], %7 {strides = array<i32>} : memref<1x1x128xf32, #tpu.memory_space<vmem>>, vector<1x1x128xf32>,
    %c0_i32 = arith.constant 0 : i32
    %c8_i32 = arith.constant 8 : i32
    %8 = arith.muli %c0_i32, %c8_i32 : i32
    %cst_6 = arith.constant 0.000000e+00 : f32
    %9 = vector.broadcast %cst_6 : f32 to vector<64x128xf32>
    %c0_i32_7 = arith.constant 0 : i32
    %10 = arith.addi %8, %c0_i32_7 : i32
    %c0_8 = arith.constant 0 : index
    %11 = arith.index_cast %10 : i32 to index
    %c0_9 = arith.constant 0 : index
    %c0_10 = arith.constant 0 : index
    %12 = vector.load %arg1[%c0_8, %11, %c0_9, %c0_10] : memref<1x10x10x64xbf16, #tpu.memory_space<vmem>>, vector<1x8x10x64xbf16>
    %13 = vector.shape_cast %12 : vector<1x8x10x64xbf16> to vector<8x10x64xbf16>
    %c0_i32_11 = arith.constant 0 : i32
    %14 = arith.addi %8, %c0_i32_11 : i32
    %c0_12 = arith.constant 0 : index
    %15 = arith.index_cast %14 : i32 to index
    %c0_13 = arith.constant 0 : index
    %c0_14 = arith.constant 0 : index
    %16 = vector.load %arg2[%c0_12, %15, %c0_13, %c0_14] : memref<1x10x10x8xbf16, #tpu.memory_space<vmem>>, vector<1x8x10x8xbf16>
    %17 = vector.shape_cast %16 : vector<1x8x10x8xbf16> to vector<8x10x8xbf16>
    %18 = vector.extract_strided_slice %13 {offsets = [0, 0, 0], sizes = [8, 8, 64], strides = [1, 1, 1]} : vector<8x10x64xbf16> to vector<8x8x64xbf16>
    %19 = vector.shape_cast %18 : vector<8x8x64xbf16> to vector<64x64xbf16>
    %c0_15 = arith.constant 0 : index
    %c0_16 = arith.constant 0 : index
    %c0_17 = arith.constant 0 : index
    %20 = vector.load %arg3[%c0_15, %c0_16, %c0_17] : memref<9x64x128xbf16, #tpu.memory_space<vmem>>, vector<1x64x128xbf16>
    %21 = vector.shape_cast %20 : vector<1x64x128xbf16> to vector<64x128xbf16>
    %cst_18 = arith.constant dense<0.000000e+00> : vector<64x128xf32>
    %22 = tpu.matmul %19, %21, %cst_18 {dimension_numbers = #tpu.dot_dimension_numbers<[1], [0], [0], [1], [0, 0, 1, 1], [], []>} : vector<64x64xbf16>, vector<64x128xbf16>, vector<64x128xf32> -> vector<64x128xf32>
    %23 = arith.addf %9, %22 : vector<64x128xf32>
    %24 = vector.extract_strided_slice %17 {offsets = [0, 0, 0], sizes = [8, 8, 8], strides = [1, 1, 1]} : vector<8x10x8xbf16> to vector<8x8x8xbf16>
    %25 = vector.shape_cast %24 : vector<8x8x8xbf16> to vector<64x8xbf16>
    %c0_19 = arith.constant 0 : index
    %c0_20 = arith.constant 0 : index
    %c0_21 = arith.constant 0 : index
    %26 = vector.load %arg4[%c0_19, %c0_20, %c0_21] : memref<9x8x128xbf16, #tpu.memory_space<vmem>>, vector<1x8x128xbf16>
    %27 = vector.shape_cast %26 : vector<1x8x128xbf16> to vector<8x128xbf16>
    %cst_22 = arith.constant dense<0.000000e+00> : vector<64x128xf32>
    %28 = tpu.matmul %25, %27, %cst_22 {dimension_numbers = #tpu.dot_dimension_numbers<[1], [0], [0], [1], [0, 0, 1, 1], [], []>} : vector<64x8xbf16>, vector<8x128xbf16>, vector<64x128xf32> -> vector<64x128xf32>
    %29 = arith.addf %23, %28 : vector<64x128xf32>
    %30 = vector.extract_strided_slice %13 {offsets = [0, 1, 0], sizes = [8, 8, 64], strides = [1, 1, 1]} : vector<8x10x64xbf16> to vector<8x8x64xbf16>
    %31 = vector.shape_cast %30 : vector<8x8x64xbf16> to vector<64x64xbf16>
    %c1 = arith.constant 1 : index
    %c0_23 = arith.constant 0 : index
    %c0_24 = arith.constant 0 : index
    %32 = vector.load %arg3[%c1, %c0_23, %c0_24] : memref<9x64x128xbf16, #tpu.memory_space<vmem>>, vector<1x64x128xbf16>
    %33 = vector.shape_cast %32 : vector<1x64x128xbf16> to vector<64x128xbf16>
    %cst_25 = arith.constant dense<0.000000e+00> : vector<64x128xf32>
    %34 = tpu.matmul %31, %33, %cst_25 {dimension_numbers = #tpu.dot_dimension_numbers<[1], [0], [0], [1], [0, 0, 1, 1], [], []>} : vector<64x64xbf16>, vector<64x128xbf16>, vector<64x128xf32> -> vector<64x128xf32>
    %35 = arith.addf %29, %34 : vector<64x128xf32>
    %36 = vector.extract_strided_slice %17 {offsets = [0, 1, 0], sizes = [8, 8, 8], strides = [1, 1, 1]} : vector<8x10x8xbf16> to vector<8x8x8xbf16>
    %37 = vector.shape_cast %36 : vector<8x8x8xbf16> to vector<64x8xbf16>
    %c1_26 = arith.constant 1 : index
    %c0_27 = arith.constant 0 : index
    %c0_28 = arith.constant 0 : index
    %38 = vector.load %arg4[%c1_26, %c0_27, %c0_28] : memref<9x8x128xbf16, #tpu.memory_space<vmem>>, vector<1x8x128xbf16>
    %39 = vector.shape_cast %38 : vector<1x8x128xbf16> to vector<8x128xbf16>
    %cst_29 = arith.constant dense<0.000000e+00> : vector<64x128xf32>
    %40 = tpu.matmul %37, %39, %cst_29 {dimension_numbers = #tpu.dot_dimension_numbers<[1], [0], [0], [1], [0, 0, 1, 1], [], []>} : vector<64x8xbf16>, vector<8x128xbf16>, vector<64x128xf32> -> vector<64x128xf32>
    %41 = arith.addf %35, %40 : vector<64x128xf32>
    %42 = vector.extract_strided_slice %13 {offsets = [0, 2, 0], sizes = [8, 8, 64], strides = [1, 1, 1]} : vector<8x10x64xbf16> to vector<8x8x64xbf16>
    %43 = vector.shape_cast %42 : vector<8x8x64xbf16> to vector<64x64xbf16>
    %c2 = arith.constant 2 : index
    %c0_30 = arith.constant 0 : index
    %c0_31 = arith.constant 0 : index
    %44 = vector.load %arg3[%c2, %c0_30, %c0_31] : memref<9x64x128xbf16, #tpu.memory_space<vmem>>, vector<1x64x128xbf16>
    %45 = vector.shape_cast %44 : vector<1x64x128xbf16> to vector<64x128xbf16>
    %cst_32 = arith.constant dense<0.000000e+00> : vector<64x128xf32>
    %46 = tpu.matmul %43, %45, %cst_32 {dimension_numbers = #tpu.dot_dimension_numbers<[1], [0], [0], [1], [0, 0, 1, 1], [], []>} : vector<64x64xbf16>, vector<64x128xbf16>, vector<64x128xf32> -> vector<64x128xf32>
    %47 = arith.addf %41, %46 : vector<64x128xf32>
    %48 = vector.extract_strided_slice %17 {offsets = [0, 2, 0], sizes = [8, 8, 8], strides = [1, 1, 1]} : vector<8x10x8xbf16> to vector<8x8x8xbf16>
    %49 = vector.shape_cast %48 : vector<8x8x8xbf16> to vector<64x8xbf16>
    %c2_33 = arith.constant 2 : index
    %c0_34 = arith.constant 0 : index
    %c0_35 = arith.constant 0 : index
    %50 = vector.load %arg4[%c2_33, %c0_34, %c0_35] : memref<9x8x128xbf16, #tpu.memory_space<vmem>>, vector<1x8x128xbf16>
    %51 = vector.shape_cast %50 : vector<1x8x128xbf16> to vector<8x128xbf16>
    %cst_36 = arith.constant dense<0.000000e+00> : vector<64x128xf32>
    %52 = tpu.matmul %49, %51, %cst_36 {dimension_numbers = #tpu.dot_dimension_numbers<[1], [0], [0], [1], [0, 0, 1, 1], [], []>} : vector<64x8xbf16>, vector<8x128xbf16>, vector<64x128xf32> -> vector<64x128xf32>
    %53 = arith.addf %47, %52 : vector<64x128xf32>
    %c1_i32 = arith.constant 1 : i32
    %54 = arith.addi %8, %c1_i32 : i32
    %c0_37 = arith.constant 0 : index
    %55 = arith.index_cast %54 : i32 to index
    %c0_38 = arith.constant 0 : index
    %c0_39 = arith.constant 0 : index
    %56 = vector.load %arg1[%c0_37, %55, %c0_38, %c0_39] : memref<1x10x10x64xbf16, #tpu.memory_space<vmem>>, vector<1x8x10x64xbf16>
    %57 = vector.shape_cast %56 : vector<1x8x10x64xbf16> to vector<8x10x64xbf16>
    %c1_i32_40 = arith.constant 1 : i32
    %58 = arith.addi %8, %c1_i32_40 : i32
    %c0_41 = arith.constant 0 : index
    %59 = arith.index_cast %58 : i32 to index
    %c0_42 = arith.constant 0 : index
    %c0_43 = arith.constant 0 : index
    %60 = vector.load %arg2[%c0_41, %59, %c0_42, %c0_43] : memref<1x10x10x8xbf16, #tpu.memory_space<vmem>>, vector<1x8x10x8xbf16>
    %61 = vector.shape_cast %60 : vector<1x8x10x8xbf16> to vector<8x10x8xbf16>
    %62 = vector.extract_strided_slice %57 {offsets = [0, 0, 0], sizes = [8, 8, 64], strides = [1, 1, 1]} : vector<8x10x64xbf16> to vector<8x8x64xbf16>
    %63 = vector.shape_cast %62 : vector<8x8x64xbf16> to vector<64x64xbf16>
    %c3 = arith.constant 3 : index
    %c0_44 = arith.constant 0 : index
    %c0_45 = arith.constant 0 : index
    %64 = vector.load %arg3[%c3, %c0_44, %c0_45] : memref<9x64x128xbf16, #tpu.memory_space<vmem>>, vector<1x64x128xbf16>
    %65 = vector.shape_cast %64 : vector<1x64x128xbf16> to vector<64x128xbf16>
    %cst_46 = arith.constant dense<0.000000e+00> : vector<64x128xf32>
    %66 = tpu.matmul %63, %65, %cst_46 {dimension_numbers = #tpu.dot_dimension_numbers<[1], [0], [0], [1], [0, 0, 1, 1], [], []>} : vector<64x64xbf16>, vector<64x128xbf16>, vector<64x128xf32> -> vector<64x128xf32>
    %67 = arith.addf %53, %66 : vector<64x128xf32>
    %68 = vector.extract_strided_slice %61 {offsets = [0, 0, 0], sizes = [8, 8, 8], strides = [1, 1, 1]} : vector<8x10x8xbf16> to vector<8x8x8xbf16>
    %69 = vector.shape_cast %68 : vector<8x8x8xbf16> to vector<64x8xbf16>
    %c3_47 = arith.constant 3 : index
    %c0_48 = arith.constant 0 : index
    %c0_49 = arith.constant 0 : index
    %70 = vector.load %arg4[%c3_47, %c0_48, %c0_49] : memref<9x8x128xbf16, #tpu.memory_space<vmem>>, vector<1x8x128xbf16>
    %71 = vector.shape_cast %70 : vector<1x8x128xbf16> to vector<8x128xbf16>
    %cst_50 = arith.constant dense<0.000000e+00> : vector<64x128xf32>
    %72 = tpu.matmul %69, %71, %cst_50 {dimension_numbers = #tpu.dot_dimension_numbers<[1], [0], [0], [1], [0, 0, 1, 1], [], []>} : vector<64x8xbf16>, vector<8x128xbf16>, vector<64x128xf32> -> vector<64x128xf32>
    %73 = arith.addf %67, %72 : vector<64x128xf32>
    %74 = vector.extract_strided_slice %57 {offsets = [0, 1, 0], sizes = [8, 8, 64], strides = [1, 1, 1]} : vector<8x10x64xbf16> to vector<8x8x64xbf16>
    %75 = vector.shape_cast %74 : vector<8x8x64xbf16> to vector<64x64xbf16>
    %c4 = arith.constant 4 : index
    %c0_51 = arith.constant 0 : index
    %c0_52 = arith.constant 0 : index
    %76 = vector.load %arg3[%c4, %c0_51, %c0_52] : memref<9x64x128xbf16, #tpu.memory_space<vmem>>, vector<1x64x128xbf16>
    %77 = vector.shape_cast %76 : vector<1x64x128xbf16> to vector<64x128xbf16>
    %cst_53 = arith.constant dense<0.000000e+00> : vector<64x128xf32>
    %78 = tpu.matmul %75, %77, %cst_53 {dimension_numbers = #tpu.dot_dimension_numbers<[1], [0], [0], [1], [0, 0, 1, 1], [], []>} : vector<64x64xbf16>, vector<64x128xbf16>, vector<64x128xf32> -> vector<64x128xf32>
    %79 = arith.addf %73, %78 : vector<64x128xf32>
    %80 = vector.extract_strided_slice %61 {offsets = [0, 1, 0], sizes = [8, 8, 8], strides = [1, 1, 1]} : vector<8x10x8xbf16> to vector<8x8x8xbf16>
    %81 = vector.shape_cast %80 : vector<8x8x8xbf16> to vector<64x8xbf16>
    %c4_54 = arith.constant 4 : index
    %c0_55 = arith.constant 0 : index
    %c0_56 = arith.constant 0 : index
    %82 = vector.load %arg4[%c4_54, %c0_55, %c0_56] : memref<9x8x128xbf16, #tpu.memory_space<vmem>>, vector<1x8x128xbf16>
    %83 = vector.shape_cast %82 : vector<1x8x128xbf16> to vector<8x128xbf16>
    %cst_57 = arith.constant dense<0.000000e+00> : vector<64x128xf32>
    %84 = tpu.matmul %81, %83, %cst_57 {dimension_numbers = #tpu.dot_dimension_numbers<[1], [0], [0], [1], [0, 0, 1, 1], [], []>} : vector<64x8xbf16>, vector<8x128xbf16>, vector<64x128xf32> -> vector<64x128xf32>
    %85 = arith.addf %79, %84 : vector<64x128xf32>
    %86 = vector.extract_strided_slice %57 {offsets = [0, 2, 0], sizes = [8, 8, 64], strides = [1, 1, 1]} : vector<8x10x64xbf16> to vector<8x8x64xbf16>
    %87 = vector.shape_cast %86 : vector<8x8x64xbf16> to vector<64x64xbf16>
    %c5 = arith.constant 5 : index
    %c0_58 = arith.constant 0 : index
    %c0_59 = arith.constant 0 : index
    %88 = vector.load %arg3[%c5, %c0_58, %c0_59] : memref<9x64x128xbf16, #tpu.memory_space<vmem>>, vector<1x64x128xbf16>
    %89 = vector.shape_cast %88 : vector<1x64x128xbf16> to vector<64x128xbf16>
    %cst_60 = arith.constant dense<0.000000e+00> : vector<64x128xf32>
    %90 = tpu.matmul %87, %89, %cst_60 {dimension_numbers = #tpu.dot_dimension_numbers<[1], [0], [0], [1], [0, 0, 1, 1], [], []>} : vector<64x64xbf16>, vector<64x128xbf16>, vector<64x128xf32> -> vector<64x128xf32>
    %91 = arith.addf %85, %90 : vector<64x128xf32>
    %92 = vector.extract_strided_slice %61 {offsets = [0, 2, 0], sizes = [8, 8, 8], strides = [1, 1, 1]} : vector<8x10x8xbf16> to vector<8x8x8xbf16>
    %93 = vector.shape_cast %92 : vector<8x8x8xbf16> to vector<64x8xbf16>
    %c5_61 = arith.constant 5 : index
    %c0_62 = arith.constant 0 : index
    %c0_63 = arith.constant 0 : index
    %94 = vector.load %arg4[%c5_61, %c0_62, %c0_63] : memref<9x8x128xbf16, #tpu.memory_space<vmem>>, vector<1x8x128xbf16>
    %95 = vector.shape_cast %94 : vector<1x8x128xbf16> to vector<8x128xbf16>
    %cst_64 = arith.constant dense<0.000000e+00> : vector<64x128xf32>
    %96 = tpu.matmul %93, %95, %cst_64 {dimension_numbers = #tpu.dot_dimension_numbers<[1], [0], [0], [1], [0, 0, 1, 1], [], []>} : vector<64x8xbf16>, vector<8x128xbf16>, vector<64x128xf32> -> vector<64x128xf32>
    %97 = arith.addf %91, %96 : vector<64x128xf32>
    %c2_i32 = arith.constant 2 : i32
    %98 = arith.addi %8, %c2_i32 : i32
    %c0_65 = arith.constant 0 : index
    %99 = arith.index_cast %98 : i32 to index
    %c0_66 = arith.constant 0 : index
    %c0_67 = arith.constant 0 : index
    %100 = vector.load %arg1[%c0_65, %99, %c0_66, %c0_67] : memref<1x10x10x64xbf16, #tpu.memory_space<vmem>>, vector<1x8x10x64xbf16>
    %101 = vector.shape_cast %100 : vector<1x8x10x64xbf16> to vector<8x10x64xbf16>
    %c2_i32_68 = arith.constant 2 : i32
    %102 = arith.addi %8, %c2_i32_68 : i32
    %c0_69 = arith.constant 0 : index
    %103 = arith.index_cast %102 : i32 to index
    %c0_70 = arith.constant 0 : index
    %c0_71 = arith.constant 0 : index
    %104 = vector.load %arg2[%c0_69, %103, %c0_70, %c0_71] : memref<1x10x10x8xbf16, #tpu.memory_space<vmem>>, vector<1x8x10x8xbf16>
    %105 = vector.shape_cast %104 : vector<1x8x10x8xbf16> to vector<8x10x8xbf16>
    %106 = vector.extract_strided_slice %101 {offsets = [0, 0, 0], sizes = [8, 8, 64], strides = [1, 1, 1]} : vector<8x10x64xbf16> to vector<8x8x64xbf16>
    %107 = vector.shape_cast %106 : vector<8x8x64xbf16> to vector<64x64xbf16>
    %c6 = arith.constant 6 : index
    %c0_72 = arith.constant 0 : index
    %c0_73 = arith.constant 0 : index
    %108 = vector.load %arg3[%c6, %c0_72, %c0_73] : memref<9x64x128xbf16, #tpu.memory_space<vmem>>, vector<1x64x128xbf16>
    %109 = vector.shape_cast %108 : vector<1x64x128xbf16> to vector<64x128xbf16>
    %cst_74 = arith.constant dense<0.000000e+00> : vector<64x128xf32>
    %110 = tpu.matmul %107, %109, %cst_74 {dimension_numbers = #tpu.dot_dimension_numbers<[1], [0], [0], [1], [0, 0, 1, 1], [], []>} : vector<64x64xbf16>, vector<64x128xbf16>, vector<64x128xf32> -> vector<64x128xf32>
    %111 = arith.addf %97, %110 : vector<64x128xf32>
    %112 = vector.extract_strided_slice %105 {offsets = [0, 0, 0], sizes = [8, 8, 8], strides = [1, 1, 1]} : vector<8x10x8xbf16> to vector<8x8x8xbf16>
    %113 = vector.shape_cast %112 : vector<8x8x8xbf16> to vector<64x8xbf16>
    %c6_75 = arith.constant 6 : index
    %c0_76 = arith.constant 0 : index
    %c0_77 = arith.constant 0 : index
    %114 = vector.load %arg4[%c6_75, %c0_76, %c0_77] : memref<9x8x128xbf16, #tpu.memory_space<vmem>>, vector<1x8x128xbf16>
    %115 = vector.shape_cast %114 : vector<1x8x128xbf16> to vector<8x128xbf16>
    %cst_78 = arith.constant dense<0.000000e+00> : vector<64x128xf32>
    %116 = tpu.matmul %113, %115, %cst_78 {dimension_numbers = #tpu.dot_dimension_numbers<[1], [0], [0], [1], [0, 0, 1, 1], [], []>} : vector<64x8xbf16>, vector<8x128xbf16>, vector<64x128xf32> -> vector<64x128xf32>
    %117 = arith.addf %111, %116 : vector<64x128xf32>
    %118 = vector.extract_strided_slice %101 {offsets = [0, 1, 0], sizes = [8, 8, 64], strides = [1, 1, 1]} : vector<8x10x64xbf16> to vector<8x8x64xbf16>
    %119 = vector.shape_cast %118 : vector<8x8x64xbf16> to vector<64x64xbf16>
    %c7 = arith.constant 7 : index
    %c0_79 = arith.constant 0 : index
    %c0_80 = arith.constant 0 : index
    %120 = vector.load %arg3[%c7, %c0_79, %c0_80] : memref<9x64x128xbf16, #tpu.memory_space<vmem>>, vector<1x64x128xbf16>
    %121 = vector.shape_cast %120 : vector<1x64x128xbf16> to vector<64x128xbf16>
    %cst_81 = arith.constant dense<0.000000e+00> : vector<64x128xf32>
    %122 = tpu.matmul %119, %121, %cst_81 {dimension_numbers = #tpu.dot_dimension_numbers<[1], [0], [0], [1], [0, 0, 1, 1], [], []>} : vector<64x64xbf16>, vector<64x128xbf16>, vector<64x128xf32> -> vector<64x128xf32>
    %123 = arith.addf %117, %122 : vector<64x128xf32>
    %124 = vector.extract_strided_slice %105 {offsets = [0, 1, 0], sizes = [8, 8, 8], strides = [1, 1, 1]} : vector<8x10x8xbf16> to vector<8x8x8xbf16>
    %125 = vector.shape_cast %124 : vector<8x8x8xbf16> to vector<64x8xbf16>
    %c7_82 = arith.constant 7 : index
    %c0_83 = arith.constant 0 : index
    %c0_84 = arith.constant 0 : index
    %126 = vector.load %arg4[%c7_82, %c0_83, %c0_84] : memref<9x8x128xbf16, #tpu.memory_space<vmem>>, vector<1x8x128xbf16>
    %127 = vector.shape_cast %126 : vector<1x8x128xbf16> to vector<8x128xbf16>
    %cst_85 = arith.constant dense<0.000000e+00> : vector<64x128xf32>
    %128 = tpu.matmul %125, %127, %cst_85 {dimension_numbers = #tpu.dot_dimension_numbers<[1], [0], [0], [1], [0, 0, 1, 1], [], []>} : vector<64x8xbf16>, vector<8x128xbf16>, vector<64x128xf32> -> vector<64x128xf32>
    %129 = arith.addf %123, %128 : vector<64x128xf32>
    %130 = vector.extract_strided_slice %101 {offsets = [0, 2, 0], sizes = [8, 8, 64], strides = [1, 1, 1]} : vector<8x10x64xbf16> to vector<8x8x64xbf16>
    %131 = vector.shape_cast %130 : vector<8x8x64xbf16> to vector<64x64xbf16>
    %c8 = arith.constant 8 : index
    %c0_86 = arith.constant 0 : index
    %c0_87 = arith.constant 0 : index
    %132 = vector.load %arg3[%c8, %c0_86, %c0_87] : memref<9x64x128xbf16, #tpu.memory_space<vmem>>, vector<1x64x128xbf16>
    %133 = vector.shape_cast %132 : vector<1x64x128xbf16> to vector<64x128xbf16>
    %cst_88 = arith.constant dense<0.000000e+00> : vector<64x128xf32>
    %134 = tpu.matmul %131, %133, %cst_88 {dimension_numbers = #tpu.dot_dimension_numbers<[1], [0], [0], [1], [0, 0, 1, 1], [], []>} : vector<64x64xbf16>, vector<64x128xbf16>, vector<64x128xf32> -> vector<64x128xf32>
    %135 = arith.addf %129, %134 : vector<64x128xf32>
    %136 = vector.extract_strided_slice %105 {offsets = [0, 2, 0], sizes = [8, 8, 8], strides = [1, 1, 1]} : vector<8x10x8xbf16> to vector<8x8x8xbf16>
    %137 = vector.shape_cast %136 : vector<8x8x8xbf16> to vector<64x8xbf16>
    %c8_89 = arith.constant 8 : index
    %c0_90 = arith.constant 0 : index
    %c0_91 = arith.constant 0 : index
    %138 = vector.load %arg4[%c8_89, %c0_90, %c0_91] : memref<9x8x128xbf16, #tpu.memory_space<vmem>>, vector<1x8x128xbf16>
    %139 = vector.shape_cast %138 : vector<1x8x128xbf16> to vector<8x128xbf16>
    %cst_92 = arith.constant dense<0.000000e+00> : vector<64x128xf32>
    %140 = tpu.matmul %137, %139, %cst_92 {dimension_numbers = #tpu.dot_dimension_numbers<[1], [0], [0], [1], [0, 0, 1, 1], [], []>} : vector<64x8xbf16>, vector<8x128xbf16>, vector<64x128xf32> -> vector<64x128xf32>
    %141 = arith.addf %135, %140 : vector<64x128xf32>
    %c8_i32_93 = arith.constant 8 : i32
    %142 = arith.muli %8, %c8_i32_93 : i32
    %143 = tpu.assume_multiple %142, 64 : i32
    %c0_94 = arith.constant 0 : index
    %144 = arith.index_cast %143 : i32 to index
    %c0_95 = arith.constant 0 : index
    %145 = vector.load %arg5[%c0_94, %144, %c0_95] : memref<1x64x128xf32, #tpu.memory_space<vmem>>, vector<1x64x128xf32>
    %146 = vector.shape_cast %145 : vector<1x64x128xf32> to vector<64x128xf32>
    %147 = vector.shape_cast %141 : vector<64x128xf32> to vector<1x64x128xf32>
    tpu.vector_store %arg5[%c0_94, %144, %c0_95], %147 {strides = array<i32>} : memref<1x64x128xf32, #tpu.memory_space<vmem>>, vector<1x64x128xf32>,
    %c0_96 = arith.constant 0 : index
    %c0_97 = arith.constant 0 : index
    %c0_98 = arith.constant 0 : index
    %148 = vector.load %arg6[%c0_96, %c0_97, %c0_98] : memref<1x1x128xf32, #tpu.memory_space<vmem>>, vector<1x1x128xf32>
    %149 = vector.shape_cast %148 : vector<1x1x128xf32> to vector<1x128xf32>
    %cst_99 = arith.constant dense<0.000000e+00> : vector<128xf32>
    %150 = vector.multi_reduction <add>, %141, %cst_99 [0] : vector<64x128xf32> to vector<128xf32>
    %151 = vector.shape_cast %150 : vector<128xf32> to vector<1x128xf32>
    %152 = arith.addf %149, %151 : vector<1x128xf32>
    %c0_100 = arith.constant 0 : index
    %c0_101 = arith.constant 0 : index
    %c0_102 = arith.constant 0 : index
    %153 = vector.load %arg6[%c0_100, %c0_101, %c0_102] : memref<1x1x128xf32, #tpu.memory_space<vmem>>, vector<1x1x128xf32>
    %154 = vector.shape_cast %153 : vector<1x1x128xf32> to vector<1x128xf32>
    %155 = vector.shape_cast %152 : vector<1x128xf32> to vector<1x1x128xf32>
    tpu.vector_store %arg6[%c0_100, %c0_101, %c0_102], %155 {strides = array<i32>} : memref<1x1x128xf32, #tpu.memory_space<vmem>>, vector<1x1x128xf32>,
    %c0_103 = arith.constant 0 : index
    %c0_104 = arith.constant 0 : index
    %c0_105 = arith.constant 0 : index
    %156 = vector.load %arg7[%c0_103, %c0_104, %c0_105] : memref<1x1x128xf32, #tpu.memory_space<vmem>>, vector<1x1x128xf32>
    %157 = vector.shape_cast %156 : vector<1x1x128xf32> to vector<1x128xf32>
    %158 = arith.mulf %141, %141 : vector<64x128xf32>
    %cst_106 = arith.constant dense<0.000000e+00> : vector<128xf32>
    %159 = vector.multi_reduction <add>, %158, %cst_106 [0] : vector<64x128xf32> to vector<128xf32>
    %160 = vector.shape_cast %159 : vector<128xf32> to vector<1x128xf32>
    %161 = arith.addf %157, %160 : vector<1x128xf32>
    %c0_107 = arith.constant 0 : index
    %c0_108 = arith.constant 0 : index
    %c0_109 = arith.constant 0 : index
    %162 = vector.load %arg7[%c0_107, %c0_108, %c0_109] : memref<1x1x128xf32, #tpu.memory_space<vmem>>, vector<1x1x128xf32>
    %163 = vector.shape_cast %162 : vector<1x1x128xf32> to vector<1x128xf32>
    %164 = vector.shape_cast %161 : vector<1x128xf32> to vector<1x1x128xf32>
    tpu.vector_store %arg7[%c0_107, %c0_108, %c0_109], %164 {strides = array<i32>} : memref<1x1x128xf32, #tpu.memory_space<vmem>>, vector<1x1x128xf32>,
    %c1_i32_110 = arith.constant 1 : i32
    return
  }
  func.func @transform_0(%arg0: i32) -> (i32, i32, i32, i32) {
    %c0_i32 = arith.constant 0 : i32
    %c0_i32_0 = arith.constant 0 : i32
    %c0_i32_1 = arith.constant 0 : i32
    %c0_i32_2 = arith.constant 0 : i32
    return %arg0, %c0_i32, %c0_i32_0, %c0_i32_1 : i32, i32, i32, i32
  }
  func.func @transform_1(%arg0: i32) -> (i32, i32, i32, i32) {
    %c0_i32 = arith.constant 0 : i32
    %c0_i32_0 = arith.constant 0 : i32
    %c0_i32_1 = arith.constant 0 : i32
    %c0_i32_2 = arith.constant 0 : i32
    return %arg0, %c0_i32, %c0_i32_0, %c0_i32_1 : i32, i32, i32, i32
  }
  func.func @transform_2(%arg0: i32) -> (i32, i32, i32) {
    %c0_i32 = arith.constant 0 : i32
    %c0_i32_0 = arith.constant 0 : i32
    %c0_i32_1 = arith.constant 0 : i32
    %c0_i32_2 = arith.constant 0 : i32
    return %c0_i32, %c0_i32_0, %c0_i32_1 : i32, i32, i32
  }
  func.func @transform_3(%arg0: i32) -> (i32, i32, i32) {
    %c0_i32 = arith.constant 0 : i32
    %c0_i32_0 = arith.constant 0 : i32
    %c0_i32_1 = arith.constant 0 : i32
    %c0_i32_2 = arith.constant 0 : i32
    return %c0_i32, %c0_i32_0, %c0_i32_1 : i32, i32, i32
  }
  func.func @transform_4(%arg0: i32) -> (i32, i32, i32) {
    %c0_i32 = arith.constant 0 : i32
    %c0_i32_0 = arith.constant 0 : i32
    %c0_i32_1 = arith.constant 0 : i32
    return %arg0, %c0_i32, %c0_i32_0 : i32, i32, i32
  }
  func.func @transform_5(%arg0: i32) -> (i32, i32, i32) {
    %c0_i32 = arith.constant 0 : i32
    %c0_i32_0 = arith.constant 0 : i32
    %c0_i32_1 = arith.constant 0 : i32
    return %arg0, %c0_i32, %c0_i32_0 : i32, i32, i32
  }
  func.func @transform_6(%arg0: i32) -> (i32, i32, i32) {
    %c0_i32 = arith.constant 0 : i32
    %c0_i32_0 = arith.constant 0 : i32
    %c0_i32_1 = arith.constant 0 : i32
    return %arg0, %c0_i32, %c0_i32_0 : i32, i32, i32
  }
}

module attributes {stable_mosaic.version = 11 : i64} {
  func.func @_conv3x3_kernel(%arg0: i32, %arg1: memref<1x18x18x32xbf16, #tpu.memory_space<vmem>>, %arg2: memref<1x18x18x32xbf16, #tpu.memory_space<vmem>>, %arg3: memref<9x32x128xbf16, #tpu.memory_space<vmem>>, %arg4: memref<9x32x128xbf16, #tpu.memory_space<vmem>>, %arg5: memref<1x256x128xf32, #tpu.memory_space<vmem>>, %arg6: memref<1x1x128xf32, #tpu.memory_space<vmem>>, %arg7: memref<1x1x128xf32, #tpu.memory_space<vmem>>) attributes {dimension_semantics = [#tpu.dimension_semantics<parallel>], iteration_bounds = array<i64: 2>, scalar_prefetch = 0 : i64, scratch_operands = 0 : i64, tpu.core_type = #tpu.core_type<tc>, window_params = [{transform_indices = @transform_0, window_bounds = array<i64: 1, 18, 18, 32>}, {transform_indices = @transform_1, window_bounds = array<i64: 1, 18, 18, 32>}, {pipeline_mode = #tpu.pipeline_mode<synchronous>, transform_indices = @transform_2, window_bounds = array<i64: 9, 32, 128>}, {pipeline_mode = #tpu.pipeline_mode<synchronous>, transform_indices = @transform_3, window_bounds = array<i64: 9, 32, 128>}, {transform_indices = @transform_4, window_bounds = array<i64: 1, 256, 128>}, {transform_indices = @transform_5, window_bounds = array<i64: 1, 1, 128>}, {transform_indices = @transform_6, window_bounds = array<i64: 1, 1, 128>}]} {
    %cst = arith.constant 0.000000e+00 : f32
    %0 = vector.broadcast %cst : f32 to vector<1x128xf32>
    %c0 = arith.constant 0 : index
    %c0_0 = arith.constant 0 : index
    %c0_1 = arith.constant 0 : index
    %1 = vector.load %arg6[%c0, %c0_0, %c0_1] : memref<1x1x128xf32, #tpu.memory_space<vmem>>, vector<1x1x128xf32>
    %2 = vector.shape_cast %1 : vector<1x1x128xf32> to vector<1x128xf32>
    %3 = vector.shape_cast %0 : vector<1x128xf32> to vector<1x1x128xf32>
    tpu.vector_store %arg6[%c0, %c0_0, %c0_1], %3 {strides = array<i32>} : memref<1x1x128xf32, #tpu.memory_space<vmem>>, vector<1x1x128xf32>,
    %cst_2 = arith.constant 0.000000e+00 : f32
    %4 = vector.broadcast %cst_2 : f32 to vector<1x128xf32>
    %c0_3 = arith.constant 0 : index
    %c0_4 = arith.constant 0 : index
    %c0_5 = arith.constant 0 : index
    %5 = vector.load %arg7[%c0_3, %c0_4, %c0_5] : memref<1x1x128xf32, #tpu.memory_space<vmem>>, vector<1x1x128xf32>
    %6 = vector.shape_cast %5 : vector<1x1x128xf32> to vector<1x128xf32>
    %7 = vector.shape_cast %4 : vector<1x128xf32> to vector<1x1x128xf32>
    tpu.vector_store %arg7[%c0_3, %c0_4, %c0_5], %7 {strides = array<i32>} : memref<1x1x128xf32, #tpu.memory_space<vmem>>, vector<1x1x128xf32>,
    %c0_i32 = arith.constant 0 : i32
    %c2_i32 = arith.constant 2 : i32
    %8 = arith.addi %c0_i32, %c2_i32 : i32
    %c1_i32 = arith.constant 1 : i32
    scf.for %arg8 = %c0_i32 to %8 step %c1_i32  : i32 {
      %c8_i32 = arith.constant 8 : i32
      %9 = arith.muli %arg8, %c8_i32 : i32
      %cst_7 = arith.constant 0.000000e+00 : f32
      %10 = vector.broadcast %cst_7 : f32 to vector<128x128xf32>
      %c0_i32_8 = arith.constant 0 : i32
      %11 = arith.addi %9, %c0_i32_8 : i32
      %c0_9 = arith.constant 0 : index
      %12 = arith.index_cast %11 : i32 to index
      %c0_10 = arith.constant 0 : index
      %c0_11 = arith.constant 0 : index
      %13 = vector.load %arg1[%c0_9, %12, %c0_10, %c0_11] : memref<1x18x18x32xbf16, #tpu.memory_space<vmem>>, vector<1x8x18x32xbf16>
      %14 = vector.shape_cast %13 : vector<1x8x18x32xbf16> to vector<8x18x32xbf16>
      %c0_i32_12 = arith.constant 0 : i32
      %15 = arith.addi %9, %c0_i32_12 : i32
      %c0_13 = arith.constant 0 : index
      %16 = arith.index_cast %15 : i32 to index
      %c0_14 = arith.constant 0 : index
      %c0_15 = arith.constant 0 : index
      %17 = vector.load %arg2[%c0_13, %16, %c0_14, %c0_15] : memref<1x18x18x32xbf16, #tpu.memory_space<vmem>>, vector<1x8x18x32xbf16>
      %18 = vector.shape_cast %17 : vector<1x8x18x32xbf16> to vector<8x18x32xbf16>
      %19 = vector.extract_strided_slice %14 {offsets = [0, 0, 0], sizes = [8, 16, 32], strides = [1, 1, 1]} : vector<8x18x32xbf16> to vector<8x16x32xbf16>
      %20 = vector.shape_cast %19 : vector<8x16x32xbf16> to vector<128x32xbf16>
      %c0_16 = arith.constant 0 : index
      %c0_17 = arith.constant 0 : index
      %c0_18 = arith.constant 0 : index
      %21 = vector.load %arg3[%c0_16, %c0_17, %c0_18] : memref<9x32x128xbf16, #tpu.memory_space<vmem>>, vector<1x32x128xbf16>
      %22 = vector.shape_cast %21 : vector<1x32x128xbf16> to vector<32x128xbf16>
      %cst_19 = arith.constant dense<0.000000e+00> : vector<128x128xf32>
      %23 = tpu.matmul %20, %22, %cst_19 {dimension_numbers = #tpu.dot_dimension_numbers<[1], [0], [0], [1], [0, 0, 1, 1], [], []>} : vector<128x32xbf16>, vector<32x128xbf16>, vector<128x128xf32> -> vector<128x128xf32>
      %24 = arith.addf %10, %23 : vector<128x128xf32>
      %25 = vector.extract_strided_slice %18 {offsets = [0, 0, 0], sizes = [8, 16, 32], strides = [1, 1, 1]} : vector<8x18x32xbf16> to vector<8x16x32xbf16>
      %26 = vector.shape_cast %25 : vector<8x16x32xbf16> to vector<128x32xbf16>
      %c0_20 = arith.constant 0 : index
      %c0_21 = arith.constant 0 : index
      %c0_22 = arith.constant 0 : index
      %27 = vector.load %arg4[%c0_20, %c0_21, %c0_22] : memref<9x32x128xbf16, #tpu.memory_space<vmem>>, vector<1x32x128xbf16>
      %28 = vector.shape_cast %27 : vector<1x32x128xbf16> to vector<32x128xbf16>
      %cst_23 = arith.constant dense<0.000000e+00> : vector<128x128xf32>
      %29 = tpu.matmul %26, %28, %cst_23 {dimension_numbers = #tpu.dot_dimension_numbers<[1], [0], [0], [1], [0, 0, 1, 1], [], []>} : vector<128x32xbf16>, vector<32x128xbf16>, vector<128x128xf32> -> vector<128x128xf32>
      %30 = arith.addf %24, %29 : vector<128x128xf32>
      %31 = vector.extract_strided_slice %14 {offsets = [0, 1, 0], sizes = [8, 16, 32], strides = [1, 1, 1]} : vector<8x18x32xbf16> to vector<8x16x32xbf16>
      %32 = vector.shape_cast %31 : vector<8x16x32xbf16> to vector<128x32xbf16>
      %c1 = arith.constant 1 : index
      %c0_24 = arith.constant 0 : index
      %c0_25 = arith.constant 0 : index
      %33 = vector.load %arg3[%c1, %c0_24, %c0_25] : memref<9x32x128xbf16, #tpu.memory_space<vmem>>, vector<1x32x128xbf16>
      %34 = vector.shape_cast %33 : vector<1x32x128xbf16> to vector<32x128xbf16>
      %cst_26 = arith.constant dense<0.000000e+00> : vector<128x128xf32>
      %35 = tpu.matmul %32, %34, %cst_26 {dimension_numbers = #tpu.dot_dimension_numbers<[1], [0], [0], [1], [0, 0, 1, 1], [], []>} : vector<128x32xbf16>, vector<32x128xbf16>, vector<128x128xf32> -> vector<128x128xf32>
      %36 = arith.addf %30, %35 : vector<128x128xf32>
      %37 = vector.extract_strided_slice %18 {offsets = [0, 1, 0], sizes = [8, 16, 32], strides = [1, 1, 1]} : vector<8x18x32xbf16> to vector<8x16x32xbf16>
      %38 = vector.shape_cast %37 : vector<8x16x32xbf16> to vector<128x32xbf16>
      %c1_27 = arith.constant 1 : index
      %c0_28 = arith.constant 0 : index
      %c0_29 = arith.constant 0 : index
      %39 = vector.load %arg4[%c1_27, %c0_28, %c0_29] : memref<9x32x128xbf16, #tpu.memory_space<vmem>>, vector<1x32x128xbf16>
      %40 = vector.shape_cast %39 : vector<1x32x128xbf16> to vector<32x128xbf16>
      %cst_30 = arith.constant dense<0.000000e+00> : vector<128x128xf32>
      %41 = tpu.matmul %38, %40, %cst_30 {dimension_numbers = #tpu.dot_dimension_numbers<[1], [0], [0], [1], [0, 0, 1, 1], [], []>} : vector<128x32xbf16>, vector<32x128xbf16>, vector<128x128xf32> -> vector<128x128xf32>
      %42 = arith.addf %36, %41 : vector<128x128xf32>
      %43 = vector.extract_strided_slice %14 {offsets = [0, 2, 0], sizes = [8, 16, 32], strides = [1, 1, 1]} : vector<8x18x32xbf16> to vector<8x16x32xbf16>
      %44 = vector.shape_cast %43 : vector<8x16x32xbf16> to vector<128x32xbf16>
      %c2 = arith.constant 2 : index
      %c0_31 = arith.constant 0 : index
      %c0_32 = arith.constant 0 : index
      %45 = vector.load %arg3[%c2, %c0_31, %c0_32] : memref<9x32x128xbf16, #tpu.memory_space<vmem>>, vector<1x32x128xbf16>
      %46 = vector.shape_cast %45 : vector<1x32x128xbf16> to vector<32x128xbf16>
      %cst_33 = arith.constant dense<0.000000e+00> : vector<128x128xf32>
      %47 = tpu.matmul %44, %46, %cst_33 {dimension_numbers = #tpu.dot_dimension_numbers<[1], [0], [0], [1], [0, 0, 1, 1], [], []>} : vector<128x32xbf16>, vector<32x128xbf16>, vector<128x128xf32> -> vector<128x128xf32>
      %48 = arith.addf %42, %47 : vector<128x128xf32>
      %49 = vector.extract_strided_slice %18 {offsets = [0, 2, 0], sizes = [8, 16, 32], strides = [1, 1, 1]} : vector<8x18x32xbf16> to vector<8x16x32xbf16>
      %50 = vector.shape_cast %49 : vector<8x16x32xbf16> to vector<128x32xbf16>
      %c2_34 = arith.constant 2 : index
      %c0_35 = arith.constant 0 : index
      %c0_36 = arith.constant 0 : index
      %51 = vector.load %arg4[%c2_34, %c0_35, %c0_36] : memref<9x32x128xbf16, #tpu.memory_space<vmem>>, vector<1x32x128xbf16>
      %52 = vector.shape_cast %51 : vector<1x32x128xbf16> to vector<32x128xbf16>
      %cst_37 = arith.constant dense<0.000000e+00> : vector<128x128xf32>
      %53 = tpu.matmul %50, %52, %cst_37 {dimension_numbers = #tpu.dot_dimension_numbers<[1], [0], [0], [1], [0, 0, 1, 1], [], []>} : vector<128x32xbf16>, vector<32x128xbf16>, vector<128x128xf32> -> vector<128x128xf32>
      %54 = arith.addf %48, %53 : vector<128x128xf32>
      %c1_i32_38 = arith.constant 1 : i32
      %55 = arith.addi %9, %c1_i32_38 : i32
      %c0_39 = arith.constant 0 : index
      %56 = arith.index_cast %55 : i32 to index
      %c0_40 = arith.constant 0 : index
      %c0_41 = arith.constant 0 : index
      %57 = vector.load %arg1[%c0_39, %56, %c0_40, %c0_41] : memref<1x18x18x32xbf16, #tpu.memory_space<vmem>>, vector<1x8x18x32xbf16>
      %58 = vector.shape_cast %57 : vector<1x8x18x32xbf16> to vector<8x18x32xbf16>
      %c1_i32_42 = arith.constant 1 : i32
      %59 = arith.addi %9, %c1_i32_42 : i32
      %c0_43 = arith.constant 0 : index
      %60 = arith.index_cast %59 : i32 to index
      %c0_44 = arith.constant 0 : index
      %c0_45 = arith.constant 0 : index
      %61 = vector.load %arg2[%c0_43, %60, %c0_44, %c0_45] : memref<1x18x18x32xbf16, #tpu.memory_space<vmem>>, vector<1x8x18x32xbf16>
      %62 = vector.shape_cast %61 : vector<1x8x18x32xbf16> to vector<8x18x32xbf16>
      %63 = vector.extract_strided_slice %58 {offsets = [0, 0, 0], sizes = [8, 16, 32], strides = [1, 1, 1]} : vector<8x18x32xbf16> to vector<8x16x32xbf16>
      %64 = vector.shape_cast %63 : vector<8x16x32xbf16> to vector<128x32xbf16>
      %c3 = arith.constant 3 : index
      %c0_46 = arith.constant 0 : index
      %c0_47 = arith.constant 0 : index
      %65 = vector.load %arg3[%c3, %c0_46, %c0_47] : memref<9x32x128xbf16, #tpu.memory_space<vmem>>, vector<1x32x128xbf16>
      %66 = vector.shape_cast %65 : vector<1x32x128xbf16> to vector<32x128xbf16>
      %cst_48 = arith.constant dense<0.000000e+00> : vector<128x128xf32>
      %67 = tpu.matmul %64, %66, %cst_48 {dimension_numbers = #tpu.dot_dimension_numbers<[1], [0], [0], [1], [0, 0, 1, 1], [], []>} : vector<128x32xbf16>, vector<32x128xbf16>, vector<128x128xf32> -> vector<128x128xf32>
      %68 = arith.addf %54, %67 : vector<128x128xf32>
      %69 = vector.extract_strided_slice %62 {offsets = [0, 0, 0], sizes = [8, 16, 32], strides = [1, 1, 1]} : vector<8x18x32xbf16> to vector<8x16x32xbf16>
      %70 = vector.shape_cast %69 : vector<8x16x32xbf16> to vector<128x32xbf16>
      %c3_49 = arith.constant 3 : index
      %c0_50 = arith.constant 0 : index
      %c0_51 = arith.constant 0 : index
      %71 = vector.load %arg4[%c3_49, %c0_50, %c0_51] : memref<9x32x128xbf16, #tpu.memory_space<vmem>>, vector<1x32x128xbf16>
      %72 = vector.shape_cast %71 : vector<1x32x128xbf16> to vector<32x128xbf16>
      %cst_52 = arith.constant dense<0.000000e+00> : vector<128x128xf32>
      %73 = tpu.matmul %70, %72, %cst_52 {dimension_numbers = #tpu.dot_dimension_numbers<[1], [0], [0], [1], [0, 0, 1, 1], [], []>} : vector<128x32xbf16>, vector<32x128xbf16>, vector<128x128xf32> -> vector<128x128xf32>
      %74 = arith.addf %68, %73 : vector<128x128xf32>
      %75 = vector.extract_strided_slice %58 {offsets = [0, 1, 0], sizes = [8, 16, 32], strides = [1, 1, 1]} : vector<8x18x32xbf16> to vector<8x16x32xbf16>
      %76 = vector.shape_cast %75 : vector<8x16x32xbf16> to vector<128x32xbf16>
      %c4 = arith.constant 4 : index
      %c0_53 = arith.constant 0 : index
      %c0_54 = arith.constant 0 : index
      %77 = vector.load %arg3[%c4, %c0_53, %c0_54] : memref<9x32x128xbf16, #tpu.memory_space<vmem>>, vector<1x32x128xbf16>
      %78 = vector.shape_cast %77 : vector<1x32x128xbf16> to vector<32x128xbf16>
      %cst_55 = arith.constant dense<0.000000e+00> : vector<128x128xf32>
      %79 = tpu.matmul %76, %78, %cst_55 {dimension_numbers = #tpu.dot_dimension_numbers<[1], [0], [0], [1], [0, 0, 1, 1], [], []>} : vector<128x32xbf16>, vector<32x128xbf16>, vector<128x128xf32> -> vector<128x128xf32>
      %80 = arith.addf %74, %79 : vector<128x128xf32>
      %81 = vector.extract_strided_slice %62 {offsets = [0, 1, 0], sizes = [8, 16, 32], strides = [1, 1, 1]} : vector<8x18x32xbf16> to vector<8x16x32xbf16>
      %82 = vector.shape_cast %81 : vector<8x16x32xbf16> to vector<128x32xbf16>
      %c4_56 = arith.constant 4 : index
      %c0_57 = arith.constant 0 : index
      %c0_58 = arith.constant 0 : index
      %83 = vector.load %arg4[%c4_56, %c0_57, %c0_58] : memref<9x32x128xbf16, #tpu.memory_space<vmem>>, vector<1x32x128xbf16>
      %84 = vector.shape_cast %83 : vector<1x32x128xbf16> to vector<32x128xbf16>
      %cst_59 = arith.constant dense<0.000000e+00> : vector<128x128xf32>
      %85 = tpu.matmul %82, %84, %cst_59 {dimension_numbers = #tpu.dot_dimension_numbers<[1], [0], [0], [1], [0, 0, 1, 1], [], []>} : vector<128x32xbf16>, vector<32x128xbf16>, vector<128x128xf32> -> vector<128x128xf32>
      %86 = arith.addf %80, %85 : vector<128x128xf32>
      %87 = vector.extract_strided_slice %58 {offsets = [0, 2, 0], sizes = [8, 16, 32], strides = [1, 1, 1]} : vector<8x18x32xbf16> to vector<8x16x32xbf16>
      %88 = vector.shape_cast %87 : vector<8x16x32xbf16> to vector<128x32xbf16>
      %c5 = arith.constant 5 : index
      %c0_60 = arith.constant 0 : index
      %c0_61 = arith.constant 0 : index
      %89 = vector.load %arg3[%c5, %c0_60, %c0_61] : memref<9x32x128xbf16, #tpu.memory_space<vmem>>, vector<1x32x128xbf16>
      %90 = vector.shape_cast %89 : vector<1x32x128xbf16> to vector<32x128xbf16>
      %cst_62 = arith.constant dense<0.000000e+00> : vector<128x128xf32>
      %91 = tpu.matmul %88, %90, %cst_62 {dimension_numbers = #tpu.dot_dimension_numbers<[1], [0], [0], [1], [0, 0, 1, 1], [], []>} : vector<128x32xbf16>, vector<32x128xbf16>, vector<128x128xf32> -> vector<128x128xf32>
      %92 = arith.addf %86, %91 : vector<128x128xf32>
      %93 = vector.extract_strided_slice %62 {offsets = [0, 2, 0], sizes = [8, 16, 32], strides = [1, 1, 1]} : vector<8x18x32xbf16> to vector<8x16x32xbf16>
      %94 = vector.shape_cast %93 : vector<8x16x32xbf16> to vector<128x32xbf16>
      %c5_63 = arith.constant 5 : index
      %c0_64 = arith.constant 0 : index
      %c0_65 = arith.constant 0 : index
      %95 = vector.load %arg4[%c5_63, %c0_64, %c0_65] : memref<9x32x128xbf16, #tpu.memory_space<vmem>>, vector<1x32x128xbf16>
      %96 = vector.shape_cast %95 : vector<1x32x128xbf16> to vector<32x128xbf16>
      %cst_66 = arith.constant dense<0.000000e+00> : vector<128x128xf32>
      %97 = tpu.matmul %94, %96, %cst_66 {dimension_numbers = #tpu.dot_dimension_numbers<[1], [0], [0], [1], [0, 0, 1, 1], [], []>} : vector<128x32xbf16>, vector<32x128xbf16>, vector<128x128xf32> -> vector<128x128xf32>
      %98 = arith.addf %92, %97 : vector<128x128xf32>
      %c2_i32_67 = arith.constant 2 : i32
      %99 = arith.addi %9, %c2_i32_67 : i32
      %c0_68 = arith.constant 0 : index
      %100 = arith.index_cast %99 : i32 to index
      %c0_69 = arith.constant 0 : index
      %c0_70 = arith.constant 0 : index
      %101 = vector.load %arg1[%c0_68, %100, %c0_69, %c0_70] : memref<1x18x18x32xbf16, #tpu.memory_space<vmem>>, vector<1x8x18x32xbf16>
      %102 = vector.shape_cast %101 : vector<1x8x18x32xbf16> to vector<8x18x32xbf16>
      %c2_i32_71 = arith.constant 2 : i32
      %103 = arith.addi %9, %c2_i32_71 : i32
      %c0_72 = arith.constant 0 : index
      %104 = arith.index_cast %103 : i32 to index
      %c0_73 = arith.constant 0 : index
      %c0_74 = arith.constant 0 : index
      %105 = vector.load %arg2[%c0_72, %104, %c0_73, %c0_74] : memref<1x18x18x32xbf16, #tpu.memory_space<vmem>>, vector<1x8x18x32xbf16>
      %106 = vector.shape_cast %105 : vector<1x8x18x32xbf16> to vector<8x18x32xbf16>
      %107 = vector.extract_strided_slice %102 {offsets = [0, 0, 0], sizes = [8, 16, 32], strides = [1, 1, 1]} : vector<8x18x32xbf16> to vector<8x16x32xbf16>
      %108 = vector.shape_cast %107 : vector<8x16x32xbf16> to vector<128x32xbf16>
      %c6 = arith.constant 6 : index
      %c0_75 = arith.constant 0 : index
      %c0_76 = arith.constant 0 : index
      %109 = vector.load %arg3[%c6, %c0_75, %c0_76] : memref<9x32x128xbf16, #tpu.memory_space<vmem>>, vector<1x32x128xbf16>
      %110 = vector.shape_cast %109 : vector<1x32x128xbf16> to vector<32x128xbf16>
      %cst_77 = arith.constant dense<0.000000e+00> : vector<128x128xf32>
      %111 = tpu.matmul %108, %110, %cst_77 {dimension_numbers = #tpu.dot_dimension_numbers<[1], [0], [0], [1], [0, 0, 1, 1], [], []>} : vector<128x32xbf16>, vector<32x128xbf16>, vector<128x128xf32> -> vector<128x128xf32>
      %112 = arith.addf %98, %111 : vector<128x128xf32>
      %113 = vector.extract_strided_slice %106 {offsets = [0, 0, 0], sizes = [8, 16, 32], strides = [1, 1, 1]} : vector<8x18x32xbf16> to vector<8x16x32xbf16>
      %114 = vector.shape_cast %113 : vector<8x16x32xbf16> to vector<128x32xbf16>
      %c6_78 = arith.constant 6 : index
      %c0_79 = arith.constant 0 : index
      %c0_80 = arith.constant 0 : index
      %115 = vector.load %arg4[%c6_78, %c0_79, %c0_80] : memref<9x32x128xbf16, #tpu.memory_space<vmem>>, vector<1x32x128xbf16>
      %116 = vector.shape_cast %115 : vector<1x32x128xbf16> to vector<32x128xbf16>
      %cst_81 = arith.constant dense<0.000000e+00> : vector<128x128xf32>
      %117 = tpu.matmul %114, %116, %cst_81 {dimension_numbers = #tpu.dot_dimension_numbers<[1], [0], [0], [1], [0, 0, 1, 1], [], []>} : vector<128x32xbf16>, vector<32x128xbf16>, vector<128x128xf32> -> vector<128x128xf32>
      %118 = arith.addf %112, %117 : vector<128x128xf32>
      %119 = vector.extract_strided_slice %102 {offsets = [0, 1, 0], sizes = [8, 16, 32], strides = [1, 1, 1]} : vector<8x18x32xbf16> to vector<8x16x32xbf16>
      %120 = vector.shape_cast %119 : vector<8x16x32xbf16> to vector<128x32xbf16>
      %c7 = arith.constant 7 : index
      %c0_82 = arith.constant 0 : index
      %c0_83 = arith.constant 0 : index
      %121 = vector.load %arg3[%c7, %c0_82, %c0_83] : memref<9x32x128xbf16, #tpu.memory_space<vmem>>, vector<1x32x128xbf16>
      %122 = vector.shape_cast %121 : vector<1x32x128xbf16> to vector<32x128xbf16>
      %cst_84 = arith.constant dense<0.000000e+00> : vector<128x128xf32>
      %123 = tpu.matmul %120, %122, %cst_84 {dimension_numbers = #tpu.dot_dimension_numbers<[1], [0], [0], [1], [0, 0, 1, 1], [], []>} : vector<128x32xbf16>, vector<32x128xbf16>, vector<128x128xf32> -> vector<128x128xf32>
      %124 = arith.addf %118, %123 : vector<128x128xf32>
      %125 = vector.extract_strided_slice %106 {offsets = [0, 1, 0], sizes = [8, 16, 32], strides = [1, 1, 1]} : vector<8x18x32xbf16> to vector<8x16x32xbf16>
      %126 = vector.shape_cast %125 : vector<8x16x32xbf16> to vector<128x32xbf16>
      %c7_85 = arith.constant 7 : index
      %c0_86 = arith.constant 0 : index
      %c0_87 = arith.constant 0 : index
      %127 = vector.load %arg4[%c7_85, %c0_86, %c0_87] : memref<9x32x128xbf16, #tpu.memory_space<vmem>>, vector<1x32x128xbf16>
      %128 = vector.shape_cast %127 : vector<1x32x128xbf16> to vector<32x128xbf16>
      %cst_88 = arith.constant dense<0.000000e+00> : vector<128x128xf32>
      %129 = tpu.matmul %126, %128, %cst_88 {dimension_numbers = #tpu.dot_dimension_numbers<[1], [0], [0], [1], [0, 0, 1, 1], [], []>} : vector<128x32xbf16>, vector<32x128xbf16>, vector<128x128xf32> -> vector<128x128xf32>
      %130 = arith.addf %124, %129 : vector<128x128xf32>
      %131 = vector.extract_strided_slice %102 {offsets = [0, 2, 0], sizes = [8, 16, 32], strides = [1, 1, 1]} : vector<8x18x32xbf16> to vector<8x16x32xbf16>
      %132 = vector.shape_cast %131 : vector<8x16x32xbf16> to vector<128x32xbf16>
      %c8 = arith.constant 8 : index
      %c0_89 = arith.constant 0 : index
      %c0_90 = arith.constant 0 : index
      %133 = vector.load %arg3[%c8, %c0_89, %c0_90] : memref<9x32x128xbf16, #tpu.memory_space<vmem>>, vector<1x32x128xbf16>
      %134 = vector.shape_cast %133 : vector<1x32x128xbf16> to vector<32x128xbf16>
      %cst_91 = arith.constant dense<0.000000e+00> : vector<128x128xf32>
      %135 = tpu.matmul %132, %134, %cst_91 {dimension_numbers = #tpu.dot_dimension_numbers<[1], [0], [0], [1], [0, 0, 1, 1], [], []>} : vector<128x32xbf16>, vector<32x128xbf16>, vector<128x128xf32> -> vector<128x128xf32>
      %136 = arith.addf %130, %135 : vector<128x128xf32>
      %137 = vector.extract_strided_slice %106 {offsets = [0, 2, 0], sizes = [8, 16, 32], strides = [1, 1, 1]} : vector<8x18x32xbf16> to vector<8x16x32xbf16>
      %138 = vector.shape_cast %137 : vector<8x16x32xbf16> to vector<128x32xbf16>
      %c8_92 = arith.constant 8 : index
      %c0_93 = arith.constant 0 : index
      %c0_94 = arith.constant 0 : index
      %139 = vector.load %arg4[%c8_92, %c0_93, %c0_94] : memref<9x32x128xbf16, #tpu.memory_space<vmem>>, vector<1x32x128xbf16>
      %140 = vector.shape_cast %139 : vector<1x32x128xbf16> to vector<32x128xbf16>
      %cst_95 = arith.constant dense<0.000000e+00> : vector<128x128xf32>
      %141 = tpu.matmul %138, %140, %cst_95 {dimension_numbers = #tpu.dot_dimension_numbers<[1], [0], [0], [1], [0, 0, 1, 1], [], []>} : vector<128x32xbf16>, vector<32x128xbf16>, vector<128x128xf32> -> vector<128x128xf32>
      %142 = arith.addf %136, %141 : vector<128x128xf32>
      %c16_i32 = arith.constant 16 : i32
      %143 = arith.muli %9, %c16_i32 : i32
      %144 = tpu.assume_multiple %143, 128 : i32
      %c0_96 = arith.constant 0 : index
      %145 = arith.index_cast %144 : i32 to index
      %c0_97 = arith.constant 0 : index
      %146 = vector.load %arg5[%c0_96, %145, %c0_97] : memref<1x256x128xf32, #tpu.memory_space<vmem>>, vector<1x128x128xf32>
      %147 = vector.shape_cast %146 : vector<1x128x128xf32> to vector<128x128xf32>
      %148 = vector.shape_cast %142 : vector<128x128xf32> to vector<1x128x128xf32>
      tpu.vector_store %arg5[%c0_96, %145, %c0_97], %148 {strides = array<i32>} : memref<1x256x128xf32, #tpu.memory_space<vmem>>, vector<1x128x128xf32>,
      %c0_98 = arith.constant 0 : index
      %c0_99 = arith.constant 0 : index
      %c0_100 = arith.constant 0 : index
      %149 = vector.load %arg6[%c0_98, %c0_99, %c0_100] : memref<1x1x128xf32, #tpu.memory_space<vmem>>, vector<1x1x128xf32>
      %150 = vector.shape_cast %149 : vector<1x1x128xf32> to vector<1x128xf32>
      %cst_101 = arith.constant dense<0.000000e+00> : vector<128xf32>
      %151 = vector.multi_reduction <add>, %142, %cst_101 [0] : vector<128x128xf32> to vector<128xf32>
      %152 = vector.shape_cast %151 : vector<128xf32> to vector<1x128xf32>
      %153 = arith.addf %150, %152 : vector<1x128xf32>
      %c0_102 = arith.constant 0 : index
      %c0_103 = arith.constant 0 : index
      %c0_104 = arith.constant 0 : index
      %154 = vector.load %arg6[%c0_102, %c0_103, %c0_104] : memref<1x1x128xf32, #tpu.memory_space<vmem>>, vector<1x1x128xf32>
      %155 = vector.shape_cast %154 : vector<1x1x128xf32> to vector<1x128xf32>
      %156 = vector.shape_cast %153 : vector<1x128xf32> to vector<1x1x128xf32>
      tpu.vector_store %arg6[%c0_102, %c0_103, %c0_104], %156 {strides = array<i32>} : memref<1x1x128xf32, #tpu.memory_space<vmem>>, vector<1x1x128xf32>,
      %c0_105 = arith.constant 0 : index
      %c0_106 = arith.constant 0 : index
      %c0_107 = arith.constant 0 : index
      %157 = vector.load %arg7[%c0_105, %c0_106, %c0_107] : memref<1x1x128xf32, #tpu.memory_space<vmem>>, vector<1x1x128xf32>
      %158 = vector.shape_cast %157 : vector<1x1x128xf32> to vector<1x128xf32>
      %159 = arith.mulf %142, %142 : vector<128x128xf32>
      %cst_108 = arith.constant dense<0.000000e+00> : vector<128xf32>
      %160 = vector.multi_reduction <add>, %159, %cst_108 [0] : vector<128x128xf32> to vector<128xf32>
      %161 = vector.shape_cast %160 : vector<128xf32> to vector<1x128xf32>
      %162 = arith.addf %158, %161 : vector<1x128xf32>
      %c0_109 = arith.constant 0 : index
      %c0_110 = arith.constant 0 : index
      %c0_111 = arith.constant 0 : index
      %163 = vector.load %arg7[%c0_109, %c0_110, %c0_111] : memref<1x1x128xf32, #tpu.memory_space<vmem>>, vector<1x1x128xf32>
      %164 = vector.shape_cast %163 : vector<1x1x128xf32> to vector<1x128xf32>
      %165 = vector.shape_cast %162 : vector<1x128xf32> to vector<1x1x128xf32>
      tpu.vector_store %arg7[%c0_109, %c0_110, %c0_111], %165 {strides = array<i32>} : memref<1x1x128xf32, #tpu.memory_space<vmem>>, vector<1x1x128xf32>,
    }
    %c2_i32_6 = arith.constant 2 : i32
    return
  }
  func.func @transform_0(%arg0: i32) -> (i32, i32, i32, i32) {
    %c0_i32 = arith.constant 0 : i32
    %c0_i32_0 = arith.constant 0 : i32
    %c0_i32_1 = arith.constant 0 : i32
    %c0_i32_2 = arith.constant 0 : i32
    return %arg0, %c0_i32, %c0_i32_0, %c0_i32_1 : i32, i32, i32, i32
  }
  func.func @transform_1(%arg0: i32) -> (i32, i32, i32, i32) {
    %c0_i32 = arith.constant 0 : i32
    %c0_i32_0 = arith.constant 0 : i32
    %c0_i32_1 = arith.constant 0 : i32
    %c0_i32_2 = arith.constant 0 : i32
    return %arg0, %c0_i32, %c0_i32_0, %c0_i32_1 : i32, i32, i32, i32
  }
  func.func @transform_2(%arg0: i32) -> (i32, i32, i32) {
    %c0_i32 = arith.constant 0 : i32
    %c0_i32_0 = arith.constant 0 : i32
    %c0_i32_1 = arith.constant 0 : i32
    %c0_i32_2 = arith.constant 0 : i32
    return %c0_i32, %c0_i32_0, %c0_i32_1 : i32, i32, i32
  }
  func.func @transform_3(%arg0: i32) -> (i32, i32, i32) {
    %c0_i32 = arith.constant 0 : i32
    %c0_i32_0 = arith.constant 0 : i32
    %c0_i32_1 = arith.constant 0 : i32
    %c0_i32_2 = arith.constant 0 : i32
    return %c0_i32, %c0_i32_0, %c0_i32_1 : i32, i32, i32
  }
  func.func @transform_4(%arg0: i32) -> (i32, i32, i32) {
    %c0_i32 = arith.constant 0 : i32
    %c0_i32_0 = arith.constant 0 : i32
    %c0_i32_1 = arith.constant 0 : i32
    return %arg0, %c0_i32, %c0_i32_0 : i32, i32, i32
  }
  func.func @transform_5(%arg0: i32) -> (i32, i32, i32) {
    %c0_i32 = arith.constant 0 : i32
    %c0_i32_0 = arith.constant 0 : i32
    %c0_i32_1 = arith.constant 0 : i32
    return %arg0, %c0_i32, %c0_i32_0 : i32, i32, i32
  }
  func.func @transform_6(%arg0: i32) -> (i32, i32, i32) {
    %c0_i32 = arith.constant 0 : i32
    %c0_i32_0 = arith.constant 0 : i32
    %c0_i32_1 = arith.constant 0 : i32
    return %arg0, %c0_i32, %c0_i32_0 : i32, i32, i32
  }
}

module attributes {stable_mosaic.version = 11 : i64} {
  func.func @_gates_kernel(%arg0: i32, %arg1: memref<512x128xf32, #tpu.memory_space<vmem>>, %arg2: memref<512x32xf32, #tpu.memory_space<vmem>>, %arg3: memref<1x128xf32, #tpu.memory_space<vmem>>, %arg4: memref<1x128xf32, #tpu.memory_space<vmem>>, %arg5: memref<512x32xf32, #tpu.memory_space<vmem>>, %arg6: memref<512x32xf32, #tpu.memory_space<vmem>>) attributes {dimension_semantics = [#tpu.dimension_semantics<parallel>], iteration_bounds = array<i64: 1>, scalar_prefetch = 0 : i64, scratch_operands = 0 : i64, tpu.core_type = #tpu.core_type<tc>, window_params = [{transform_indices = @transform_0, window_bounds = array<i64: 512, 128>}, {transform_indices = @transform_1, window_bounds = array<i64: 512, 32>}, {pipeline_mode = #tpu.pipeline_mode<synchronous>, transform_indices = @transform_2, window_bounds = array<i64: 1, 128>}, {pipeline_mode = #tpu.pipeline_mode<synchronous>, transform_indices = @transform_3, window_bounds = array<i64: 1, 128>}, {transform_indices = @transform_4, window_bounds = array<i64: 512, 32>}, {transform_indices = @transform_5, window_bounds = array<i64: 512, 32>}]} {
    %c0 = arith.constant 0 : index
    %c0_0 = arith.constant 0 : index
    %0 = vector.load %arg1[%c0, %c0_0] : memref<512x128xf32, #tpu.memory_space<vmem>>, vector<512x128xf32>
    %c0_1 = arith.constant 0 : index
    %c0_2 = arith.constant 0 : index
    %1 = vector.load %arg3[%c0_1, %c0_2] : memref<1x128xf32, #tpu.memory_space<vmem>>, vector<1x128xf32>
    %2 = vector.broadcast %1 : vector<1x128xf32> to vector<512x128xf32>
    %3 = arith.mulf %0, %2 : vector<512x128xf32>
    %c0_3 = arith.constant 0 : index
    %c0_4 = arith.constant 0 : index
    %4 = vector.load %arg4[%c0_3, %c0_4] : memref<1x128xf32, #tpu.memory_space<vmem>>, vector<1x128xf32>
    %5 = vector.broadcast %4 : vector<1x128xf32> to vector<512x128xf32>
    %6 = arith.addf %3, %5 : vector<512x128xf32>
    %cst = arith.constant 0.000000e+00 : f32
    %7 = vector.broadcast %cst : f32 to vector<512x128xf32>
    %8 = arith.subf %7, %6 : vector<512x128xf32>
    %9 = math.exp %8 : vector<512x128xf32>
    %cst_5 = arith.constant 1.000000e+00 : f32
    %10 = vector.broadcast %cst_5 : f32 to vector<512x128xf32>
    %11 = arith.addf %10, %9 : vector<512x128xf32>
    %12 = tpu.reciprocal %11 {approx = true} : vector<512x128xf32> -> vector<512x128xf32>
    %13 = vector.extract_strided_slice %12 {offsets = [0, 0], sizes = [512, 32], strides = [1, 1]} : vector<512x128xf32> to vector<512x32xf32>
    %c0_6 = arith.constant 0 : index
    %c0_7 = arith.constant 0 : index
    %14 = vector.load %arg2[%c0_6, %c0_7] : memref<512x32xf32, #tpu.memory_space<vmem>>, vector<512x32xf32>
    %15 = arith.mulf %13, %14 : vector<512x32xf32>
    %c0_8 = arith.constant 0 : index
    %c0_9 = arith.constant 0 : index
    %16 = vector.load %arg5[%c0_8, %c0_9] : memref<512x32xf32, #tpu.memory_space<vmem>>, vector<512x32xf32>
    tpu.vector_store %arg5[%c0_8, %c0_9], %15 {strides = array<i32>} : memref<512x32xf32, #tpu.memory_space<vmem>>, vector<512x32xf32>,
    %17 = vector.extract_strided_slice %12 {offsets = [0, 32], sizes = [512, 32], strides = [1, 1]} : vector<512x128xf32> to vector<512x32xf32>
    %c0_10 = arith.constant 0 : index
    %c0_11 = arith.constant 0 : index
    %18 = vector.load %arg6[%c0_10, %c0_11] : memref<512x32xf32, #tpu.memory_space<vmem>>, vector<512x32xf32>
    tpu.vector_store %arg6[%c0_10, %c0_11], %17 {strides = array<i32>} : memref<512x32xf32, #tpu.memory_space<vmem>>, vector<512x32xf32>,
    return
  }
  func.func @transform_0(%arg0: i32) -> (i32, i32) {
    %c0_i32 = arith.constant 0 : i32
    %c0_i32_0 = arith.constant 0 : i32
    return %arg0, %c0_i32 : i32, i32
  }
  func.func @transform_1(%arg0: i32) -> (i32, i32) {
    %c0_i32 = arith.constant 0 : i32
    %c0_i32_0 = arith.constant 0 : i32
    return %arg0, %c0_i32 : i32, i32
  }
  func.func @transform_2(%arg0: i32) -> (i32, i32) {
    %c0_i32 = arith.constant 0 : i32
    %c0_i32_0 = arith.constant 0 : i32
    %c0_i32_1 = arith.constant 0 : i32
    return %c0_i32, %c0_i32_0 : i32, i32
  }
  func.func @transform_3(%arg0: i32) -> (i32, i32) {
    %c0_i32 = arith.constant 0 : i32
    %c0_i32_0 = arith.constant 0 : i32
    %c0_i32_1 = arith.constant 0 : i32
    return %c0_i32, %c0_i32_0 : i32, i32
  }
  func.func @transform_4(%arg0: i32) -> (i32, i32) {
    %c0_i32 = arith.constant 0 : i32
    %c0_i32_0 = arith.constant 0 : i32
    return %arg0, %c0_i32 : i32, i32
  }
  func.func @transform_5(%arg0: i32) -> (i32, i32) {
    %c0_i32 = arith.constant 0 : i32
    %c0_i32_0 = arith.constant 0 : i32
    return %arg0, %c0_i32 : i32, i32
  }
}

module attributes {stable_mosaic.version = 11 : i64} {
  func.func @_hidden_out_kernel(%arg0: i32, %arg1: memref<512x128xf32, #tpu.memory_space<vmem>>, %arg2: memref<1x128xf32, #tpu.memory_space<vmem>>, %arg3: memref<1x128xf32, #tpu.memory_space<vmem>>, %arg4: memref<512x32xf32, #tpu.memory_space<vmem>>, %arg5: memref<512x32xf32, #tpu.memory_space<vmem>>, %arg6: memref<512x32xf32, #tpu.memory_space<vmem>>) attributes {dimension_semantics = [#tpu.dimension_semantics<parallel>], iteration_bounds = array<i64: 1>, scalar_prefetch = 0 : i64, scratch_operands = 0 : i64, tpu.core_type = #tpu.core_type<tc>, window_params = [{transform_indices = @transform_0, window_bounds = array<i64: 512, 128>}, {pipeline_mode = #tpu.pipeline_mode<synchronous>, transform_indices = @transform_1, window_bounds = array<i64: 1, 128>}, {pipeline_mode = #tpu.pipeline_mode<synchronous>, transform_indices = @transform_2, window_bounds = array<i64: 1, 128>}, {transform_indices = @transform_3, window_bounds = array<i64: 512, 32>}, {transform_indices = @transform_4, window_bounds = array<i64: 512, 32>}, {transform_indices = @transform_5, window_bounds = array<i64: 512, 32>}]} {
    %c0 = arith.constant 0 : index
    %c0_0 = arith.constant 0 : index
    %0 = vector.load %arg1[%c0, %c0_0] : memref<512x128xf32, #tpu.memory_space<vmem>>, vector<512x128xf32>
    %c0_1 = arith.constant 0 : index
    %c0_2 = arith.constant 0 : index
    %1 = vector.load %arg2[%c0_1, %c0_2] : memref<1x128xf32, #tpu.memory_space<vmem>>, vector<1x128xf32>
    %2 = vector.broadcast %1 : vector<1x128xf32> to vector<512x128xf32>
    %3 = arith.mulf %0, %2 : vector<512x128xf32>
    %c0_3 = arith.constant 0 : index
    %c0_4 = arith.constant 0 : index
    %4 = vector.load %arg3[%c0_3, %c0_4] : memref<1x128xf32, #tpu.memory_space<vmem>>, vector<1x128xf32>
    %5 = vector.broadcast %4 : vector<1x128xf32> to vector<512x128xf32>
    %6 = arith.addf %3, %5 : vector<512x128xf32>
    %7 = vector.extract_strided_slice %6 {offsets = [0, 0], sizes = [512, 32], strides = [1, 1]} : vector<512x128xf32> to vector<512x32xf32>
    %8 = math.tanh %7 : vector<512x32xf32>
    %c0_5 = arith.constant 0 : index
    %c0_6 = arith.constant 0 : index
    %9 = vector.load %arg4[%c0_5, %c0_6] : memref<512x32xf32, #tpu.memory_space<vmem>>, vector<512x32xf32>
    %cst = arith.constant 1.000000e+00 : f32
    %10 = vector.broadcast %cst : f32 to vector<512x32xf32>
    %11 = arith.subf %10, %9 : vector<512x32xf32>
    %c0_7 = arith.constant 0 : index
    %c0_8 = arith.constant 0 : index
    %12 = vector.load %arg5[%c0_7, %c0_8] : memref<512x32xf32, #tpu.memory_space<vmem>>, vector<512x32xf32>
    %13 = arith.mulf %11, %12 : vector<512x32xf32>
    %14 = arith.mulf %9, %8 : vector<512x32xf32>
    %15 = arith.addf %13, %14 : vector<512x32xf32>
    %c0_9 = arith.constant 0 : index
    %c0_10 = arith.constant 0 : index
    %16 = vector.load %arg6[%c0_9, %c0_10] : memref<512x32xf32, #tpu.memory_space<vmem>>, vector<512x32xf32>
    tpu.vector_store %arg6[%c0_9, %c0_10], %15 {strides = array<i32>} : memref<512x32xf32, #tpu.memory_space<vmem>>, vector<512x32xf32>,
    return
  }
  func.func @transform_0(%arg0: i32) -> (i32, i32) {
    %c0_i32 = arith.constant 0 : i32
    %c0_i32_0 = arith.constant 0 : i32
    return %arg0, %c0_i32 : i32, i32
  }
  func.func @transform_1(%arg0: i32) -> (i32, i32) {
    %c0_i32 = arith.constant 0 : i32
    %c0_i32_0 = arith.constant 0 : i32
    %c0_i32_1 = arith.constant 0 : i32
    return %c0_i32, %c0_i32_0 : i32, i32
  }
  func.func @transform_2(%arg0: i32) -> (i32, i32) {
    %c0_i32 = arith.constant 0 : i32
    %c0_i32_0 = arith.constant 0 : i32
    %c0_i32_1 = arith.constant 0 : i32
    return %c0_i32, %c0_i32_0 : i32, i32
  }
  func.func @transform_3(%arg0: i32) -> (i32, i32) {
    %c0_i32 = arith.constant 0 : i32
    %c0_i32_0 = arith.constant 0 : i32
    return %arg0, %c0_i32 : i32, i32
  }
  func.func @transform_4(%arg0: i32) -> (i32, i32) {
    %c0_i32 = arith.constant 0 : i32
    %c0_i32_0 = arith.constant 0 : i32
    return %arg0, %c0_i32 : i32, i32
  }
  func.func @transform_5(%arg0: i32) -> (i32, i32) {
    %c0_i32 = arith.constant 0 : i32
    %c0_i32_0 = arith.constant 0 : i32
    return %arg0, %c0_i32 : i32, i32
  }
}

</mosaic_0001>

<bundles_post_ra>
// kernel: _lambda_.7
= control target key start
LH: loop header
LB: loop body
LE: loop exit
PB: predicated region body
PF: predicated region fallthrough
CT: control target
= control target key end

     0   :  { %vm673_vm0 = vcmask 261120   ;;  %s1327_s26 = smov 96   ;;  %s2541_s0 = inlined_call_operand.vmem [shape: f32[512,128], index: 0, kind: input, shape index: {}]   ;;  %s2542_s2 = inlined_call_operand.vmem [shape: f32[1,128], index: 2, kind: input, shape index: {}]   ;;  %s2543_s3 = inlined_call_operand.vmem [shape: f32[1,128], index: 3, kind: input, shape index: {}]   ;;  %s2544_s1 = inlined_call_operand.vmem [shape: f32[512,32], index: 1, kind: input, shape index: {}]   ;;  %s2545_s4 = inlined_call_operand.vmem [shape: f32[512,32], index: 4, kind: output, shape index: {0}]   ;;  %s2546_s5 = inlined_call_operand.vmem [shape: f32[512,32], index: 5, kind: output, shape index: {1}]  }
   0x1   :  { %v21_v0 = vld [vmem:[%s2541_s0 + $0x10] sm:$0xff]  ;;  %v1364_v1 = vld [vmem:[%s2542_s2] ss:$0 sm:$0xff]  ;;  %v22_v6 = vld [vmem:[%s2541_s0 + $0x18] sm:$0xff] }
   0x2   :  { %v1369_v2 = vld [vmem:[%s2543_s3] ss:$0 sm:$0xff]  ;;  %v92_v3 = vmul.f32 %v1364_v1, %v21_v0  ;;  %v20_v7 = vld [vmem:[%s2541_s0 + $0x8] sm:$0xff]  ;;  %v93_v9 = vmul.f32 %v1364_v1, %v22_v6  ;;  %v26_v15 = vld [vmem:[%s2541_s0 + $0x38] sm:$0xff] }
   0x3   :  { %v19_v4 = vld [vmem:[%s2541_s0] sm:$0xff]  ;;  %v91_v10 = vmul.f32 %v1364_v1, %v20_v7  ;;  %v24_v11 = vld [vmem:[%s2541_s0 + $0x28] sm:$0xff]  ;;  %v25_v20 = vld [vmem:[%s2541_s0 + $0x30] sm:$0xff]  ;;  %v97_v23 = vmul.f32 %v1364_v1, %v26_v15 }
   0x4   :  { %v90_v5 = vmul.f32 %v1364_v1, %v19_v4  ;;  %v163_v8 = vadd.f32 %v1369_v2, %v92_v3  ;;  %v95_v13 = vmul.f32 %v1364_v1, %v24_v11  ;;  %v23_v14 = vld [vmem:[%s2541_s0 + $0x20] sm:$0xff]  ;;  %v164_v17 = vadd.f32 %v1369_v2, %v93_v9  ;;  %v28_v33 = vld [vmem:[%s2541_s0 + $0x48] sm:$0xff]  ;;  %v30_v38 = vld [vmem:[%s2541_s0 + $0x58] sm:$0xff] }
   0x5   :  { %v162_v18 = vadd.f32 %v1369_v2, %v91_v10  ;;  %v94_v19 = vmul.f32 %v1364_v1, %v23_v14  ;;  %v96_v24 = vmul.f32 %v1364_v1, %v25_v20  ;;  %v168_v31 = vadd.f32 %v1369_v2, %v97_v23  ;;  %v27_v34 = vld [vmem:[%s2541_s0 + $0x40] sm:$0xff]  ;;  %v29_v42 = vld [vmem:[%s2541_s0 + $0x50] sm:$0xff]  ;;  %v32_v46 = vld [vmem:[%s2541_s0 + $0x68] sm:$0xff] }
   0x6   :  { %v161_v12 = vadd.f32 %v1369_v2, %v90_v5  ;;  %v227_v16 = vsub.f32 0.0, %v163_v8  ;;  %v166_v22 = vadd.f32 %v1369_v2, %v95_v13  ;;  %v228_v26 = vsub.f32 0.0, %v164_v17  ;;  %v31_v47 = vld [vmem:[%s2541_s0 + $0x60] sm:$0xff]  ;;  %v34_v57 = vld [vmem:[%s2541_s0 + $0x78] sm:$0xff]  ;;  %v33_v61 = vld [vmem:[%s2541_s0 + $0x70] sm:$0xff] }
   0x7   :  { %v226_v27 = vsub.f32 0.0, %v162_v18  ;;  %v165_v28 = vadd.f32 %v1369_v2, %v94_v19  ;;  %v167_v32 = vadd.f32 %v1369_v2, %v96_v24  ;;  %v232_v40 = vsub.f32 0.0, %v168_v31  ;;  %v36_v3 = vld [vmem:[%s2541_s0 + $0x88] sm:$0xff]  ;;  %v35_v14 = vld [vmem:[%s2541_s0 + $0x80] sm:$0xff] }
   0x8   :  { %v225_v21 = vsub.f32 0.0, %v161_v12  ;;  %v293_v25 = vmul.f32 1.442695, %v227_v16  ;;  %v230_v30 = vsub.f32 0.0, %v166_v22  ;;  %v295_v35 = vmul.f32 1.442695, %v228_v26 }
   0x9   :  { %v291_v36 = vmul.f32 1.442695, %v226_v27  ;;  %v229_v37 = vsub.f32 0.0, %v165_v28  ;;  %v231_v41 = vsub.f32 0.0, %v167_v32  ;;  %v99_v44 = vmul.f32 %v1364_v1, %v28_v33  ;;  %v38_v27 = vld [vmem:[%s2541_s0 + $0x98] sm:$0xff] }
   0xa   :  { %v289_v29 = vmul.f32 1.442695, %v225_v21  ;;  %1069 = vpow2.f32 %v293_v25  ;;  %v299_v39 = vmul.f32 1.442695, %v230_v30  ;;  %v98_v45 = vmul.f32 %v1364_v1, %v27_v34 }
   0xb   :  { %v297_v43 = vmul.f32 1.442695, %v229_v37  ;;  %v303_v48 = vmul.f32 1.442695, %v232_v40  ;;  %v301_v49 = vmul.f32 1.442695, %v231_v41  ;;  %v101_v50 = vmul.f32 %v1364_v1, %v30_v38 }
   0xc   :  { %1071 = vpow2.f32 %v289_v29  ;;  %v170_v51 = vadd.f32 %v1369_v2, %v99_v44  ;;  %v169_v52 = vadd.f32 %v1369_v2, %v98_v45  ;;  %v100_v53 = vmul.f32 %v1364_v1, %v29_v42  ;;  %v40_v41 = vld [vmem:[%s2541_s0 + $0xa8] sm:$0xff]  ;;  %v39_v42 = vld [vmem:[%s2541_s0 + $0xa0] sm:$0xff] }
   0xd   :  { %1073 = vpow2.f32 %v295_v35  ;;  %v172_v54 = vadd.f32 %v1369_v2, %v101_v50  ;;  %v103_v55 = vmul.f32 %v1364_v1, %v32_v46  ;;  %v102_v56 = vmul.f32 %v1364_v1, %v31_v47  ;;  %v42_v47 = vld [vmem:[%s2541_s0 + $0xb8] sm:$0xff] }
   0xe   :  { %1075 = vpow2.f32 %v291_v36  ;;  %v234_v58 = vsub.f32 0.0, %v170_v51  ;;  %v233_v59 = vsub.f32 0.0, %v169_v52  ;;  %v171_v60 = vadd.f32 %v1369_v2, %v100_v53  ;;  %v37_v36 = vld [vmem:[%s2541_s0 + $0x90] sm:$0xff] }
   0xf   :  { %1077 = vpow2.f32 %v299_v39  ;;  %v236_v62 = vsub.f32 0.0, %v172_v54  ;;  %v174_v63 = vadd.f32 %v1369_v2, %v103_v55  ;;  %v173_v0 = vadd.f32 %v1369_v2, %v102_v56 }
  0x10   :  { %1079 = vpow2.f32 %v297_v43  ;;  %v307_v4 = vmul.f32 1.442695, %v234_v58  ;;  %v305_v5 = vmul.f32 1.442695, %v233_v59  ;;  %v235_v6 = vsub.f32 0.0, %v171_v60  ;;  %v547_v59 = vld [vmem:[%s2544_s1 + $0x10] sm:$0xff] }
  0x11   :  { %1081 = vpow2.f32 %v303_v48  ;;  %v105_v7 = vmul.f32 %v1364_v1, %v34_v57  ;;  %v311_v8 = vmul.f32 1.442695, %v236_v62  ;;  %v104_v9 = vmul.f32 %v1364_v1, %v33_v61 }
  0x12   :  { %1083 = vpow2.f32 %v301_v49  ;;  %v238_v11 = vsub.f32 0.0, %v174_v63  ;;  %v107_v13 = vmul.f32 %v1364_v1, %v36_v3  ;;  %v309_v17 = vmul.f32 1.442695, %v235_v6 }
  0x13   :  { %1085 = vpow2.f32 %v307_v4  ;;  %v176_v12 = vadd.f32 %v1369_v2, %v105_v7  ;;  %v237_v18 = vsub.f32 0.0, %v173_v0  ;;  %v175_v22 = vadd.f32 %v1369_v2, %v104_v9  ;;  %v545_v0 = vld [vmem:[%s2544_s1] sm:$0xff]  ;;  %v548_v7 = vld [vmem:[%s2544_s1 + $0x18] sm:$0xff] }
  0x14   :  { %v1070_v10 = vpop.eup %1069  ;;  %1087 = vpow2.f32 %v305_v5  ;;  %v178_v25 = vadd.f32 %v1369_v2, %v107_v13  ;;  %v106_v26 = vmul.f32 %v1364_v1, %v35_v14  ;;  %v315_v30 = vmul.f32 1.442695, %v238_v11  ;;  %v41_v11 = vld [vmem:[%s2541_s0 + $0xb0] sm:$0xff]  ;;  %v546_v14 = vld [vmem:[%s2544_s1 + $0x8] sm:$0xff] }
  0x15   :  { %v419_v16 = vadd.f32 1.0, %v1070_v10  ;;  %1089 = vpow2.f32 %v311_v8  ;;  %v240_v21 = vsub.f32 0.0, %v176_v12  ;;  %v239_v31 = vsub.f32 0.0, %v175_v22 }
  0x16   :  { %v1072_v15 = vpop.eup %1071  ;;  %v1460_v34 = vmul.f32 1.442695, %v237_v18  ;;  %v177_v35 = vadd.f32 %v1369_v2, %v106_v26  ;;  %v109_v40 = vmul.f32 %v1364_v1, %v38_v27  ;;  %v242_v46 = vsub.f32 0.0, %v178_v25  ;;  %v43_v18 = vld [vmem:[%s2541_s0 + $0xc0] sm:$0xff] }
  0x17   :  { %v1074_v19 = vpop.eup %1073  ;;  %v417_v20 = vadd.f32 1.0, %v1072_v15  ;;  %1091 = vrcp.f32 %v419_v16  ;;  %v1466_v39 = vmul.f32 1.442695, %v240_v21  ;;  %v1475_v45 = vmul.f32 1.442695, %v239_v31  ;;  %v550_v21 = vld [vmem:[%s2544_s1 + $0x28] sm:$0xff] }
  0x18   :  { %v1076_v23 = vpop.eup %1075  ;;  %v420_v24 = vadd.f32 1.0, %v1074_v19  ;;  %v180_v49 = vadd.f32 %v1369_v2, %v109_v40  ;;  %v108_v50 = vmul.f32 %v1364_v1, %v37_v36  ;;  %v241_v51 = vsub.f32 0.0, %v177_v35  ;;  %v549_v26 = vld [vmem:[%s2544_s1 + $0x20] sm:$0xff]  ;;  %v552_v31 = vld [vmem:[%s2544_s1 + $0x38] sm:$0xff] }
  0x19   :  { %v1078_v28 = vpop.eup %1077  ;;  %1093 = vrcp.f32 %v417_v20  ;;  %v418_v29 = vadd.f32 1.0, %v1076_v23  ;;  %v111_v52 = vmul.f32 %v1364_v1, %v40_v41  ;;  %v110_v53 = vmul.f32 %v1364_v1, %v39_v42 }
  0x1a   :  { %v1080_v32 = vpop.eup %1079  ;;  %1095 = vrcp.f32 %v420_v24  ;;  %v422_v33 = vadd.f32 1.0, %v1078_v28  ;;  %v244_v55 = vsub.f32 0.0, %v180_v49  ;;  %v179_v56 = vadd.f32 %v1369_v2, %v108_v50  ;;  %v554_v50 = vld [vmem:[%s2544_s1 + $0x48] sm:$0xff] }
  0x1b   :  { %v1082_v37 = vpop.eup %1081  ;;  %1097 = vrcp.f32 %v418_v29  ;;  %v421_v38 = vadd.f32 1.0, %v1080_v32  ;;  %v113_v57 = vmul.f32 %v1364_v1, %v42_v47  ;;  %v182_v61 = vadd.f32 %v1369_v2, %v111_v52 }
  0x1c   :  { %v1084_v43 = vpop.eup %1083  ;;  %1099 = vrcp.f32 %v422_v33  ;;  %v424_v44 = vadd.f32 1.0, %v1082_v37  ;;  %v1491_v62 = vadd.f32 %v1369_v2, %v110_v53  ;;  %v323_v4 = vmul.f32 1.442695, %v242_v46  ;;  %v551_v37 = vld [vmem:[%s2544_s1 + $0x30] sm:$0xff] }
  0x1d   :  { %1101 = vrcp.f32 %v421_v38  ;;  %v423_v48 = vadd.f32 1.0, %v1084_v43  ;;  %v1086_v54 = vpop.eup %1085  ;;  %v243_v5 = vsub.f32 0.0, %v179_v56  ;;  %v321_v9 = vmul.f32 1.442695, %v241_v51  ;;  %v45_v53 = vld [vmem:[%s2541_s0 + $0xd0] sm:$0xff] }
  0x1e   :  { %1103 = vrcp.f32 %v424_v44  ;;  %v1088_v58 = vpop.eup %1087  ;;  %v426_v60 = vadd.f32 1.0, %v1086_v54  ;;  %v246_v10 = vsub.f32 0.0, %v182_v61  ;;  %v327_v15 = vmul.f32 1.442695, %v244_v55  ;;  %v553_v55 = vld [vmem:[%s2544_s1 + $0x40] sm:$0xff] }
  0x1f   :  { %1105 = vrcp.f32 %v423_v48  ;;  %v1090_v63 = vpop.eup %1089  ;;  %v425_v3 = vadd.f32 1.0, %v1088_v58  ;;  %v184_v16 = vadd.f32 %v1369_v2, %v113_v57  ;;  %v325_v22 = vmul.f32 1.442695, %v243_v5 }
  0x20   :  { %1107 = vpow2.f32 %v309_v17  ;;  %v428_v8 = vadd.f32 1.0, %v1090_v63  ;;  %v44_v17 = vld [vmem:[%s2541_s0 + $0xc8] sm:$0xff]  ;;  %v245_v23 = vsub.f32 0.0, %v1491_v62  ;;  %v331_v27 = vmul.f32 1.442695, %v246_v10  ;;  %v556_v62 = vld [vmem:[%s2544_s1 + $0x58] sm:$0xff] }
  0x21   :  { %1109 = vpow2.f32 %v315_v30  ;;  %v1092_v6 = vpop.eup %1091  ;;  %v112_v28 = vmul.f32 %v1364_v1, %v41_v11  ;;  %v115_v32 = vmul.f32 %v1364_v1, %v44_v17  ;;  %v114_v33 = vmul.f32 %v1364_v1, %v43_v18 }
  0x22   :  { %1111 = vrcp.f32 %v426_v60  ;;  %806 = vrot.lane.b32.xlu1 %v1092_v6, %s1327_s26  ;;  %v611_v13 = vmul.f32 %v1092_v6, %v547_v59  ;;  %v248_v38 = vsub.f32 0.0, %v184_v16  ;;  %v329_v51 = vmul.f32 1.442695, %v245_v23  ;;  %v48_v59 = vld [vmem:[%s2541_s0 + $0xe8] sm:$0xff]  ;;  %v47_v60 = vld [vmem:[%s2541_s0 + $0xe0] sm:$0xff] }
  0x23   :  { %v1094_v12 = vpop.eup %1093  ;;  %1113 = vrcp.f32 %v425_v3  ;;  %v186_v42 = vadd.f32 %v1369_v2, %v115_v32  ;;  %v1557_v43 = vadd.f32 %v1369_v2, %v114_v33  ;;  %v119_v10 = vmul.f32 %v1364_v1, %v48_v59 }
  0x24   :  { %v1096_v19 = vpop.eup %1095  ;;  %802 = vrot.lane.b32.xlu0 %v1094_v12, %s1327_s26  ;;  %v609_v20 = vmul.f32 %v1094_v12, %v545_v0  ;;  %1115 = vrcp.f32 %v428_v8  ;;  %676 = vst.msk [vmem:[%s2545_s4 + $0x10] sm:$0xff] %vm673_vm0, %v611_v13  ;;  %v335_v57 = vmul.f32 1.442695, %v248_v38  ;;  %v118_v11 = vmul.f32 %v1364_v1, %v47_v60  ;;  %v50_v12 = vld [vmem:[%s2541_s0 + $0xf8] sm:$0xff] }
  0x25   :  { %v1098_v24 = vpop.eup %1097  ;;  %v612_v25 = vmul.f32 %v1096_v19, %v548_v7  ;;  %1117 = vpow2.f32 %v1460_v34  ;;  %v46_v34 = vld [vmem:[%s2541_s0 + $0xd8] sm:$0xff]  ;;  %v250_v52 = vsub.f32 0.0, %v186_v42  ;;  %v249_v3 = vsub.f32 0.0, %v1557_v43 }
  0x26   :  { %v1100_v29 = vpop.eup %1099  ;;  %674 = vst.msk [vmem:[%s2545_s4] sm:$0xff] %vm673_vm0, %v609_v20  ;;  %v610_v30 = vmul.f32 %v1098_v24, %v546_v14  ;;  %1119 = vpow2.f32 %v1466_v39  ;;  %808 = vrot.lane.b32.xlu1 %v1096_v19, %s1327_s26  ;;  %v183_v39 = vadd.f32 %v1369_v2, %v112_v28  ;;  %v117_v47 = vmul.f32 %v1364_v1, %v46_v34  ;;  %v52_v34 = vld [vmem:[%s2541_s0 + $0x108] sm:$0xff] }
  0x27   :  { %v1102_v35 = vpop.eup %1101  ;;  %677 = vst.msk [vmem:[%s2545_s4 + $0x18] sm:$0xff] %vm673_vm0, %v612_v25  ;;  %v614_v36 = vmul.f32 %v1100_v29, %v550_v21  ;;  %1121 = vpow2.f32 %v1475_v45  ;;  %v1598_v6 = vmul.f32 1.442695, %v250_v52  ;;  %v116_v7 = vmul.f32 %v1364_v1, %v45_v53 }
  0x28   :  { %v1104_v40 = vpop.eup %1103  ;;  %675 = vst.msk [vmem:[%s2545_s4 + $0x8] sm:$0xff] %vm673_vm0, %v610_v30  ;;  %804 = vrot.lane.b32.xlu0 %v1098_v24, %s1327_s26  ;;  %v613_v41 = vmul.f32 %v1102_v35, %v549_v26  ;;  %1123 = vpow2.f32 %v323_v4  ;;  %v247_v46 = vsub.f32 0.0, %v183_v39  ;;  %v188_v58 = vadd.f32 %v1369_v2, %v117_v47 }
  0x29   :  { %v1106_v44 = vpop.eup %1105  ;;  %679 = vst.msk [vmem:[%s2545_s4 + $0x28] sm:$0xff] %vm673_vm0, %v614_v36  ;;  %v616_v45 = vmul.f32 %v1104_v40, %v552_v31  ;;  %1125 = vpow2.f32 %v321_v9  ;;  %v187_v16 = vadd.f32 %v1369_v2, %v116_v7  ;;  %v190_v19 = vadd.f32 %v1369_v2, %v119_v10  ;;  %v53_v7 = vld [vmem:[%s2541_s0 + $0x110] sm:$0xff] }
  0x2a   :  { %v1108_v48 = vpop.eup %1107  ;;  %678 = vst.msk [vmem:[%s2545_s4 + $0x20] sm:$0xff] %vm673_vm0, %v613_v41  ;;  %v615_v49 = vmul.f32 %v1106_v44, %v551_v37  ;;  %1127 = vpow2.f32 %v327_v15  ;;  %812 = vrot.lane.b32.xlu1 %v1100_v29, %s1327_s26  ;;  %v333_v0 = vmul.f32 1.442695, %v247_v46  ;;  %v252_v15 = vsub.f32 0.0, %v188_v58  ;;  %v49_v29 = vld [vmem:[%s2541_s0 + $0xf0] sm:$0xff]  ;;  %v558_v46 = vld [vmem:[%s2544_s1 + $0x68] sm:$0xff] }
  0x2b   :  { %v1110_v54 = vpop.eup %1109  ;;  %681 = vst.msk [vmem:[%s2545_s4 + $0x38] sm:$0xff] %vm673_vm0, %v616_v45  ;;  %v427_v56 = vadd.f32 1.0, %v1108_v48  ;;  %1129 = vpow2.f32 %v325_v22  ;;  %v189_v20 = vadd.f32 %v1369_v2, %v118_v11  ;;  %v251_v23 = vsub.f32 0.0, %v187_v16  ;;  %v555_v41 = vld [vmem:[%s2544_s1 + $0x50] sm:$0xff] }
  0x2c   :  { %v1112_v61 = vpop.eup %1111  ;;  %810 = vrot.lane.b32.xlu0 %v1102_v35, %s1327_s26  ;;  %680 = vst.msk [vmem:[%s2545_s4 + $0x30] sm:$0xff] %vm673_vm0, %v615_v49  ;;  %v430_v63 = vadd.f32 1.0, %v1110_v54  ;;  %1131 = vpow2.f32 %v331_v27  ;;  %v121_v24 = vmul.f32 %v1364_v1, %v50_v12  ;;  %v337_v27 = vmul.f32 1.442695, %v249_v3  ;;  %v51_v35 = vld [vmem:[%s2541_s0 + $0x100] sm:$0xff]  ;;  %v56_v12 = vld [vmem:[%s2541_s0 + $0x128] sm:$0xff] }
  0x2d   :  { %v1114_v4 = vpop.eup %1113  ;;  %v618_v5 = vmul.f32 %v1112_v61, %v554_v50  ;;  %1133 = vrcp.f32 %v427_v56  ;;  %v254_v28 = vsub.f32 0.0, %v190_v19  ;;  %v1628_v32 = vmul.f32 1.442695, %v252_v15  ;;  %v54_v50 = vld [vmem:[%s2541_s0 + $0x118] sm:$0xff]  ;;  %v559_v15 = vld [vmem:[%s2544_s1 + $0x70] sm:$0xff] }
  0x2e   :  { %v1116_v8 = vpop.eup %1115  ;;  %v617_v9 = vmul.f32 %v1114_v4, %v553_v55  ;;  %1135 = vrcp.f32 %v430_v63  ;;  %816 = vrot.lane.b32.xlu1 %v1104_v40, %s1327_s26  ;;  %v192_v33 = vadd.f32 %v1369_v2, %v121_v24  ;;  %v1638_v38 = vmul.f32 1.442695, %v251_v23 }
  0x2f   :  { %v1118_v13 = vpop.eup %1117  ;;  %683 = vst.msk [vmem:[%s2545_s4 + $0x48] sm:$0xff] %vm673_vm0, %v618_v5  ;;  %v620_v14 = vmul.f32 %v1116_v8, %v556_v62  ;;  %1137 = vpow2.f32 %v329_v51  ;;  %v253_v39 = vsub.f32 0.0, %v189_v20  ;;  %v1643_v43 = vmul.f32 1.442695, %v254_v28 }
  0x30   :  { %v1120_v17 = vpop.eup %1119  ;;  %814 = vrot.lane.b32.xlu0 %v1106_v44, %s1327_s26  ;;  %682 = vst.msk [vmem:[%s2545_s4 + $0x40] sm:$0xff] %vm673_vm0, %v617_v9  ;;  %v429_v18 = vadd.f32 1.0, %v1118_v13  ;;  %1139 = vpow2.f32 %v335_v57  ;;  %v120_v44 = vmul.f32 %v1364_v1, %v49_v29  ;;  %v123_v48 = vmul.f32 %v1364_v1, %v52_v34  ;;  %v560_v9 = vld [vmem:[%s2544_s1 + $0x78] sm:$0xff]  ;;  %v55_v13 = vld [vmem:[%s2541_s0 + $0x120] sm:$0xff] }
  0x31   :  { %v1122_v21 = vpop.eup %1121  ;;  %685 = vst.msk [vmem:[%s2545_s4 + $0x58] sm:$0xff] %vm673_vm0, %v620_v14  ;;  %v432_v22 = vadd.f32 1.0, %v1120_v17  ;;  %1141 = vpow2.f32 %v333_v0  ;;  %v122_v49 = vmul.f32 %v1364_v1, %v51_v35  ;;  %v256_v53 = vsub.f32 0.0, %v192_v33  ;;  %v557_v0 = vld [vmem:[%s2544_s1 + $0x60] sm:$0xff]  ;;  %v58_v29 = vld [vmem:[%s2541_s0 + $0x138] sm:$0xff] }
  0x32   :  { %v1124_v25 = vpop.eup %1123  ;;  %1143 = vrcp.f32 %v429_v18  ;;  %v431_v26 = vadd.f32 1.0, %v1122_v21  ;;  %820 = vrot.lane.b32.xlu1 %v1112_v61, %s1327_s26  ;;  %v191_v54 = vadd.f32 %v1369_v2, %v120_v44  ;;  %v194_v57 = vadd.f32 %v1369_v2, %v123_v48  ;;  %v562_v21 = vld [vmem:[%s2544_s1 + $0x88] sm:$0xff]  ;;  %v564_v33 = vld [vmem:[%s2544_s1 + $0x98] sm:$0xff] }
  0x33   :  { %v1126_v30 = vpop.eup %1125  ;;  %1145 = vrcp.f32 %v432_v22  ;;  %v434_v31 = vadd.f32 1.0, %v1124_v25  ;;  %v1659_v58 = vadd.f32 %v1369_v2, %v122_v49  ;;  %v125_v62 = vmul.f32 %v1364_v1, %v54_v50  ;;  %v566_v44 = vld [vmem:[%s2544_s1 + $0xa8] sm:$0xff]  ;;  %v57_v50 = vld [vmem:[%s2541_s0 + $0x130] sm:$0xff] }
  0x34   :  { %v1128_v36 = vpop.eup %1127  ;;  %818 = vrot.lane.b32.xlu0 %v1114_v4, %s1327_s26  ;;  %1147 = vrcp.f32 %v431_v26  ;;  %v433_v37 = vadd.f32 1.0, %v1126_v30  ;;  %v255_v61 = vsub.f32 0.0, %v191_v54  ;;  %v345_v4 = vmul.f32 1.442695, %v253_v39  ;;  %v561_v26 = vld [vmem:[%s2544_s1 + $0x80] sm:$0xff]  ;;  %v563_v39 = vld [vmem:[%s2544_s1 + $0x90] sm:$0xff] }
  0x35   :  { %v1130_v40 = vpop.eup %1129  ;;  %1149 = vrcp.f32 %v434_v31  ;;  %v436_v42 = vadd.f32 1.0, %v1128_v36  ;;  %v258_v5 = vsub.f32 0.0, %v194_v57  ;;  %v196_v11 = vadd.f32 %v1369_v2, %v125_v62  ;;  %v60_v54 = vld [vmem:[%s2541_s0 + $0x148] sm:$0xff]  ;;  %v568_v62 = vld [vmem:[%s2544_s1 + $0xb8] sm:$0xff] }
  0x36   :  { %v1132_v45 = vpop.eup %1131  ;;  %1151 = vrcp.f32 %v433_v37  ;;  %v435_v47 = vadd.f32 1.0, %v1130_v40  ;;  %824 = vrot.lane.b32.xlu1 %v1116_v8, %s1327_s26  ;;  %v349_v17 = vmul.f32 1.442695, %v255_v61  ;;  %v257_v18 = vsub.f32 0.0, %v1659_v58  ;;  %v565_v58 = vld [vmem:[%s2544_s1 + $0xa0] sm:$0xff] }
  0x37   :  { %v1134_v51 = vpop.eup %1133  ;;  %1153 = vrcp.f32 %v436_v42  ;;  %v438_v52 = vadd.f32 1.0, %v1132_v45  ;;  %v355_v22 = vmul.f32 1.442695, %v258_v5  ;;  %v124_v23 = vmul.f32 %v1364_v1, %v53_v7  ;;  %v567_v5 = vld [vmem:[%s2544_s1 + $0xb0] sm:$0xff] }
  0x38   :  { %v1136_v55 = vpop.eup %1135  ;;  %v619_v56 = vmul.f32 %v1134_v51, %v555_v41  ;;  %822 = vrot.lane.b32.xlu0 %v1134_v51, %s1327_s26  ;;  %1155 = vrcp.f32 %v435_v47  ;;  %v126_v28 = vmul.f32 %v1364_v1, %v55_v13  ;;  %v260_v34 = vsub.f32 0.0, %v196_v11 }
  0x39   :  { %v1138_v59 = vpop.eup %1137  ;;  %v622_v60 = vmul.f32 %v1136_v55, %v558_v46  ;;  %1157 = vrcp.f32 %v438_v52  ;;  %v195_v35 = vadd.f32 %v1369_v2, %v124_v23  ;;  %v129_v45 = vmul.f32 %v1364_v1, %v58_v29 }
  0x3a   :  { %v1140_v63 = vpop.eup %1139  ;;  %684 = vst.msk [vmem:[%s2545_s4 + $0x50] sm:$0xff] %vm673_vm0, %v619_v56  ;;  %v437_v3 = vadd.f32 1.0, %v1138_v59  ;;  %1159 = vpow2.f32 %v1598_v6  ;;  %828 = vrot.lane.b32.xlu1 %v1136_v55, %s1327_s26  ;;  %v351_v6 = vmul.f32 1.442695, %v256_v53  ;;  %v353_v48 = vmul.f32 1.442695, %v257_v18 }
  0x3b   :  { %v1142_v8 = vpop.eup %1141  ;;  %687 = vst.msk [vmem:[%s2545_s4 + $0x68] sm:$0xff] %vm673_vm0, %v622_v60  ;;  %v440_v10 = vadd.f32 1.0, %v1140_v63  ;;  %1161 = vpow2.f32 %v337_v27  ;;  %v127_v27 = vmul.f32 %v1364_v1, %v56_v12  ;;  %v359_v52 = vmul.f32 1.442695, %v260_v34  ;;  %v59_v55 = vld [vmem:[%s2541_s0 + $0x140] sm:$0xff] }
  0x3c   :  { %v1144_v14 = vpop.eup %1143  ;;  %1163 = vrcp.f32 %v437_v3  ;;  %v439_v16 = vadd.f32 1.0, %v1142_v8  ;;  %v200_v53 = vadd.f32 %v1369_v2, %v129_v45  ;;  %v128_v3 = vmul.f32 %v1364_v1, %v57_v50  ;;  %v66_v45 = vld [vmem:[%s2541_s0 + $0x178] sm:$0xff] }
  0x3d   :  { %v1146_v19 = vpop.eup %1145  ;;  %v621_v20 = vmul.f32 %v1144_v14, %v557_v0  ;;  %826 = vrot.lane.b32.xlu0 %v1144_v14, %s1327_s26  ;;  %1165 = vrcp.f32 %v440_v10  ;;  %v198_v40 = vadd.f32 %v1369_v2, %v127_v27  ;;  %v131_v8 = vmul.f32 %v1364_v1, %v60_v54  ;;  %v62_v10 = vld [vmem:[%s2541_s0 + $0x158] sm:$0xff] }
  0x3e   :  { %v1148_v24 = vpop.eup %1147  ;;  %v624_v25 = vmul.f32 %v1146_v19, %v560_v9  ;;  %1167 = vrcp.f32 %v439_v16  ;;  %832 = vrot.lane.b32.xlu1 %v1146_v19, %s1327_s26  ;;  %v130_v9 = vmul.f32 %v1364_v1, %v59_v55  ;;  %v264_v12 = vsub.f32 0.0, %v200_v53 }
  0x3f   :  { %v1150_v30 = vpop.eup %1149  ;;  %686 = vst.msk [vmem:[%s2545_s4 + $0x60] sm:$0xff] %vm673_vm0, %v621_v20  ;;  %v623_v31 = vmul.f32 %v1148_v24, %v559_v15  ;;  %1169 = vpow2.f32 %v1628_v32  ;;  %v1725_v32 = vadd.f32 %v1369_v2, %v126_v28  ;;  %v262_v49 = vsub.f32 0.0, %v198_v40 }
  0x40   :  { %v1152_v36 = vpop.eup %1151  ;;  %689 = vst.msk [vmem:[%s2545_s4 + $0x78] sm:$0xff] %vm673_vm0, %v624_v25  ;;  %v626_v37 = vmul.f32 %v1150_v30, %v562_v21  ;;  %1171 = vpow2.f32 %v1638_v38  ;;  %v259_v38 = vsub.f32 0.0, %v195_v35  ;;  %v199_v13 = vadd.f32 %v1369_v2, %v128_v3  ;;  %v61_v25 = vld [vmem:[%s2541_s0 + $0x150] sm:$0xff] }
  0x41   :  { %v1154_v41 = vpop.eup %1153  ;;  %688 = vst.msk [vmem:[%s2545_s4 + $0x70] sm:$0xff] %vm673_vm0, %v623_v31  ;;  %830 = vrot.lane.b32.xlu0 %v1148_v24, %s1327_s26  ;;  %v625_v42 = vmul.f32 %v1152_v36, %v561_v26  ;;  %1173 = vpow2.f32 %v1643_v43  ;;  %v261_v60 = vsub.f32 0.0, %v1725_v32  ;;  %v363_v0 = vmul.f32 1.442695, %v262_v49  ;;  %v63_v31 = vld [vmem:[%s2541_s0 + $0x160] sm:$0xff] }
  0x42   :  { %v1156_v46 = vpop.eup %1155  ;;  %691 = vst.msk [vmem:[%s2545_s4 + $0x88] sm:$0xff] %vm673_vm0, %v626_v37  ;;  %v628_v47 = vmul.f32 %v1154_v41, %v564_v33  ;;  %1175 = vpow2.f32 %v345_v4  ;;  %836 = vrot.lane.b32.xlu1 %v1150_v30, %s1327_s26  ;;  %v357_v59 = vmul.f32 1.442695, %v259_v38  ;;  %v1788_v16 = vadd.f32 %v1369_v2, %v131_v8  ;;  %v64_v30 = vld [vmem:[%s2541_s0 + $0x168] sm:$0xff] }
  0x43   :  { %v1158_v51 = vpop.eup %1157  ;;  %690 = vst.msk [vmem:[%s2545_s4 + $0x80] sm:$0xff] %vm673_vm0, %v625_v42  ;;  %v627_v43 = vmul.f32 %v1156_v46, %v563_v39  ;;  %1177 = vpow2.f32 %v351_v6  ;;  %v263_v20 = vsub.f32 0.0, %v199_v13  ;;  %v133_v21 = vmul.f32 %v1364_v1, %v62_v10 }
  0x44   :  { %v1160_v56 = vpop.eup %1159  ;;  %693 = vst.msk [vmem:[%s2545_s4 + $0x98] sm:$0xff] %vm673_vm0, %v628_v47  ;;  %v630_v57 = vmul.f32 %v1158_v51, %v566_v44  ;;  %1179 = vpow2.f32 %v349_v17  ;;  %v1791_v17 = vadd.f32 %v1369_v2, %v130_v9  ;;  %v1803_v24 = vmul.f32 1.442695, %v261_v60  ;;  %v570_v47 = vld [vmem:[%s2544_s1 + $0xc8] sm:$0xff]  ;;  %v572_v9 = vld [vmem:[%s2544_s1 + $0xd8] sm:$0xff] }
  0x45   :  { %v1162_v61 = vpop.eup %1161  ;;  %834 = vrot.lane.b32.xlu0 %v1152_v36, %s1327_s26  ;;  %692 = vst.msk [vmem:[%s2545_s4 + $0x90] sm:$0xff] %vm673_vm0, %v627_v43  ;;  %v442_v63 = vadd.f32 1.0, %v1160_v56  ;;  %1181 = vpow2.f32 %v355_v22  ;;  %v1813_v28 = vmul.f32 1.442695, %v264_v12  ;;  %v204_v29 = vadd.f32 %v1369_v2, %v133_v21  ;;  %v569_v43 = vld [vmem:[%s2544_s1 + $0xc0] sm:$0xff]  ;;  %v571_v12 = vld [vmem:[%s2544_s1 + $0xd0] sm:$0xff] }
  0x46   :  { %v1164_v4 = vpop.eup %1163  ;;  %695 = vst.msk [vmem:[%s2545_s4 + $0xa8] sm:$0xff] %vm673_vm0, %v630_v57  ;;  %v441_v7 = vadd.f32 1.0, %v1162_v61  ;;  %1183 = vpow2.f32 %v353_v48  ;;  %840 = vrot.lane.b32.xlu1 %v1154_v41, %s1327_s26  ;;  %v266_v35 = vsub.f32 0.0, %v1788_v16  ;;  %v265_v36 = vsub.f32 0.0, %v1791_v17 }
  0x47   :  { %v1166_v6 = vpop.eup %1165  ;;  %v629_v11 = vmul.f32 %v1164_v4, %v565_v58  ;;  %1185 = vrcp.f32 %v442_v63  ;;  %v1825_v40 = vmul.f32 1.442695, %v263_v20  ;;  %v132_v32 = vmul.f32 %v1364_v1, %v61_v25  ;;  %v65_v63 = vld [vmem:[%s2541_s0 + $0x170] sm:$0xff]  ;;  %v573_v25 = vld [vmem:[%s2544_s1 + $0xe0] sm:$0xff] }
  0x48   :  { %v1168_v14 = vpop.eup %1167  ;;  %v632_v15 = vmul.f32 %v1166_v6, %v568_v62  ;;  %1187 = vrcp.f32 %v441_v7  ;;  %v135_v44 = vmul.f32 %v1364_v1, %v64_v30  ;;  %v134_v38 = vmul.f32 %v1364_v1, %v63_v31  ;;  %v67_v7 = vld [vmem:[%s2541_s0 + $0x180] sm:$0xff]  ;;  %v576_v31 = vld [vmem:[%s2544_s1 + $0xf8] sm:$0xff] }
  0x49   :  { %v1170_v18 = vpop.eup %1169  ;;  %838 = vrot.lane.b32.xlu0 %v1156_v46, %s1327_s26  ;;  %694 = vst.msk [vmem:[%s2545_s4 + $0xa0] sm:$0xff] %vm673_vm0, %v629_v11  ;;  %v631_v19 = vmul.f32 %v1168_v14, %v567_v5  ;;  %1189 = vpow2.f32 %v359_v52  ;;  %v268_v49 = vsub.f32 0.0, %v204_v29  ;;  %v203_v50 = vadd.f32 %v1369_v2, %v132_v32 }
  0x4a   :  { %v1172_v22 = vpop.eup %1171  ;;  %697 = vst.msk [vmem:[%s2545_s4 + $0xb8] sm:$0xff] %vm673_vm0, %v632_v15  ;;  %v444_v23 = vadd.f32 1.0, %v1170_v18  ;;  %1191 = vpow2.f32 %v357_v59  ;;  %844 = vrot.lane.b32.xlu1 %v1158_v51, %s1327_s26  ;;  %v1842_v53 = vadd.f32 %v1369_v2, %v135_v44  ;;  %v1845_v54 = vadd.f32 %v1369_v2, %v134_v38  ;;  %v1888_v15 = vld [vmem:[%s2542_s2] ss:$0 sm:$0xff]  ;;  %v574_v18 = vld [vmem:[%s2544_s1 + $0xe8] sm:$0xff] }
  0x4b   :  { %v1174_v26 = vpop.eup %1173  ;;  %696 = vst.msk [vmem:[%s2545_s4 + $0xb0] sm:$0xff] %vm673_vm0, %v631_v19  ;;  %v443_v27 = vadd.f32 1.0, %v1172_v22  ;;  %1193 = vpow2.f32 %v363_v0  ;;  %v267_v57 = vsub.f32 0.0, %v203_v50  ;;  %v137_v58 = vmul.f32 %v1364_v1, %v66_v45  ;;  %v68_v1 = vld [vmem:[%s2541_s0 + $0x188] sm:$0xff]  ;;  %v70_v22 = vld [vmem:[%s2541_s0 + $0x198] sm:$0xff] }
  0x4c   :  { %v1176_v33 = vpop.eup %1175  ;;  %1195 = vrcp.f32 %v444_v23  ;;  %v446_v34 = vadd.f32 1.0, %v1174_v26  ;;  %v371_v61 = vmul.f32 1.442695, %v266_v35  ;;  %v1849_v62 = vmul.f32 1.442695, %v265_v36  ;;  %v578_v44 = vld [vmem:[%s2544_s1 + $0x108] sm:$0xff] }
  0x4d   :  { %v1178_v37 = vpop.eup %1177  ;;  %842 = vrot.lane.b32.xlu0 %v1164_v4, %s1327_s26  ;;  %1197 = vrcp.f32 %v443_v27  ;;  %v445_v39 = vadd.f32 1.0, %v1176_v33  ;;  %v1855_v4 = vmul.f32 1.442695, %v268_v49  ;;  %v1858_v5 = vadd.f32 %v1369_v2, %v137_v58  ;;  %v1907_v27 = vld [vmem:[%s2543_s3] ss:$0 sm:$0xff] }
  0x4e   :  { %v1180_v41 = vpop.eup %1179  ;;  %1199 = vrcp.f32 %v446_v34  ;;  %v448_v42 = vadd.f32 1.0, %v1178_v37  ;;  %848 = vrot.lane.b32.xlu1 %v1166_v6, %s1327_s26  ;;  %v270_v10 = vsub.f32 0.0, %v1842_v53  ;;  %v269_v6 = vsub.f32 0.0, %v1845_v54  ;;  %v575_v37 = vld [vmem:[%s2544_s1 + $0xf0] sm:$0xff] }
  0x4f   :  { %v1182_v46 = vpop.eup %1181  ;;  %1201 = vrcp.f32 %v445_v39  ;;  %v447_v48 = vadd.f32 1.0, %v1180_v41  ;;  %v136_v16 = vmul.f32 %v1888_v15, %v65_v63  ;;  %v139_v20 = vmul.f32 %v1888_v15, %v68_v1 }
  0x50   :  { %v1184_v51 = vpop.eup %1183  ;;  %1203 = vrcp.f32 %v448_v42  ;;  %v450_v52 = vadd.f32 1.0, %v1182_v46  ;;  %v138_v21 = vmul.f32 %v1888_v15, %v67_v7  ;;  %v272_v26 = vsub.f32 0.0, %v1858_v5  ;;  %v579_v5 = vld [vmem:[%s2544_s1 + $0x110] sm:$0xff] }
  0x51   :  { %v1186_v55 = vpop.eup %1185  ;;  %846 = vrot.lane.b32.xlu0 %v1168_v14, %s1327_s26  ;;  %1205 = vrcp.f32 %v447_v48  ;;  %v449_v56 = vadd.f32 1.0, %v1184_v51  ;;  %v373_v14 = vmul.f32 1.442695, %v267_v57  ;;  %v210_v33 = vadd.f32 %v1907_v27, %v139_v20  ;;  %v577_v48 = vld [vmem:[%s2544_s1 + $0x100] sm:$0xff]  ;;  %v72_v51 = vld [vmem:[%s2541_s0 + $0x1a8] sm:$0xff]  ;;  %v73_v20 = vld [vmem:[%s2541_s0 + $0x1b0] sm:$0xff] }
  0x52   :  { %v1188_v59 = vpop.eup %1187  ;;  %v634_v60 = vmul.f32 %v1186_v55, %v570_v47  ;;  %1207 = vrcp.f32 %v450_v52  ;;  %852 = vrot.lane.b32.xlu1 %v1186_v55, %s1327_s26  ;;  %v209_v34 = vadd.f32 %v1907_v27, %v138_v21  ;;  %v141_v32 = vmul.f32 %v1888_v15, %v70_v22 }
  0x53   :  { %v1190_v0 = vpop.eup %1189  ;;  %v633_v3 = vmul.f32 %v1188_v59, %v569_v43  ;;  %1209 = vrcp.f32 %v449_v56  ;;  %v379_v38 = vmul.f32 1.442695, %v270_v10  ;;  %v377_v45 = vmul.f32 1.442695, %v269_v6  ;;  %v71_v43 = vld [vmem:[%s2541_s0 + $0x1a0] sm:$0xff] }
  0x54   :  { %v1192_v8 = vpop.eup %1191  ;;  %699 = vst.msk [vmem:[%s2545_s4 + $0xc8] sm:$0xff] %vm673_vm0, %v634_v60  ;;  %v452_v2 = vadd.f32 1.0, %v1190_v0  ;;  %1211 = vpow2.f32 %v1803_v24  ;;  %v274_v49 = vsub.f32 0.0, %v210_v33  ;;  %v273_v50 = vsub.f32 0.0, %v209_v34 }
  0x55   :  { %v1194_v11 = vpop.eup %1193  ;;  %698 = vst.msk [vmem:[%s2545_s4 + $0xc0] sm:$0xff] %vm673_vm0, %v633_v3  ;;  %850 = vrot.lane.b32.xlu0 %v1188_v59, %s1327_s26  ;;  %v451_v13 = vadd.f32 1.0, %v1192_v8  ;;  %1213 = vpow2.f32 %v1813_v28  ;;  %v207_v28 = vadd.f32 %v1907_v27, %v136_v16  ;;  %v383_v54 = vmul.f32 1.442695, %v272_v26  ;;  %v74_v3 = vld [vmem:[%s2541_s0 + $0x1b8] sm:$0xff] }
  0x56   :  { %v1196_v17 = vpop.eup %1195  ;;  %1215 = vrcp.f32 %v452_v2  ;;  %v454_v19 = vadd.f32 1.0, %v1194_v11  ;;  %v212_v55 = vadd.f32 %v1907_v27, %v141_v32  ;;  %v143_v63 = vmul.f32 %v1888_v15, %v72_v51  ;;  %v582_v2 = vld [vmem:[%s2544_s1 + $0x128] sm:$0xff]  ;;  %v584_v51 = vld [vmem:[%s2544_s1 + $0x138] sm:$0xff] }
  0x57   :  { %v1198_v23 = vpop.eup %1197  ;;  %v636_v24 = vmul.f32 %v1196_v17, %v572_v9  ;;  %856 = vrot.lane.b32.xlu1 %v1196_v17, %s1327_s26  ;;  %1217 = vrcp.f32 %v451_v13  ;;  %v271_v39 = vsub.f32 0.0, %v207_v28  ;;  %v142_v0 = vmul.f32 %v1888_v15, %v71_v43 }
  0x58   :  { %v1200_v29 = vpop.eup %1199  ;;  %v635_v30 = vmul.f32 %v1198_v23, %v571_v12  ;;  %1219 = vrcp.f32 %v454_v19  ;;  %v387_v7 = vmul.f32 1.442695, %v274_v49  ;;  %v385_v8 = vmul.f32 1.442695, %v273_v50  ;;  %v581_v50 = vld [vmem:[%s2544_s1 + $0x120] sm:$0xff] }
  0x59   :  { %v1202_v35 = vpop.eup %1201  ;;  %701 = vst.msk [vmem:[%s2545_s4 + $0xd8] sm:$0xff] %vm673_vm0, %v636_v24  ;;  %854 = vrot.lane.b32.xlu0 %v1198_v23, %s1327_s26  ;;  %v638_v36 = vmul.f32 %v1200_v29, %v574_v18  ;;  %1221 = vpow2.f32 %v1825_v40  ;;  %v69_v40 = vld [vmem:[%s2541_s0 + $0x190] sm:$0xff]  ;;  %v381_v58 = vmul.f32 1.442695, %v271_v39  ;;  %v276_v6 = vsub.f32 0.0, %v212_v55  ;;  %v76_v24 = vld [vmem:[%s2541_s0 + $0x1c8] sm:$0xff] }
  0x5a   :  { %v1204_v41 = vpop.eup %1203  ;;  %700 = vst.msk [vmem:[%s2545_s4 + $0xd0] sm:$0xff] %vm673_vm0, %v635_v30  ;;  %v637_v42 = vmul.f32 %v1202_v35, %v573_v25  ;;  %1223 = vpow2.f32 %v371_v61  ;;  %v140_v59 = vmul.f32 %v1888_v15, %v69_v40  ;;  %v145_v16 = vmul.f32 %v1888_v15, %v74_v3  ;;  %v75_v30 = vld [vmem:[%s2541_s0 + $0x1c0] sm:$0xff] }
  0x5b   :  { %v1206_v46 = vpop.eup %1205  ;;  %703 = vst.msk [vmem:[%s2545_s4 + $0xe8] sm:$0xff] %vm673_vm0, %v638_v36  ;;  %860 = vrot.lane.b32.xlu1 %v1200_v29, %s1327_s26  ;;  %v640_v47 = vmul.f32 %v1204_v41, %v576_v31  ;;  %1225 = vpow2.f32 %v1849_v62  ;;  %v580_v62 = vld [vmem:[%s2544_s1 + $0x118] sm:$0xff]  ;;  %v213_v19 = vadd.f32 %v1907_v27, %v142_v0  ;;  %v2010_v28 = vmul.f32 1.442695, %v276_v6  ;;  %v79_v0 = vld [vmem:[%s2541_s0 + $0x1e0] sm:$0xff] }
  0x5c   :  { %v1208_v52 = vpop.eup %1207  ;;  %702 = vst.msk [vmem:[%s2545_s4 + $0xe0] sm:$0xff] %vm673_vm0, %v637_v42  ;;  %v639_v53 = vmul.f32 %v1206_v46, %v575_v37  ;;  %1227 = vpow2.f32 %v1855_v4  ;;  %v211_v11 = vadd.f32 %v1907_v27, %v140_v59  ;;  %v216_v23 = vadd.f32 %v1907_v27, %v145_v16  ;;  %v583_v6 = vld [vmem:[%s2544_s1 + $0x130] sm:$0xff] }
  0x5d   :  { %v1210_v56 = vpop.eup %1209  ;;  %858 = vrot.lane.b32.xlu0 %v1202_v35, %s1327_s26  ;;  %705 = vst.msk [vmem:[%s2545_s4 + $0xf8] sm:$0xff] %vm673_vm0, %v640_v47  ;;  %v642_v57 = vmul.f32 %v1208_v52, %v578_v44  ;;  %1229 = vpow2.f32 %v373_v14  ;;  %v214_v14 = vadd.f32 %v1907_v27, %v143_v63  ;;  %v144_v35 = vmul.f32 %v1888_v15, %v73_v20  ;;  %v80_v63 = vld [vmem:[%s2541_s0 + $0x1e8] sm:$0xff] }
  0x5e   :  { %v1212_v60 = vpop.eup %1211  ;;  %704 = vst.msk [vmem:[%s2545_s4 + $0xf0] sm:$0xff] %vm673_vm0, %v639_v53  ;;  %v641_v61 = vmul.f32 %v1210_v56, %v577_v48  ;;  %1231 = vpow2.f32 %v379_v38  ;;  %v275_v29 = vsub.f32 0.0, %v211_v11  ;;  %v277_v39 = vsub.f32 0.0, %v213_v19 }
  0x5f   :  { %v1214_v4 = vpop.eup %1213  ;;  %864 = vrot.lane.b32.xlu1 %v1204_v41, %s1327_s26  ;;  %707 = vst.msk [vmem:[%s2545_s4 + $0x108] sm:$0xff] %vm673_vm0, %v642_v57  ;;  %v453_v1 = vadd.f32 1.0, %v1212_v60  ;;  %1233 = vpow2.f32 %v377_v45  ;;  %v278_v34 = vsub.f32 0.0, %v214_v14  ;;  %v147_v32 = vmul.f32 %v1888_v15, %v76_v24  ;;  %v78_v41 = vld [vmem:[%s2541_s0 + $0x1d8] sm:$0xff] }
  0x60   :  { %v1216_v9 = vpop.eup %1215  ;;  %706 = vst.msk [vmem:[%s2545_s4 + $0x100] sm:$0xff] %vm673_vm0, %v641_v61  ;;  %v456_v10 = vadd.f32 1.0, %v1214_v4  ;;  %1235 = vpow2.f32 %v383_v54  ;;  %v280_v38 = vsub.f32 0.0, %v216_v23  ;;  %v146_v45 = vmul.f32 %v1888_v15, %v75_v30  ;;  %v82_v14 = vld [vmem:[%s2541_s0 + $0x1f8] sm:$0xff] }
  0x61   :  { %v1218_v12 = vpop.eup %1217  ;;  %862 = vrot.lane.b32.xlu0 %v1206_v46, %s1327_s26  ;;  %v644_v13 = vmul.f32 %v1216_v9, %v580_v62  ;;  %1237 = vrcp.f32 %v453_v1  ;;  %v389_v47 = vmul.f32 1.442695, %v275_v29  ;;  %v215_v48 = vadd.f32 %v1907_v27, %v144_v35  ;;  %v588_v29 = vld [vmem:[%s2544_s1 + $0x158] sm:$0xff]  ;;  %v587_v35 = vld [vmem:[%s2544_s1 + $0x150] sm:$0xff] }
  0x62   :  { %v1220_v17 = vpop.eup %1219  ;;  %v643_v18 = vmul.f32 %v1218_v12, %v579_v5  ;;  %1239 = vrcp.f32 %v456_v10  ;;  %v149_v53 = vmul.f32 %v1888_v15, %v78_v41  ;;  %v2039_v57 = vmul.f32 1.442695, %v277_v39  ;;  %v590_v41 = vld [vmem:[%s2544_s1 + $0x168] sm:$0xff] }
  0x63   :  { %v1222_v21 = vpop.eup %1221  ;;  %868 = vrot.lane.b32.xlu1 %v1208_v52, %s1327_s26  ;;  %709 = vst.msk [vmem:[%s2545_s4 + $0x118] sm:$0xff] %vm673_vm0, %v644_v13  ;;  %v646_v22 = vmul.f32 %v1220_v17, %v582_v2  ;;  %1241 = vpow2.f32 %v381_v58  ;;  %v2036_v52 = vadd.f32 %v1907_v27, %v147_v32  ;;  %v77_v58 = vld [vmem:[%s2541_s0 + $0x1d0] sm:$0xff]  ;;  %v2045_v61 = vmul.f32 1.442695, %v280_v38 }
  0x64   :  { %v1224_v25 = vpop.eup %1223  ;;  %708 = vst.msk [vmem:[%s2545_s4 + $0x110] sm:$0xff] %vm673_vm0, %v643_v18  ;;  %v455_v26 = vadd.f32 1.0, %v1222_v21  ;;  %1243 = vpow2.f32 %v387_v7  ;;  %v217_v62 = vadd.f32 %v1907_v27, %v146_v45  ;;  %v279_v5 = vsub.f32 0.0, %v215_v48 }
  0x65   :  { %v1226_v31 = vpop.eup %1225  ;;  %866 = vrot.lane.b32.xlu0 %v1210_v56, %s1327_s26  ;;  %711 = vst.msk [vmem:[%s2545_s4 + $0x128] sm:$0xff] %vm673_vm0, %v646_v22  ;;  %v458_v33 = vadd.f32 1.0, %v1224_v25  ;;  %1245 = vpow2.f32 %v385_v8  ;;  %v395_v56 = vmul.f32 1.442695, %v278_v34  ;;  %v220_v1 = vadd.f32 %v1907_v27, %v149_v53  ;;  %v585_v22 = vld [vmem:[%s2544_s1 + $0x140] sm:$0xff] }
  0x66   :  { %v1228_v36 = vpop.eup %1227  ;;  %1247 = vrcp.f32 %v455_v26  ;;  %v457_v37 = vadd.f32 1.0, %v1226_v31  ;;  %v148_v2 = vmul.f32 %v1888_v15, %v77_v58  ;;  %v150_v13 = vmul.f32 %v1888_v15, %v79_v0  ;;  %v594_v0 = vld [vmem:[%s2544_s1 + $0x188] sm:$0xff] }
  0x67   :  { %v1230_v42 = vpop.eup %1229  ;;  %872 = vrot.lane.b32.xlu1 %v1216_v9, %s1327_s26  ;;  %1249 = vrcp.f32 %v458_v33  ;;  %v460_v44 = vadd.f32 1.0, %v1228_v36  ;;  %v282_v9 = vsub.f32 0.0, %v2036_v52  ;;  %v281_v19 = vsub.f32 0.0, %v217_v62 }
  0x68   :  { %v1232_v40 = vpop.eup %1231  ;;  %1251 = vrcp.f32 %v457_v37  ;;  %v459_v46 = vadd.f32 1.0, %v1230_v42  ;;  %v219_v20 = vadd.f32 %v1907_v27, %v148_v2  ;;  %v397_v24 = vmul.f32 1.442695, %v279_v5 }
  0x69   :  { %v1234_v49 = vpop.eup %1233  ;;  %870 = vrot.lane.b32.xlu0 %v1218_v12, %s1327_s26  ;;  %1253 = vrcp.f32 %v460_v44  ;;  %v462_v43 = vadd.f32 1.0, %v1232_v40  ;;  %v151_v12 = vmul.f32 %v1888_v15, %v80_v63  ;;  %v284_v25 = vsub.f32 0.0, %v220_v1  ;;  %v589_v40 = vld [vmem:[%s2544_s1 + $0x160] sm:$0xff] }
  0x6a   :  { %v1236_v54 = vpop.eup %1235  ;;  %1255 = vrcp.f32 %v459_v46  ;;  %v461_v55 = vadd.f32 1.0, %v1234_v49  ;;  %v153_v31 = vmul.f32 %v1888_v15, %v82_v14  ;;  %v283_v36 = vsub.f32 0.0, %v219_v20  ;;  %v592_v49 = vld [vmem:[%s2544_s1 + $0x178] sm:$0xff] }
  0x6b   :  { %v1238_v59 = vpop.eup %1237  ;;  %876 = vrot.lane.b32.xlu1 %v1220_v17, %s1327_s26  ;;  %1257 = vrcp.f32 %v462_v43  ;;  %v464_v60 = vadd.f32 1.0, %v1236_v54  ;;  %v586_v17 = vld [vmem:[%s2544_s1 + $0x148] sm:$0xff]  ;;  %v222_v30 = vadd.f32 %v1907_v27, %v151_v12  ;;  %v221_v37 = vadd.f32 %v1907_v27, %v150_v13  ;;  %v81_v43 = vld [vmem:[%s2541_s0 + $0x1f0] sm:$0xff] }
  0x6c   :  { %v1240_v3 = vpop.eup %1239  ;;  %v645_v4 = vmul.f32 %v1238_v59, %v581_v50  ;;  %1259 = vrcp.f32 %v461_v55  ;;  %v403_v42 = vmul.f32 1.442695, %v282_v9  ;;  %v224_v44 = vadd.f32 %v1907_v27, %v153_v31 }
  0x6d   :  { %v1242_v7 = vpop.eup %1241  ;;  %874 = vrot.lane.b32.xlu0 %v1238_v59, %s1327_s26  ;;  %v648_v8 = vmul.f32 %v1240_v3, %v584_v51  ;;  %1261 = vrcp.f32 %v464_v60  ;;  %v401_v46 = vmul.f32 1.442695, %v281_v19  ;;  %v407_v50 = vmul.f32 1.442695, %v284_v25 }
  0x6e   :  { %v1244_v10 = vpop.eup %1243  ;;  %710 = vst.msk [vmem:[%s2545_s4 + $0x120] sm:$0xff] %vm673_vm0, %v645_v4  ;;  %v463_v11 = vadd.f32 1.0, %v1242_v7  ;;  %1263 = vpow2.f32 %v2010_v28  ;;  %v286_v51 = vsub.f32 0.0, %v222_v30  ;;  %v405_v54 = vmul.f32 1.442695, %v283_v36  ;;  %v595_v30 = vld [vmem:[%s2544_s1 + $0x190] sm:$0xff] }
  0x6f   :  { %v1246_v16 = vpop.eup %1245  ;;  %713 = vst.msk [vmem:[%s2545_s4 + $0x138] sm:$0xff] %vm673_vm0, %v648_v8  ;;  %880 = vrot.lane.b32.xlu1 %v1240_v3, %s1327_s26  ;;  %v466_v18 = vadd.f32 1.0, %v1244_v10  ;;  %1265 = vpow2.f32 %v389_v47  ;;  %v285_v55 = vsub.f32 0.0, %v221_v37  ;;  %v288_v58 = vsub.f32 0.0, %v224_v44 }
  0x70   :  { %v1248_v21 = vpop.eup %1247  ;;  %1267 = vrcp.f32 %v463_v11  ;;  %v465_v23 = vadd.f32 1.0, %v1246_v16  ;;  %v152_v62 = vmul.f32 %v1888_v15, %v81_v43  ;;  %v411_v4 = vmul.f32 1.442695, %v286_v51  ;;  %v593_v15 = vld [vmem:[%s2544_s1 + $0x180] sm:$0xff]  ;;  %v599_v51 = vld [vmem:[%s2544_s1 + $0x1b0] sm:$0xff] }
  0x71   :  { %v1250_v26 = vpop.eup %1249  ;;  %v647_v28 = vmul.f32 %v1248_v21, %v583_v6  ;;  %878 = vrot.lane.b32.xlu0 %v1248_v21, %s1327_s26  ;;  %1269 = vrcp.f32 %v466_v18  ;;  %v409_v7 = vmul.f32 1.442695, %v285_v55  ;;  %v415_v2 = vmul.f32 1.442695, %v288_v58 }
  0x72   :  { %v1252_v33 = vpop.eup %1251  ;;  %v650_v34 = vmul.f32 %v1250_v26, %v586_v17  ;;  %1271 = vrcp.f32 %v465_v23  ;;  %v223_v11 = vadd.f32 %v1907_v27, %v152_v62  ;;  %v603_v62 = vld [vmem:[%s2544_s1 + $0x1d0] sm:$0xff] }
  0x73   :  { %v1254_v39 = vpop.eup %1253  ;;  %712 = vst.msk [vmem:[%s2545_s4 + $0x130] sm:$0xff] %vm673_vm0, %v647_v28  ;;  %884 = vrot.lane.b32.xlu1 %v1250_v26, %s1327_s26  ;;  %v649_v32 = vmul.f32 %v1252_v33, %v585_v22  ;;  %1273 = vpow2.f32 %v395_v56  ;;  %v596_v26 = vld [vmem:[%s2544_s1 + $0x198] sm:$0xff] }
  0x74   :  { %v1256_v38 = vpop.eup %1255  ;;  %715 = vst.msk [vmem:[%s2545_s4 + $0x148] sm:$0xff] %vm673_vm0, %v650_v34  ;;  %v652_v45 = vmul.f32 %v1254_v39, %v588_v29  ;;  %1275 = vpow2.f32 %v2039_v57  ;;  %v287_v20 = vsub.f32 0.0, %v223_v11 }
  0x75   :  { %v1258_v47 = vpop.eup %1257  ;;  %714 = vst.msk [vmem:[%s2545_s4 + $0x140] sm:$0xff] %vm673_vm0, %v649_v32  ;;  %882 = vrot.lane.b32.xlu0 %v1252_v33, %s1327_s26  ;;  %v651_v48 = vmul.f32 %v1256_v38, %v587_v35  ;;  %1277 = vpow2.f32 %v2045_v61  ;;  %v591_v61 = vld [vmem:[%s2544_s1 + $0x170] sm:$0xff] }
  0x76   :  { %v1260_v52 = vpop.eup %1259  ;;  %717 = vst.msk [vmem:[%s2545_s4 + $0x158] sm:$0xff] %vm673_vm0, %v652_v45  ;;  %v654_v53 = vmul.f32 %v1258_v47, %v590_v41  ;;  %1279 = vpow2.f32 %v397_v24  ;;  %v413_v33 = vmul.f32 1.442695, %v287_v20  ;;  %v597_v45 = vld [vmem:[%s2544_s1 + $0x1a0] sm:$0xff] }
  0x77   :  { %v1262_v56 = vpop.eup %1261  ;;  %888 = vrot.lane.b32.xlu1 %v1254_v39, %s1327_s26  ;;  %716 = vst.msk [vmem:[%s2545_s4 + $0x150] sm:$0xff] %vm673_vm0, %v651_v48  ;;  %v653_v57 = vmul.f32 %v1260_v52, %v589_v40  ;;  %1281 = vpow2.f32 %v403_v42  ;;  %v598_v42 = vld [vmem:[%s2544_s1 + $0x1a8] sm:$0xff] }
  0x78   :  { %v1264_v59 = vpop.eup %1263  ;;  %719 = vst.msk [vmem:[%s2545_s4 + $0x168] sm:$0xff] %vm673_vm0, %v654_v53  ;;  %v656_v60 = vmul.f32 %v1262_v56, %v592_v49  ;;  %1283 = vpow2.f32 %v401_v46  ;;  %v602_v53 = vld [vmem:[%s2544_s1 + $0x1c8] sm:$0xff] }
  0x79   :  { %v1266_v63 = vpop.eup %1265  ;;  %886 = vrot.lane.b32.xlu0 %v1256_v38, %s1327_s26  ;;  %718 = vst.msk [vmem:[%s2545_s4 + $0x160] sm:$0xff] %vm673_vm0, %v653_v57  ;;  %v468_v3 = vadd.f32 1.0, %v1264_v59  ;;  %1285 = vpow2.f32 %v407_v50  ;;  %v604_v59 = vld [vmem:[%s2544_s1 + $0x1d8] sm:$0xff] }
  0x7a   :  { %v1268_v5 = vpop.eup %1267  ;;  %721 = vst.msk [vmem:[%s2545_s4 + $0x178] sm:$0xff] %vm673_vm0, %v656_v60  ;;  %v467_v1 = vadd.f32 1.0, %v1266_v63  ;;  %1287 = vpow2.f32 %v405_v54 }
  0x7b   :  { %v1270_v8 = vpop.eup %1269  ;;  %892 = vrot.lane.b32.xlu1 %v1258_v47, %s1327_s26  ;;  %v655_v9 = vmul.f32 %v1268_v5, %v591_v61  ;;  %1289 = vrcp.f32 %v468_v3  ;;  %v600_v47 = vld [vmem:[%s2544_s1 + $0x1b8] sm:$0xff] }
  0x7c   :  { %v1272_v10 = vpop.eup %1271  ;;  %v658_v6 = vmul.f32 %v1270_v8, %v594_v0  ;;  %1291 = vrcp.f32 %v467_v1  ;;  %v606_v1 = vld [vmem:[%s2544_s1 + $0x1e8] sm:$0xff] }
  0x7d   :  { %v1274_v12 = vpop.eup %1273  ;;  %890 = vrot.lane.b32.xlu0 %v1260_v52, %s1327_s26  ;;  %720 = vst.msk [vmem:[%s2545_s4 + $0x170] sm:$0xff] %vm673_vm0, %v655_v9  ;;  %v657_v13 = vmul.f32 %v1272_v10, %v593_v15  ;;  %1293 = vpow2.f32 %v411_v4 }
  0x7e   :  { %v1276_v14 = vpop.eup %1275  ;;  %723 = vst.msk [vmem:[%s2545_s4 + $0x188] sm:$0xff] %vm673_vm0, %v658_v6  ;;  %v470_v16 = vadd.f32 1.0, %v1274_v12  ;;  %1295 = vpow2.f32 %v409_v7  ;;  %v605_v7 = vld [vmem:[%s2544_s1 + $0x1e0] sm:$0xff] }
  0x7f   :  { %v1278_v17 = vpop.eup %1277  ;;  %896 = vrot.lane.b32.xlu1 %v1262_v56, %s1327_s26  ;;  %722 = vst.msk [vmem:[%s2545_s4 + $0x180] sm:$0xff] %vm673_vm0, %v657_v13  ;;  %v469_v27 = vadd.f32 1.0, %v1276_v14  ;;  %1297 = vpow2.f32 %v415_v2  ;;  %v601_v56 = vld [vmem:[%s2544_s1 + $0x1c0] sm:$0xff]  ;;  %v608_v2 = vld [vmem:[%s2544_s1 + $0x1f8] sm:$0xff] }
  0x80   :  { %v1280_v18 = vpop.eup %1279  ;;  %1299 = vrcp.f32 %v470_v16  ;;  %v472_v19 = vadd.f32 1.0, %v1278_v17 }
  0x81   :  { %v1282_v21 = vpop.eup %1281  ;;  %894 = vrot.lane.b32.xlu0 %v1268_v5, %s1327_s26  ;;  %1301 = vrcp.f32 %v469_v27  ;;  %v471_v22 = vadd.f32 1.0, %v1280_v18 }
  0x82   :  { %v1284_v23 = vpop.eup %1283  ;;  %1303 = vrcp.f32 %v472_v19  ;;  %v474_v24 = vadd.f32 1.0, %v1282_v21  ;;  %v607_v19 = vld [vmem:[%s2544_s1 + $0x1f0] sm:$0xff] }
  0x83   :  { %v1286_v25 = vpop.eup %1285  ;;  %900 = vrot.lane.b32.xlu1 %v1270_v8, %s1327_s26  ;;  %1305 = vrcp.f32 %v471_v22  ;;  %v473_v28 = vadd.f32 1.0, %v1284_v23 }
  0x84   :  { %v1288_v29 = vpop.eup %1287  ;;  %1307 = vrcp.f32 %v474_v24  ;;  %v476_v31 = vadd.f32 1.0, %v1286_v25 }
  0x85   :  { %v1290_v34 = vpop.eup %1289  ;;  %898 = vrot.lane.b32.xlu0 %v1272_v10, %s1327_s26  ;;  %1309 = vrcp.f32 %v473_v28  ;;  %v475_v35 = vadd.f32 1.0, %v1288_v29 }
  0x86   :  { %v1292_v36 = vpop.eup %1291  ;;  %v660_v37 = vmul.f32 %v1290_v34, %v596_v26  ;;  %1311 = vrcp.f32 %v476_v31 }
  0x87   :  { %v1294_v39 = vpop.eup %1293  ;;  %904 = vrot.lane.b32.xlu1 %v1290_v34, %s1327_s26  ;;  %v659_v32 = vmul.f32 %v1292_v36, %v595_v30  ;;  %1313 = vrcp.f32 %v475_v35 }
  0x88   :  { %v1296_v41 = vpop.eup %1295  ;;  %725 = vst.msk [vmem:[%s2545_s4 + $0x198] sm:$0xff] %vm673_vm0, %v660_v37  ;;  %v478_v44 = vadd.f32 1.0, %v1294_v39  ;;  %1315 = vpow2.f32 %v413_v33 }
  0x89   :  { %v1298_v38 = vpop.eup %1297  ;;  %724 = vst.msk [vmem:[%s2545_s4 + $0x190] sm:$0xff] %vm673_vm0, %v659_v32  ;;  %902 = vrot.lane.b32.xlu0 %v1292_v36, %s1327_s26  ;;  %v477_v40 = vadd.f32 1.0, %v1296_v41 }
  0x8a   :  { %v1300_v46 = vpop.eup %1299  ;;  %1317 = vrcp.f32 %v478_v44  ;;  %v480_v48 = vadd.f32 1.0, %v1298_v38 }
  0x8b   :  { %v1302_v49 = vpop.eup %1301  ;;  %v662_v50 = vmul.f32 %v1300_v46, %v598_v42  ;;  %908 = vrot.lane.b32.xlu1 %v1300_v46, %s1327_s26  ;;  %1319 = vrcp.f32 %v477_v40 }
  0x8c   :  { %v1304_v43 = vpop.eup %1303  ;;  %v661_v52 = vmul.f32 %v1302_v49, %v597_v45  ;;  %1321 = vrcp.f32 %v480_v48 }
  0x8d   :  { %v1306_v54 = vpop.eup %1305  ;;  %727 = vst.msk [vmem:[%s2545_s4 + $0x1a8] sm:$0xff] %vm673_vm0, %v662_v50  ;;  %906 = vrot.lane.b32.xlu0 %v1302_v49, %s1327_s26  ;;  %v664_v55 = vmul.f32 %v1304_v43, %v600_v47 }
  0x8e   :  { %v1308_v57 = vpop.eup %1307  ;;  %726 = vst.msk [vmem:[%s2545_s4 + $0x1a0] sm:$0xff] %vm673_vm0, %v661_v52  ;;  %v663_v58 = vmul.f32 %v1306_v54, %v599_v51 }
  0x8f   :  { %v1310_v60 = vpop.eup %1309  ;;  %729 = vst.msk [vmem:[%s2545_s4 + $0x1b8] sm:$0xff] %vm673_vm0, %v664_v55  ;;  %912 = vrot.lane.b32.xlu1 %v1304_v43, %s1327_s26  ;;  %v666_v61 = vmul.f32 %v1308_v57, %v602_v53 }
  0x90   :  { %v1312_v63 = vpop.eup %1311  ;;  %728 = vst.msk [vmem:[%s2545_s4 + $0x1b0] sm:$0xff] %vm673_vm0, %v663_v58  ;;  %v665_v0 = vmul.f32 %v1310_v60, %v601_v56 }
  0x91   :  { %v1314_v3 = vpop.eup %1313  ;;  %910 = vrot.lane.b32.xlu0 %v1306_v54, %s1327_s26  ;;  %731 = vst.msk [vmem:[%s2545_s4 + $0x1c8] sm:$0xff] %vm673_vm0, %v666_v61  ;;  %v668_v4 = vmul.f32 %v1312_v63, %v604_v59 }
  0x92   :  { %v1316_v5 = vpop.eup %1315  ;;  %730 = vst.msk [vmem:[%s2545_s4 + $0x1c0] sm:$0xff] %vm673_vm0, %v665_v0  ;;  %v667_v15 = vmul.f32 %v1314_v3, %v603_v62 }
  0x93   :  { %916 = vrot.lane.b32.xlu1 %v1308_v57, %s1327_s26  ;;  %733 = vst.msk [vmem:[%s2545_s4 + $0x1d8] sm:$0xff] %vm673_vm0, %v668_v4  ;;  %v479_v8 = vadd.f32 1.0, %v1316_v5 }
  0x94   :  { %v1318_v9 = vpop.eup %1317  ;;  %732 = vst.msk [vmem:[%s2545_s4 + $0x1d0] sm:$0xff] %vm673_vm0, %v667_v15  ;;  %v807_v6 = vpop.permute.xlu1 %806 }
  0x95   :  { %v1320_v10 = vpop.eup %1319  ;;  %914 = vrot.lane.b32.xlu0 %v1310_v60, %s1327_s26  ;;  %v670_v11 = vmul.f32 %v1318_v9, %v606_v1  ;;  %1323 = vrcp.f32 %v479_v8  ;;  %996 = vst.msk [vmem:[%s2546_s5 + $0x10] sm:$0xff] %vm673_vm0, %v807_v6 }
  0x96   :  { %v1322_v12 = vpop.eup %1321  ;;  %v803_v13 = vpop.permute.xlu0 %802  ;;  %v669_v14 = vmul.f32 %v1320_v10, %v605_v7 }
  0x97   :  { %994 = vst.msk [vmem:[%s2546_s5] sm:$0xff] %vm673_vm0, %v803_v13  ;;  %920 = vrot.lane.b32.xlu1 %v1312_v63, %s1327_s26  ;;  %735 = vst.msk [vmem:[%s2545_s4 + $0x1e8] sm:$0xff] %vm673_vm0, %v670_v11  ;;  %v672_v16 = vmul.f32 %v1322_v12, %v608_v2 }
  0x98   :  { %734 = vst.msk [vmem:[%s2545_s4 + $0x1e0] sm:$0xff] %vm673_vm0, %v669_v14  ;;  %v809_v17 = vpop.permute.xlu1 %808 }
  0x99   :  { %918 = vrot.lane.b32.xlu0 %v1314_v3, %s1327_s26  ;;  %737 = vst.msk [vmem:[%s2545_s4 + $0x1f8] sm:$0xff] %vm673_vm0, %v672_v16  ;;  %997 = vst.msk [vmem:[%s2546_s5 + $0x18] sm:$0xff] %vm673_vm0, %v809_v17 }
  0x9a   :  { %v805_v27 = vpop.permute.xlu0 %804 }
  0x9b   :  { %995 = vst.msk [vmem:[%s2546_s5 + $0x8] sm:$0xff] %vm673_vm0, %v805_v27  ;;  %924 = vrot.lane.b32.xlu1 %v1318_v9, %s1327_s26 }
  0x9c   :  { %v813_v18 = vpop.permute.xlu1 %812 }
  0x9d   :  { %922 = vrot.lane.b32.xlu0 %v1320_v10, %s1327_s26  ;;  %999 = vst.msk [vmem:[%s2546_s5 + $0x28] sm:$0xff] %vm673_vm0, %v813_v18 }
  0x9e   :  { %v811_v20 = vpop.permute.xlu0 %810 }
  0x9f   :  { %v1324_v21 = vpop.eup %1323  ;;  %998 = vst.msk [vmem:[%s2546_s5 + $0x20] sm:$0xff] %vm673_vm0, %v811_v20  ;;  %928 = vrot.lane.b32.xlu1 %v1322_v12, %s1327_s26 }
  0xa0   :  { %v671_v22 = vmul.f32 %v1324_v21, %v607_v19  ;;  %v817_v23 = vpop.permute.xlu1 %816 }
  0xa1   :  { %926 = vrot.lane.b32.xlu0 %v1324_v21, %s1327_s26  ;;  %1001 = vst.msk [vmem:[%s2546_s5 + $0x38] sm:$0xff] %vm673_vm0, %v817_v23 }
  0xa2   :  { %736 = vst.msk [vmem:[%s2545_s4 + $0x1f0] sm:$0xff] %vm673_vm0, %v671_v22  ;;  %v815_v24 = vpop.permute.xlu0 %814 }
  0xa3   :  { %1000 = vst.msk [vmem:[%s2546_s5 + $0x30] sm:$0xff] %vm673_vm0, %v815_v24 }
  0xa4   :  { %v821_v25 = vpop.permute.xlu1 %820 }
  0xa5   :  { %1003 = vst.msk [vmem:[%s2546_s5 + $0x48] sm:$0xff] %vm673_vm0, %v821_v25 }
  0xa6   :  { %v819_v26 = vpop.permute.xlu0 %818 }
  0xa7   :  { %1002 = vst.msk [vmem:[%s2546_s5 + $0x40] sm:$0xff] %vm673_vm0, %v819_v26 }
  0xa8   :  { %v825_v28 = vpop.permute.xlu1 %824 }
  0xa9   :  { %1005 = vst.msk [vmem:[%s2546_s5 + $0x58] sm:$0xff] %vm673_vm0, %v825_v28 }
  0xaa   :  { %v823_v29 = vpop.permute.xlu0 %822 }
  0xab   :  { %1004 = vst.msk [vmem:[%s2546_s5 + $0x50] sm:$0xff] %vm673_vm0, %v823_v29 }
  0xac   :  { %v829_v30 = vpop.permute.xlu1 %828 }
  0xad   :  { %1007 = vst.msk [vmem:[%s2546_s5 + $0x68] sm:$0xff] %vm673_vm0, %v829_v30 }
  0xaf   :  { %v827_v31 = vpop.permute.xlu0 %826 }
  0xb0   :  { %1006 = vst.msk [vmem:[%s2546_s5 + $0x60] sm:$0xff] %vm673_vm0, %v827_v31  ;;  %v833_v33 = vpop.permute.xlu1 %832 }
  0xb1   :  { %1009 = vst.msk [vmem:[%s2546_s5 + $0x78] sm:$0xff] %vm673_vm0, %v833_v33 }
  0xb3   :  { %v831_v34 = vpop.permute.xlu0 %830 }
  0xb4   :  { %1008 = vst.msk [vmem:[%s2546_s5 + $0x70] sm:$0xff] %vm673_vm0, %v831_v34  ;;  %v837_v35 = vpop.permute.xlu1 %836 }
  0xb5   :  { %1011 = vst.msk [vmem:[%s2546_s5 + $0x88] sm:$0xff] %vm673_vm0, %v837_v35 }
  0xb7   :  { %v835_v36 = vpop.permute.xlu0 %834 }
  0xb8   :  { %1010 = vst.msk [vmem:[%s2546_s5 + $0x80] sm:$0xff] %vm673_vm0, %v835_v36  ;;  %v841_v37 = vpop.permute.xlu1 %840 }
  0xb9   :  { %1013 = vst.msk [vmem:[%s2546_s5 + $0x98] sm:$0xff] %vm673_vm0, %v841_v37 }
  0xbb   :  { %v839_v39 = vpop.permute.xlu0 %838 }
  0xbc   :  { %1012 = vst.msk [vmem:[%s2546_s5 + $0x90] sm:$0xff] %vm673_vm0, %v839_v39  ;;  %v845_v32 = vpop.permute.xlu1 %844 }
  0xbd   :  { %1015 = vst.msk [vmem:[%s2546_s5 + $0xa8] sm:$0xff] %vm673_vm0, %v845_v32 }
  0xbf   :  { %v843_v41 = vpop.permute.xlu0 %842 }
  0xc0   :  { %1014 = vst.msk [vmem:[%s2546_s5 + $0xa0] sm:$0xff] %vm673_vm0, %v843_v41  ;;  %v849_v42 = vpop.permute.xlu1 %848 }
  0xc1   :  { %1017 = vst.msk [vmem:[%s2546_s5 + $0xb8] sm:$0xff] %vm673_vm0, %v849_v42 }
  0xc3   :  { %v847_v44 = vpop.permute.xlu0 %846 }
  0xc4   :  { %1016 = vst.msk [vmem:[%s2546_s5 + $0xb0] sm:$0xff] %vm673_vm0, %v847_v44  ;;  %v853_v38 = vpop.permute.xlu1 %852 }
  0xc5   :  { %1019 = vst.msk [vmem:[%s2546_s5 + $0xc8] sm:$0xff] %vm673_vm0, %v853_v38 }
  0xc7   :  { %v851_v45 = vpop.permute.xlu0 %850 }
  0xc8   :  { %1018 = vst.msk [vmem:[%s2546_s5 + $0xc0] sm:$0xff] %vm673_vm0, %v851_v45 }
  0xc9   :  { %v857_v40 = vpop.permute.xlu1 %856 }
  0xca   :  { %1021 = vst.msk [vmem:[%s2546_s5 + $0xd8] sm:$0xff] %vm673_vm0, %v857_v40 }
  0xcb   :  { %v855_v46 = vpop.permute.xlu0 %854 }
  0xcc   :  { %1020 = vst.msk [vmem:[%s2546_s5 + $0xd0] sm:$0xff] %vm673_vm0, %v855_v46 }
  0xcd   :  { %v861_v47 = vpop.permute.xlu1 %860 }
  0xce   :  { %1023 = vst.msk [vmem:[%s2546_s5 + $0xe8] sm:$0xff] %vm673_vm0, %v861_v47 }
  0xcf   :  { %v859_v48 = vpop.permute.xlu0 %858 }
  0xd0   :  { %1022 = vst.msk [vmem:[%s2546_s5 + $0xe0] sm:$0xff] %vm673_vm0, %v859_v48 }
  0xd1   :  { %v865_v49 = vpop.permute.xlu1 %864 }
  0xd2   :  { %1025 = vst.msk [vmem:[%s2546_s5 + $0xf8] sm:$0xff] %vm673_vm0, %v865_v49 }
  0xd3   :  { %v863_v50 = vpop.permute.xlu0 %862 }
  0xd4   :  { %1024 = vst.msk [vmem:[%s2546_s5 + $0xf0] sm:$0xff] %vm673_vm0, %v863_v50 }
  0xd5   :  { %v869_v51 = vpop.permute.xlu1 %868 }
  0xd6   :  { %1027 = vst.msk [vmem:[%s2546_s5 + $0x108] sm:$0xff] %vm673_vm0, %v869_v51 }
  0xd7   :  { %v867_v43 = vpop.permute.xlu0 %866 }
  0xd8   :  { %1026 = vst.msk [vmem:[%s2546_s5 + $0x100] sm:$0xff] %vm673_vm0, %v867_v43 }
  0xd9   :  { %v873_v52 = vpop.permute.xlu1 %872 }
  0xda   :  { %1029 = vst.msk [vmem:[%s2546_s5 + $0x118] sm:$0xff] %vm673_vm0, %v873_v52 }
  0xdb   :  { %v871_v53 = vpop.permute.xlu0 %870 }
  0xdc   :  { %1028 = vst.msk [vmem:[%s2546_s5 + $0x110] sm:$0xff] %vm673_vm0, %v871_v53 }
  0xdd   :  { %v877_v54 = vpop.permute.xlu1 %876 }
  0xde   :  { %1031 = vst.msk [vmem:[%s2546_s5 + $0x128] sm:$0xff] %vm673_vm0, %v877_v54 }
  0xdf   :  { %v875_v55 = vpop.permute.xlu0 %874 }
  0xe0   :  { %1030 = vst.msk [vmem:[%s2546_s5 + $0x120] sm:$0xff] %vm673_vm0, %v875_v55 }
  0xe1   :  { %v881_v56 = vpop.permute.xlu1 %880 }
  0xe2   :  { %1033 = vst.msk [vmem:[%s2546_s5 + $0x138] sm:$0xff] %vm673_vm0, %v881_v56 }
  0xe3   :  { %v879_v57 = vpop.permute.xlu0 %878 }
  0xe4   :  { %1032 = vst.msk [vmem:[%s2546_s5 + $0x130] sm:$0xff] %vm673_vm0, %v879_v57 }
  0xe5   :  { %v885_v58 = vpop.permute.xlu1 %884 }
  0xe6   :  { %1035 = vst.msk [vmem:[%s2546_s5 + $0x148] sm:$0xff] %vm673_vm0, %v885_v58 }
  0xe7   :  { %v883_v59 = vpop.permute.xlu0 %882 }
  0xe8   :  { %1034 = vst.msk [vmem:[%s2546_s5 + $0x140] sm:$0xff] %vm673_vm0, %v883_v59 }
  0xe9   :  { %v889_v60 = vpop.permute.xlu1 %888 }
  0xea   :  { %1037 = vst.msk [vmem:[%s2546_s5 + $0x158] sm:$0xff] %vm673_vm0, %v889_v60 }
  0xeb   :  { %v887_v61 = vpop.permute.xlu0 %886 }
  0xec   :  { %1036 = vst.msk [vmem:[%s2546_s5 + $0x150] sm:$0xff] %vm673_vm0, %v887_v61 }
  0xed   :  { %v893_v62 = vpop.permute.xlu1 %892 }
  0xee   :  { %1039 = vst.msk [vmem:[%s2546_s5 + $0x168] sm:$0xff] %vm673_vm0, %v893_v62 }
  0xef   :  { %v891_v63 = vpop.permute.xlu0 %890 }
  0xf0   :  { %1038 = vst.msk [vmem:[%s2546_s5 + $0x160] sm:$0xff] %vm673_vm0, %v891_v63 }
  0xf1   :  { %v897_v0 = vpop.permute.xlu1 %896 }
  0xf2   :  { %1041 = vst.msk [vmem:[%s2546_s5 + $0x178] sm:$0xff] %vm673_vm0, %v897_v0 }
  0xf3   :  { %v895_v3 = vpop.permute.xlu0 %894 }
  0xf4   :  { %1040 = vst.msk [vmem:[%s2546_s5 + $0x170] sm:$0xff] %vm673_vm0, %v895_v3 }
  0xf5   :  { %v901_v4 = vpop.permute.xlu1 %900 }
  0xf6   :  { %1043 = vst.msk [vmem:[%s2546_s5 + $0x188] sm:$0xff] %vm673_vm0, %v901_v4 }
  0xf7   :  { %v899_v5 = vpop.permute.xlu0 %898 }
  0xf8   :  { %1042 = vst.msk [vmem:[%s2546_s5 + $0x180] sm:$0xff] %vm673_vm0, %v899_v5 }
  0xf9   :  { %v905_v15 = vpop.permute.xlu1 %904 }
  0xfa   :  { %1045 = vst.msk [vmem:[%s2546_s5 + $0x198] sm:$0xff] %vm673_vm0, %v905_v15 }
  0xfb   :  { %v903_v1 = vpop.permute.xlu0 %902 }
  0xfc   :  { %1044 = vst.msk [vmem:[%s2546_s5 + $0x190] sm:$0xff] %vm673_vm0, %v903_v1 }
  0xfd   :  { %v909_v7 = vpop.permute.xlu1 %908 }
  0xfe   :  { %1047 = vst.msk [vmem:[%s2546_s5 + $0x1a8] sm:$0xff] %vm673_vm0, %v909_v7 }
  0xff   :  { %v907_v8 = vpop.permute.xlu0 %906 }
 0x100   :  { %1046 = vst.msk [vmem:[%s2546_s5 + $0x1a0] sm:$0xff] %vm673_vm0, %v907_v8 }
 0x101   :  { %v913_v9 = vpop.permute.xlu1 %912 }
 0x102   :  { %1049 = vst.msk [vmem:[%s2546_s5 + $0x1b8] sm:$0xff] %vm673_vm0, %v913_v9 }
 0x103   :  { %v911_v2 = vpop.permute.xlu0 %910 }
 0x104   :  { %1048 = vst.msk [vmem:[%s2546_s5 + $0x1b0] sm:$0xff] %vm673_vm0, %v911_v2 }
 0x105   :  { %v917_v10 = vpop.permute.xlu1 %916 }
 0x106   :  { %1051 = vst.msk [vmem:[%s2546_s5 + $0x1c8] sm:$0xff] %vm673_vm0, %v917_v10 }
 0x107   :  { %v915_v6 = vpop.permute.xlu0 %914 }
 0x108   :  { %1050 = vst.msk [vmem:[%s2546_s5 + $0x1c0] sm:$0xff] %vm673_vm0, %v915_v6 }
 0x109   :  { %v921_v11 = vpop.permute.xlu1 %920 }
 0x10a   :  { %1053 = vst.msk [vmem:[%s2546_s5 + $0x1d8] sm:$0xff] %vm673_vm0, %v921_v11 }
 0x10b   :  { %v919_v12 = vpop.permute.xlu0 %918 }
 0x10c   :  { %1052 = vst.msk [vmem:[%s2546_s5 + $0x1d0] sm:$0xff] %vm673_vm0, %v919_v12 }
 0x10d   :  { %v925_v13 = vpop.permute.xlu1 %924 }
 0x10e   :  { %1055 = vst.msk [vmem:[%s2546_s5 + $0x1e8] sm:$0xff] %vm673_vm0, %v925_v13 }
 0x10f   :  { %v923_v14 = vpop.permute.xlu0 %922 }
 0x110   :  { %1054 = vst.msk [vmem:[%s2546_s5 + $0x1e0] sm:$0xff] %vm673_vm0, %v923_v14 }
 0x111   :  { %v929_v16 = vpop.permute.xlu1 %928 }
 0x112   :  { %1057 = vst.msk [vmem:[%s2546_s5 + $0x1f8] sm:$0xff] %vm673_vm0, %v929_v16 }
 0x113   :  { %v927_v17 = vpop.permute.xlu0 %926 }
 0x114   :  { %1056 = vst.msk [vmem:[%s2546_s5 + $0x1f0] sm:$0xff] %vm673_vm0, %v927_v17 }

// kernel: _lambda_.9
= control target key start
LH: loop header
LB: loop body
LE: loop exit
PB: predicated region body
PF: predicated region fallthrough
CT: control target
= control target key end

     0   :  { %vm675_vm0 = vcmask 261120   ;;  %s1976_s0 = inlined_call_operand.vmem [shape: f32[512,128], index: 0, kind: input, shape index: {}]   ;;  %s1977_s1 = inlined_call_operand.vmem [shape: f32[1,128], index: 1, kind: input, shape index: {}]   ;;  %s1978_s2 = inlined_call_operand.vmem [shape: f32[1,128], index: 2, kind: input, shape index: {}]   ;;  %s1979_s3 = inlined_call_operand.vmem [shape: f32[512,32], index: 3, kind: input, shape index: {}]   ;;  %s1980_s4 = inlined_call_operand.vmem [shape: f32[512,32], index: 4, kind: input, shape index: {}]   ;;  %s1981_s5 = inlined_call_operand.hbm [shape: f32[512,32], index: 5, kind: output, shape index: {}]  }
   0x1   :  { %v21_v0 = vld [vmem:[%s1976_s0] sm:$0xff]  ;;  %v22_v5 = vld [vmem:[%s1976_s0 + $0x8] sm:$0xff]  ;;  %v23_v7 = vld [vmem:[%s1976_s0 + $0x10] sm:$0xff] }
   0x2   :  { %v954_v1 = vld [vmem:[%s1977_s1] ss:$0 sm:$0xff]  ;;  %v24_v11 = vld [vmem:[%s1976_s0 + $0x18] sm:$0xff]  ;;  %v987_v14 = vld [vmem:[%s1979_s3 + $0x8] sm:$0xff] }
   0x3   :  { %v959_v2 = vld [vmem:[%s1978_s2] ss:$0 sm:$0xff]  ;;  %v92_v3 = vmul.f32 %v954_v1, %v21_v0  ;;  %v93_v6 = vmul.f32 %v954_v1, %v22_v5  ;;  %v94_v10 = vmul.f32 %v954_v1, %v23_v7  ;;  %v95_v15 = vmul.f32 %v954_v1, %v24_v11  ;;  %v997_v18 = vld [vmem:[%s1979_s3 + $0x10] sm:$0xff]  ;;  %v26_v19 = vld [vmem:[%s1976_s0 + $0x28] sm:$0xff] }
   0x4   :  { %v965_v4 = vld [vmem:[%s1979_s3] sm:$0xff]  ;;  %v1006_v21 = vld [vmem:[%s1979_s3 + $0x18] sm:$0xff]  ;;  %v27_v24 = vld [vmem:[%s1976_s0 + $0x30] sm:$0xff]  ;;  %v356_v26 = vsub.f32 1.0, %v987_v14  ;;  %v97_v27 = vmul.f32 %v954_v1, %v26_v19  ;;  %v357_v31 = vsub.f32 1.0, %v997_v18 }
   0x5   :  { %v163_v8 = vadd.f32 %v959_v2, %v92_v3  ;;  %v355_v9 = vsub.f32 1.0, %v965_v4  ;;  %v419_v12 = vld [vmem:[%s1980_s4] sm:$0xff]  ;;  %v164_v13 = vadd.f32 %v959_v2, %v93_v6  ;;  %v165_v17 = vadd.f32 %v959_v2, %v94_v10  ;;  %v1024_v28 = vld [vmem:[%s1979_s3 + $0x28] sm:$0xff]  ;;  %v1029_v29 = vld [vmem:[%s1979_s3 + $0x30] sm:$0xff] }
   0x6   :  { %v25_v16 = vld [vmem:[%s1976_s0 + $0x20] sm:$0xff]  ;;  %v166_v20 = vadd.f32 %v959_v2, %v95_v15  ;;  %v28_v30 = vld [vmem:[%s1976_s0 + $0x38] sm:$0xff]  ;;  %v98_v33 = vmul.f32 %v954_v1, %v27_v24  ;;  %v420_v36 = vld [vmem:[%s1980_s4 + $0x8] sm:$0xff]  ;;  %v358_v38 = vsub.f32 1.0, %v1006_v21  ;;  %v168_v40 = vadd.f32 %v959_v2, %v97_v27 }
   0x7   :  { %761 = vtanh.f32 %v163_v8  ;;  %v96_v22 = vmul.f32 %v954_v1, %v25_v16  ;;  %v1012_v23 = vld [vmem:[%s1979_s3 + $0x20] sm:$0xff]  ;;  %v1017_v25 = vmul.f32 %v419_v12, %v355_v9  ;;  %v1040_v34 = vld [vmem:[%s1979_s3 + $0x38] sm:$0xff]  ;;  %v421_v37 = vld [vmem:[%s1980_s4 + $0x10] sm:$0xff]  ;;  %v99_v41 = vmul.f32 %v954_v1, %v28_v30 }
   0x8   :  { %763 = vtanh.f32 %v164_v13  ;;  %v29_v35 = vld [vmem:[%s1976_s0 + $0x40] sm:$0xff]  ;;  %v359_v39 = vsub.f32 1.0, %v1012_v23  ;;  %v30_v42 = vld [vmem:[%s1976_s0 + $0x48] sm:$0xff]  ;;  %v422_v43 = vld [vmem:[%s1980_s4 + $0x18] sm:$0xff]  ;;  %v360_v44 = vsub.f32 1.0, %v1024_v28  ;;  %v169_v45 = vadd.f32 %v959_v2, %v98_v33 }
   0x9   :  { %765 = vtanh.f32 %v165_v17  ;;  %v167_v32 = vadd.f32 %v959_v2, %v96_v22  ;;  %v361_v46 = vsub.f32 1.0, %v1029_v29  ;;  %v31_v47 = vld [vmem:[%s1976_s0 + $0x50] sm:$0xff]  ;;  %v423_v48 = vld [vmem:[%s1980_s4 + $0x20] sm:$0xff]  ;;  %v424_v49 = vld [vmem:[%s1980_s4 + $0x28] sm:$0xff]  ;;  %v170_v50 = vadd.f32 %v959_v2, %v99_v41 }
   0xa   :  { %767 = vtanh.f32 %v166_v20  ;;  %v362_v51 = vsub.f32 1.0, %v1040_v34  ;;  %v100_v52 = vmul.f32 %v954_v1, %v29_v35  ;;  %v32_v53 = vld [vmem:[%s1976_s0 + $0x58] sm:$0xff]  ;;  %v484_v54 = vmul.f32 %v420_v36, %v356_v26  ;;  %v425_v56 = vld [vmem:[%s1980_s4 + $0x30] sm:$0xff]  ;;  %v1090_v61 = vld [vmem:[%s1979_s3 + $0x40] sm:$0xff] }
   0xb   :  { %769 = vtanh.f32 %v167_v32  ;;  %v485_v55 = vmul.f32 %v421_v37, %v357_v31  ;;  %v426_v57 = vld [vmem:[%s1980_s4 + $0x38] sm:$0xff]  ;;  %v101_v58 = vmul.f32 %v954_v1, %v30_v42  ;;  %v486_v59 = vmul.f32 %v422_v43, %v358_v38  ;;  %v1099_v5 = vld [vmem:[%s1979_s3 + $0x48] sm:$0xff]  ;;  %v33_v7 = vld [vmem:[%s1976_s0 + $0x60] sm:$0xff] }
   0xc   :  { %771 = vtanh.f32 %v168_v40  ;;  %v171_v60 = vadd.f32 %v959_v2, %v100_v52  ;;  %v102_v62 = vmul.f32 %v954_v1, %v31_v47  ;;  %v487_v63 = vmul.f32 %v423_v48, %v359_v39  ;;  %v1113_v12 = vld [vmem:[%s1979_s3 + $0x50] sm:$0xff]  ;;  %v34_v19 = vld [vmem:[%s1976_s0 + $0x68] sm:$0xff]  ;;  %v427_v24 = vld [vmem:[%s1980_s4 + $0x40] sm:$0xff] }
   0xd   :  { %773 = vtanh.f32 %v169_v45  ;;  %v1093_v0 = vmul.f32 %v424_v49, %v360_v44  ;;  %v172_v3 = vadd.f32 %v959_v2, %v101_v58  ;;  %v103_v6 = vmul.f32 %v954_v1, %v32_v53  ;;  %v35_v30 = vld [vmem:[%s1976_s0 + $0x70] sm:$0xff]  ;;  %v428_v37 = vld [vmem:[%s1980_s4 + $0x48] sm:$0xff]  ;;  %v36_v43 = vld [vmem:[%s1976_s0 + $0x78] sm:$0xff] }
   0xe   :  { %775 = vtanh.f32 %v170_v50  ;;  %v1105_v9 = vmul.f32 %v425_v56, %v361_v46  ;;  %v1107_v10 = vmul.f32 %v426_v57, %v362_v51  ;;  %v173_v11 = vadd.f32 %v959_v2, %v102_v62  ;;  %v429_v38 = vld [vmem:[%s1980_s4 + $0x50] sm:$0xff]  ;;  %v430_v47 = vld [vmem:[%s1980_s4 + $0x58] sm:$0xff]  ;;  %v1164_v53 = vld [vmem:[%s1979_s3 + $0x60] sm:$0xff] }
   0xf   :  { %777 = vtanh.f32 %v171_v60  ;;  %v363_v16 = vsub.f32 1.0, %v1090_v61  ;;  %v174_v17 = vadd.f32 %v959_v2, %v103_v6  ;;  %v364_v26 = vsub.f32 1.0, %v1099_v5 }
  0x10   :  { %779 = vtanh.f32 %v172_v3  ;;  %v104_v27 = vmul.f32 %v954_v1, %v33_v7  ;;  %v365_v33 = vsub.f32 1.0, %v1113_v12  ;;  %v107_v58 = vmul.f32 %v954_v1, %v36_v43 }
  0x11   :  { %v762_v8 = vpop.eup %761  ;;  %781 = vtanh.f32 %v173_v11  ;;  %v491_v41 = vmul.f32 %v427_v24, %v363_v16  ;;  %v492_v51 = vmul.f32 %v428_v37, %v364_v26  ;;  %v367_v7 = vsub.f32 1.0, %v1164_v53  ;;  %v1231_v37 = vld [vmem:[%s1979_s3 + $0x80] sm:$0xff] }
  0x12   :  { %v764_v13 = vpop.eup %763  ;;  %v547_v15 = vmul.f32 %v762_v8, %v965_v4  ;;  %v1129_v4 = vld [vmem:[%s1979_s3 + $0x58] sm:$0xff]  ;;  %783 = vtanh.f32 %v174_v17  ;;  %v175_v39 = vadd.f32 %v959_v2, %v104_v27  ;;  %v493_v52 = vmul.f32 %v429_v38, %v365_v33  ;;  %v433_v27 = vld [vmem:[%s1980_s4 + $0x70] sm:$0xff]  ;;  %v41_v33 = vld [vmem:[%s1976_s0 + $0xa0] sm:$0xff] }
  0x13   :  { %v766_v20 = vpop.eup %765  ;;  %v548_v22 = vmul.f32 %v764_v13, %v987_v14  ;;  %v366_v42 = vsub.f32 1.0, %v1129_v4  ;;  %v178_v8 = vadd.f32 %v959_v2, %v107_v58  ;;  %v44_v58 = vld [vmem:[%s1976_s0 + $0xb8] sm:$0xff] }
  0x14   :  { %v768_v31 = vpop.eup %767  ;;  %v611_v14 = vadd.f32 %v547_v15, %v1017_v25  ;;  %v549_v32 = vmul.f32 %v766_v20, %v997_v18  ;;  %v105_v25 = vmul.f32 %v954_v1, %v34_v19  ;;  %785 = vtanh.f32 %v175_v39  ;;  %v431_v19 = vld [vmem:[%s1980_s4 + $0x60] sm:$0xff]  ;;  %v42_v39 = vld [vmem:[%s1976_s0 + $0xa8] sm:$0xff] }
  0x15   :  { %v612_v35 = vadd.f32 %v548_v22, %v484_v54  ;;  %v550_v36 = vmul.f32 %v768_v31, %v1006_v21  ;;  %v770_v40 = vpop.eup %769  ;;  %v106_v21 = vmul.f32 %v954_v1, %v35_v30  ;;  %v37_v54 = vld [vmem:[%s1976_s0 + $0x80] sm:$0xff]  ;;  %v494_v3 = vmul.f32 %v430_v47, %v366_v42  ;;  %v40_v31 = vld [vmem:[%s1976_s0 + $0x98] sm:$0xff] }
  0x16   :  { %676 = vst.msk [vmem:[#allocation2] sm:$0xff] %vm675_vm0, %v611_v14  ;;  %v613_v18 = vadd.f32 %v549_v32, %v485_v55  ;;  %v772_v44 = vpop.eup %771  ;;  %v551_v46 = vmul.f32 %v770_v40, %v1012_v23  ;;  %v176_v48 = vadd.f32 %v959_v2, %v105_v25  ;;  %v111_v42 = vmul.f32 %v954_v1, %v40_v31  ;;  %v47_v31 = vld [vmem:[%s1976_s0 + $0xd0] sm:$0xff] }
  0x17   :  { %677 = vst.msk [vmem:[#allocation2 + $0x8] sm:$0xff] %vm675_vm0, %v612_v35  ;;  %v614_v45 = vadd.f32 %v550_v36, %v486_v59  ;;  %v774_v49 = vpop.eup %773  ;;  %v552_v50 = vmul.f32 %v772_v44, %v1024_v28  ;;  %v177_v23 = vadd.f32 %v959_v2, %v106_v21  ;;  %v1175_v28 = vld [vmem:[%s1979_s3 + $0x68] sm:$0xff]  ;;  %v495_v36 = vmul.f32 %v431_v19, %v367_v7  ;;  %v1290_v7 = vld [vmem:[%s1979_s3 + $0xa0] sm:$0xff] }
  0x18   :  { %678 = vst.msk [vmem:[#allocation2 + $0x10] sm:$0xff] %vm675_vm0, %v613_v18  ;;  %v776_v55 = vpop.eup %775  ;;  %v615_v56 = vadd.f32 %v551_v46, %v487_v63  ;;  %v553_v57 = vmul.f32 %v774_v49, %v1029_v29  ;;  %787 = vtanh.f32 %v176_v48  ;;  %v38_v59 = vld [vmem:[%s1976_s0 + $0x88] sm:$0xff]  ;;  %v1186_v29 = vld [vmem:[%s1979_s3 + $0x70] sm:$0xff]  ;;  %v368_v15 = vsub.f32 1.0, %v1175_v28  ;;  %v434_v48 = vld [vmem:[%s1980_s4 + $0x78] sm:$0xff] }
  0x19   :  { %679 = vst.msk [vmem:[#allocation2 + $0x18] sm:$0xff] %vm675_vm0, %v614_v45  ;;  %v616_v60 = vadd.f32 %v552_v50, %v1093_v0  ;;  %v554_v62 = vmul.f32 %v776_v55, %v1040_v34  ;;  %789 = vtanh.f32 %v177_v23  ;;  %v778_v63 = vpop.eup %777  ;;  %v108_v0 = vmul.f32 %v954_v1, %v37_v54  ;;  %v1250_v45 = vld [vmem:[%s1979_s3 + $0x90] sm:$0xff] }
  0x1a   :  { %680 = vst.msk [vmem:[#allocation2 + $0x20] sm:$0xff] %vm675_vm0, %v615_v56  ;;  %v617_v6 = vadd.f32 %v553_v57, %v1105_v9  ;;  %v780_v11 = vpop.eup %779  ;;  %v555_v13 = vmul.f32 %v778_v63, %v1090_v61  ;;  %v109_v16 = vmul.f32 %v954_v1, %v38_v59  ;;  %v369_v20 = vsub.f32 1.0, %v1186_v29  ;;  %v39_v61 = vld [vmem:[%s1976_s0 + $0x90] sm:$0xff]  ;;  %v435_v56 = vld [vmem:[%s1980_s4 + $0x80] sm:$0xff] }
  0x1b   :  { %681 = vst.msk [vmem:[#allocation2 + $0x28] sm:$0xff] %vm675_vm0, %v616_v60  ;;  %v618_v34 = vadd.f32 %v554_v62, %v1107_v10  ;;  %v782_v17 = vpop.eup %781  ;;  %v556_v9 = vmul.f32 %v780_v11, %v1099_v5  ;;  %791 = vtanh.f32 %v178_v8  ;;  %v179_v10 = vadd.f32 %v959_v2, %v108_v0  ;;  %v432_v5 = vld [vmem:[%s1980_s4 + $0x68] sm:$0xff]  ;;  %v45_v0 = vld [vmem:[%s1976_s0 + $0xc0] sm:$0xff] }
  0x1c   :  { %682 = vst.msk [vmem:[#allocation2 + $0x30] sm:$0xff] %vm675_vm0, %v617_v6  ;;  %v784_v22 = vpop.eup %783  ;;  %v619_v24 = vadd.f32 %v555_v13, %v491_v41  ;;  %v557_v26 = vmul.f32 %v782_v17, %v1113_v12  ;;  %v180_v30 = vadd.f32 %v959_v2, %v109_v16  ;;  %v306_v12 = vld [vmem:[%s1979_s3 + $0x78] sm:$0xff]  ;;  %v110_v38 = vmul.f32 %v954_v1, %v39_v61  ;;  %v436_v60 = vld [vmem:[%s1980_s4 + $0x88] sm:$0xff] }
  0x1d   :  { %683 = vst.msk [vmem:[#allocation2 + $0x38] sm:$0xff] %vm675_vm0, %v618_v34  ;;  %v620_v14 = vadd.f32 %v556_v9, %v492_v51  ;;  %v558_v32 = vmul.f32 %v784_v22, %v1129_v4  ;;  %793 = vtanh.f32 %v179_v10  ;;  %v1236_v4 = vld [vmem:[%s1979_s3 + $0x88] sm:$0xff]  ;;  %v496_v18 = vmul.f32 %v432_v5, %v368_v15  ;;  %v1308_v10 = vld [vmem:[%s1979_s3 + $0xb0] sm:$0xff]  ;;  %v1316_v5 = vld [vmem:[%s1979_s3 + $0xb8] sm:$0xff] }
  0x1e   :  { %684 = vst.msk [vmem:[#allocation2 + $0x40] sm:$0xff] %vm675_vm0, %v619_v24  ;;  %v621_v35 = vadd.f32 %v557_v26, %v493_v52  ;;  %795 = vtanh.f32 %v180_v30  ;;  %v786_v25 = vpop.eup %785  ;;  %v497_v41 = vmul.f32 %v433_v27, %v369_v20  ;;  %v370_v43 = vsub.f32 1.0, %v306_v12  ;;  %v1299_v15 = vld [vmem:[%s1979_s3 + $0xa8] sm:$0xff] }
  0x1f   :  { %685 = vst.msk [vmem:[#allocation2 + $0x48] sm:$0xff] %vm675_vm0, %v620_v14  ;;  %v622_v40 = vadd.f32 %v558_v32, %v494_v3  ;;  %v559_v21 = vmul.f32 %v786_v25, %v1164_v53  ;;  %v181_v44 = vadd.f32 %v959_v2, %v110_v38  ;;  %v112_v46 = vmul.f32 %v954_v1, %v41_v33  ;;  %v43_v53 = vld [vmem:[%s1976_s0 + $0xb0] sm:$0xff]  ;;  %v46_v30 = vld [vmem:[%s1976_s0 + $0xc8] sm:$0xff]  ;;  %v438_v33 = vld [vmem:[%s1980_s4 + $0x98] sm:$0xff] }
  0x20   :  { %686 = vst.msk [vmem:[#allocation2 + $0x50] sm:$0xff] %vm675_vm0, %v621_v35  ;;  %v371_v49 = vsub.f32 1.0, %v1231_v37  ;;  %v372_v50 = vsub.f32 1.0, %v1236_v4  ;;  %v182_v51 = vadd.f32 %v959_v2, %v111_v42  ;;  %v113_v52 = vmul.f32 %v954_v1, %v42_v39  ;;  %v439_v39 = vld [vmem:[%s1980_s4 + $0xa0] sm:$0xff] }
  0x21   :  { %687 = vst.msk [vmem:[#allocation2 + $0x58] sm:$0xff] %vm675_vm0, %v622_v40  ;;  %v623_v54 = vadd.f32 %v559_v21, %v495_v36  ;;  %797 = vtanh.f32 %v181_v44  ;;  %v183_v57 = vadd.f32 %v959_v2, %v112_v46  ;;  %v373_v62 = vsub.f32 1.0, %v1250_v45  ;;  %v48_v36 = vld [vmem:[%s1976_s0 + $0xd8] sm:$0xff] }
  0x22   :  { %v788_v47 = vpop.eup %787  ;;  %799 = vtanh.f32 %v182_v51  ;;  %v184_v3 = vadd.f32 %v959_v2, %v113_v52  ;;  %v498_v6 = vmul.f32 %v434_v48, %v370_v43  ;;  %v114_v8 = vmul.f32 %v954_v1, %v43_v53  ;;  %v49_v43 = vld [vmem:[%s1976_s0 + $0xe0] sm:$0xff] }
  0x23   :  { %v790_v23 = vpop.eup %789  ;;  %v560_v55 = vmul.f32 %v788_v47, %v1175_v28  ;;  %v1280_v28 = vld [vmem:[%s1979_s3 + $0x98] sm:$0xff]  ;;  %688 = vst.msk [vmem:[#allocation2 + $0x60] sm:$0xff] %vm675_vm0, %v623_v54  ;;  %801 = vtanh.f32 %v183_v57  ;;  %v499_v13 = vmul.f32 %v435_v56, %v371_v49  ;;  %v115_v16 = vmul.f32 %v954_v1, %v44_v58  ;;  %v1358_v48 = vld [vmem:[%s1979_s3 + $0xc0] sm:$0xff]  ;;  %v1369_v57 = vld [vmem:[%s1979_s3 + $0xc8] sm:$0xff] }
  0x24   :  { %v561_v59 = vmul.f32 %v790_v23, %v1186_v29  ;;  %v437_v29 = vld [vmem:[%s1980_s4 + $0x90] sm:$0xff]  ;;  %803 = vtanh.f32 %v184_v3  ;;  %v500_v9 = vmul.f32 %v436_v60, %v372_v50  ;;  %v374_v19 = vsub.f32 1.0, %v1280_v28  ;;  %v442_v47 = vld [vmem:[%s1980_s4 + $0xb8] sm:$0xff] }
  0x25   :  { %v624_v63 = vadd.f32 %v560_v55, %v496_v18  ;;  %v792_v11 = vpop.eup %791  ;;  %v185_v20 = vadd.f32 %v959_v2, %v114_v8  ;;  %v501_v22 = vmul.f32 %v437_v29, %v373_v62  ;;  %v375_v24 = vsub.f32 1.0, %v1290_v7 }
  0x26   :  { %v625_v34 = vadd.f32 %v561_v59, %v497_v41  ;;  %v562_v17 = vmul.f32 %v792_v11, %v306_v12  ;;  %v186_v26 = vadd.f32 %v959_v2, %v115_v16  ;;  %v116_v27 = vmul.f32 %v954_v1, %v45_v0 }
  0x27   :  { %689 = vst.msk [vmem:[#allocation2 + $0x68] sm:$0xff] %vm675_vm0, %v624_v63  ;;  %v794_v61 = vpop.eup %793  ;;  %v376_v35 = vsub.f32 1.0, %v1299_v15  ;;  %805 = vtanh.f32 %v185_v20  ;;  %v377_v25 = vsub.f32 1.0, %v1308_v10  ;;  %v378_v41 = vsub.f32 1.0, %v1316_v5 }
  0x28   :  { %690 = vst.msk [vmem:[#allocation2 + $0x70] sm:$0xff] %vm675_vm0, %v625_v34  ;;  %v796_v14 = vpop.eup %795  ;;  %v626_v32 = vadd.f32 %v562_v17, %v498_v6  ;;  %v563_v12 = vmul.f32 %v794_v61, %v1231_v37  ;;  %v440_v37 = vld [vmem:[%s1980_s4 + $0xa8] sm:$0xff]  ;;  %807 = vtanh.f32 %v186_v26  ;;  %v187_v40 = vadd.f32 %v959_v2, %v116_v27  ;;  %v51_v34 = vld [vmem:[%s1976_s0 + $0xf0] sm:$0xff] }
  0x29   :  { %v564_v38 = vmul.f32 %v796_v14, %v1236_v4  ;;  %v441_v4 = vld [vmem:[%s1980_s4 + $0xb0] sm:$0xff]  ;;  %v117_v42 = vmul.f32 %v954_v1, %v46_v30  ;;  %v118_v21 = vmul.f32 %v954_v1, %v47_v31  ;;  %v502_v46 = vmul.f32 %v438_v33, %v374_v19  ;;  %v50_v6 = vld [vmem:[%s1976_s0 + $0xe8] sm:$0xff]  ;;  %v1404_v19 = vld [vmem:[%s1979_s3 + $0xe0] sm:$0xff] }
  0x2a   :  { %691 = vst.msk [vmem:[#allocation2 + $0x78] sm:$0xff] %vm675_vm0, %v626_v32  ;;  %v627_v18 = vadd.f32 %v563_v12, %v499_v13  ;;  %809 = vtanh.f32 %v187_v40  ;;  %v119_v49 = vmul.f32 %v954_v1, %v48_v36  ;;  %v503_v51 = vmul.f32 %v439_v39, %v375_v24  ;;  %v52_v13 = vld [vmem:[%s1976_s0 + $0xf8] sm:$0xff]  ;;  %v444_v61 = vld [vmem:[%s1980_s4 + $0xc8] sm:$0xff]  ;;  %v445_v27 = vld [vmem:[%s1980_s4 + $0xd0] sm:$0xff] }
  0x2b   :  { %v628_v44 = vadd.f32 %v564_v38, %v500_v9  ;;  %v798_v50 = vpop.eup %797  ;;  %v504_v52 = vmul.f32 %v440_v37, %v376_v35  ;;  %v188_v53 = vadd.f32 %v959_v2, %v117_v42  ;;  %v189_v23 = vadd.f32 %v959_v2, %v118_v21  ;;  %v53_v32 = vld [vmem:[%s1976_s0 + $0x100] sm:$0xff]  ;;  %v446_v36 = vld [vmem:[%s1980_s4 + $0xd8] sm:$0xff] }
  0x2c   :  { %692 = vst.msk [vmem:[#allocation2 + $0x80] sm:$0xff] %vm675_vm0, %v627_v18  ;;  %v800_v54 = vpop.eup %799  ;;  %v565_v55 = vmul.f32 %v798_v50, %v1250_v45  ;;  %v505_v56 = vmul.f32 %v441_v4, %v377_v25  ;;  %v190_v58 = vadd.f32 %v959_v2, %v119_v49  ;;  %v120_v59 = vmul.f32 %v954_v1, %v49_v43  ;;  %v1378_v45 = vld [vmem:[%s1979_s3 + $0xd0] sm:$0xff]  ;;  %v447_v40 = vld [vmem:[%s1980_s4 + $0xe0] sm:$0xff]  ;;  %v54_v4 = vld [vmem:[%s1976_s0 + $0x108] sm:$0xff] }
  0x2d   :  { %693 = vst.msk [vmem:[#allocation2 + $0x88] sm:$0xff] %vm675_vm0, %v628_v44  ;;  %v802_v60 = vpop.eup %801  ;;  %v566_v62 = vmul.f32 %v800_v54, %v1280_v28  ;;  %v506_v3 = vmul.f32 %v442_v47, %v378_v41  ;;  %v379_v63 = vsub.f32 1.0, %v1358_v48  ;;  %811 = vtanh.f32 %v188_v53  ;;  %v1387_v28 = vld [vmem:[%s1979_s3 + $0xd8] sm:$0xff]  ;;  %v1447_v43 = vld [vmem:[%s1979_s3 + $0xf0] sm:$0xff] }
  0x2e   :  { %v804_v29 = vpop.eup %803  ;;  %v629_v8 = vadd.f32 %v565_v55, %v501_v22  ;;  %v567_v0 = vmul.f32 %v802_v60, %v1290_v7  ;;  %813 = vtanh.f32 %v189_v23  ;;  %v191_v11 = vadd.f32 %v959_v2, %v120_v59  ;;  %v443_v7 = vld [vmem:[%s1980_s4 + $0xc0] sm:$0xff]  ;;  %v56_v54 = vld [vmem:[%s1976_s0 + $0x118] sm:$0xff]  ;;  %v1476_v60 = vld [vmem:[%s1979_s3 + $0x108] sm:$0xff] }
  0x2f   :  { %v630_v16 = vadd.f32 %v566_v62, %v502_v46  ;;  %v568_v17 = vmul.f32 %v804_v29, %v1299_v15  ;;  %v380_v9 = vsub.f32 1.0, %v1369_v57  ;;  %815 = vtanh.f32 %v190_v58  ;;  %v55_v46 = vld [vmem:[%s1976_s0 + $0x110] sm:$0xff]  ;;  %v1464_v23 = vld [vmem:[%s1979_s3 + $0x100] sm:$0xff] }
  0x30   :  { %694 = vst.msk [vmem:[#allocation2 + $0x90] sm:$0xff] %vm675_vm0, %v629_v8  ;;  %v631_v20 = vadd.f32 %v567_v0, %v503_v51  ;;  %v381_v15 = vsub.f32 1.0, %v1378_v45  ;;  %817 = vtanh.f32 %v191_v11  ;;  %v121_v22 = vmul.f32 %v954_v1, %v50_v6  ;;  %v1457_v51 = vld [vmem:[%s1979_s3 + $0xf8] sm:$0xff]  ;;  %v448_v11 = vld [vmem:[%s1980_s4 + $0xe8] sm:$0xff] }
  0x31   :  { %v806_v24 = vpop.eup %805  ;;  %695 = vst.msk [vmem:[#allocation2 + $0x98] sm:$0xff] %vm675_vm0, %v630_v16  ;;  %v632_v26 = vadd.f32 %v568_v17, %v504_v52  ;;  %v382_v30 = vsub.f32 1.0, %v1387_v28  ;;  %v122_v31 = vmul.f32 %v954_v1, %v51_v34  ;;  %v123_v14 = vmul.f32 %v954_v1, %v52_v13  ;;  %v449_v34 = vld [vmem:[%s1980_s4 + $0xf0] sm:$0xff]  ;;  %v57_v17 = vld [vmem:[%s1976_s0 + $0x120] sm:$0xff] }
  0x32   :  { %v808_v12 = vpop.eup %807  ;;  %696 = vst.msk [vmem:[#allocation2 + $0xa0] sm:$0xff] %vm675_vm0, %v631_v20  ;;  %v569_v33 = vmul.f32 %v806_v24, %v1308_v10  ;;  %v507_v35 = vmul.f32 %v443_v7, %v379_v63  ;;  %v383_v38 = vsub.f32 1.0, %v1404_v19  ;;  %v192_v39 = vadd.f32 %v959_v2, %v121_v22  ;;  %v450_v20 = vld [vmem:[%s1980_s4 + $0xf8] sm:$0xff] }
  0x33   :  { %697 = vst.msk [vmem:[#allocation2 + $0xa8] sm:$0xff] %vm675_vm0, %v632_v26  ;;  %v570_v37 = vmul.f32 %v808_v12, %v1316_v5  ;;  %v508_v25 = vmul.f32 %v444_v61, %v380_v9  ;;  %v193_v10 = vadd.f32 %v959_v2, %v122_v31  ;;  %v194_v18 = vadd.f32 %v959_v2, %v123_v14  ;;  %v1442_v5 = vld [vmem:[%s1979_s3 + $0xe8] sm:$0xff]  ;;  %v451_v26 = vld [vmem:[%s1980_s4 + $0x100] sm:$0xff] }
  0x34   :  { %v810_v41 = vpop.eup %809  ;;  %v633_v42 = vadd.f32 %v569_v33, %v505_v56  ;;  %v509_v21 = vmul.f32 %v445_v27, %v381_v15  ;;  %819 = vtanh.f32 %v192_v39  ;;  %v124_v44 = vmul.f32 %v954_v1, %v53_v32  ;;  %v58_v15 = vld [vmem:[%s1976_s0 + $0x128] sm:$0xff]  ;;  %v60_v33 = vld [vmem:[%s1976_s0 + $0x138] sm:$0xff] }
  0x35   :  { %v634_v47 = vadd.f32 %v570_v37, %v506_v3  ;;  %v571_v49 = vmul.f32 %v810_v41, %v1358_v48  ;;  %v510_v50 = vmul.f32 %v446_v36, %v382_v30  ;;  %821 = vtanh.f32 %v193_v10  ;;  %v59_v30 = vld [vmem:[%s1976_s0 + $0x130] sm:$0xff]  ;;  %v452_v32 = vld [vmem:[%s1980_s4 + $0x108] sm:$0xff] }
  0x36   :  { %698 = vst.msk [vmem:[#allocation2 + $0xb0] sm:$0xff] %vm675_vm0, %v633_v42  ;;  %v511_v52 = vmul.f32 %v447_v40, %v383_v38  ;;  %823 = vtanh.f32 %v194_v18  ;;  %v195_v53 = vadd.f32 %v959_v2, %v124_v44  ;;  %v125_v48 = vmul.f32 %v954_v1, %v54_v4  ;;  %v1529_v38 = vld [vmem:[%s1979_s3 + $0x118] sm:$0xff] }
  0x37   :  { %v812_v55 = vpop.eup %811  ;;  %699 = vst.msk [vmem:[#allocation2 + $0xb8] sm:$0xff] %vm675_vm0, %v634_v47  ;;  %v635_v56 = vadd.f32 %v571_v49, %v507_v35  ;;  %v384_v58 = vsub.f32 1.0, %v1442_v5  ;;  %v385_v59 = vsub.f32 1.0, %v1447_v43  ;;  %v126_v62 = vmul.f32 %v954_v1, %v55_v46  ;;  %v61_v47 = vld [vmem:[%s1976_s0 + $0x140] sm:$0xff] }
  0x38   :  { %v814_v3 = vpop.eup %813  ;;  %v572_v63 = vmul.f32 %v812_v55, %v1369_v57  ;;  %v386_v6 = vsub.f32 1.0, %v1457_v51  ;;  %825 = vtanh.f32 %v195_v53  ;;  %v196_v29 = vadd.f32 %v959_v2, %v125_v48 }
  0x39   :  { %v816_v8 = vpop.eup %815  ;;  %700 = vst.msk [vmem:[#allocation2 + $0xc0] sm:$0xff] %vm675_vm0, %v635_v56  ;;  %v573_v0 = vmul.f32 %v814_v3, %v1378_v45  ;;  %v387_v57 = vsub.f32 1.0, %v1464_v23  ;;  %v197_v13 = vadd.f32 %v959_v2, %v126_v62  ;;  %v127_v16 = vmul.f32 %v954_v1, %v56_v54 }
  0x3a   :  { %v818_v7 = vpop.eup %817  ;;  %v636_v45 = vadd.f32 %v572_v63, %v508_v25  ;;  %v574_v9 = vmul.f32 %v816_v8, %v1387_v28  ;;  %827 = vtanh.f32 %v196_v29  ;;  %v388_v61 = vsub.f32 1.0, %v1476_v60  ;;  %v1511_v28 = vld [vmem:[%s1979_s3 + $0x110] sm:$0xff] }
  0x3b   :  { %v637_v22 = vadd.f32 %v573_v0, %v509_v21  ;;  %v575_v24 = vmul.f32 %v818_v7, %v1404_v19  ;;  %829 = vtanh.f32 %v197_v13  ;;  %v198_v27 = vadd.f32 %v959_v2, %v127_v16  ;;  %v453_v21 = vld [vmem:[%s1980_s4 + $0x110] sm:$0xff] }
  0x3c   :  { %701 = vst.msk [vmem:[#allocation2 + $0xc8] sm:$0xff] %vm675_vm0, %v636_v45  ;;  %v638_v31 = vadd.f32 %v574_v9, %v510_v50  ;;  %v512_v19 = vmul.f32 %v448_v11, %v384_v58  ;;  %v513_v14 = vmul.f32 %v449_v34, %v385_v59  ;;  %v128_v12 = vmul.f32 %v954_v1, %v57_v17 }
  0x3d   :  { %702 = vst.msk [vmem:[#allocation2 + $0xd0] sm:$0xff] %vm675_vm0, %v637_v22  ;;  %v639_v35 = vadd.f32 %v575_v24, %v511_v52  ;;  %v514_v36 = vmul.f32 %v450_v20, %v386_v6  ;;  %831 = vtanh.f32 %v198_v27  ;;  %v129_v39 = vmul.f32 %v954_v1, %v58_v15 }
  0x3e   :  { %v820_v37 = vpop.eup %819  ;;  %703 = vst.msk [vmem:[#allocation2 + $0xd8] sm:$0xff] %vm675_vm0, %v638_v31  ;;  %v515_v25 = vmul.f32 %v451_v26, %v387_v57  ;;  %v389_v40 = vsub.f32 1.0, %v1511_v28  ;;  %v199_v10 = vadd.f32 %v959_v2, %v128_v12  ;;  %v130_v18 = vmul.f32 %v954_v1, %v59_v30 }
  0x3f   :  { %v822_v4 = vpop.eup %821  ;;  %704 = vst.msk [vmem:[#allocation2 + $0xe0] sm:$0xff] %vm675_vm0, %v639_v35  ;;  %v576_v41 = vmul.f32 %v820_v37, %v1442_v5  ;;  %v516_v42 = vmul.f32 %v452_v32, %v388_v61  ;;  %v200_v44 = vadd.f32 %v959_v2, %v129_v39  ;;  %v131_v46 = vmul.f32 %v954_v1, %v60_v33 }
  0x40   :  { %10 = vsyncpa [#allocation3], 0  ;;  %v824_v49 = vpop.eup %823  ;;  %v577_v50 = vmul.f32 %v822_v4, %v1447_v43  ;;  %v390_v52 = vsub.f32 1.0, %v1529_v38  ;;  %833 = vtanh.f32 %v199_v10  ;;  %v1551_v5 = vld [vmem:[%s1979_s3 + $0x120] sm:$0xff]  ;;  %v201_v53 = vadd.f32 %v959_v2, %v130_v18  ;;  %v454_v55 = vld [vmem:[%s1980_s4 + $0x118] sm:$0xff]  ;;  %s915_s25 = smov [#allocation2]  }
  0x41   :  { %v640_v48 = vadd.f32 %v576_v41, %v512_v19  ;;  %v578_v54 = vmul.f32 %v824_v49, %v1457_v51  ;;  %835 = vtanh.f32 %v200_v44  ;;  %v1561_v43 = vld [vmem:[%s1979_s3 + $0x128] sm:$0xff]  ;;  %v202_v56 = vadd.f32 %v959_v2, %v131_v46  ;;  %v1570_v51 = vld [vmem:[%s1979_s3 + $0x130] sm:$0xff]  ;;  %v1582_v11 = vld [vmem:[%s1979_s3 + $0x138] sm:$0xff]  ;;  %s745_s26 = sshll.u32 %s915_s25, 4  ;;  %s746_s26 = int_to_ptr.vmem [resolvable:$true] %s745_s26 }
  0x42   :  { %v62_v58 = vld [vmem:[%s1976_s0 + $0x148] sm:$0xff]  ;;  %v826_v59 = vpop.eup %825  ;;  %v641_v62 = vadd.f32 %v577_v50, %v513_v14  ;;  %v517_v3 = vmul.f32 %v453_v21, %v389_v40  ;;  %837 = vtanh.f32 %v201_v53  ;;  %v132_v63 = vmul.f32 %v954_v1, %v61_v47  ;;  %v63_v6 = vld [vmem:[%s1976_s0 + $0x150] sm:$0xff]  ;;  %v455_v13 = vld [vmem:[%s1980_s4 + $0x120] sm:$0xff]  ;;  %p896_p1 = scmp.lt.s32.totalorder %s746_s26, %s746_s26 }
  0x43   :  { %705 = vst.msk [vmem:[#allocation2 + $0xe8] sm:$0xff] %vm675_vm0, %v640_v48  ;;  %v642_v29 = vadd.f32 %v578_v54, %v514_v36  ;;  %v579_v8 = vmul.f32 %v826_v59, %v1464_v23  ;;  %v391_v0 = vsub.f32 1.0, %v1551_v5  ;;  %839 = vtanh.f32 %v202_v56  ;;  %v64_v7 = vld [vmem:[%s1976_s0 + $0x158] sm:$0xff]  ;;  %v456_v61 = vld [vmem:[%s1980_s4 + $0x128] sm:$0xff]  ;;  %v457_v26 = vld [vmem:[%s1980_s4 + $0x130] sm:$0xff] }
  0x44   :  { %v828_v34 = vpop.eup %827  ;;  %706 = vst.msk [vmem:[#allocation2 + $0xf0] sm:$0xff] %vm675_vm0, %v641_v62  ;;  %v518_v57 = vmul.f32 %v454_v55, %v390_v52  ;;  %v392_v16 = vsub.f32 1.0, %v1561_v43  ;;  %v203_v23 = vadd.f32 %v959_v2, %v132_v63  ;;  %v133_v17 = vmul.f32 %v954_v1, %v62_v58  ;;  %v1617_v32 = vld [vmem:[%s1979_s3 + $0x140] sm:$0xff]  ;;  %v66_v35 = vld [vmem:[%s1976_s0 + $0x168] sm:$0xff]  ;;  %v1634_v10 = vld [vmem:[%s1979_s3 + $0x150] sm:$0xff] }
  0x45   :  { %v830_v45 = vpop.eup %829  ;;  %707 = vst.msk [vmem:[#allocation2 + $0xf8] sm:$0xff] %vm675_vm0, %v642_v29  ;;  %v643_v9 = vadd.f32 %v579_v8, %v515_v25  ;;  %v580_v20 = vmul.f32 %v828_v34, %v1476_v60  ;;  %v393_v15 = vsub.f32 1.0, %v1570_v51  ;;  %v134_v22 = vmul.f32 %v954_v1, %v63_v6  ;;  %v65_v60 = vld [vmem:[%s1976_s0 + $0x160] sm:$0xff]  ;;  %v1628_v25 = vld [vmem:[%s1979_s3 + $0x148] sm:$0xff]  ;;  %v67_v4 = vld [vmem:[%s1976_s0 + $0x170] sm:$0xff] }
  0x46   :  { %v581_v24 = vmul.f32 %v830_v45, %v1511_v28  ;;  %v394_v27 = vsub.f32 1.0, %v1582_v11  ;;  %841 = vtanh.f32 %v203_v23  ;;  %v204_v30 = vadd.f32 %v959_v2, %v133_v17  ;;  %v458_v28 = vld [vmem:[%s1980_s4 + $0x138] sm:$0xff]  ;;  %v459_v55 = vld [vmem:[%s1980_s4 + $0x140] sm:$0xff]  ;;  %v461_v8 = vld [vmem:[%s1980_s4 + $0x150] sm:$0xff] }
  0x47   :  { %v832_v31 = vpop.eup %831  ;;  %708 = vst.msk [vmem:[#allocation2 + $0x100] sm:$0xff] %vm675_vm0, %v643_v9  ;;  %v644_v19 = vadd.f32 %v580_v20, %v516_v42  ;;  %v519_v14 = vmul.f32 %v455_v13, %v391_v0  ;;  %v205_v12 = vadd.f32 %v959_v2, %v134_v22  ;;  %v135_v33 = vmul.f32 %v954_v1, %v64_v7  ;;  %v1646_v46 = vld [vmem:[%s1979_s3 + $0x158] sm:$0xff]  ;;  %v1683_v0 = vld [vmem:[%s1978_s2] ss:$0 sm:$0xff]  ;;  %v70_v7 = vld [vmem:[%s1976_s0 + $0x188] sm:$0xff] }
  0x48   :  { %v645_v36 = vadd.f32 %v581_v24, %v517_v3  ;;  %v582_v39 = vmul.f32 %v832_v31, %v1529_v38  ;;  %v520_v37 = vmul.f32 %v456_v61, %v392_v16  ;;  %843 = vtanh.f32 %v204_v30  ;;  %v68_v59 = vld [vmem:[%s1976_s0 + $0x178] sm:$0xff]  ;;  %v1693_v16 = vld [vmem:[%s1979_s3 + $0x168] sm:$0xff]  ;;  %v1698_v23 = vld [vmem:[%s1977_s1] ss:$0 sm:$0xff] }
  0x49   :  { %709 = vst.msk [vmem:[#allocation2 + $0x108] sm:$0xff] %vm675_vm0, %v644_v19  ;;  %v521_v40 = vmul.f32 %v457_v26, %v393_v15  ;;  %845 = vtanh.f32 %v205_v12  ;;  %v206_v18 = vadd.f32 %v959_v2, %v135_v33  ;;  %v136_v38 = vmul.f32 %v954_v1, %v65_v60  ;;  %v462_v13 = vld [vmem:[%s1980_s4 + $0x158] sm:$0xff]  ;;  %v71_v15 = vld [vmem:[%s1976_s0 + $0x190] sm:$0xff]  ;;  %v463_v19 = vld [vmem:[%s1980_s4 + $0x160] sm:$0xff] }
  0x4a   :  { %v834_v41 = vpop.eup %833  ;;  %710 = vst.msk [vmem:[#allocation2 + $0x110] sm:$0xff] %vm675_vm0, %v645_v36  ;;  %v646_v42 = vadd.f32 %v582_v39, %v518_v57  ;;  %v522_v21 = vmul.f32 %v458_v28, %v394_v27  ;;  %v395_v44 = vsub.f32 1.0, %v1617_v32  ;;  %v137_v47 = vmul.f32 %v954_v1, %v66_v35  ;;  %v1715_v27 = vld [vmem:[%s1979_s3 + $0x170] sm:$0xff]  ;;  %v72_v12 = vld [vmem:[%s1976_s0 + $0x198] sm:$0xff]  ;;  %v464_v39 = vld [vmem:[%s1980_s4 + $0x168] sm:$0xff] }
  0x4b   :  { %v836_v49 = vpop.eup %835  ;;  %v583_v50 = vmul.f32 %v834_v41, %v1551_v5  ;;  %v396_v52 = vsub.f32 1.0, %v1628_v25  ;;  %847 = vtanh.f32 %v206_v18  ;;  %v207_v53 = vadd.f32 %v959_v2, %v136_v38  ;;  %v1738_v38 = vld [vmem:[%s1979_s3 + $0x178] sm:$0xff] }
  0x4c   :  { %v838_v48 = vpop.eup %837  ;;  %711 = vst.msk [vmem:[#allocation2 + $0x118] sm:$0xff] %vm675_vm0, %v646_v42  ;;  %v584_v54 = vmul.f32 %v836_v49, %v1561_v43  ;;  %v397_v56 = vsub.f32 1.0, %v1634_v10  ;;  %v208_v58 = vadd.f32 %v959_v2, %v137_v47  ;;  %v138_v5 = vmul.f32 %v954_v1, %v67_v4  ;;  %v460_v43 = vld [vmem:[%s1980_s4 + $0x148] sm:$0xff]  ;;  %v69_v2 = vld [vmem:[%s1976_s0 + $0x180] sm:$0xff] }
  0x4d   :  { %v840_v62 = vpop.eup %839  ;;  %v647_v3 = vadd.f32 %v583_v50, %v519_v14  ;;  %v585_v63 = vmul.f32 %v838_v48, %v1570_v51  ;;  %v398_v6 = vsub.f32 1.0, %v1646_v46  ;;  %849 = vtanh.f32 %v207_v53  ;;  %v1678_v51 = vld [vmem:[%s1979_s3 + $0x160] sm:$0xff]  ;;  %v74_v48 = vld [vmem:[%s1976_s0 + $0x1a8] sm:$0xff] }
  0x4e   :  { %v648_v1 = vadd.f32 %v584_v54, %v520_v37  ;;  %v586_v29 = vmul.f32 %v840_v62, %v1582_v11  ;;  %851 = vtanh.f32 %v208_v58  ;;  %v209_v34 = vadd.f32 %v1683_v0, %v138_v5 }
  0x4f   :  { %712 = vst.msk [vmem:[#allocation2 + $0x120] sm:$0xff] %vm675_vm0, %v647_v3  ;;  %v649_v11 = vadd.f32 %v585_v63, %v521_v40  ;;  %v523_v57 = vmul.f32 %v459_v55, %v395_v44  ;;  %v139_v17 = vmul.f32 %v1698_v23, %v68_v59  ;;  %v524_v20 = vmul.f32 %v460_v43, %v396_v52  ;;  %v1751_v44 = vld [vmem:[%s1979_s3 + $0x180] sm:$0xff]  ;;  %v75_v59 = vld [vmem:[%s1976_s0 + $0x1b0] sm:$0xff] }
  0x50   :  { %v842_v45 = vpop.eup %841  ;;  %713 = vst.msk [vmem:[#allocation2 + $0x128] sm:$0xff] %vm675_vm0, %v648_v1  ;;  %v650_v9 = vadd.f32 %v586_v29, %v522_v21  ;;  %853 = vtanh.f32 %v209_v34  ;;  %v140_v61 = vmul.f32 %v1698_v23, %v69_v2  ;;  %v525_v24 = vmul.f32 %v461_v8, %v397_v56  ;;  %v1764_v56 = vld [vmem:[%s1979_s3 + $0x188] sm:$0xff]  ;;  %v466_v1 = vld [vmem:[%s1980_s4 + $0x178] sm:$0xff] }
  0x51   :  { %714 = vst.msk [vmem:[#allocation2 + $0x130] sm:$0xff] %vm675_vm0, %v649_v11  ;;  %v587_v22 = vmul.f32 %v842_v45, %v1617_v32  ;;  %v399_v26 = vsub.f32 1.0, %v1678_v51  ;;  %v210_v30 = vadd.f32 %v1683_v0, %v139_v17  ;;  %v526_v31 = vmul.f32 %v462_v13, %v398_v6  ;;  %v1786_v29 = vld [vmem:[%s1979_s3 + $0x198] sm:$0xff]  ;;  %v467_v13 = vld [vmem:[%s1980_s4 + $0x180] sm:$0xff] }
  0x52   :  { %v844_v60 = vpop.eup %843  ;;  %715 = vst.msk [vmem:[#allocation2 + $0x138] sm:$0xff] %vm675_vm0, %v650_v9  ;;  %v400_v14 = vsub.f32 1.0, %v1693_v16  ;;  %v211_v28 = vadd.f32 %v1683_v0, %v140_v61  ;;  %v141_v32 = vmul.f32 %v1698_v23, %v70_v7  ;;  %v142_v37 = vmul.f32 %v1698_v23, %v71_v15  ;;  %v77_v45 = vld [vmem:[%s1976_s0 + $0x1c0] sm:$0xff] }
  0x53   :  { %v846_v33 = vpop.eup %845  ;;  %v651_v35 = vadd.f32 %v587_v22, %v523_v57  ;;  %v588_v36 = vmul.f32 %v844_v60, %v1628_v25  ;;  %855 = vtanh.f32 %v210_v30  ;;  %v401_v18 = vsub.f32 1.0, %v1715_v27  ;;  %v73_v25 = vld [vmem:[%s1976_s0 + $0x1a0] sm:$0xff] }
  0x54   :  { %v589_v40 = vmul.f32 %v846_v33, %v1634_v10  ;;  %857 = vtanh.f32 %v211_v28  ;;  %v212_v4 = vadd.f32 %v1683_v0, %v141_v32  ;;  %v527_v21 = vmul.f32 %v463_v19, %v399_v26  ;;  %v465_v10 = vld [vmem:[%s1980_s4 + $0x170] sm:$0xff]  ;;  %v1807_v61 = vld [vmem:[%s1979_s3 + $0x1a0] sm:$0xff]  ;;  %v470_v28 = vld [vmem:[%s1980_s4 + $0x198] sm:$0xff] }
  0x55   :  { %v848_v41 = vpop.eup %847  ;;  %716 = vst.msk [vmem:[#allocation2 + $0x140] sm:$0xff] %vm675_vm0, %v651_v35  ;;  %v652_v42 = vadd.f32 %v588_v36, %v524_v20  ;;  %v213_v47 = vadd.f32 %v1683_v0, %v142_v37  ;;  %v143_v49 = vmul.f32 %v1698_v23, %v72_v12  ;;  %v528_v53 = vmul.f32 %v464_v39, %v400_v14  ;;  %v469_v26 = vld [vmem:[%s1980_s4 + $0x190] sm:$0xff]  ;;  %v78_v12 = vld [vmem:[%s1976_s0 + $0x1c8] sm:$0xff] }
  0x56   :  { %v653_v50 = vadd.f32 %v589_v40, %v525_v24  ;;  %v590_v52 = vmul.f32 %v848_v41, %v1646_v46  ;;  %859 = vtanh.f32 %v212_v4  ;;  %v402_v55 = vsub.f32 1.0, %v1738_v38  ;;  %v1769_v46 = vld [vmem:[%s1979_s3 + $0x190] sm:$0xff]  ;;  %v468_v24 = vld [vmem:[%s1980_s4 + $0x188] sm:$0xff] }
  0x57   :  { %v850_v54 = vpop.eup %849  ;;  %717 = vst.msk [vmem:[#allocation2 + $0x148] sm:$0xff] %vm675_vm0, %v652_v42  ;;  %861 = vtanh.f32 %v213_v47  ;;  %v214_v58 = vadd.f32 %v1683_v0, %v143_v49  ;;  %v144_v5 = vmul.f32 %v1698_v23, %v73_v25  ;;  %v529_v43 = vmul.f32 %v465_v10, %v401_v18  ;;  %v1833_v39 = vld [vmem:[%s1979_s3 + $0x1a8] sm:$0xff]  ;;  %v79_v41 = vld [vmem:[%s1976_s0 + $0x1d0] sm:$0xff] }
  0x58   :  { %v852_v62 = vpop.eup %851  ;;  %718 = vst.msk [vmem:[#allocation2 + $0x150] sm:$0xff] %vm675_vm0, %v653_v50  ;;  %v654_v3 = vadd.f32 %v590_v52, %v526_v31  ;;  %v591_v63 = vmul.f32 %v850_v54, %v1678_v51  ;;  %v403_v6 = vsub.f32 1.0, %v1751_v44  ;;  %v145_v34 = vmul.f32 %v1698_v23, %v74_v48  ;;  %v76_v51 = vld [vmem:[%s1976_s0 + $0x1b8] sm:$0xff]  ;;  %v345_v47 = vld [vmem:[%s1979_s3 + $0x1b0] sm:$0xff] }
  0x59   :  { %v592_v2 = vmul.f32 %v852_v62, %v1693_v16  ;;  %863 = vtanh.f32 %v214_v58  ;;  %v215_v8 = vadd.f32 %v1683_v0, %v144_v5  ;;  %v404_v16 = vsub.f32 1.0, %v1764_v56  ;;  %v80_v50 = vld [vmem:[%s1976_s0 + $0x1d8] sm:$0xff]  ;;  %v472_v5 = vld [vmem:[%s1980_s4 + $0x1a8] sm:$0xff] }
  0x5a   :  { %v854_v11 = vpop.eup %853  ;;  %719 = vst.msk [vmem:[#allocation2 + $0x158] sm:$0xff] %vm675_vm0, %v654_v3  ;;  %v655_v57 = vadd.f32 %v591_v63, %v527_v21  ;;  %v405_v17 = vsub.f32 1.0, %v1769_v46  ;;  %v146_v7 = vmul.f32 %v1698_v23, %v75_v59  ;;  %v216_v15 = vadd.f32 %v1683_v0, %v145_v34  ;;  %v473_v34 = vld [vmem:[%s1980_s4 + $0x1b0] sm:$0xff] }
  0x5b   :  { %v656_v9 = vadd.f32 %v592_v2, %v528_v53  ;;  %v593_v20 = vmul.f32 %v854_v11, %v1715_v27  ;;  %865 = vtanh.f32 %v215_v8  ;;  %v530_v22 = vmul.f32 %v466_v1, %v402_v55  ;;  %v82_v11 = vld [vmem:[%s1976_s0 + $0x1e8] sm:$0xff] }
  0x5c   :  { %720 = vst.msk [vmem:[#allocation2 + $0x160] sm:$0xff] %vm675_vm0, %v655_v57  ;;  %v406_v27 = vsub.f32 1.0, %v1786_v29  ;;  %v217_v30 = vadd.f32 %v1683_v0, %v146_v7  ;;  %v147_v60 = vmul.f32 %v1698_v23, %v76_v51  ;;  %v531_v14 = vmul.f32 %v467_v13, %v403_v6  ;;  %v347_v6 = vld [vmem:[%s1979_s3 + $0x1c0] sm:$0xff]  ;;  %v83_v7 = vld [vmem:[%s1976_s0 + $0x1f0] sm:$0xff] }
  0x5d   :  { %v856_v31 = vpop.eup %855  ;;  %721 = vst.msk [vmem:[#allocation2 + $0x168] sm:$0xff] %vm675_vm0, %v656_v9  ;;  %v657_v19 = vadd.f32 %v593_v20, %v529_v43  ;;  %867 = vtanh.f32 %v216_v15  ;;  %v148_v32 = vmul.f32 %v1698_v23, %v77_v45  ;;  %v407_v36 = vsub.f32 1.0, %v1807_v61  ;;  %v348_v15 = vld [vmem:[%s1979_s3 + $0x1c8] sm:$0xff] }
  0x5e   :  { %v858_v33 = vpop.eup %857  ;;  %v594_v35 = vmul.f32 %v856_v31, %v1738_v38  ;;  %869 = vtanh.f32 %v217_v30  ;;  %v218_v37 = vadd.f32 %v1683_v0, %v147_v60  ;;  %v532_v18 = vmul.f32 %v468_v24, %v404_v16  ;;  %v471_v38 = vld [vmem:[%s1980_s4 + $0x1a0] sm:$0xff]  ;;  %v474_v16 = vld [vmem:[%s1980_s4 + $0x1b8] sm:$0xff] }
  0x5f   :  { %722 = vst.msk [vmem:[#allocation2 + $0x170] sm:$0xff] %vm675_vm0, %v657_v19  ;;  %v595_v40 = vmul.f32 %v858_v33, %v1751_v44  ;;  %v533_v4 = vmul.f32 %v469_v26, %v405_v17  ;;  %v219_v25 = vadd.f32 %v1683_v0, %v148_v32  ;;  %v534_v10 = vmul.f32 %v470_v28, %v406_v27  ;;  %v1851_v44 = vld [vmem:[%s1979_s3 + $0x1b8] sm:$0xff]  ;;  %v475_v26 = vld [vmem:[%s1980_s4 + $0x1c0] sm:$0xff]  ;;  %v349_v28 = vld [vmem:[%s1979_s3 + $0x1d0] sm:$0xff] }
  0x60   :  { %v860_v42 = vpop.eup %859  ;;  %v658_v21 = vadd.f32 %v594_v35, %v530_v22  ;;  %871 = vtanh.f32 %v218_v37  ;;  %v149_v49 = vmul.f32 %v1698_v23, %v78_v12  ;;  %v408_v54 = vsub.f32 1.0, %v1833_v39  ;;  %v350_v35 = vld [vmem:[%s1979_s3 + $0x1d8] sm:$0xff] }
  0x61   :  { %v862_v52 = vpop.eup %861  ;;  %v659_v53 = vadd.f32 %v595_v40, %v531_v14  ;;  %v596_v48 = vmul.f32 %v860_v42, %v1764_v56  ;;  %873 = vtanh.f32 %v219_v25  ;;  %v535_v58 = vmul.f32 %v471_v38, %v407_v36  ;;  %v81_v56 = vld [vmem:[%s1976_s0 + $0x1e0] sm:$0xff] }
  0x62   :  { %723 = vst.msk [vmem:[#allocation2 + $0x178] sm:$0xff] %vm675_vm0, %v658_v21  ;;  %v597_v55 = vmul.f32 %v862_v52, %v1769_v46  ;;  %v220_v59 = vadd.f32 %v1683_v0, %v149_v49  ;;  %v150_v62 = vmul.f32 %v1698_v23, %v79_v41  ;;  %v409_v43 = vsub.f32 1.0, %v345_v47  ;;  %v477_v49 = vld [vmem:[%s1980_s4 + $0x1d0] sm:$0xff] }
  0x63   :  { %v864_v3 = vpop.eup %863  ;;  %724 = vst.msk [vmem:[#allocation2 + $0x180] sm:$0xff] %vm675_vm0, %v659_v53  ;;  %v660_v63 = vadd.f32 %v596_v48, %v532_v18  ;;  %v410_v46 = vsub.f32 1.0, %v1851_v44  ;;  %v151_v2 = vmul.f32 %v1698_v23, %v80_v50  ;;  %v536_v13 = vmul.f32 %v472_v5, %v408_v54  ;;  %v476_v18 = vld [vmem:[%s1980_s4 + $0x1c8] sm:$0xff]  ;;  %v478_v53 = vld [vmem:[%s1980_s4 + $0x1d8] sm:$0xff]  ;;  %v353_v5 = vld [vmem:[%s1979_s3 + $0x1f0] sm:$0xff] }
  0x64   :  { %v661_v1 = vadd.f32 %v597_v55, %v533_v4  ;;  %v598_v8 = vmul.f32 %v864_v3, %v1786_v29  ;;  %875 = vtanh.f32 %v220_v59  ;;  %v221_v51 = vadd.f32 %v1683_v0, %v150_v62  ;;  %v352_v48 = vld [vmem:[%s1979_s3 + $0x1e8] sm:$0xff]  ;;  %v479_v62 = vld [vmem:[%s1980_s4 + $0x1e0] sm:$0xff] }
  0x65   :  { %v866_v57 = vpop.eup %865  ;;  %725 = vst.msk [vmem:[#allocation2 + $0x188] sm:$0xff] %vm675_vm0, %v660_v63  ;;  %v222_v29 = vadd.f32 %v1683_v0, %v151_v2  ;;  %v152_v17 = vmul.f32 %v1698_v23, %v81_v56  ;;  %v411_v20 = vsub.f32 1.0, %v347_v6  ;;  %v537_v24 = vmul.f32 %v473_v34, %v409_v43  ;;  %v354_v43 = vld [vmem:[%s1979_s3 + $0x1f8] sm:$0xff] }
  0x66   :  { %726 = vst.msk [vmem:[#allocation2 + $0x190] sm:$0xff] %vm675_vm0, %v661_v1  ;;  %v662_v45 = vadd.f32 %v598_v8, %v534_v10  ;;  %v599_v9 = vmul.f32 %v866_v57, %v1807_v61  ;;  %877 = vtanh.f32 %v221_v51  ;;  %v153_v30 = vmul.f32 %v1698_v23, %v82_v11  ;;  %v84_v61 = vld [vmem:[%s1976_s0 + $0x1f8] sm:$0xff]  ;;  %v351_v10 = vld [vmem:[%s1979_s3 + $0x1e0] sm:$0xff]  ;;  %v480_v1 = vld [vmem:[%s1980_s4 + $0x1e8] sm:$0xff] }
  0x67   :  { %v868_v22 = vpop.eup %867  ;;  %879 = vtanh.f32 %v222_v29  ;;  %v223_v27 = vadd.f32 %v1683_v0, %v152_v17  ;;  %v538_v14 = vmul.f32 %v474_v16, %v410_v46  ;;  %v154_v32 = vmul.f32 %v1698_v23, %v83_v7  ;;  %v481_v11 = vld [vmem:[%s1980_s4 + $0x1f0] sm:$0xff] }
  0x68   :  { %v870_v60 = vpop.eup %869  ;;  %727 = vst.msk [vmem:[#allocation2 + $0x198] sm:$0xff] %vm675_vm0, %v662_v45  ;;  %v663_v31 = vadd.f32 %v599_v9, %v535_v58  ;;  %v600_v19 = vmul.f32 %v868_v22, %v1833_v39  ;;  %v412_v33 = vsub.f32 1.0, %v348_v15  ;;  %v224_v36 = vadd.f32 %v1683_v0, %v153_v30  ;;  %v482_v45 = vld [vmem:[%s1980_s4 + $0x1f8] sm:$0xff]  ;;  %s891_s4 = scalar_lea.vmem %s746_s26, 8192 }
  0x69   :  { %v601_v12 = vmul.f32 %v870_v60, %v345_v47  ;;  %881 = vtanh.f32 %v223_v27  ;;  %v539_v40 = vmul.f32 %v475_v26, %v411_v20  ;;  %v225_v4 = vadd.f32 %v1683_v0, %v154_v32  ;;  %p892_p0 = scmp.ne.s32.totalorder %s746_s26, %s891_s4  ;;  %p897_p2 = scmp.lt.s32.totalorder %s891_s4, %s891_s4 }
  0x6a   :  { %v872_v37 = vpop.eup %871  ;;  %728 = vst.msk [vmem:[#allocation2 + $0x1a0] sm:$0xff] %vm675_vm0, %v663_v31  ;;  %v664_v39 = vadd.f32 %v600_v19, %v536_v13  ;;  %v155_v38 = vmul.f32 %v1698_v23, %v84_v61  ;;  %v413_v21 = vsub.f32 1.0, %v349_v28  ;;  %883 = vtanh.f32 %v224_v36 }
  0x6b   :  { %v874_v25 = vpop.eup %873  ;;  %v665_v41 = vadd.f32 %v601_v12, %v537_v24  ;;  %v602_v42 = vmul.f32 %v872_v37, %v1851_v44  ;;  %v414_v50 = vsub.f32 1.0, %v350_v35  ;;  %885 = vtanh.f32 %v225_v4  ;;  %p898_p3 = por %p897_p2, %p896_p1 }
  0x6c   :  { %729 = vst.msk [vmem:[#allocation2 + $0x1a8] sm:$0xff] %vm675_vm0, %v664_v39  ;;  %v603_v47 = vmul.f32 %v874_v25, %v347_v6  ;;  %v226_v23 = vadd.f32 %v1683_v0, %v155_v38  ;;  %v540_v52 = vmul.f32 %v476_v18, %v412_v33  ;;  %v415_v58 = vsub.f32 1.0, %v351_v10 }
  0x6d   :  { %730 = vst.msk [vmem:[#allocation2 + $0x1b0] sm:$0xff] %vm675_vm0, %v665_v41  ;;  %v666_v44 = vadd.f32 %v602_v42, %v538_v14  ;;  %v541_v59 = vmul.f32 %v477_v49, %v413_v21  ;;  %v542_v3 = vmul.f32 %v478_v53, %v414_v50  ;;  %v416_v63 = vsub.f32 1.0, %v352_v48  ;;  %p899_p4 = pnand %p898_p3, %p892_p0 }
  0x6e   :  { %v876_v54 = vpop.eup %875  ;;  %v667_v55 = vadd.f32 %v603_v47, %v539_v40  ;;  %887 = vtanh.f32 %v226_v23  ;;  %v417_v8 = vsub.f32 1.0, %v353_v5  ;;  %v543_v51 = vmul.f32 %v479_v62, %v415_v58 }
  0x6f   :  { %731 = vst.msk [vmem:[#allocation2 + $0x1b8] sm:$0xff] %vm675_vm0, %v666_v44  ;;  %v604_v0 = vmul.f32 %v876_v54, %v348_v15  ;;  %v418_v16 = vsub.f32 1.0, %v354_v43  ;;  %v544_v7 = vmul.f32 %v480_v1, %v416_v63 }
  0x70   :  { %v878_v56 = vpop.eup %877  ;;  %732 = vst.msk [vmem:[#allocation2 + $0x1c0] sm:$0xff] %vm675_vm0, %v667_v55  ;;  %v545_v20 = vmul.f32 %v481_v11, %v417_v8 }
  0x71   :  { %v880_v46 = vpop.eup %879  ;;  %v668_v6 = vadd.f32 %v604_v0, %v540_v52  ;;  %v605_v2 = vmul.f32 %v878_v56, %v349_v28  ;;  %v546_v27 = vmul.f32 %v482_v45, %v418_v16 }
  0x72   :  { %v606_v34 = vmul.f32 %v880_v46, %v350_v35 }
  0x73   :  { %v882_v57 = vpop.eup %881  ;;  %733 = vst.msk [vmem:[#allocation2 + $0x1c8] sm:$0xff] %vm675_vm0, %v668_v6  ;;  %v669_v13 = vadd.f32 %v605_v2, %v541_v59 }
  0x74   :  { %v670_v29 = vadd.f32 %v606_v34, %v542_v3  ;;  %v607_v17 = vmul.f32 %v882_v57, %v351_v10  ;;  %v884_v9 = vpop.eup %883 }
  0x75   :  { %734 = vst.msk [vmem:[#allocation2 + $0x1d0] sm:$0xff] %vm675_vm0, %v669_v13  ;;  %v886_v15 = vpop.eup %885  ;;  %v608_v24 = vmul.f32 %v884_v9, %v352_v48 }
  0x76   :  { %735 = vst.msk [vmem:[#allocation2 + $0x1d8] sm:$0xff] %vm675_vm0, %v670_v29  ;;  %v671_v22 = vadd.f32 %v607_v17, %v543_v51  ;;  %v609_v26 = vmul.f32 %v886_v15, %v353_v5 }
  0x77   :  { %v672_v61 = vadd.f32 %v608_v24, %v544_v7 }
  0x78   :  { %v888_v30 = vpop.eup %887  ;;  %736 = vst.msk [vmem:[#allocation2 + $0x1e0] sm:$0xff] %vm675_vm0, %v671_v22  ;;  %v673_v60 = vadd.f32 %v609_v26, %v545_v20 }
  0x79   :  { %v610_v31 = vmul.f32 %v888_v30, %v354_v43  ;;  %737 = vst.msk [vmem:[#allocation2 + $0x1e8] sm:$0xff] %vm675_vm0, %v672_v61 }
  0x7a   :  { %738 = vst.msk [vmem:[#allocation2 + $0x1f0] sm:$0xff] %vm675_vm0, %v673_v60 }
  0x7b   :  { %v674_v19 = vadd.f32 %v610_v31, %v546_v27 }
  0x7d   :  { %739 = vst.msk [vmem:[#allocation2 + $0x1f8] sm:$0xff] %vm675_vm0, %v674_v19 }
  0x7e   :  { %902 = shalt.err (!%p899_p4)
}
  0x7f   :  { %s903_s2 = scalar_lea.hbm %s1981_s5, 8192 }
  0x80   :  { %p904_p5 = scmp.ne.s32.totalorder %s1981_s5, %s903_s2  ;;  %p907_p6 = scmp.lt.u32.totalorder %s903_s2, %s1981_s5 }
  0x82   :  { %p909_p7 = pnand %p907_p6, %p904_p5 }
  0x84   :  { %912 = shalt.err (!%p909_p7)
}
  0x85   :  { %s916_s1 = smov 128   ;;  %s917_s7 = smov 8  }
  0x86   :  { %751 = dma.vmem_to_hbm [thread:$0]  %s746_s26, 8192, %s1981_s5, [#allocation3], %s916_s1, %s916_s1, %s917_s7  }
  0x87   :  { %913 = dma.done.wait [#allocation3], 8192  }
  0x88   :  { %914 = vsyncadd [#allocation3], 4294959104 }
  0x89   :  { %755 = vsyncpa [#allocation3], 1 }

// kernel: _lambda_.5
= control target key start
LH: loop header
LB: loop body
LE: loop exit
PB: predicated region body
PF: predicated region fallthrough
CT: control target
= control target key end

     0   :  { %12 = vsyncpa [#allocation3], 0  ;;  %s6154_s0 = inlined_call_operand.vmem [shape: bf16[2,10,10,64], index: 0, kind: input, shape index: {}]   ;;  %s6155_s1 = inlined_call_operand.vmem [shape: bf16[2,10,10,8], index: 1, kind: input, shape index: {}]   ;;  %s6156_s2 = inlined_call_operand.vmem [shape: bf16[9,64,128], index: 2, kind: input, shape index: {}]   ;;  %s6157_s3 = inlined_call_operand.vmem [shape: bf16[9,8,128], index: 3, kind: input, shape index: {}]   ;;  %s6158_s4 = inlined_call_operand.vmem [shape: f32[2,64,128], index: 4, kind: output, shape index: {0}]   ;;  %s6159_s5 = inlined_call_operand.hbm [shape: f32[2,1,128], index: 5, kind: output, shape index: {1}]   ;;  %s6160_s6 = inlined_call_operand.hbm [shape: f32[2,1,128], index: 6, kind: output, shape index: {2}]  }
   0x1   :  { %14 = vsyncpa [#allocation3 + $0x1], 0 }
   0x2   :  { %15 = vsyncpa [#allocation5], 0 }
   0x3   :  { %17 = vsyncpa [#allocation5 + $0x1], 0  ;;  %s4772_s21 = smov 0   ;;  %s4774_s22 = smov 0  }
   0x4   :  { %s4776_s23 = smov 0   ;;  %s4778_s24 = smov 0  }
   0x5 LB: > { %s4793_s25 = sadd.s32 4294967295, %s4732_s24   ;;  %s3639_s26 = sadd.s32 4294967294, %s4732_s24   ;;  %s4732_s24 = sphi %s4778_s24, %s6283_s24   ;;  %s4728_s23 = sphi %s4776_s23, %s6282_s23   ;;  %s4724_s22 = sphi %s4774_s22, %s6281_s22   ;;  %s4720_s21 = sphi %s4772_s21, %s6280_s21  }
   0x6   : > { %s4797_s27 = sadd.s32 1, %s4732_s24   ;;  %s150_s28 = sadd.s32 1, %s4728_s23 }
   0x7   : > { %s147_s29 = ssub.s32 %s4732_s24, %s4797_s27  ;;  %p160_p0 = scmp.ne.s32.totalorder %s4728_s23, %s4724_s22 }
   0x8   : > { %p148_p1 = scmp.eq.s32.totalorder %s147_s29, 0  ;;  %p161_p2 = scmp.eq.s32.totalorder %s4793_s25, 1 }
   0x9   : > { %p166_p3 = scmp.ne.s32.totalorder %s4724_s22, %s4720_s21  ;;  %p167_p4 = scmp.eq.s32.totalorder %s3639_s26, 1 }
   0xa   : > { %s4808_s30 = scalar_select %p148_p1, %s4728_s23, %s150_s28  }
   0xb   : > { %p4810_p5 = por %p161_p2, %p160_p0  ;;  %p4814_p6 = por %p167_p4, %p166_p3 }
   0xc   : > { %p3642_p7 = scmp.ge.s32.totalorder %s4732_s24, 1  ;;  %p233_p8 = scmp.lt.s32.totalorder %s4732_s24, 3 }
   0xe   : > { %p234_p9 = pnand %p3642_p7, %p233_p8 }
  0x10   : > { %237 = sbr.rel (%p234_p9) target bundleno = 483 (0x1e3), region = 36 }
  0x17   : > { %v334_v0 = vld [vmem:[%s6157_s3] sm:$0xf]  ;;  %vm368_vm0 = vcmask 1043456   ;;  %p276_p10 = scmp.lt.s32.totalorder %s4793_s25, 1  ;;  %v3822_v3 = vld [vmem:[%s6157_s3 + $0x10] sm:$0xf] }
  0x18   : > { %v4560_v1 = vld [vmem:[%s6156_s2] sm:$0xff]   ;;  %4503 = vmatprep.subr.msk.bf16.mxu1 %vm368_vm0, %v334_v0  ;;  %v370_v2 = vsel %vm368_vm0, %v334_v0, 0  ;;  %4507 = vmatprep.subr.msk.bf16.mxu0 %vm368_vm0, %v3822_v3  ;;  %v1996_v4 = vsel %vm368_vm0, %v3822_v3, 0  ;;  %vm355_vm1 = vcmask 64512   ;;  %v4561_v18 = vld [vmem:[%s6156_s2 + $0x8] sm:$0xff]   ;;  %v4564_v39 = vld [vmem:[%s6156_s2 + $0x10] sm:$0xff]  }
  0x19   : > { %4134 = vmatpush3.bf16.msra.mxu1 %v370_v2  ;;  %s4830_s13 = scalar_select %p276_p10, %s4793_s25, 1  ;;  %4254 = vmatpush3.bf16.msra.mxu0 %v1996_v4  ;;  %v4848_v5 = vld [vmem:[%s6156_s2 + $0xa0] sm:$0xff]   ;;  %vm559_vm2 = vsmask.f32 3328  ;;  %vm560_vm3 = vsmask.f32 7440 }
  0x1a   : > { %4143 = vmatprep.subr.bf16.mxu1 %v4560_v1  ;;  %4263 = vmatprep.subr.bf16.mxu0 %v4848_v5  ;;  %v4566_v57 = vld [vmem:[%s6156_s2 + $0x18] sm:$0xff]   ;;  %vm481_vm4 = vcmask 523264   ;;  %vm4978_vm5 = vmor %vm559_vm2, %vm560_vm3  ;;  %vm1026_vm6 = vcmask 1042432   ;;  %vm1027_vm7 = vcmask 1046532   ;;  %s4735_s9 = smov [#allocation2]  }
  0x1b   : > { %s4512_s16 = smul.u32 80, %s4830_s13  ;;  %vm5124_vm8 = vmor %vm1026_vm6, %vm1027_vm7  ;;  %s4015_s28 = sshll.u32 %s4830_s13, 6 }
  0x1c   : > { %s6062_s10 = scalar_lea.vmem %s6158_s4, %s4015_s28  ;;  %s4011_s13 = sshll.u32 %s4793_s25, 4 }
  0x1d   : > { %s4843_s19 = scalar_lea.vmem %s6155_s1, %s4512_s16  ;;  %s4953_s17 = scalar_lea.vmem %s6154_s0, %s4512_s16 }
  0x1e   : > { %v4851_v6 = vld [vmem:[%s4843_s19] sm:$0xf]  ;;  %v4854_v7 = vld [vmem:[%s4843_s19 + $0x8] sm:$0xf]  ;;  %v4857_v8 = vld [vmem:[%s4843_s19 + $0x10] sm:$0xf]  ;;  %s6080_s18 = scalar_lea.hbm %s6159_s5, %s4011_s13  ;;  %s6088_s16 = scalar_lea.hbm %s6160_s6, %s4011_s13 }
  0x1f   : > { %6184 = vst [vmem:[#allocation8_spill] sm:$0xff] %v4851_v6  ;;  %6185 = vst [vmem:[#allocation9_spill] sm:$0xff] %v4854_v7  ;;  %v3647_v9 = vcombine.low %v4851_v6, %v4854_v7  ;;  %v805_v10 = vshrl.u32 %v4851_v6, 16  ;;  %v808_v11 = vshll.u32 %v4851_v6, 16  ;;  %v819_v12 = vshrl.u32 %v4854_v7, 16 }
  0x20   : > { %6186 = vst [vmem:[#allocation10_spill] sm:$0xff] %v4857_v8  ;;  %v4865_v13 = vld [vmem:[%s4843_s19 + $0x18] sm:$0xf]  ;;  %v822_v14 = vshll.u32 %v4854_v7, 16  ;;  %v4877_v19 = vld [vmem:[%s4843_s19 + $0x20] sm:$0xf] }
  0x21   : > { %6187 = vst [vmem:[#allocation11_spill] sm:$0xff] %v4865_v13  ;;  %v3648_v17 = vcombine.low %v4857_v8, %v4865_v13  ;;  %4135 = vmatprep.mubr.msk.bf16.mxu1 %vm355_vm1, %v3647_v9  ;;  %v807_v20 = vrot.slane %v805_v10, 4  ;;  %v810_v21 = vrot.slane %v808_v11, 5  ;;  %v821_v22 = vrot.slane %v819_v12, 4  ;;  %v4882_v24 = vld [vmem:[%s4843_s19 + $0x28] sm:$0xf] }
  0x22   : > { %v833_v23 = vshrl.u32 %v4857_v8, 16  ;;  %v824_v25 = vrot.slane %v822_v14, 5  ;;  %v836_v26 = vshll.u32 %v4857_v8, 16  ;;  %v847_v27 = vshrl.u32 %v4865_v13, 16  ;;  %v4889_v29 = vld [vmem:[%s4843_s19 + $0x30] sm:$0xf] }
  0x23   : > { %4136 = vmatmul.mubr.msk.bf16.vlgmr.msra.gmra.mrb[0].mxu1 %vm355_vm1, %v3648_v17  ;;  %v850_v28 = vshll.u32 %v4865_v13, 16  ;;  %v811_v30 = vor.u32 %v810_v21, %v807_v20  ;;  %v4894_v34 = vld [vmem:[%s4843_s19 + $0x38] sm:$0xf]  ;;  %v4900_v40 = vld [vmem:[%s4843_s19 + $0x8] sm:$0xf]  ;;  %v3649_v42 = vcombine.low %v4877_v19, %v4882_v24  ;;  %v4966_v14 = vld [vmem:[%s6156_s2 + $0x20] sm:$0xff]  }
  0x24   : > { %v835_v31 = vrot.slane %v833_v23, 4  ;;  %4144 = vmatpush3.bf16.msra.mxu1 %v4560_v1  ;;  %v825_v35 = vor.u32 %v824_v25, %v821_v22  ;;  %v838_v36 = vrot.slane %v836_v26, 5  ;;  %v849_v37 = vrot.slane %v847_v27, 4  ;;  %v4909_v45 = vld [vmem:[%s4843_s19 + $0xc] sm:$0x1] }
  0x25   : > { %v852_v38 = vrot.slane %v850_v28, 5  ;;  %4145 = vmatprep.subr.bf16.mxu1 %v4561_v18  ;;  %v4902_v41 = vrot.slane %v811_v30, 4  ;;  %v4915_v50 = vld [vmem:[%s4843_s19 + $0x10] sm:$0xf]  ;;  %v4918_v51 = vld [vmem:[%s4843_s19 + $0x14] sm:$0x1]  ;;  %4139 = vmatprep.mubr.msk.bf16.mxu1 %vm355_vm1, %v3649_v42  ;;  %v3650_v53 = vcombine.low %v4889_v29, %v4894_v34 }
  0x26   : > { %v4911_v46 = vrot.slane %v825_v35, 4  ;;  %v839_v47 = vor.u32 %v838_v36, %v835_v31  ;;  %v4927_v56 = vld [vmem:[%s4843_s19 + $0x18] sm:$0xf]  ;;  %v4939_v62 = vld [vmem:[%s4843_s19 + $0x1c] sm:$0x1]  ;;  %v1858_v63 = vshrl.u32 %v4900_v40, 16 }
  0x27   : > { %v853_v48 = vor.u32 %v852_v38, %v849_v37  ;;  %v1861_v0 = vshll.u32 %v4900_v40, 16  ;;  %v1867_v1 = vshll.u32 %v4909_v45, 16  ;;  %v1872_v2 = vshrl.u32 %v4915_v50, 16  ;;  %v4946_v3 = vld [vmem:[%s4843_s19 + $0x20] sm:$0xf] }
  0x28   : > { %4146 = vmatpush3.bf16.msra.mxu1 %v4561_v18  ;;  %v4932_v58 = vrot.slane %v839_v47, 4  ;;  %v1875_v4 = vshll.u32 %v4915_v50, 16  ;;  %v1881_v9 = vshll.u32 %v4918_v51, 16  ;;  %v4961_v12 = vld [vmem:[%s4843_s19 + $0x24] sm:$0x1]  ;;  %v1860_v17 = vrot.slane %v1858_v63, 4 }
  0x29   : > { %v4934_v59 = vrot.slane %v853_v48, 4  ;;  %4147 = vmatprep.subr.bf16.mxu1 %v4564_v39  ;;  %v1863_v18 = vrot.slane %v1861_v0, 5  ;;  %v1869_v20 = vrot.slane %v1867_v1, 5  ;;  %v1874_v21 = vrot.slane %v1872_v2, 4  ;;  %v4974_v35 = vld [vmem:[%s4953_s17] sm:$0xf] }
  0x2a   : > { %v1877_v22 = vrot.slane %v1875_v4, 5  ;;  %v1883_v23 = vrot.slane %v1881_v9, 5  ;;  %v1886_v25 = vshrl.u32 %v4927_v56, 16  ;;  %v1889_v26 = vshll.u32 %v4927_v56, 16  ;;  %v4984_v47 = vld [vmem:[%s4953_s17 + $0x8] sm:$0xf] }
  0x2b   : > { %4140 = vmatmul.mubr.msk.bf16.gmra.mrb[4].mxu1 %vm355_vm1, %v3650_v53  ;;  %v1864_v27 = vor.u32 %v1863_v18, %v1860_v17  ;;  %v1895_v28 = vshll.u32 %v4939_v62, 16  ;;  %v1900_v30 = vshrl.u32 %v4946_v3, 16  ;;  %v1903_v31 = vshll.u32 %v4946_v3, 16  ;;  %v4987_v1 = vld [vmem:[%s4953_s17 + $0x10] sm:$0xf] }
  0x2c   : > { %4148 = vmatpush3.bf16.msra.mxu1 %v4564_v39  ;;  %v1878_v37 = vor.u32 %v1877_v22, %v1874_v21  ;;  %v1888_v38 = vrot.slane %v1886_v25, 4  ;;  %v1891_v39 = vrot.slane %v1889_v26, 5  ;;  %v1909_v42 = vshll.u32 %v4961_v12, 16  ;;  %v4991_v18 = vld [vmem:[%s4953_s17 + $0x18] sm:$0xf] }
  0x2d   : > { %4149 = vmatprep.subr.bf16.mxu1 %v4566_v57  ;;  %v1865_v48 = vrot.slane %v1864_v27, 4  ;;  %v1897_v53 = vrot.slane %v1895_v28, 5  ;;  %v1902_v63 = vrot.slane %v1900_v30, 4  ;;  %v1905_v0 = vrot.slane %v1903_v31, 5  ;;  %v5004_v31 = vld [vmem:[%s4843_s19 + $0x28] sm:$0xf] }
  0x2e   : > { %v1879_v2 = vrot.slane %v1878_v37, 4  ;;  %v1892_v4 = vor.u32 %v1891_v39, %v1888_v38  ;;  %v1911_v9 = vrot.slane %v1909_v42, 5  ;;  %v563_v28 = vshrl.u32 %v4974_v35, 16  ;;  %v5010_v42 = vld [vmem:[%s4843_s19 + $0x2c] sm:$0x1] }
  0x2f   : > { %v1870_v21 = vsel %vm4978_vm5, %v1865_v48, %v1869_v20  ;;  %v1906_v22 = vor.u32 %v1905_v0, %v1902_v63  ;;  %v566_v30 = vshll.u32 %v4974_v35, 16  ;;  %v577_v38 = vshrl.u32 %v4984_v47, 16  ;;  %v5058_v49 = vld [vmem:[%s4843_s19 + $0x40] sm:$0xf]  ;;  %v5061_v44 = vld [vmem:[%s4843_s19 + $0x44] sm:$0x1] }
  0x30   : > { %4150 = vmatpush3.bf16.msra.mxu1 %v4566_v57  ;;  %v3655_v57 = vcombine.low %v4974_v35, %v4984_v47  ;;  %v1884_v26 = vsel %vm4978_vm5, %v1879_v2, %v1883_v23  ;;  %v1893_v27 = vrot.slane %v1892_v4, 4  ;;  %v580_v39 = vshll.u32 %v4984_v47, 16  ;;  %v4572_v23 = vld [vmem:[%s6156_s2 + $0x28] sm:$0xff]   ;;  %v5022_v4 = vld [vmem:[%s4843_s19 + $0x30] sm:$0xf] }
  0x31   : > { %4159 = vmatprep.subr.bf16.mxu1 %v4966_v14  ;;  %v3823_v37 = vcombine.low %v1870_v21, %v1884_v26  ;;  %v1907_v20 = vrot.slane %v1906_v22, 4  ;;  %v3656_v63 = vcombine.low %v4987_v1, %v4991_v18  ;;  %v591_v0 = vshrl.u32 %v4987_v1, 16  ;;  %v5025_v21 = vld [vmem:[%s4843_s19 + $0x34] sm:$0x1]  ;;  %v5091_v26 = vld [vmem:[%s4953_s17 + $0x28] sm:$0xf] }
  0x32   : > { %4151 = vmatprep.mubr.msk.bf16.mxu1 %vm481_vm4, %v3655_v57  ;;  %v1898_v48 = vsel %vm4978_vm5, %v1893_v27, %v1897_v53  ;;  %v594_v2 = vshll.u32 %v4987_v1, 16  ;;  %v4567_v53 = vld [vmem:[%s6156_s2 + $0xa8] sm:$0xff]   ;;  %v1914_v27 = vshrl.u32 %v5004_v31, 16  ;;  %v1917_v32 = vshll.u32 %v5004_v31, 16  ;;  %v5094_v57 = vld [vmem:[%s4953_s17 + $0x30] sm:$0xf] }
  0x33   : > { %4255 = vmatprep.mubr.msk.bf16.mxu0 %vm355_vm1, %v3823_v37  ;;  %v1912_v22 = vsel %vm4978_vm5, %v1907_v20, %v1911_v9  ;;  %4152 = vmatmul.mubr.msk.bf16.vlgmr.msra.gmra.mrb[0].mxu1 %vm481_vm4, %v3656_v63  ;;  %v1923_v37 = vshll.u32 %v5010_v42, 16  ;;  %v1928_v9 = vshrl.u32 %v5022_v4, 16  ;;  %v4576_v20 = vld [vmem:[%s6156_s2 + $0x30] sm:$0xff]   ;;  %v1931_v15 = vshll.u32 %v5022_v4, 16  ;;  %6190 = vst [vmem:[#allocation12_spill] sm:$0xff] %v5094_v57 }
  0x34   : > { %v3824_v33 = vcombine.low %v1898_v48, %v1912_v22  ;;  %v1916_v16 = vrot.slane %v1914_v27, 4  ;;  %v1937_v61 = vshll.u32 %v5025_v21, 16  ;;  %4160 = vmatpush3.bf16.msra.mxu1 %v4966_v14  ;;  %v5047_v48 = vld [vmem:[%s4843_s19 + $0x38] sm:$0xf]  ;;  %v5049_v63 = vrot.slane %v563_v28, 4 }
  0x35   : > { %v1919_v22 = vrot.slane %v1917_v32, 5  ;;  %v1925_v60 = vrot.slane %v1923_v37, 5  ;;  %v1930_v55 = vrot.slane %v1928_v9, 4  ;;  %v5053_v27 = vld [vmem:[%s4843_s19 + $0x3c] sm:$0x1]  ;;  %v1942_v54 = vshrl.u32 %v5047_v48, 16  ;;  %4161 = vmatprep.subr.bf16.mxu1 %v4572_v23 }
  0x36   : > { %4256 = vmatmul.mubr.msk.bf16.vlgmr.msra.gmra.mrb[0].mxu0 %vm355_vm1, %v3824_v33  ;;  %v1933_v14 = vrot.slane %v1931_v15, 5  ;;  %v1939_v52 = vrot.slane %v1937_v61, 5  ;;  %v4571_v37 = vld [vmem:[%s6156_s2 + $0xb0] sm:$0xff]   ;;  %v1951_v15 = vshll.u32 %v5053_v27, 16  ;;  %v1956_v43 = vshrl.u32 %v5058_v49, 16 }
  0x37   : > { %4264 = vmatpush3.bf16.msra.mxu0 %v4848_v5  ;;  %v1920_v33 = vor.u32 %v1919_v22, %v1916_v16  ;;  %v1944_v9 = vrot.slane %v1942_v54, 4  ;;  %v1945_v5 = vshll.u32 %v5047_v48, 16  ;;  %v1959_v25 = vshll.u32 %v5058_v49, 16  ;;  %v4577_v16 = vld [vmem:[%s6156_s2 + $0x38] sm:$0xff]  }
  0x38   : > { %4265 = vmatprep.subr.bf16.mxu0 %v4567_v53  ;;  %v1934_v61 = vor.u32 %v1933_v14, %v1930_v55  ;;  %v1965_v28 = vshll.u32 %v5061_v44, 16  ;;  %4162 = vmatpush3.bf16.msra.mxu1 %v4572_v23  ;;  %v1953_v32 = vrot.slane %v1951_v15, 5  ;;  %v4573_v55 = vld [vmem:[%s6156_s2 + $0xb8] sm:$0xff]   ;;  %v5083_v14 = vrot.slane %v566_v30, 5  ;;  %v5088_v15 = vld [vmem:[%s4953_s17 + $0x20] sm:$0xf] }
  0x39   : > { %v1921_v22 = vrot.slane %v1920_v33, 4  ;;  %v1947_v54 = vrot.slane %v1945_v5, 5  ;;  %4163 = vmatprep.subr.bf16.mxu1 %v4576_v20  ;;  %v1958_v17 = vrot.slane %v1956_v43, 4  ;;  %v1961_v11 = vrot.slane %v1959_v25, 5  ;;  %v5216_v7 = vld [vmem:[%s4953_s17 + $0x38] sm:$0xf] }
  0x3a   : > { %v1935_v23 = vrot.slane %v1934_v61, 4  ;;  %v1967_v10 = vrot.slane %v1965_v28, 5  ;;  %v3657_v25 = vcombine.low %v5088_v15, %v5091_v26  ;;  %v5104_v28 = vld [vmem:[%s4953_s17 + $0x38] sm:$0xf]  ;;  %6202 = vst [vmem:[#allocation20_spill] sm:$0xff] %v5216_v7 }
  0x3b   : > { %4266 = vmatpush3.bf16.msra.mxu0 %v4567_v53  ;;  %v1926_v33 = vsel %vm4978_vm5, %v1921_v22, %v1925_v60  ;;  %v1948_v5 = vor.u32 %v1947_v54, %v1944_v9  ;;  %v1962_v43 = vor.u32 %v1961_v11, %v1958_v17  ;;  %6191 = vst [vmem:[#allocation13_spill] sm:$0xff] %v5104_v28 }
  0x3c   : > { %4267 = vmatprep.subr.bf16.mxu0 %v4571_v37  ;;  %v1940_v53 = vsel %vm4978_vm5, %v1935_v23, %v1939_v52  ;;  %4164 = vmatpush3.bf16.msra.mxu1 %v4576_v20  ;;  %v3658_v11 = vcombine.low %v5094_v57, %v5104_v28  ;;  %v5114_v20 = vld [vmem:[%s4953_s17 + $0x8] sm:$0xf] }
  0x3d   : > { %v3825_v9 = vcombine.low %v1926_v33, %v1940_v53  ;;  %v1949_v61 = vrot.slane %v1948_v5, 4  ;;  %4165 = vmatprep.subr.bf16.mxu1 %v4577_v16  ;;  %v1963_v30 = vrot.slane %v1962_v43, 4  ;;  %4155 = vmatprep.mubr.msk.bf16.mxu1 %vm481_vm4, %v3657_v25  ;;  %6192 = vst [vmem:[#allocation14_spill] sm:$0xff] %v5114_v20  ;;  %v3742_v43 = vld [vmem:[%s4953_s17 + $0xc] sm:$0x1] }
  0x3e   : > { %4156 = vmatmul.mubr.msk.bf16.gmra.mrb[4].mxu1 %vm481_vm4, %v3658_v11  ;;  %v2081_v5 = vrot.slane %v3742_v43, 5  ;;  %v569_v11 = vor.u32 %v5083_v14, %v5049_v63 }
  0x3f   : > { %4268 = vmatpush3.bf16.msra.mxu0 %v4571_v37  ;;  %4259 = vmatprep.mubr.msk.bf16.mxu0 %vm355_vm1, %v3825_v9  ;;  %v1954_v23 = vsel %vm4978_vm5, %v1949_v61, %v1953_v32  ;;  %v1968_v25 = vsel %vm4978_vm5, %v1963_v30, %v1967_v10  ;;  %v5133_v32 = vld [vmem:[%s4953_s17 + $0x10] sm:$0xf]  ;;  %v3744_v9 = vld [vmem:[%s4953_s17 + $0x14] sm:$0x1]  ;;  %v3831_v61 = vrot.slane %v5114_v20, 9  ;;  %v6199_v20 = vshrl.u32 %v4991_v18, 16 }
  0x40   : > { %4269 = vmatprep.subr.bf16.mxu0 %v4573_v55  ;;  %6195 = vst [vmem:[#allocation15_spill] sm:$0xff] %v5133_v32  ;;  %v3826_v37 = vcombine.low %v1954_v23, %v1968_v25  ;;  %v3832_v17 = vrot.slane %v5133_v32, 9  ;;  %v2085_v52 = vrot.slane %v3744_v9, 5  ;;  %v3867_v10 = vld [vmem:[%s6157_s3 + $0x14] sm:$0xf]  ;;  %4166 = vmatpush3.bf16.msra.mxu1 %v4577_v16 }
  0x41   : > { %v5144_v30 = vld [vmem:[%s4953_s17 + $0x18] sm:$0xf]  ;;  %v2082_v43 = vsel %vm5124_vm8, %v3831_v61, %v2081_v5  ;;  %v3746_v23 = vld [vmem:[%s4953_s17 + $0x1c] sm:$0x1]  ;;  %v5152_v25 = vld [vmem:[%s4953_s17 + $0x20] sm:$0xf] }
  0x42   : > { %6196 = vst [vmem:[#allocation16_spill] sm:$0xff] %v5144_v30  ;;  %6197 = vst [vmem:[#allocation17_spill] sm:$0xff] %v5152_v25  ;;  %v3748_v9 = vld [vmem:[%s4953_s17 + $0x24] sm:$0x1]  ;;  %4260 = vmatmul.mubr.msk.bf16.gmra.mrb[4].mxu0 %vm355_vm1, %v3826_v37  ;;  %v2086_v33 = vsel %vm5124_vm8, %v3832_v17, %v2085_v52  ;;  %v3833_v16 = vrot.slane %v5144_v30, 9  ;;  %v2089_v54 = vrot.slane %v3746_v23, 5 }
  0x43   : > { %4270 = vmatpush3.bf16.msra.mxu0 %v4573_v55  ;;  %v3834_v63 = vrot.slane %v5152_v25, 9  ;;  %v3847_v55 = vcombine.low %v2082_v43, %v2086_v33  ;;  %v2093_v14 = vrot.slane %v3748_v9, 5  ;;  %v2308_v5 = vsel %vm368_vm0, %v3867_v10, 0  ;;  %v5163_v61 = vld [vmem:[%s4953_s17 + $0x4] sm:$0x1] }
  0x44   : > { %4508 = vmatprep.subr.msk.bf16.mxu0 %vm368_vm0, %v3867_v10  ;;  %v2090_v52 = vsel %vm5124_vm8, %v3833_v16, %v2089_v54  ;;  %v5170_v17 = vld [vmem:[%s4953_s17 + $0xc] sm:$0x1]  ;;  %v570_v23 = vrot.slane %v569_v11, 4  ;;  %v572_v22 = vshll.u32 %v5163_v61, 16  ;;  %v579_v33 = vrot.slane %v577_v38, 4 }
  0x45   : > { %4271 = vmatprep.mubr.msk.bf16.mxu0 %vm481_vm4, %v3847_v55  ;;  %v2094_v10 = vsel %vm5124_vm8, %v3834_v63, %v2093_v14  ;;  %v582_v43 = vrot.slane %v580_v39, 5  ;;  %v586_v54 = vshll.u32 %v5170_v17, 16  ;;  %v5182_v9 = vld [vmem:[%s4953_s17 + $0x14] sm:$0x1]  ;;  %v5185_v16 = vld [vmem:[%s4953_s17 + $0x1c] sm:$0x1] }
  0x46   : > { %v3848_v38 = vcombine.low %v2090_v52, %v2094_v10  ;;  %v574_v55 = vrot.slane %v572_v22, 5  ;;  %v593_v37 = vrot.slane %v591_v0, 4  ;;  %v596_v63 = vrot.slane %v594_v2, 5  ;;  %v5194_v39 = vld [vmem:[%s4953_s17 + $0x28] sm:$0xf]  ;;  %v5203_v22 = vld [vmem:[%s6156_s2 + $0xc0] sm:$0xff]  }
  0x47   : > { %6198 = vst [vmem:[#allocation18_spill] sm:$0xff] %v5194_v39  ;;  %v583_v14 = vor.u32 %v582_v43, %v579_v33  ;;  %v588_v60 = vrot.slane %v586_v54, 5  ;;  %v600_v32 = vshll.u32 %v5182_v9, 16  ;;  %v607_v11 = vrot.slane %v6199_v20, 4  ;;  %v3750_v25 = vld [vmem:[%s4953_s17 + $0x2c] sm:$0x1] }
  0x48   : > { %v575_v0 = vsel %vm4978_vm5, %v570_v23, %v574_v55  ;;  %v597_v2 = vor.u32 %v596_v63, %v593_v37  ;;  %v6200_v52 = vshll.u32 %v4991_v18, 16  ;;  %v614_v10 = vshll.u32 %v5185_v16, 16  ;;  %v5211_v43 = vld [vmem:[%s4953_s17 + $0x30] sm:$0xf]  ;;  %v3752_v54 = vld [vmem:[%s4953_s17 + $0x34] sm:$0x1] }
  0x49   : > { %6201 = vst [vmem:[#allocation19_spill] sm:$0xff] %v5211_v43  ;;  %v584_v20 = vrot.slane %v583_v14, 4  ;;  %v602_v30 = vrot.slane %v600_v32, 5  ;;  %v3835_v13 = vrot.slane %v5194_v39, 9  ;;  %v2097_v8 = vrot.slane %v3750_v25, 5 }
  0x4a   : > { %v610_v33 = vrot.slane %v6200_v52, 5  ;;  %4272 = vmatmul.mubr.msk.bf16.vlgmr.msra.gmra.mrb[0].mxu0 %vm481_vm4, %v3848_v38  ;;  %v598_v37 = vrot.slane %v597_v2, 4  ;;  %v616_v55 = vrot.slane %v614_v10, 5  ;;  %v3836_v63 = vrot.slane %v5211_v43, 9  ;;  %v3754_v52 = vld [vmem:[%s4953_s17 + $0x3c] sm:$0x1] }
  0x4b   : > { %4280 = vmatpush3.bf16.msra.mxu0 %v2308_v5  ;;  %v589_v14 = vsel %vm4978_vm5, %v584_v20, %v588_v60  ;;  %v2098_v32 = vsel %vm5124_vm8, %v3835_v13, %v2097_v8  ;;  %v2101_v25 = vrot.slane %v3752_v54, 5  ;;  %v5226_v39 = vld [vmem:[%s4953_s17 + $0x40] sm:$0xf]  ;;  %v3756_v38 = vld [vmem:[%s4953_s17 + $0x44] sm:$0x1]  ;;  %v3837_v2 = vrot.slane %v5216_v7, 9 }
  0x4c   : > { %v611_v23 = vor.u32 %v610_v33, %v607_v11  ;;  %6203 = vst [vmem:[#allocation21_spill] sm:$0xff] %v5226_v39  ;;  %v3675_v11 = vcombine.low %v575_v0, %v589_v14  ;;  %v603_v33 = vsel %vm4978_vm5, %v598_v37, %v602_v30  ;;  %v2105_v5 = vrot.slane %v3754_v52, 5  ;;  %v5233_v43 = vld [vmem:[%s4953_s17 + $0x24] sm:$0x1]  ;;  %v5236_v60 = vld [vmem:[%s4953_s17 + $0x2c] sm:$0x1]  ;;  %4289 = vmatprep.subr.bf16.mxu0 %v5203_v22 }
  0x4d   : > { %v2102_v8 = vsel %vm5124_vm8, %v3836_v63, %v2101_v25  ;;  %v3838_v13 = vrot.slane %v5226_v39, 9  ;;  %v2109_v54 = vrot.slane %v3756_v38, 5  ;;  %v6204_v0 = vshrl.u32 %v5088_v15, 16  ;;  %v5245_v14 = vld [vmem:[%s4953_s17 + $0x34] sm:$0x1] }
  0x4e   : > { %v612_v10 = vrot.slane %v611_v23, 4  ;;  %6205 = vst [vmem:[#allocation22_spill] sm:$0xff] %v5245_v14  ;;  %4167 = vmatprep.mubr.msk.bf16.mxu1 %vm481_vm4, %v3675_v11  ;;  %v3849_v37 = vcombine.low %v2098_v32, %v2102_v8  ;;  %v2106_v23 = vsel %vm5124_vm8, %v3837_v2, %v2105_v5  ;;  %v6206_v52 = vshll.u32 %v5088_v15, 16  ;;  %v5255_v25 = vld [vmem:[%s4953_s17 + $0x3c] sm:$0x1] }
  0x4f   : > { %v621_v20 = vrot.slane %v6204_v0, 4  ;;  %6207 = vst [vmem:[#allocation23_spill] sm:$0xff] %v5255_v25  ;;  %v3687_v38 = vld [vmem:[%s6157_s3 + $0x4] sm:$0xf]  ;;  %v2110_v11 = vsel %vm5124_vm8, %v3838_v13, %v2109_v54  ;;  %v628_v7 = vshll.u32 %v5233_v43, 16  ;;  %v6209_v5 = vshll.u32 %v5091_v26, 16 }
  0x50   : > { %v617_v30 = vsel %vm4978_vm5, %v612_v10, %v616_v55  ;;  %v624_v63 = vrot.slane %v6206_v52, 5  ;;  %v6208_v55 = vshrl.u32 %v5091_v26, 16  ;;  %4504 = vmatprep.subr.msk.bf16.mxu1 %vm368_vm0, %v3687_v38  ;;  %4275 = vmatprep.mubr.msk.bf16.mxu0 %vm481_vm4, %v3849_v37  ;;  %v3850_v2 = vcombine.low %v2106_v23, %v2110_v11 }
  0x51   : > { %v3676_v0 = vcombine.low %v603_v33, %v617_v30  ;;  %v638_v8 = vrot.slane %v6209_v5, 5  ;;  %v642_v33 = vshll.u32 %v5236_v60, 16  ;;  %v630_v13 = vrot.slane %v628_v7, 5 }
  0x52   : > { %v635_v32 = vrot.slane %v6208_v55, 4  ;;  %v625_v10 = vor.u32 %v624_v63, %v621_v20  ;;  %v6210_v54 = vshrl.u32 %v5094_v57, 16  ;;  %v6211_v52 = vshll.u32 %v5094_v57, 16  ;;  %4276 = vmatmul.mubr.msk.bf16.gmra.mrb[4].mxu0 %vm481_vm4, %v3850_v2  ;;  %v5291_v2 = vld [vmem:[%s6156_s2 + $0x40] sm:$0xff]  }
  0x53   : > { %4168 = vmatmul.mubr.msk.bf16.vlgmr.msra.gmra.mrb[0].mxu1 %vm481_vm4, %v3676_v0  ;;  %v656_v37 = vshll.u32 %v5245_v14, 16  ;;  %v644_v63 = vrot.slane %v642_v33, 5  ;;  %v6212_v11 = vshrl.u32 %v5104_v28, 16  ;;  %v6213_v39 = vshll.u32 %v5104_v28, 16  ;;  %v5286_v14 = vld [vmem:[%s4843_s19 + $0xc] sm:$0x1] }
  0x54   : > { %v649_v30 = vrot.slane %v6210_v54, 4  ;;  %v652_v55 = vrot.slane %v6211_v52, 5  ;;  %v626_v20 = vrot.slane %v625_v10, 4  ;;  %v639_v23 = vor.u32 %v638_v8, %v635_v32  ;;  %v5283_v52 = vld [vmem:[%s4843_s19 + $0x4] sm:$0x1] }
  0x55   : > { %v663_v5 = vrot.slane %v6212_v11, 4  ;;  %v658_v7 = vrot.slane %v656_v37, 5  ;;  %v666_v54 = vrot.slane %v6213_v39, 5  ;;  %v670_v6 = vshll.u32 %v5255_v25, 16  ;;  %v5298_v39 = vld [vmem:[%s4843_s19 + $0x14] sm:$0x1] }
  0x56   : > { %v653_v0 = vor.u32 %v652_v55, %v649_v30  ;;  %v631_v32 = vsel %vm4978_vm5, %v626_v20, %v630_v13  ;;  %v640_v10 = vrot.slane %v639_v23, 4  ;;  %v3859_v8 = vrot.slane %v4900_v40, 9  ;;  %v5301_v30 = vld [vmem:[%s4843_s19 + $0x1c] sm:$0x1] }
  0x57   : > { %v3860_v33 = vrot.slane %v4915_v50, 9  ;;  %v667_v37 = vor.u32 %v666_v54, %v663_v5  ;;  %v672_v11 = vrot.slane %v670_v6, 5  ;;  %v943_v25 = vsel %vm368_vm0, %v3687_v38, 0 }
  0x58   : > { %v654_v55 = vrot.slane %v653_v0, 4  ;;  %v645_v28 = vsel %vm4978_vm5, %v640_v10, %v644_v63  ;;  %v6214_v57 = vrot.slane %v4909_v45, 5  ;;  %v6215_v20 = vrot.slane %v4918_v51, 5  ;;  %4176 = vmatpush3.bf16.msra.mxu1 %v943_v25 }
  0x59   : > { %v3861_v0 = vrot.slane %v4927_v56, 9  ;;  %v3677_v5 = vcombine.low %v631_v32, %v645_v28  ;;  %v668_v38 = vrot.slane %v667_v37, 4  ;;  %4185 = vmatprep.subr.bf16.mxu1 %v5291_v2  ;;  %v6216_v45 = vrot.slane %v4939_v62, 5 }
  0x5a   : > { %v2252_v13 = vsel %vm5124_vm8, %v3859_v8, %v6214_v57  ;;  %v2256_v23 = vsel %vm5124_vm8, %v3860_v33, %v6215_v20  ;;  %v659_v6 = vsel %vm4978_vm5, %v654_v55, %v658_v7  ;;  %v3862_v51 = vrot.slane %v4946_v3, 9 }
  0x5b   : > { %v3868_v54 = vcombine.low %v2252_v13, %v2256_v23  ;;  %v2260_v57 = vsel %vm5124_vm8, %v3861_v0, %v6216_v45  ;;  %v814_v63 = vshll.u32 %v5283_v52, 16  ;;  %v828_v25 = vshll.u32 %v5286_v14, 16  ;;  %4171 = vmatprep.mubr.msk.bf16.mxu1 %vm481_vm4, %v3677_v5 }
  0x5c   : > { %v673_v28 = vsel %vm4978_vm5, %v668_v38, %v672_v11  ;;  %v842_v7 = vshll.u32 %v5298_v39, 16  ;;  %v856_v62 = vshll.u32 %v5301_v30, 16  ;;  %v3863_v32 = vrot.slane %v5004_v31, 9  ;;  %v4579_v11 = vld [vmem:[%s6156_s2 + $0xc8] sm:$0xff]  }
  0x5d   : > { %4281 = vmatprep.mubr.msk.bf16.mxu0 %vm355_vm1, %v3868_v54  ;;  %v3678_v10 = vcombine.low %v659_v6, %v673_v28  ;;  %v6217_v8 = vrot.slane %v4961_v12, 5  ;;  %v816_v55 = vrot.slane %v814_v63, 5  ;;  %v830_v37 = vrot.slane %v828_v25, 5  ;;  %v5367_v63 = vld [vmem:[%s4843_s19 + $0x2c] sm:$0x1] }
  0x5e   : > { %v844_v20 = vrot.slane %v842_v7, 5  ;;  %v858_v23 = vrot.slane %v856_v62, 5  ;;  %v2267_v0 = vrot.slane %v5010_v42, 5  ;;  %v3864_v6 = vrot.slane %v5022_v4, 9 }
  0x5f   : > { %v2264_v33 = vsel %vm5124_vm8, %v3862_v51, %v6217_v8  ;;  %4172 = vmatmul.mubr.msk.bf16.gmra.mrb[4].mxu1 %vm481_vm4, %v3678_v10  ;;  %v817_v12 = vsel %vm4978_vm5, %v4902_v41, %v816_v55  ;;  %v831_v5 = vsel %vm4978_vm5, %v4911_v46, %v830_v37  ;;  %v2271_v38 = vrot.slane %v5025_v21, 5  ;;  %v5359_v46 = vld [vmem:[%s4843_s19 + $0x24] sm:$0x1] }
  0x60   : > { %v3869_v13 = vcombine.low %v2260_v57, %v2264_v33  ;;  %v3688_v54 = vcombine.low %v817_v12, %v831_v5  ;;  %v845_v42 = vsel %vm4978_vm5, %v4932_v58, %v844_v20  ;;  %v859_v41 = vsel %vm4978_vm5, %v4934_v59, %v858_v23  ;;  %v5370_v59 = vld [vmem:[%s4843_s19 + $0x34] sm:$0x1]  ;;  %v5391_v20 = vld [vmem:[%s4953_s17 + $0x10] sm:$0xf]  ;;  %v4582_v23 = vld [vmem:[%s6156_s2 + $0x48] sm:$0xff]  }
  0x61   : > { %v2268_v45 = vsel %vm5124_vm8, %v3863_v32, %v2267_v0  ;;  %v3689_v21 = vcombine.low %v845_v42, %v859_v41  ;;  %v2272_v57 = vsel %vm5124_vm8, %v3864_v6, %v2271_v38  ;;  %v3865_v51 = vrot.slane %v5047_v48, 9 }
  0x62   : > { %4282 = vmatmul.mubr.msk.bf16.vlgmr.msra.gmra.mrb[0].mxu0 %vm355_vm1, %v3869_v13  ;;  %v2275_v58 = vrot.slane %v5053_v27, 5  ;;  %4177 = vmatprep.mubr.msk.bf16.mxu1 %vm355_vm1, %v3688_v54  ;;  %v3870_v25 = vcombine.low %v2268_v45, %v2272_v57  ;;  %v3866_v28 = vrot.slane %v5058_v49, 9  ;;  %v2279_v7 = vrot.slane %v5061_v44, 5  ;;  %v5381_v27 = vld [vmem:[%s4843_s19 + $0x3c] sm:$0x1] }
  0x63   : > { %4290 = vmatpush3.bf16.msra.mxu0 %v5203_v22  ;;  %v4581_v22 = vld [vmem:[%s6156_s2 + $0xd0] sm:$0xff]   ;;  %v6218_v62 = vshrl.u32 %v4877_v19, 16  ;;  %v6219_v8 = vshll.u32 %v4877_v19, 16  ;;  %v870_v55 = vshll.u32 %v5359_v46, 16  ;;  %v6220_v37 = vshrl.u32 %v4882_v24, 16 }
  0x64   : > { %4291 = vmatprep.subr.bf16.mxu0 %v4579_v11  ;;  %v2276_v10 = vsel %vm5124_vm8, %v3865_v51, %v2275_v58  ;;  %4285 = vmatprep.mubr.msk.bf16.mxu0 %vm355_vm1, %v3870_v25  ;;  %v2280_v44 = vsel %vm5124_vm8, %v3866_v28, %v2279_v7  ;;  %v6221_v19 = vshll.u32 %v4882_v24, 16  ;;  %v884_v12 = vshll.u32 %v5367_v63, 16  ;;  %v5407_v57 = vld [vmem:[%s4953_s17 + $0x18] sm:$0xf] }
  0x65   : > { %v863_v32 = vrot.slane %v6218_v62, 4  ;;  %v866_v33 = vrot.slane %v6219_v8, 5  ;;  %v877_v13 = vrot.slane %v6220_v37, 4  ;;  %v6222_v5 = vshrl.u32 %v4889_v29, 16  ;;  %v4583_v24 = vld [vmem:[%s6156_s2 + $0xd8] sm:$0xff]  }
  0x66   : > { %v880_v0 = vrot.slane %v6221_v19, 5  ;;  %v3871_v38 = vcombine.low %v2276_v10, %v2280_v44  ;;  %v872_v42 = vrot.slane %v870_v55, 5  ;;  %v6223_v41 = vshll.u32 %v4889_v29, 16  ;;  %v5420_v8 = vld [vmem:[%s4953_s17 + $0x20] sm:$0xf] }
  0x67   : > { %v891_v6 = vrot.slane %v6222_v5, 4  ;;  %4292 = vmatpush3.bf16.msra.mxu0 %v4579_v11  ;;  %v867_v54 = vor.u32 %v866_v33, %v863_v32  ;;  %v886_v58 = vrot.slane %v884_v12, 5  ;;  %v898_v25 = vshll.u32 %v5370_v59, 16  ;;  %4178 = vmatmul.mubr.msk.bf16.vlgmr.msra.gmra.mrb[0].mxu1 %vm355_vm1, %v3689_v21  ;;  %v4584_v12 = vld [vmem:[%s6156_s2 + $0x50] sm:$0xff]  }
  0x68   : > { %v894_v45 = vrot.slane %v6223_v41, 5  ;;  %4293 = vmatprep.subr.bf16.mxu0 %v4581_v22  ;;  %v881_v51 = vor.u32 %v880_v0, %v877_v13  ;;  %v6224_v11 = vshrl.u32 %v4894_v34, 16  ;;  %v6225_v62 = vshll.u32 %v4894_v34, 16  ;;  %4186 = vmatpush3.bf16.msra.mxu1 %v5291_v2  ;;  %v5428_v13 = vld [vmem:[%s4953_s17 + $0x28] sm:$0xf] }
  0x69   : > { %v868_v7 = vrot.slane %v867_v54, 4  ;;  %v912_v10 = vshll.u32 %v5381_v27, 16  ;;  %v900_v55 = vrot.slane %v898_v25, 5  ;;  %v3916_v37 = vcombine.low %v5391_v20, %v5407_v57  ;;  %4187 = vmatprep.subr.bf16.mxu1 %v4582_v23 }
  0x6a   : > { %v905_v28 = vrot.slane %v6224_v11, 4  ;;  %v895_v29 = vor.u32 %v894_v45, %v891_v6  ;;  %v908_v32 = vrot.slane %v6225_v62, 5  ;;  %4286 = vmatmul.mubr.msk.bf16.gmra.mrb[4].mxu0 %vm355_vm1, %v3871_v38  ;;  %v882_v33 = vrot.slane %v881_v51, 4  ;;  %v3928_v38 = vld [vmem:[%s6157_s3 + $0x18] sm:$0xf] }
  0x6b   : > { %v2666_v21 = vshrl.u32 %v5391_v20, 16  ;;  %4294 = vmatpush3.bf16.msra.mxu0 %v4581_v22  ;;  %v873_v34 = vsel %vm4978_vm5, %v868_v7, %v872_v42  ;;  %v914_v2 = vrot.slane %v912_v10, 5  ;;  %4297 = vmatprep.mubr.msk.bf16.mxu0 %vm481_vm4, %v3916_v37  ;;  %v2669_v22 = vshll.u32 %v5391_v20, 16  ;;  %v5449_v51 = vld [vmem:[%s4953_s17 + $0x30] sm:$0xf] }
  0x6c   : > { %v896_v44 = vrot.slane %v895_v29, 4  ;;  %v909_v19 = vor.u32 %v908_v32, %v905_v28  ;;  %4295 = vmatprep.subr.bf16.mxu0 %v4583_v24  ;;  %v887_v0 = vsel %vm4978_vm5, %v882_v33, %v886_v58  ;;  %v2680_v5 = vshrl.u32 %v5407_v57, 16  ;;  %4188 = vmatpush3.bf16.msra.mxu1 %v4582_v23  ;;  %v5456_v7 = vld [vmem:[%s4953_s17 + $0x38] sm:$0xf]  ;;  %v5465_v10 = vld [vmem:[%s4953_s17 + $0x40] sm:$0xf] }
  0x6d   : > { %v2683_v6 = vshll.u32 %v5407_v57, 16  ;;  %v3690_v54 = vcombine.low %v873_v34, %v887_v0  ;;  %v3917_v45 = vcombine.low %v5420_v8, %v5428_v13  ;;  %v2694_v58 = vshrl.u32 %v5420_v8, 16  ;;  %v5468_v33 = vld [vmem:[%s4953_s17 + $0x48] sm:$0xf]  ;;  %4189 = vmatprep.subr.bf16.mxu1 %v4584_v12  ;;  %v5485_v0 = vld [vmem:[%s6156_s2 + $0xe0] sm:$0xff]  }
  0x6e   : > { %v901_v42 = vsel %vm4978_vm5, %v896_v44, %v900_v55  ;;  %v910_v41 = vrot.slane %v909_v19, 4  ;;  %v2697_v25 = vshll.u32 %v5420_v8, 16  ;;  %v2708_v11 = vshrl.u32 %v5428_v13, 16 }
  0x6f   : > { %v2711_v28 = vshll.u32 %v5428_v13, 16  ;;  %4296 = vmatpush3.bf16.msra.mxu0 %v4583_v24  ;;  %4181 = vmatprep.mubr.msk.bf16.mxu1 %vm355_vm1, %v3690_v54  ;;  %v2590_v62 = vsel %vm368_vm0, %v3928_v38, 0  ;;  %v3696_v23 = vrot.slane %v4974_v35, 9  ;;  %v1031_v32 = vrot.slane %v5163_v61, 5  ;;  %v4587_v24 = vld [vmem:[%s6156_s2 + $0x58] sm:$0xff]  }
  0x70   : > { %v915_v29 = vsel %vm4978_vm5, %v910_v41, %v914_v2  ;;  %4509 = vmatprep.subr.msk.bf16.mxu0 %vm368_vm0, %v3928_v38  ;;  %v3697_v37 = vrot.slane %v4984_v47, 9  ;;  %v1035_v34 = vrot.slane %v5170_v17, 5  ;;  %v3698_v35 = vrot.slane %v4987_v1, 9  ;;  %4190 = vmatpush3.bf16.msra.mxu1 %v4584_v12  ;;  %v5504_v41 = vld [vmem:[%s4843_s19 + $0x10] sm:$0xf] }
  0x71   : > { %v3691_v55 = vcombine.low %v901_v42, %v915_v29  ;;  %v1032_v61 = vsel %vm5124_vm8, %v3696_v23, %v1031_v32  ;;  %v1039_v44 = vrot.slane %v5182_v9, 5  ;;  %v3699_v19 = vrot.slane %v4991_v18, 9  ;;  %v3732_v42 = vld [vmem:[%s6157_s3 + $0x8] sm:$0xf]  ;;  %4191 = vmatprep.subr.bf16.mxu1 %v4587_v24  ;;  %v5623_v23 = vld [vmem:[%s4953_s17 + $0x14] sm:$0x1] }
  0x72   : > { %v1043_v2 = vrot.slane %v5185_v16, 5  ;;  %4298 = vmatmul.mubr.msk.bf16.vlgmr.msra.gmra.mrb[0].mxu0 %vm481_vm4, %v3917_v45  ;;  %v1036_v47 = vsel %vm5124_vm8, %v3697_v37, %v1035_v34  ;;  %v3918_v1 = vcombine.low %v5449_v51, %v5456_v7  ;;  %v2722_v18 = vshrl.u32 %v5449_v51, 16  ;;  %v5507_v45 = vld [vmem:[%s4843_s19 + $0x18] sm:$0xf]  ;;  %v6230_v37 = vld [vmem:[#allocation23_spill] sm:$0xff] }
  0x73   : > { %4182 = vmatmul.mubr.msk.bf16.gmra.mrb[4].mxu1 %vm355_vm1, %v3691_v55  ;;  %v2725_v17 = vshll.u32 %v5449_v51, 16  ;;  %4306 = vmatpush3.bf16.msra.mxu0 %v2590_v62  ;;  %v3712_v9 = vcombine.low %v1032_v61, %v1036_v47  ;;  %v1040_v16 = vsel %vm5124_vm8, %v3698_v35, %v1039_v44  ;;  %v2736_v54 = vshrl.u32 %v5456_v7, 16  ;;  %v5521_v35 = vld [vmem:[%s4843_s19 + $0x20] sm:$0xf] }
  0x74   : > { %v1044_v38 = vsel %vm5124_vm8, %v3699_v19, %v1043_v2  ;;  %4301 = vmatprep.mubr.msk.bf16.mxu0 %vm481_vm4, %v3918_v1  ;;  %v2739_v29 = vshll.u32 %v5456_v7, 16  ;;  %v3919_v62 = vcombine.low %v5465_v10, %v5468_v33  ;;  %v3700_v34 = vrot.slane %v5088_v15, 9  ;;  %4315 = vmatprep.subr.bf16.mxu0 %v5485_v0  ;;  %v6226_v2 = vld [vmem:[#allocation12_spill] sm:$0xff] }
  0x75   : > { %v3713_v12 = vcombine.low %v1040_v16, %v1044_v38  ;;  %4193 = vmatprep.mubr.msk.bf16.mxu1 %vm481_vm4, %v3712_v9  ;;  %v1047_v61 = vrot.slane %v5233_v43, 5  ;;  %v3701_v44 = vrot.slane %v5091_v26, 9  ;;  %v1051_v19 = vrot.slane %v5236_v60, 5  ;;  %v5528_v1 = vld [vmem:[%s4843_s19 + $0x28] sm:$0xf]  ;;  %4192 = vmatpush3.bf16.msra.mxu1 %v4587_v24  ;;  %v6228_v9 = vld [vmem:[#allocation22_spill] sm:$0xff] }
  0x76   : > { %v3702_v47 = vrot.slane %v6226_v2, 9  ;;  %6227 = vst [vmem:[#allocation12_spill] sm:$0xff] %v5528_v1  ;;  %v1055_v16 = vrot.slane %v6228_v9, 5  ;;  %v6229_v38 = vld [vmem:[#allocation13_spill] sm:$0xff]  ;;  %v1059_v55 = vrot.slane %v6230_v37, 5  ;;  %v3929_v32 = vcombine.low %v5504_v41, %v5507_v45  ;;  %4505 = vmatprep.subr.msk.bf16.mxu1 %vm368_vm0, %v3732_v42 }
  0x77   : > { %v3703_v15 = vrot.slane %v6229_v38, 9  ;;  %v1048_v43 = vsel %vm5124_vm8, %v3700_v34, %v1047_v61  ;;  %v1052_v26 = vsel %vm5124_vm8, %v3701_v44, %v1051_v19  ;;  %v5543_v2 = vld [vmem:[%s4843_s19 + $0x30] sm:$0xf]  ;;  %v5553_v61 = vld [vmem:[%s6156_s2 + $0x60] sm:$0xff]   ;;  %v6235_v34 = vld [vmem:[#allocation10_spill] sm:$0xff] }
  0x78   : > { %v3714_v9 = vcombine.low %v1048_v43, %v1052_v26  ;;  %v1056_v37 = vsel %vm5124_vm8, %v3702_v47, %v1055_v16  ;;  %v1258_v47 = vsel %vm368_vm0, %v3732_v42, 0  ;;  %v5562_v16 = vld [vmem:[%s4843_s19 + $0x38] sm:$0xf]  ;;  %v5571_v26 = vld [vmem:[%s4843_s19 + $0x40] sm:$0xf]  ;;  %v1201_v42 = vrot.slane %v5283_v52, 5 }
  0x79   : > { %v1060_v38 = vsel %vm5124_vm8, %v3703_v15, %v1059_v55  ;;  %v3930_v55 = vcombine.low %v5521_v35, %v5528_v1  ;;  %v6236_v24 = vrot.slane %v6235_v34, 9  ;;  %v1221_v52 = vrot.slane %v5367_v63, 5 }
  0x7a   : > { %4302 = vmatmul.mubr.msk.bf16.gmra.mrb[4].mxu0 %vm481_vm4, %v3919_v62  ;;  %v3715_v44 = vcombine.low %v1056_v37, %v1060_v38  ;;  %v1205_v37 = vrot.slane %v5286_v14, 5  ;;  %v1209_v38 = vrot.slane %v5298_v39, 5  ;;  %v3931_v62 = vcombine.low %v5543_v2, %v5562_v16 }
  0x7b   : > { %4194 = vmatmul.mubr.msk.bf16.vlgmr.msra.gmra.mrb[0].mxu1 %vm481_vm4, %v3713_v12  ;;  %4307 = vmatprep.mubr.msk.bf16.mxu0 %vm355_vm1, %v3929_v32  ;;  %v5578_v32 = vld [vmem:[%s4843_s19 + $0x48] sm:$0xf] }
  0x7c   : > { %4197 = vmatprep.mubr.msk.bf16.mxu1 %vm481_vm4, %v3714_v9  ;;  %4202 = vmatpush3.bf16.msra.mxu1 %v1258_v47  ;;  %v1213_v9 = vrot.slane %v5301_v30, 5  ;;  %v6231_v12 = vld [vmem:[#allocation8_spill] sm:$0xff]  ;;  %v6233_v30 = vld [vmem:[#allocation9_spill] sm:$0xff]  ;;  %v5598_v43 = vsel %vm5124_vm8, %v6236_v24, %v1209_v38  ;;  %v6237_v47 = vld [vmem:[#allocation11_spill] sm:$0xff]  ;;  %v3932_v34 = vcombine.low %v5571_v26, %v5578_v32 }
  0x7d   : > { %4211 = vmatprep.subr.bf16.mxu1 %v5553_v61  ;;  %v6232_v14 = vrot.slane %v6231_v12, 9  ;;  %v6234_v15 = vrot.slane %v6233_v30, 9  ;;  %v6238_v60 = vrot.slane %v6237_v47, 9  ;;  %v4593_v24 = vld [vmem:[%s6156_s2 + $0xe8] sm:$0xff]   ;;  %v4618_v38 = vld [vmem:[%s4843_s19 + $0x20] sm:$0xf] }
  0x7e   : > { %v1217_v47 = vrot.slane %v5359_v46, 5  ;;  %v1229_v46 = vrot.slane %v5381_v27, 5  ;;  %v5645_v27 = vld [vmem:[%s4953_s17 + $0x24] sm:$0x1] }
  0x7f   : > { %v1202_v39 = vsel %vm5124_vm8, %v6232_v14, %v1201_v42  ;;  %v1206_v19 = vsel %vm5124_vm8, %v6234_v15, %v1205_v37  ;;  %v5604_v12 = vsel %vm5124_vm8, %v6238_v60, %v1213_v9  ;;  %v3728_v9 = vrot.slane %v4618_v38, 9  ;;  %v4620_v60 = vld [vmem:[%s4843_s19 + $0x30] sm:$0xf]  ;;  %v4621_v15 = vld [vmem:[%s4843_s19 + $0x38] sm:$0xf] }
  0x80   : > { %v3733_v42 = vcombine.low %v1202_v39, %v1206_v19  ;;  %v3734_v14 = vcombine.low %v5598_v43, %v5604_v12  ;;  %v4619_v39 = vld [vmem:[%s4843_s19 + $0x28] sm:$0xf]  ;;  %v3730_v19 = vrot.slane %v4620_v60, 9  ;;  %v1225_v37 = vrot.slane %v5370_v59, 5  ;;  %v4600_v43 = vld [vmem:[%s6156_s2 + $0x70] sm:$0xff]  }
  0x81   : > { %v3729_v30 = vrot.slane %v4619_v39, 9  ;;  %v3731_v38 = vrot.slane %v4621_v15, 9  ;;  %v1218_v63 = vsel %vm5124_vm8, %v3728_v9, %v1217_v47  ;;  %v5638_v39 = vld [vmem:[%s4953_s17 + $0x1c] sm:$0x1]  ;;  %v2668_v59 = vrot.slane %v2666_v21, 4 }
  0x82   : > { %4308 = vmatmul.mubr.msk.bf16.vlgmr.msra.gmra.mrb[0].mxu0 %vm355_vm1, %v3930_v55  ;;  %v2671_v55 = vrot.slane %v2669_v22, 5  ;;  %v2675_v22 = vshll.u32 %v5623_v23, 16  ;;  %v2682_v15 = vrot.slane %v2680_v5, 4  ;;  %v2685_v60 = vrot.slane %v2683_v6, 5  ;;  %v5680_v5 = vld [vmem:[%s4953_s17 + $0x34] sm:$0x1] }
  0x83   : > { %4198 = vmatmul.mubr.msk.bf16.gmra.mrb[4].mxu1 %vm481_vm4, %v3715_v44  ;;  %4316 = vmatpush3.bf16.msra.mxu0 %v5485_v0  ;;  %v1222_v44 = vsel %vm5124_vm8, %v3729_v30, %v1221_v52  ;;  %v4596_v0 = vld [vmem:[%s6156_s2 + $0xf0] sm:$0xff]   ;;  %v5657_v21 = vsel %vm5124_vm8, %v3731_v38, %v1229_v46  ;;  %v2689_v47 = vshll.u32 %v5638_v39, 16  ;;  %v2696_v38 = vrot.slane %v2694_v58, 4  ;;  %v4598_v6 = vld [vmem:[%s6156_s2 + $0x68] sm:$0xff]   ;;  %v4599_v58 = vld [vmem:[%s6156_s2 + $0xf8] sm:$0xff]  }
  0x84   : > { %4203 = vmatprep.mubr.msk.bf16.mxu1 %vm355_vm1, %v3733_v42  ;;  %4317 = vmatprep.subr.bf16.mxu0 %v4593_v24  ;;  %v3735_v52 = vcombine.low %v1218_v63, %v1222_v44  ;;  %v5653_v42 = vsel %vm5124_vm8, %v3730_v19, %v1225_v37  ;;  %v5669_v19 = vld [vmem:[%s6157_s3 + $0x1c] sm:$0xf]  ;;  %v5672_v37 = vld [vmem:[%s4953_s17 + $0x2c] sm:$0x1]  ;;  %v2677_v9 = vrot.slane %v2675_v22, 5  ;;  %v2699_v46 = vrot.slane %v2697_v25, 5 }
  0x85   : > { %4311 = vmatprep.mubr.msk.bf16.mxu0 %vm355_vm1, %v3931_v62  ;;  %v2672_v62 = vor.u32 %v2671_v55, %v2668_v59  ;;  %v2686_v44 = vor.u32 %v2685_v60, %v2682_v15  ;;  %v2703_v59 = vshll.u32 %v5645_v27, 16  ;;  %v2710_v55 = vrot.slane %v2708_v11, 4 }
  0x86   : > { %v2691_v25 = vrot.slane %v2689_v47, 5  ;;  %v2700_v22 = vor.u32 %v2699_v46, %v2696_v38  ;;  %v2717_v30 = vshll.u32 %v5672_v37, 16  ;;  %v3046_v11 = vsel %vm368_vm0, %v5669_v19, 0 }
  0x87   : > { %4318 = vmatpush3.bf16.msra.mxu0 %v4593_v24  ;;  %v2673_v63 = vrot.slane %v2672_v62, 4  ;;  %v2713_v24 = vrot.slane %v2711_v28, 5  ;;  %v2687_v15 = vrot.slane %v2686_v44, 4  ;;  %v2705_v60 = vrot.slane %v2703_v59, 5 }
  0x88   : > { %4319 = vmatprep.subr.bf16.mxu0 %v4596_v0  ;;  %v2701_v28 = vrot.slane %v2700_v22, 4  ;;  %v2719_v38 = vrot.slane %v2717_v30, 5  ;;  %v2724_v46 = vrot.slane %v2722_v18, 4  ;;  %v2738_v30 = vrot.slane %v2736_v54, 4  ;;  %v5723_v18 = vld [vmem:[%s4953_s17 + $0x44] sm:$0x1] }
  0x89   : > { %v2678_v62 = vsel %vm4978_vm5, %v2673_v63, %v2677_v9  ;;  %v2714_v47 = vor.u32 %v2713_v24, %v2710_v55  ;;  %v5707_v9 = vld [vmem:[%s4953_s17 + $0x3c] sm:$0x1]  ;;  %v2692_v12 = vsel %vm4978_vm5, %v2687_v15, %v2691_v25  ;;  %v2741_v44 = vrot.slane %v2739_v29, 5  ;;  %v5732_v54 = vld [vmem:[%s4953_s17 + $0x4c] sm:$0x1] }
  0x8a   : > { %4312 = vmatmul.mubr.msk.bf16.gmra.mrb[4].mxu0 %vm355_vm1, %v3932_v34  ;;  %v2731_v34 = vshll.u32 %v5680_v5, 16  ;;  %v2745_v55 = vshll.u32 %v5707_v9, 16  ;;  %v6239_v25 = vshrl.u32 %v5465_v10, 16  ;;  %v6240_v15 = vshll.u32 %v5465_v10, 16 }
  0x8b   : > { %4204 = vmatmul.mubr.msk.bf16.vlgmr.msra.gmra.mrb[0].mxu1 %vm355_vm1, %v3734_v14  ;;  %4320 = vmatpush3.bf16.msra.mxu0 %v4596_v0  ;;  %v2727_v14 = vrot.slane %v2725_v17, 5  ;;  %v2706_v0 = vsel %vm4978_vm5, %v2701_v28, %v2705_v60  ;;  %v2715_v63 = vrot.slane %v2714_v47, 4  ;;  %v5743_v60 = vld [vmem:[%s4843_s19 + $0x14] sm:$0x1] }
  0x8c   : > { %4212 = vmatpush3.bf16.msra.mxu1 %v5553_v61  ;;  %4321 = vmatprep.subr.bf16.mxu0 %v4599_v58  ;;  %v3945_v61 = vcombine.low %v2678_v62, %v2692_v12  ;;  %v2733_v59 = vrot.slane %v2731_v34, 5  ;;  %v2752_v22 = vrot.slane %v6239_v25, 4  ;;  %v2742_v62 = vor.u32 %v2741_v44, %v2738_v30 }
  0x8d   : > { %4213 = vmatprep.subr.bf16.mxu1 %v4598_v6  ;;  %4207 = vmatprep.mubr.msk.bf16.mxu1 %vm355_vm1, %v3735_v52  ;;  %v2728_v17 = vor.u32 %v2727_v14, %v2724_v46  ;;  %v2720_v24 = vsel %vm4978_vm5, %v2715_v63, %v2719_v38  ;;  %v2755_v29 = vrot.slane %v6240_v15, 5  ;;  %v2759_v52 = vshll.u32 %v5723_v18, 16  ;;  %v4601_v38 = vld [vmem:[%s6156_s2 + $0x78] sm:$0xff]   ;;  %v5770_v15 = vld [vmem:[%s6156_s2 + $0x100] sm:$0xff]  }
  0x8e   : > { %4323 = vmatprep.mubr.msk.bf16.mxu0 %vm481_vm4, %v3945_v61  ;;  %v3946_v28 = vcombine.low %v2706_v0, %v2720_v24  ;;  %v2747_v46 = vrot.slane %v2745_v55, 5  ;;  %v6241_v12 = vshrl.u32 %v5468_v33, 16  ;;  %v2743_v34 = vrot.slane %v2742_v62, 4  ;;  %v3793_v0 = vld [vmem:[%s6157_s3 + $0xc] sm:$0xf]  ;;  %v6244_v55 = vld [vmem:[#allocation18_spill] sm:$0xff] }
  0x8f   : > { %4322 = vmatpush3.bf16.msra.mxu0 %v4599_v58  ;;  %v2729_v47 = vrot.slane %v2728_v17, 4  ;;  %v2756_v30 = vor.u32 %v2755_v29, %v2752_v22  ;;  %v2761_v61 = vrot.slane %v2759_v52, 5  ;;  %v5758_v63 = vld [vmem:[%s4843_s19 + $0x1c] sm:$0x1]  ;;  %v2773_v44 = vshll.u32 %v5732_v54, 16  ;;  %v6245_v22 = vld [vmem:[#allocation21_spill] sm:$0xff] }
  0x90   : > { %4214 = vmatpush3.bf16.msra.mxu1 %v4598_v6  ;;  %v2766_v14 = vrot.slane %v6241_v12, 4  ;;  %4510 = vmatprep.subr.msk.bf16.mxu0 %vm368_vm0, %v5669_v19  ;;  %v6242_v6 = vshll.u32 %v5468_v33, 16  ;;  %v6243_v17 = vld [vmem:[#allocation19_spill] sm:$0xff]  ;;  %v6246_v24 = vld [vmem:[#allocation20_spill] sm:$0xff]  ;;  %v6247_v29 = vcombine.low %v5653_v42, %v5657_v21  ;;  %v6248_v12 = vshrl.u32 %v5504_v41, 16 }
  0x91   : > { %4215 = vmatprep.subr.bf16.mxu1 %v4600_v43  ;;  %v2734_v19 = vsel %vm4978_vm5, %v2729_v47, %v2733_v59  ;;  %v3783_v25 = vcombine.low %v6244_v55, %v6243_v17  ;;  %v2748_v59 = vsel %vm4978_vm5, %v2743_v34, %v2747_v46  ;;  %v2757_v52 = vrot.slane %v2756_v30, 4  ;;  %v5782_v17 = vld [vmem:[%s4843_s19 + $0x24] sm:$0x1]  ;;  %v6251_v46 = vld [vmem:[#allocation15_spill] sm:$0xff] }
  0x92   : > { %v2769_v58 = vrot.slane %v6242_v6, 5  ;;  %4324 = vmatmul.mubr.msk.bf16.vlgmr.msra.gmra.mrb[0].mxu0 %vm481_vm4, %v3946_v28  ;;  %v2910_v6 = vrot.slane %v6248_v12, 4  ;;  %v3947_v55 = vcombine.low %v2734_v19, %v2748_v59  ;;  %v2775_v62 = vrot.slane %v2773_v44, 5 }
  0x93   : > { %4208 = vmatmul.mubr.msk.bf16.gmra.mrb[4].mxu1 %vm355_vm1, %v6247_v29  ;;  %4332 = vmatpush3.bf16.msra.mxu0 %v3046_v11  ;;  %v6249_v42 = vshll.u32 %v5504_v41, 16  ;;  %v2917_v28 = vshll.u32 %v5743_v60, 16  ;;  %v6250_v29 = vld [vmem:[#allocation14_spill] sm:$0xff]  ;;  %v6253_v11 = vshrl.u32 %v5507_v45, 16  ;;  %v2931_v12 = vshll.u32 %v5758_v63, 16 }
  0x94   : > { %v2770_v47 = vor.u32 %v2769_v58, %v2766_v14  ;;  %4216 = vmatpush3.bf16.msra.mxu1 %v4600_v43  ;;  %v6252_v34 = vcombine.low %v6250_v29, %v6251_v46  ;;  %v2762_v14 = vsel %vm4978_vm5, %v2757_v52, %v2761_v61  ;;  %v6254_v58 = vshll.u32 %v5507_v45, 16  ;;  %4327 = vmatprep.mubr.msk.bf16.mxu0 %vm481_vm4, %v3947_v55 }
  0x95   : > { %v2913_v21 = vrot.slane %v6249_v42, 5  ;;  %4217 = vmatprep.subr.bf16.mxu1 %v4601_v38  ;;  %v2924_v43 = vrot.slane %v6253_v11, 4  ;;  %v2919_v59 = vrot.slane %v2917_v28, 5  ;;  %4341 = vmatprep.subr.bf16.mxu0 %v5770_v15  ;;  %v1540_v42 = vsel %vm368_vm0, %v3793_v0, 0 }
  0x96   : > { %4219 = vmatprep.mubr.msk.bf16.mxu1 %vm481_vm4, %v6252_v34  ;;  %v2771_v30 = vrot.slane %v2770_v47, 4  ;;  %v2927_v19 = vrot.slane %v6254_v58, 5  ;;  %v5804_v47 = vld [vmem:[%s4843_s19 + $0x2c] sm:$0x1]  ;;  %v6256_v29 = vshrl.u32 %v5521_v35, 16  ;;  %v6257_v55 = vshll.u32 %v5521_v35, 16 }
  0x97   : > { %v2914_v44 = vor.u32 %v2913_v21, %v2910_v6  ;;  %6255 = vst [vmem:[#allocation22_spill] sm:$0xff] %v5804_v47  ;;  %v2933_v34 = vrot.slane %v2931_v12, 5  ;;  %v2945_v11 = vshll.u32 %v5782_v17, 16  ;;  %v2959_v12 = vshll.u32 %v5804_v47, 16 }
  0x98   : > { %v2776_v61 = vsel %vm4978_vm5, %v2771_v30, %v2775_v62  ;;  %v2928_v52 = vor.u32 %v2927_v19, %v2924_v43  ;;  %v2938_v46 = vrot.slane %v6256_v29, 4  ;;  %v2941_v6 = vrot.slane %v6257_v55, 5  ;;  %4218 = vmatpush3.bf16.msra.mxu1 %v4601_v38  ;;  %v5819_v38 = vld [vmem:[%s6156_s2 + $0x80] sm:$0xff]   ;;  %v6262_v55 = vld [vmem:[#allocation17_spill] sm:$0xff] }
  0x99   : > { %v3948_v21 = vcombine.low %v2762_v14, %v2776_v61  ;;  %v2915_v28 = vrot.slane %v2914_v44, 4  ;;  %4506 = vmatprep.subr.msk.bf16.mxu1 %vm368_vm0, %v3793_v0  ;;  %v6258_v43 = vshrl.u32 %v5528_v1, 16  ;;  %v6259_v19 = vshll.u32 %v5528_v1, 16  ;;  %v5822_v14 = vld [vmem:[%s4843_s19 + $0x34] sm:$0x1] }
  0x9a   : > { %v2929_v62 = vrot.slane %v2928_v52, 4  ;;  %v2942_v30 = vor.u32 %v2941_v6, %v2938_v46  ;;  %v2947_v0 = vrot.slane %v2945_v11, 5  ;;  %v6260_v61 = vshrl.u32 %v5543_v2, 16  ;;  %v6261_v46 = vld [vmem:[#allocation16_spill] sm:$0xff] }
  0x9b   : > { %v2952_v58 = vrot.slane %v6258_v43, 4  ;;  %v2955_v29 = vrot.slane %v6259_v19, 5  ;;  %v2920_v44 = vsel %vm4978_vm5, %v2915_v28, %v2919_v59  ;;  %v6263_v6 = vcombine.low %v6261_v46, %v6262_v55  ;;  %4328 = vmatmul.mubr.msk.bf16.gmra.mrb[4].mxu0 %vm481_vm4, %v3948_v21  ;;  %v5837_v59 = vld [vmem:[%s4843_s19 + $0x3c] sm:$0x1] }
  0x9c   : > { %v2966_v52 = vrot.slane %v6260_v61, 4  ;;  %v2934_v43 = vsel %vm4978_vm5, %v2929_v62, %v2933_v34  ;;  %v2943_v19 = vrot.slane %v2942_v30, 4  ;;  %6264 = vst [vmem:[#allocation13_spill] sm:$0xff] %v5837_v59  ;;  %v6265_v28 = vshll.u32 %v5543_v2, 16 }
  0x9d   : > { %4220 = vmatmul.mubr.msk.bf16.vlgmr.msra.gmra.mrb[0].mxu1 %vm481_vm4, %v6263_v6  ;;  %v2956_v1 = vor.u32 %v2955_v29, %v2952_v58  ;;  %v3958_v61 = vcombine.low %v2920_v44, %v2934_v43  ;;  %v2961_v47 = vrot.slane %v2959_v12, 5  ;;  %v2973_v46 = vshll.u32 %v5822_v14, 16  ;;  %v5846_v6 = vld [vmem:[%s4843_s19 + $0x44] sm:$0x1] }
  0x9e   : > { %v2969_v11 = vrot.slane %v6265_v28, 5  ;;  %4223 = vmatprep.mubr.msk.bf16.mxu1 %vm481_vm4, %v3783_v25  ;;  %4228 = vmatpush3.bf16.msra.mxu1 %v1540_v42  ;;  %v6266_v55 = vshrl.u32 %v5562_v16, 16  ;;  %v2948_v34 = vsel %vm4978_vm5, %v2943_v19, %v2947_v0  ;;  %v6267_v25 = vshll.u32 %v5562_v16, 16 }
  0x9f   : > { %v2957_v62 = vrot.slane %v2956_v1, 4  ;;  %4237 = vmatprep.subr.bf16.mxu1 %v5819_v38  ;;  %4333 = vmatprep.mubr.msk.bf16.mxu0 %vm355_vm1, %v3958_v61  ;;  %v2975_v42 = vrot.slane %v2973_v46, 5  ;;  %v2987_v29 = vshll.u32 %v5837_v59, 16  ;;  %v6268_v44 = vshrl.u32 %v5571_v26, 16 }
  0xa0   : > { %v2980_v21 = vrot.slane %v6266_v55, 4  ;;  %v2970_v30 = vor.u32 %v2969_v11, %v2966_v52  ;;  %v2983_v58 = vrot.slane %v6267_v25, 5  ;;  %v6269_v43 = vshll.u32 %v5571_v26, 16  ;;  %v5862_v52 = vld [vmem:[%s4843_s19 + $0x4c] sm:$0x1] }
  0xa1   : > { %v2994_v12 = vrot.slane %v6268_v44, 4  ;;  %v2962_v1 = vsel %vm4978_vm5, %v2957_v62, %v2961_v47  ;;  %v3001_v11 = vshll.u32 %v5846_v6, 16  ;;  %v2989_v61 = vrot.slane %v2987_v29, 5  ;;  %v4607_v44 = vld [vmem:[%s6156_s2 + $0x108] sm:$0xff]  }
  0xa2   : > { %v2997_v28 = vrot.slane %v6269_v43, 5  ;;  %v2971_v0 = vrot.slane %v2970_v30, 4  ;;  %v2984_v19 = vor.u32 %v2983_v58, %v2980_v21  ;;  %v3959_v55 = vcombine.low %v2948_v34, %v2962_v1 }
  0xa3   : > { %v6270_v25 = vshrl.u32 %v5578_v32, 16  ;;  %v3003_v62 = vrot.slane %v3001_v11, 5  ;;  %v6271_v21 = vshll.u32 %v5578_v32, 16  ;;  %v3015_v34 = vshll.u32 %v5862_v52, 16 }
  0xa4   : > { %v2998_v46 = vor.u32 %v2997_v28, %v2994_v12  ;;  %v2976_v43 = vsel %vm4978_vm5, %v2971_v0, %v2975_v42  ;;  %v2985_v47 = vrot.slane %v2984_v19, 4  ;;  %v3966_v29 = vrot.slane %v5391_v20, 9  ;;  %4334 = vmatmul.mubr.msk.bf16.vlgmr.msra.gmra.mrb[0].mxu0 %vm355_vm1, %v3959_v55  ;;  %v5889_v20 = vld [vmem:[%s6157_s3 + $0x20] sm:$0xf] }
  0xa5   : > { %v3008_v59 = vrot.slane %v6270_v25, 4  ;;  %v3011_v30 = vrot.slane %v6271_v21, 5  ;;  %v3131_v12 = vrot.slane %v5623_v23, 5  ;;  %v6272_v28 = vcombine.low %v6246_v24, %v6245_v22  ;;  %4342 = vmatpush3.bf16.msra.mxu0 %v5770_v15 }
  0xa6   : > { %v2999_v58 = vrot.slane %v2998_v46, 4  ;;  %v2990_v42 = vsel %vm4978_vm5, %v2985_v47, %v2989_v61  ;;  %v3967_v0 = vrot.slane %v5407_v57, 9  ;;  %v3135_v19 = vrot.slane %v5638_v39, 5  ;;  %4343 = vmatprep.subr.bf16.mxu0 %v4607_v44 }
  0xa7   : > { %4224 = vmatmul.mubr.msk.bf16.gmra.mrb[4].mxu1 %vm481_vm4, %v6272_v28  ;;  %v3012_v1 = vor.u32 %v3011_v30, %v3008_v59  ;;  %v6273_v23 = vcombine.low %v4900_v40, %v4915_v50  ;;  %v3960_v22 = vcombine.low %v2976_v43, %v2990_v42  ;;  %v3017_v57 = vrot.slane %v3015_v34, 5  ;;  %v4611_v59 = vld [vmem:[%s6156_s2 + $0x110] sm:$0xff]  }
  0xa8   : > { %v3004_v24 = vsel %vm4978_vm5, %v2999_v58, %v3003_v62  ;;  %v3132_v39 = vsel %vm5124_vm8, %v3966_v29, %v3131_v12  ;;  %v3136_v40 = vsel %vm5124_vm8, %v3967_v0, %v3135_v19  ;;  %v3968_v50 = vrot.slane %v5420_v8, 9  ;;  %v4624_v58 = vld [vmem:[%s4953_s17 + $0x10] sm:$0xf]  ;;  %v4612_v29 = vld [vmem:[%s6156_s2 + $0x88] sm:$0xff]  }
  0xa9   : > { %4229 = vmatprep.mubr.msk.bf16.mxu1 %vm355_vm1, %v6273_v23  ;;  %v3013_v15 = vrot.slane %v3012_v1, 4  ;;  %v3139_v11 = vrot.slane %v5645_v27, 5  ;;  %4337 = vmatprep.mubr.msk.bf16.mxu0 %vm355_vm1, %v3960_v22  ;;  %v3982_v55 = vcombine.low %v3132_v39, %v3136_v40  ;;  %v3969_v61 = vrot.slane %v5428_v13, 9  ;;  %v4622_v27 = vld [vmem:[%s4953_s17 + $0x8] sm:$0xf] }
  0xaa   : > { %v3143_v46 = vrot.slane %v5672_v37, 5  ;;  %v5912_v25 = vsel %vm368_vm0, %v5889_v20, 0  ;;  %v1616_v47 = vshrl.u32 %v4622_v27, 16  ;;  %v1619_v62 = vshll.u32 %v4622_v27, 16  ;;  %4344 = vmatpush3.bf16.msra.mxu0 %v4607_v44  ;;  %v4623_v37 = vld [vmem:[%s4953_s17 + $0xc] sm:$0x1] }
  0xab   : > { %v3018_v43 = vsel %vm4978_vm5, %v3013_v15, %v3017_v57  ;;  %v5918_v8 = vsel %vm5124_vm8, %v3968_v50, %v3139_v11  ;;  %v1625_v30 = vshll.u32 %v4623_v37, 16  ;;  %v1630_v34 = vshrl.u32 %v4624_v58, 16  ;;  %4345 = vmatprep.subr.bf16.mxu0 %v4611_v59  ;;  %v4613_v44 = vld [vmem:[%s6156_s2 + $0x118] sm:$0xff]   ;;  %v4625_v23 = vld [vmem:[%s4953_s17 + $0x14] sm:$0x1] }
  0xac   : > { %v3961_v21 = vcombine.low %v3004_v24, %v3018_v43  ;;  %v5923_v13 = vsel %vm5124_vm8, %v3969_v61, %v3143_v46  ;;  %v1618_v28 = vrot.slane %v1616_v47, 4  ;;  %v1621_v42 = vrot.slane %v1619_v62, 5  ;;  %v4626_v24 = vld [vmem:[%s4953_s17 + $0x18] sm:$0xf]  ;;  %v4627_v11 = vld [vmem:[%s4953_s17 + $0x1c] sm:$0x1] }
  0xad   : > { %v3983_v12 = vcombine.low %v5918_v8, %v5923_v13  ;;  %v1633_v1 = vshll.u32 %v4624_v58, 16  ;;  %v1627_v0 = vrot.slane %v1625_v30, 5  ;;  %v1632_v19 = vrot.slane %v1630_v34, 4  ;;  %v4628_v8 = vld [vmem:[%s4953_s17 + $0x20] sm:$0xf] }
  0xae   : > { %v1639_v22 = vshll.u32 %v4625_v23, 16  ;;  %v1644_v57 = vshrl.u32 %v4626_v24, 16  ;;  %v6274_v39 = vcombine.low %v4927_v56, %v4946_v3  ;;  %4338 = vmatmul.mubr.msk.bf16.gmra.mrb[4].mxu0 %vm355_vm1, %v3961_v21  ;;  %v1622_v15 = vor.u32 %v1621_v42, %v1618_v28  ;;  %v4616_v56 = vld [vmem:[%s6156_s2 + $0x90] sm:$0xff]   ;;  %v4629_v30 = vld [vmem:[%s4953_s17 + $0x24] sm:$0x1] }
  0xaf   : > { %v1635_v40 = vrot.slane %v1633_v1, 5  ;;  %v1647_v50 = vshll.u32 %v4626_v24, 16  ;;  %v1653_v61 = vshll.u32 %v4627_v11, 16  ;;  %4346 = vmatpush3.bf16.msra.mxu0 %v4611_v59  ;;  %v1658_v27 = vshrl.u32 %v4628_v8, 16  ;;  %4349 = vmatprep.mubr.msk.bf16.mxu0 %vm481_vm4, %v3982_v55  ;;  %v4632_v11 = vld [vmem:[%s4953_s17 + $0x30] sm:$0xf] }
  0xb0   : > { %4230 = vmatmul.mubr.msk.bf16.vlgmr.msra.gmra.mrb[0].mxu1 %vm355_vm1, %v6274_v39  ;;  %v1641_v46 = vrot.slane %v1639_v22, 5  ;;  %v1646_v43 = vrot.slane %v1644_v57, 4  ;;  %v1661_v47 = vshll.u32 %v4628_v8, 16  ;;  %4347 = vmatprep.subr.bf16.mxu0 %v4613_v44  ;;  %v1623_v3 = vrot.slane %v1622_v15, 4 }
  0xb1   : > { %4238 = vmatpush3.bf16.msra.mxu1 %v5819_v38  ;;  %v1636_v62 = vor.u32 %v1635_v40, %v1632_v19  ;;  %v1649_v21 = vrot.slane %v1647_v50, 5  ;;  %v1655_v13 = vrot.slane %v1653_v61, 5  ;;  %v6275_v38 = vcombine.low %v5004_v31, %v5022_v4  ;;  %v4631_v50 = vld [vmem:[%s4953_s17 + $0x2c] sm:$0x1] }
  0xb2   : > { %4239 = vmatprep.subr.bf16.mxu1 %v4612_v29  ;;  %v1660_v59 = vrot.slane %v1658_v27, 4  ;;  %v1663_v37 = vrot.slane %v1661_v47, 5  ;;  %v1667_v58 = vshll.u32 %v4629_v30, 16  ;;  %v3970_v34 = vrot.slane %v5449_v51, 9  ;;  %v4617_v51 = vld [vmem:[%s6156_s2 + $0x98] sm:$0xff]  }
  0xb3   : > { %4233 = vmatprep.mubr.msk.bf16.mxu1 %vm355_vm1, %v6275_v38  ;;  %v1628_v28 = vsel %vm4978_vm5, %v1623_v3, %v1627_v0  ;;  %v1637_v42 = vrot.slane %v1636_v62, 4  ;;  %v1650_v1 = vor.u32 %v1649_v21, %v1646_v43  ;;  %v3147_v19 = vrot.slane %v5680_v5, 5  ;;  %4348 = vmatpush3.bf16.msra.mxu0 %v4613_v44  ;;  %v4633_v3 = vld [vmem:[%s4953_s17 + $0x34] sm:$0x1]  ;;  %v4634_v21 = vld [vmem:[%s4953_s17 + $0x38] sm:$0xf] }
  0xb4   : > { %v1664_v31 = vor.u32 %v1663_v37, %v1660_v59  ;;  %v1669_v4 = vrot.slane %v1667_v58, 5  ;;  %v3971_v23 = vrot.slane %v5456_v7, 9  ;;  %v3151_v55 = vrot.slane %v5707_v9, 5  ;;  %4511 = vmatprep.subr.msk.bf16.mxu0 %vm368_vm0, %v5889_v20  ;;  %v4635_v30 = vld [vmem:[%s4953_s17 + $0x3c] sm:$0x1] }
  0xb5   : > { %4240 = vmatpush3.bf16.msra.mxu1 %v4612_v29  ;;  %v1642_v0 = vsel %vm4978_vm5, %v1637_v42, %v1641_v46  ;;  %v1651_v5 = vrot.slane %v1650_v1, 4  ;;  %v3148_v29 = vsel %vm5124_vm8, %v3970_v34, %v3147_v19  ;;  %v3972_v7 = vrot.slane %v5465_v10, 9  ;;  %v4636_v42 = vld [vmem:[%s4953_s17 + $0x40] sm:$0xf] }
  0xb6   : > { %4241 = vmatprep.subr.bf16.mxu1 %v4616_v56  ;;  %v3810_v44 = vcombine.low %v1628_v28, %v1642_v0  ;;  %v1665_v9 = vrot.slane %v1664_v31, 4  ;;  %v3152_v22 = vsel %vm5124_vm8, %v3971_v23, %v3151_v55  ;;  %v3155_v20 = vrot.slane %v5723_v18, 5  ;;  %4350 = vmatmul.mubr.msk.bf16.vlgmr.msra.gmra.mrb[0].mxu0 %vm481_vm4, %v3983_v12  ;;  %v4630_v18 = vld [vmem:[%s4953_s17 + $0x28] sm:$0xf] }
  0xb7   : > { %v6276_v24 = vcombine.low %v5047_v48, %v5058_v49  ;;  %v1656_v57 = vsel %vm4978_vm5, %v1651_v5, %v1655_v13  ;;  %v3984_v39 = vcombine.low %v3148_v29, %v3152_v22  ;;  %v3973_v10 = vrot.slane %v5468_v33, 9  ;;  %4358 = vmatpush3.bf16.msra.mxu0 %v5912_v25  ;;  %v4637_v5 = vld [vmem:[%s4953_s17 + $0x44] sm:$0x1]  ;;  %s6048_s17 = sand.u32 1, %s4724_s22  }
  0xb8   : > { %v3159_v15 = vrot.slane %v5732_v54, 5  ;;  %v1670_v49 = vsel %vm4978_vm5, %v1665_v9, %v1669_v4  ;;  %v3156_v48 = vsel %vm5124_vm8, %v3972_v7, %v3155_v20  ;;  %v1672_v12 = vshrl.u32 %v4630_v18, 16  ;;  %s6051_s26 = scalar_lea.vmem [#allocation2], %s6048_s17  ;;  %s6055_s19 = scalar_lea.vmem [#allocation4], %s6048_s17 }
  0xb9   : > { %4234 = vmatmul.mubr.msk.bf16.gmra.mrb[4].mxu1 %vm355_vm1, %v6276_v24  ;;  %v1675_v40 = vshll.u32 %v4630_v18, 16  ;;  %v3811_v33 = vcombine.low %v1656_v57, %v1670_v49  ;;  %v1681_v25 = vshll.u32 %v4631_v50, 16  ;;  %v1686_v61 = vshrl.u32 %v4632_v11, 16  ;;  %4353 = vmatprep.mubr.msk.bf16.mxu0 %vm481_vm4, %v3984_v39  ;;  %v6278_v50 = vld [vmem:[#allocation22_spill] sm:$0xff]  ;;  %s3506_s11 = sshll.u32 %s6051_s26, 4  ;;  %s3519_s12 = sshll.u32 %s6055_s19, 4  ;;  %s6082_s11 = int_to_ptr.vmem [resolvable:$true] %s3506_s11  ;;  %s6090_s12 = int_to_ptr.vmem [resolvable:$true] %s3519_s12 }
  0xba   : > { %4242 = vmatpush3.bf16.msra.mxu1 %v4616_v56  ;;  %4245 = vmatprep.mubr.msk.bf16.mxu1 %vm481_vm4, %v3810_v44  ;;  %v3160_v54 = vsel %vm5124_vm8, %v3973_v10, %v3159_v15  ;;  %v1674_v43 = vrot.slane %v1672_v12, 4  ;;  %v1689_v27 = vshll.u32 %v4632_v11, 16  ;;  %v1695_v62 = vshll.u32 %v4633_v3, 16  ;;  %s3487_s28 = scalar_lea.sflag [#allocation3], %s6048_s17  ;;  %s4638_s29 = scalar_lea.vmem %s6082_s11, 16 }
  0xbb   : > { %4243 = vmatprep.subr.bf16.mxu1 %v4617_v51  ;;  %v3985_v46 = vcombine.low %v3156_v48, %v3160_v54  ;;  %v1677_v8 = vrot.slane %v1675_v40, 5  ;;  %v1683_v47 = vrot.slane %v1681_v25, 5  ;;  %v1688_v56 = vrot.slane %v1686_v61, 4  ;;  %p4639_p11 = scmp.ne.s32.totalorder %s6082_s11, %s4638_s29 }
  0xbc   : > { %v1700_v13 = vshrl.u32 %v4634_v21, 16  ;;  %v1691_v59 = vrot.slane %v1689_v27, 5  ;;  %v1703_v37 = vshll.u32 %v4634_v21, 16  ;;  %v1709_v58 = vshll.u32 %v4635_v30, 16  ;;  %v6279_v27 = vld [vmem:[#allocation13_spill] sm:$0xff] }
  0xbd   : > { %v1678_v38 = vor.u32 %v1677_v8, %v1674_v43  ;;  %v1697_v34 = vrot.slane %v1695_v62, 5  ;;  %v1714_v1 = vshrl.u32 %v4636_v42, 16  ;;  %v1717_v19 = vshll.u32 %v4636_v42, 16  ;;  %p4640_p12 = pnand %p4639_p11, %p4810_p5 }
  0xbe   : > { %4244 = vmatpush3.bf16.msra.mxu1 %v4617_v51  ;;  %v1702_v28 = vrot.slane %v1700_v13, 4  ;;  %v1692_v4 = vor.u32 %v1691_v59, %v1688_v56  ;;  %v1705_v23 = vrot.slane %v1703_v37, 5  ;;  %v1711_v55 = vrot.slane %v1709_v58, 5  ;;  %4354 = vmatmul.mubr.msk.bf16.gmra.mrb[4].mxu0 %vm481_vm4, %v3985_v46 }
  0xbf   : > { %v1679_v31 = vrot.slane %v1678_v38, 4  ;;  %v1716_v51 = vrot.slane %v1714_v1, 4  ;;  %v1719_v0 = vrot.slane %v1717_v19, 5  ;;  %v1723_v29 = vshll.u32 %v4637_v5, 16  ;;  %p4641_p13 = pneg %p4640_p12 }
  0xc0   : > { %v3994_v7 = vrot.slane %v5504_v41, 9  ;;  %v1693_v9 = vrot.slane %v1692_v4, 4  ;;  %v1706_v22 = vor.u32 %v1705_v23, %v1702_v28  ;;  %v3301_v20 = vrot.slane %v5743_v60, 5 }
  0xc1   : > { %4246 = vmatmul.mubr.msk.bf16.vlgmr.msra.gmra.mrb[0].mxu1 %vm481_vm4, %v3811_v33  ;;  %v1684_v44 = vsel %vm4978_vm5, %v1679_v31, %v1683_v47  ;;  %v1720_v24 = vor.u32 %v1719_v0, %v1716_v51  ;;  %v1725_v57 = vrot.slane %v1723_v29, 5  ;;  %v3995_v39 = vrot.slane %v5507_v45, 9  ;;  %v6277_v33 = vld [vmem:[#allocation12_spill] sm:$0xff] }
  0xc2   : > { %v3305_v10 = vrot.slane %v5758_v63, 5  ;;  %v1698_v15 = vsel %vm4978_vm5, %v1693_v9, %v1697_v34  ;;  %v1707_v49 = vrot.slane %v1706_v22, 4  ;;  %v3302_v41 = vsel %vm5124_vm8, %v3994_v7, %v3301_v20 }
  0xc3   : > { %v3996_v48 = vrot.slane %v5521_v35, 9  ;;  %v3812_v18 = vcombine.low %v1684_v44, %v1698_v15  ;;  %v1721_v12 = vrot.slane %v1720_v24, 4  ;;  %v3309_v40 = vrot.slane %v5782_v17, 5 }
  0xc4   : > { %v3306_v60 = vsel %vm5124_vm8, %v3995_v39, %v3305_v10  ;;  %v1712_v45 = vsel %vm4978_vm5, %v1707_v49, %v1711_v55  ;;  %v3997_v54 = vrot.slane %v6277_v33, 9  ;;  %v3313_v25 = vrot.slane %v6278_v50, 5 }
  0xc5   : > { %v4003_v63 = vcombine.low %v3302_v41, %v3306_v60  ;;  %4249 = vmatprep.mubr.msk.bf16.mxu1 %vm481_vm4, %v3812_v18  ;;  %v1726_v35 = vsel %vm4978_vm5, %v1721_v12, %v1725_v57  ;;  %v3310_v11 = vsel %vm5124_vm8, %v3996_v48, %v3309_v40  ;;  %v3998_v61 = vrot.slane %v5543_v2, 9 }
  0xc6   : > { %v3317_v17 = vrot.slane %v5822_v14, 5  ;;  %v3813_v46 = vcombine.low %v1712_v45, %v1726_v35  ;;  %v3314_v43 = vsel %vm5124_vm8, %v3997_v54, %v3313_v25  ;;  %v3999_v8 = vrot.slane %v5562_v16, 9 }
  0xc7   : > { %4359 = vmatprep.mubr.msk.bf16.mxu0 %vm355_vm1, %v4003_v63  ;;  %v3321_v47 = vrot.slane %v6279_v27, 5  ;;  %v4004_v36 = vcombine.low %v3310_v11, %v3314_v43  ;;  %v4000_v3 = vrot.slane %v5571_v26, 9  ;;  %v3325_v2 = vrot.slane %v5846_v6, 5 }
  0xc8   : > { %v3318_v56 = vsel %vm5124_vm8, %v3998_v61, %v3317_v17  ;;  %v4001_v62 = vrot.slane %v5578_v32, 9  ;;  %v3329_v16 = vrot.slane %v5862_v52, 5  ;;  %v4734_v32 = vmov 0.0  }
  0xc9   : > { %4250 = vmatmul.mubr.msk.bf16.gmra.mrb[4].mxu1 %vm481_vm4, %v3813_v46  ;;  %v3322_v14 = vsel %vm5124_vm8, %v3999_v8, %v3321_v47  ;;  %4360 = vmatmul.mubr.msk.bf16.vlgmr.msra.gmra.mrb[0].mxu0 %vm355_vm1, %v4004_v36  ;;  %v3326_v13 = vsel %vm5124_vm8, %v4000_v3, %v3325_v2  ;;  %292 = vst [vmem:[%s6051_s26] sm:$0x1] %v4734_v32  ;;  %293 = vst [vmem:[%s6055_s19] sm:$0x1] %v4734_v32 }
  0xca   : > { %v4005_v21 = vcombine.low %v3318_v56, %v3322_v14  ;;  %v3330_v26 = vsel %vm5124_vm8, %v4001_v62, %v3329_v16 }
  0xcb   : > { %v4006_v6 = vcombine.low %v3326_v13, %v3330_v26 }
  0xcc   : > { %4363 = vmatprep.mubr.msk.bf16.mxu0 %vm355_vm1, %v4005_v21 }
  0xd0   : > { %v3441_v2 = vld [vmem:[%s6051_s26] sm:$0x1] }
  0xd1   : > { %4364 = vmatmul.mubr.msk.bf16.gmra.mrb[4].mxu0 %vm355_vm1, %v4006_v6  ;;  %v3457_v16 = vld [vmem:[%s6055_s19] sm:$0x1] }
 0x194   : > { %v4247_v53 = vpop.f32.mrb[0].mxu1 }
 0x195   : > { %v1818_v52 = vpop.f32.mrb[1].mxu1 }
 0x196   : > { %v4248_v38 = vpop.f32.mrb[2].mxu1 }
 0x197   : > { %v1821_v59 = vpop.f32.mrb[3].mxu1 }
 0x19c   : > { %v4251_v37 = vpop.f32.mrb[4].mxu1  ;;  %v4361_v58 = vpop.f32.mrb[0].mxu0 }
 0x19d   : > { %v1834_v30 = vpop.f32.mrb[5].mxu1  ;;  %v4367_v34 = vadd.f32 %v4361_v58, %v4247_v53  ;;  %v3394_v42 = vpop.f32.mrb[1].mxu0 }
 0x19e   : > { %v4252_v28 = vpop.f32.mrb[6].mxu1  ;;  %v4368_v1 = vadd.f32 %v3394_v42, %v1818_v52  ;;  %v4362_v31 = vpop.f32.mrb[2].mxu0 }
 0x19f   : > { %v1837_v19 = vpop.f32.mrb[7].mxu1  ;;  %3435 = vst [vmem:[%s6062_s10 + $0x10] sm:$0xff] %v4367_v34  ;;  %v4369_v4 = vadd.f32 %v4362_v31, %v4248_v38  ;;  %v3397_v23 = vpop.f32.mrb[3].mxu0  ;;  %v3460_v29 = vmul.f32 %v4367_v34, %v4367_v34 }
 0x1a0   : > { %3433 = vst [vmem:[%s6062_s10] sm:$0xff] %v4368_v1  ;;  %v4370_v55 = vadd.f32 %v3397_v23, %v1821_v59  ;;  %v3458_v51 = vmul.f32 %v4368_v1, %v4368_v1 }
 0x1a1   : > { %3436 = vst [vmem:[%s6062_s10 + $0x18] sm:$0xff] %v4369_v4  ;;  %v3461_v24 = vmul.f32 %v4369_v4, %v4369_v4 }
 0x1a2   : > { %3434 = vst [vmem:[%s6062_s10 + $0x8] sm:$0xff] %v4370_v55  ;;  %v3442_v0 = vadd.f32 %v4370_v55, %v4368_v1  ;;  %v3459_v5 = vmul.f32 %v4370_v55, %v4370_v55 }
 0x1a4   : > { %v3443_v7 = vadd.f32 %v4367_v34, %v3442_v0  ;;  %v3466_v44 = vadd.f32 %v3459_v5, %v3458_v51  ;;  %v4365_v9 = vpop.f32.mrb[4].mxu0 }
 0x1a5   : > { %v4371_v22 = vadd.f32 %v4365_v9, %v4251_v37  ;;  %v3410_v20 = vpop.f32.mrb[5].mxu0 }
 0x1a6   : > { %v3467_v57 = vadd.f32 %v3466_v44, %v3460_v29  ;;  %v4372_v39 = vadd.f32 %v3410_v20, %v1834_v30  ;;  %v3444_v10 = vadd.f32 %v4369_v4, %v3443_v7  ;;  %v4366_v15 = vpop.f32.mrb[6].mxu0 }
 0x1a7   : > { %3439 = vst [vmem:[%s6062_s10 + $0x30] sm:$0xff] %v4371_v22  ;;  %v4373_v49 = vadd.f32 %v4366_v15, %v4252_v28  ;;  %v3413_v41 = vpop.f32.mrb[7].mxu0  ;;  %v3464_v33 = vmul.f32 %v4371_v22, %v4371_v22 }
 0x1a8   : > { %3437 = vst [vmem:[%s6062_s10 + $0x20] sm:$0xff] %v4372_v39  ;;  %v3445_v48 = vadd.f32 %v4372_v39, %v3444_v10  ;;  %v3462_v18 = vmul.f32 %v4372_v39, %v4372_v39  ;;  %v3468_v12 = vadd.f32 %v3467_v57, %v3461_v24  ;;  %v4374_v60 = vadd.f32 %v3413_v41, %v1837_v19 }
 0x1a9   : > { %3440 = vst [vmem:[%s6062_s10 + $0x38] sm:$0xff] %v4373_v49  ;;  %v3465_v25 = vmul.f32 %v4373_v49, %v4373_v49 }
 0x1aa   : > { %v3469_v40 = vadd.f32 %v3468_v12, %v3462_v18  ;;  %3438 = vst [vmem:[%s6062_s10 + $0x28] sm:$0xff] %v4374_v60  ;;  %v3446_v45 = vadd.f32 %v4374_v60, %v3445_v48  ;;  %v3463_v63 = vmul.f32 %v4374_v60, %v4374_v60  ;;  %s4642_s10 = sshll.u32 %s4735_s9, 4  ;;  %s4643_s10 = int_to_ptr.vmem [resolvable:$false] %s4642_s10 }
 0x1ab   : > { %s4644_s14 = scalar_lea.vmem %s4643_s10, 32  ;;  %p4645_p0 = scmp.lt.s32.totalorder %s6082_s11, %s4643_s10 }
 0x1ac   : > { %v3447_v54 = vadd.f32 %v4371_v22, %v3446_v45  ;;  %v3470_v50 = vadd.f32 %v3469_v40, %v3463_v63  ;;  %p4646_p1 = scmp.lt.s32.totalorder %s4644_s14, %s4638_s29 }
 0x1ae   : > { %v3448_v35 = vadd.f32 %v4373_v49, %v3447_v54  ;;  %v3471_v11 = vadd.f32 %v3470_v50, %v3464_v33  ;;  %p4647_p2 = por %p4646_p1, %p4645_p0 }
 0x1b0   : > { %v3449_v61 = vrot.slane %v3448_v35, 4  ;;  %v3472_v17 = vadd.f32 %v3471_v11, %v3465_v25  ;;  %p4648_p3 = pnand %p4647_p2, %p4641_p13 }
 0x1b2   : > { %v3450_v46 = vadd.f32 %v3449_v61, %v3448_v35  ;;  %v3473_v43 = vrot.slane %v3472_v17, 4 }
 0x1b4   : > { %v3451_v8 = vrot.slane %v3450_v46, 2  ;;  %v3474_v27 = vadd.f32 %v3473_v43, %v3472_v17 }
 0x1b6   : > { %v3452_v47 = vadd.f32 %v3451_v8, %v3450_v46  ;;  %v3475_v36 = vrot.slane %v3474_v27, 2 }
 0x1b8   : > { %v3453_v56 = vrot.slane %v3452_v47, 1  ;;  %v3476_v3 = vadd.f32 %v3475_v36, %v3474_v27 }
 0x1ba   : > { %v3454_v14 = vadd.f32 %v3453_v56, %v3452_v47  ;;  %v3477_v62 = vrot.slane %v3476_v3, 1 }
 0x1bc   : > { %v3455_v21 = vadd.f32 %v3454_v14, %v3441_v2  ;;  %v3478_v13 = vadd.f32 %v3477_v62, %v3476_v3 }
 0x1be   : > { %3456 = vst [vmem:[%s6051_s26] sm:$0x1] %v3455_v21  ;;  %v3479_v26 = vadd.f32 %v3478_v13, %v3457_v16 }
 0x1bf   : > { %4651 = shalt.err (!%p4648_p3)
}
 0x1c0   : > { %s4652_s26 = scalar_lea.hbm %s6080_s18, 16  ;;  %s4656_s25 = scalar_lea.hbm %s6159_s5, 32 }
 0x1c1   : > { %p4653_p4 = scmp.ne.s32.totalorder %s6080_s18, %s4652_s26  ;;  %p4657_p9 = scmp.lt.u32.totalorder %s6080_s18, %s6159_s5 }
 0x1c2   : > { %p4658_p10 = scmp.lt.u32.totalorder %s4656_s25, %s4652_s26  ;;  %p4660_p12 = scmp.lt.u32.totalorder %s4652_s26, %s6080_s18 }
 0x1c3   : > { %p4654_p7 = pnand %p4653_p4, %p4810_p5 }
 0x1c4   : > { %p4659_p11 = por %p4658_p10, %p4657_p9 }
 0x1c5   : > { %p4655_p8 = pneg %p4654_p7 }
 0x1c6   : > { %p4661_p13 = por %p4660_p12, %p4659_p11 }
 0x1c8   : > { %p4662_p0 = pnand %p4661_p13, %p4655_p8 }
 0x1ca   : > { %4665 = shalt.err (!%p4662_p0)
}
 0x1cb   : > { %4513 = dma.vmem_to_hbm [thread:$0]  (%p4810_p5), %s6082_s11, 16, %s6080_s18, %s3487_s28   ;;  %3480 = vst [vmem:[%s6055_s19] sm:$0x1] %v3479_v26 }
 0x1cc   : > { %s3491_s29 = scalar_lea.sflag [#allocation5], %s6048_s17  ;;  %s4666_s10 = scalar_lea.vmem %s6090_s12, 16 }
 0x1cd   : > { %p4667_p1 = scmp.ne.s32.totalorder %s6090_s12, %s4666_s10  ;;  %s4736_s14 = smov [#allocation4]  }
 0x1ce   : > { %s4670_s26 = sshll.u32 %s4736_s14, 4  ;;  %s4671_s26 = int_to_ptr.vmem [resolvable:$false] %s4670_s26 }
 0x1cf   : > { %p4668_p2 = pnand %p4667_p1, %p4810_p5  ;;  %s4672_s13 = scalar_lea.vmem %s4671_s26, 32 }
 0x1d0   : > { %p4673_p4 = scmp.lt.s32.totalorder %s6090_s12, %s4671_s26  ;;  %p4674_p7 = scmp.lt.s32.totalorder %s4672_s13, %s4666_s10 }
 0x1d1   : > { %p4669_p3 = pneg %p4668_p2 }
 0x1d2   : > { %p4675_p8 = por %p4674_p7, %p4673_p4 }
 0x1d4   : > { %p4676_p9 = pnand %p4675_p8, %p4669_p3 }
 0x1d6   : > { %4679 = shalt.err (!%p4676_p9)
}
 0x1d7   : > { %s4680_s17 = scalar_lea.hbm %s6088_s16, 16  ;;  %s4684_s18 = scalar_lea.hbm %s6160_s6, 32 }
 0x1d8   : > { %p4681_p10 = scmp.ne.s32.totalorder %s6088_s16, %s4680_s17  ;;  %p4685_p13 = scmp.lt.u32.totalorder %s6088_s16, %s6160_s6 }
 0x1d9   : > { %p4686_p0 = scmp.lt.u32.totalorder %s4684_s18, %s4680_s17  ;;  %p4688_p2 = scmp.lt.u32.totalorder %s4680_s17, %s6088_s16 }
 0x1da   : > { %p4682_p11 = pnand %p4681_p10, %p4810_p5 }
 0x1db   : > { %p4687_p1 = por %p4686_p0, %p4685_p13 }
 0x1dc   : > { %p4683_p12 = pneg %p4682_p11 }
 0x1dd   : > { %p4689_p3 = por %p4688_p2, %p4687_p1 }
 0x1df   : > { %p4690_p4 = pnand %p4689_p3, %p4683_p12 }
 0x1e1   : > { %4693 = shalt.err (!%p4690_p4)
}
 0x1e2   : > { %4514 = dma.vmem_to_hbm [thread:$0]  (%p4810_p5), %s6090_s12, 16, %s6088_s16, %s3491_s29  }
 0x1e3 PF: > { %p4524_p7 = scmp.ge.s32.totalorder %s4732_s24, 2  ;;  %s3539_s25 = sand.u32 1, %s4720_s21  }
 0x1e4   : > { %s3540_s20 = scalar_lea.sflag [#allocation3], %s3539_s25 }
 0x1e5   : > { %p4518_p8 = pnand %p4524_p7, %p4814_p6 }
 0x1e7   : > { %4711 = dma.done.wait (!%p4518_p8), %s3540_s20, 16  }
 0x1e8   : > { %4713 = vsyncadd (!%p4518_p8), %s3540_s20, 4294967280  ;;  %s3548_s9 = scalar_lea.sflag [#allocation5], %s3539_s25 }
 0x1e9   : > { %4715 = dma.done.wait (!%p4518_p8), %s3548_s9, 16  }
 0x1ea   : > { %4717 = vsyncadd (!%p4518_p8), %s3548_s9, 4294967280  ;;  %p20_p5 = scmp.ge.s32.totalorder %s4797_s27, 4   ;;  %s6280_s21 = smov %s4724_s22 }
 0x1eb   : > { %s6281_s22 = smov %s4728_s23  ;;  %s6282_s23 = smov %s4808_s30 }
 0x1ec   : > { %s6283_s24 = smov %s4797_s27  ;;  %22 = sbr.rel (!%p20_p5) target bundleno = 5 (0x5), region = 123 }
 0x1f3   :  { %3552 = vsyncpa [#allocation3], 1 }
 0x1f4   :  { %3554 = vsyncpa [#allocation3 + $0x1], 1 }
 0x1f5   :  { %3555 = vsyncpa [#allocation5], 1 }
 0x1f6   :  { %3557 = vsyncpa [#allocation5 + $0x1], 1 }

// kernel: _lambda_.6
= control target key start
LH: loop header
LB: loop body
LE: loop exit
PB: predicated region body
PF: predicated region fallthrough
CT: control target
= control target key end

     0   :  { %s7120_s21 = smov 0   ;;  %s9351_s0 = inlined_call_operand.vmem [shape: bf16[2,18,18,32], index: 0, kind: input, shape index: {}]   ;;  %s9352_s1 = inlined_call_operand.vmem [shape: bf16[2,18,18,32], index: 1, kind: input, shape index: {}]   ;;  %s9353_s2 = inlined_call_operand.vmem [shape: bf16[9,32,128], index: 2, kind: input, shape index: {}]   ;;  %s9354_s3 = inlined_call_operand.vmem [shape: bf16[9,32,128], index: 3, kind: input, shape index: {}]   ;;  %s9355_s4 = inlined_call_operand.vmem [shape: f32[2,256,128], index: 4, kind: output, shape index: {0}]   ;;  %s9356_s5 = inlined_call_operand.vmem [shape: f32[2,1,128], index: 5, kind: output, shape index: {1}]   ;;  %s9357_s6 = inlined_call_operand.vmem [shape: f32[2,1,128], index: 6, kind: output, shape index: {2}]  }
   0x1 LB: > { %s5495_s22 = sadd.s32 4294967295, %s7078_s21   ;;  %p5499_p0 = scmp.ge.s32.totalorder %s7078_s21, 1  ;;  %s7078_s21 = sphi %s7120_s21, %s17_s21  }
   0x2   : > { %p227_p1 = scmp.lt.s32.totalorder %s7078_s21, 3 }
   0x4   : > { %p228_p2 = pnand %p5499_p0, %p227_p1 }
   0x5   : > { %p268_p3 = scmp.lt.s32.totalorder (!%p228_p2), %s5495_s22, 1  ;;  %v7084_v0 = vmov (!%p228_p2), 0.0   ;;  %s7155_s16 = smov (!%p228_p2), 0  }
   0x6   : > { %231 = sbr.rel (%p228_p2) target bundleno = 588 (0x24c), region = 36 }
   0xd   : > { %s9629_s22 = smov (!%p268_p3, %s5495_s22), 1 }
   0xe   : > { %s6866_s23 = smul.u32 216, %s9629_s22  ;;  %s6051_s24 = sshll.u32 %s9629_s22, 8 }
   0xf   : > { %s7131_s27 = scalar_lea.vmem %s9355_s4, %s6051_s24  ;;  %s7136_s30 = scalar_lea.vmem %s9356_s5, %s9629_s22 }
  0x10   : > { %s7141_s9 = scalar_lea.vmem %s9351_s0, %s6866_s23  ;;  %s7146_s12 = scalar_lea.vmem %s9352_s1, %s6866_s23  ;;  %290 = vst [vmem:[%s7136_s30] sm:$0x1] %v7084_v0 }
  0x11   : > { %s7152_s15 = scalar_lea.vmem %s9357_s6, %s9629_s22 }
  0x12   : > { %291 = vst [vmem:[%s7152_s15] sm:$0x1] %v7084_v0 }
  0x13 LB: >> { %v6884_v1 = vld [vmem:[%s9354_s3] sm:$0xff]   ;;  %v6885_v2 = vld [vmem:[%s9354_s3 + $0x8] sm:$0xff]   ;;  %s6052_s24 = smul.u32 96, %s7082_s16  ;;  %vm412_vm0 = vcmask 261120   ;;  %v7201_v14 = vld [vmem:[%s9353_s2 + $0x50] sm:$0xff]   ;;  %vm1458_vm4 = vcmask 1042432   ;;  %s7082_s16 = sphi %s7155_s16, %s297_s16  }
  0x14   : >> { %6234 = vmatprep.subr.bf16.mxu1 %v6884_v1  ;;  %v6886_v3 = vld [vmem:[%s9354_s3 + $0x40] sm:$0xff]   ;;  %v6889_v4 = vld [vmem:[%s9354_s3 + $0x48] sm:$0xff]   ;;  %vm707_vm1 = vsmask.f32 3328  ;;  %v7243_v41 = vld [vmem:[%s9353_s2 + $0x10] sm:$0xff]   ;;  %vm1459_vm5 = vcmask 1046532  }
  0x15   : >> { %6235 = vmatpush3.bf16.msra.mxu1 %v6884_v1  ;;  %6414 = vmatprep.subr.bf16.mxu0 %v6886_v3  ;;  %s7176_s28 = scalar_lea.vmem %s7146_s12, %s6052_s24  ;;  %v6890_v5 = vld [vmem:[%s9353_s2] sm:$0xff]   ;;  %v6896_v24 = vld [vmem:[%s9353_s2 + $0x8] sm:$0xff]   ;;  %vm708_vm2 = vsmask.f32 7440  ;;  %s7431_s23 = scalar_lea.vmem %s7141_s9, %s6052_s24  ;;  %vm7528_vm6 = vmor %vm1458_vm4, %vm1459_vm5 }
  0x16   : >> { %6236 = vmatprep.subr.bf16.mxu1 %v6885_v2  ;;  %v7182_v6 = vld [vmem:[%s7176_s28] sm:$0xf]  ;;  %v7185_v7 = vld [vmem:[%s7176_s28 + $0x4] sm:$0xf]  ;;  %6415 = vmatpush3.bf16.msra.mxu0 %v6886_v3  ;;  %v7188_v8 = vld [vmem:[%s7176_s28 + $0xc] sm:$0xf] }
  0x17   : >> { %9419 = vst [vmem:[#allocation2_spill] sm:$0xff] %v7182_v6  ;;  %9420 = vst [vmem:[#allocation3_spill] sm:$0xff] %v7185_v7  ;;  %v5508_v9 = vcombine.low %v7182_v6, %v7185_v7  ;;  %v1081_v10 = vshrl.u32 %v7182_v6, 16  ;;  %v1084_v11 = vshll.u32 %v7182_v6, 16  ;;  %v1090_v12 = vshll.u32 %v7185_v7, 16  ;;  %6416 = vmatprep.subr.bf16.mxu0 %v6889_v4 }
  0x18   : >> { %9421 = vst [vmem:[#allocation4_spill] sm:$0xff] %v7188_v8  ;;  %v7196_v13 = vld [vmem:[%s7176_s28 + $0x10] sm:$0xf]  ;;  %v1094_v15 = vshrl.u32 %v7185_v7, 16  ;;  %v9359_v17 = vrot.slane %v7185_v7, 5  ;;  %v1105_v22 = vshrl.u32 %v7188_v8, 16  ;;  %vm7288_vm3 = vmor %vm707_vm1, %vm708_vm2 }
  0x19   : >> { %9422 = vst [vmem:[#allocation5_spill] sm:$0xff] %v7196_v13  ;;  %6237 = vmatpush3.bf16.msra.mxu1 %v6885_v2  ;;  %v5509_v18 = vcombine.low %v7188_v8, %v7196_v13  ;;  %6238 = vmatprep.mubr.msk.bf16.mxu1 %vm412_vm0, %v5508_v9  ;;  %v1083_v19 = vrot.slane %v1081_v10, 4  ;;  %v1086_v20 = vrot.slane %v1084_v11, 5  ;;  %v7209_v21 = vrot.slane %v1090_v12, 5  ;;  %v7213_v23 = vld [vmem:[%s7176_s28 + $0xc] sm:$0xf] }
  0x1a   : >> { %6254 = vmatprep.subr.bf16.mxu1 %v6890_v5  ;;  %v1096_v25 = vrot.slane %v1094_v15, 4  ;;  %v7220_v26 = vrot.slane %v9359_v17, 4  ;;  %v1108_v27 = vshll.u32 %v7188_v8, 16  ;;  %v1114_v28 = vshll.u32 %v7196_v13, 16  ;;  %6417 = vmatpush3.bf16.msra.mxu0 %v6889_v4  ;;  %v7225_v29 = vld [vmem:[%s7176_s28 + $0x10] sm:$0xf] }
  0x1b   : >> { %9423 = vst [vmem:[#allocation6_spill] sm:$0xff] %v7209_v21  ;;  %v1087_v30 = vor.u32 %v1086_v20, %v1083_v19  ;;  %v1107_v31 = vrot.slane %v1105_v22, 4  ;;  %v1118_v32 = vshrl.u32 %v7196_v13, 16  ;;  %v7230_v33 = vld [vmem:[%s7176_s28 + $0x14] sm:$0x1]  ;;  %6434 = vmatprep.subr.bf16.mxu0 %v7201_v14  ;;  %v9358_v37 = vrot.slane %v7196_v13, 5 }
  0x1c   : >> { %9424 = vst [vmem:[#allocation7_spill] sm:$0xff] %v7220_v26  ;;  %6239 = vmatmul.mubr.msk.bf16.vlgmr.msra.gmra.mrb[0].mxu1 %vm412_vm0, %v5509_v18  ;;  %v1097_v34 = vor.u32 %v1096_v25, %v7209_v21  ;;  %v1110_v35 = vrot.slane %v1108_v27, 5  ;;  %v7234_v36 = vrot.slane %v1114_v28, 5  ;;  %v2750_v44 = vshrl.u32 %v7213_v23, 16  ;;  %v7249_v45 = vld [vmem:[%s7176_s28 + $0x18] sm:$0xf] }
  0x1d   : >> { %6255 = vmatpush3.bf16.msra.mxu1 %v6890_v5  ;;  %v7237_v38 = vrot.slane %v1087_v30, 4  ;;  %v1120_v39 = vrot.slane %v1118_v32, 4  ;;  %9428 = vst [vmem:[#allocation11_spill] sm:$0xff] %v7249_v45  ;;  %v2753_v47 = vshll.u32 %v7213_v23, 16  ;;  %v2759_v48 = vshll.u32 %v7225_v29, 16 }
  0x1e   : >> { %9425 = vst [vmem:[#allocation8_spill] sm:$0xff] %v7234_v36  ;;  %6256 = vmatprep.subr.bf16.mxu1 %v6896_v24  ;;  %v7245_v42 = vrot.slane %v1097_v34, 4  ;;  %v1111_v43 = vor.u32 %v1110_v35, %v1107_v31  ;;  %v2763_v49 = vshrl.u32 %v7225_v29, 16  ;;  %v7256_v50 = vld [vmem:[%s7176_s28 + $0x1c] sm:$0xf]  ;;  %v7262_v52 = vrot.slane %v9358_v37, 4 }
  0x1f   : >> { %9426 = vst [vmem:[#allocation9_spill] sm:$0xff] %v7237_v38  ;;  %v1121_v46 = vor.u32 %v1120_v39, %v7234_v36  ;;  %9429 = vst [vmem:[#allocation12_spill] sm:$0xff] %v7256_v50  ;;  %v2752_v53 = vrot.slane %v2750_v44, 4  ;;  %v2769_v54 = vshll.u32 %v7230_v33, 16  ;;  %v7266_v55 = vld [vmem:[%s7176_s28 + $0x18] sm:$0xf]  ;;  %v5510_v63 = vcombine.low %v7249_v45, %v7256_v50 }
  0x20   : >> { %9427 = vst [vmem:[#allocation10_spill] sm:$0xff] %v7245_v42  ;;  %v7258_v51 = vrot.slane %v1111_v43, 4  ;;  %9431 = vst [vmem:[#allocation14_spill] sm:$0xff] %v7262_v52  ;;  %v2755_v56 = vrot.slane %v2753_v47, 5  ;;  %v2761_v57 = vrot.slane %v2759_v48, 5  ;;  %v2765_v58 = vrot.slane %v2763_v49, 4 }
  0x21   : >> { %6257 = vmatpush3.bf16.msra.mxu1 %v6896_v24  ;;  %v7270_v60 = vld [vmem:[%s7176_s28 + $0x1c] sm:$0xf]  ;;  %v7273_v61 = vrot.slane %v1121_v46, 4  ;;  %v2771_v62 = vrot.slane %v2769_v54, 5  ;;  %v7279_v1 = vld [vmem:[%s7176_s28 + $0x20] sm:$0x1]  ;;  %6242 = vmatprep.mubr.msk.bf16.mxu1 %vm412_vm0, %v5510_v63 }
  0x22   : >> { %9430 = vst [vmem:[#allocation13_spill] sm:$0xff] %v7258_v51  ;;  %6274 = vmatprep.subr.bf16.mxu1 %v7243_v41  ;;  %v2756_v2 = vor.u32 %v2755_v56, %v2752_v53  ;;  %v2766_v3 = vor.u32 %v2765_v58, %v2761_v57  ;;  %v2774_v5 = vshrl.u32 %v7266_v55, 16  ;;  %v7284_v9 = vld [vmem:[%s7176_s28 + $0x24] sm:$0xf]  ;;  %v2777_v11 = vshll.u32 %v7266_v55, 16 }
  0x23   : >> { %9432 = vst [vmem:[#allocation15_spill] sm:$0xff] %v7273_v61  ;;  %9433 = vst [vmem:[#allocation16_spill] sm:$0xff] %v7284_v9  ;;  %v2783_v12 = vshll.u32 %v7270_v60, 16  ;;  %v2787_v15 = vshrl.u32 %v7270_v60, 16  ;;  %v2793_v18 = vshll.u32 %v7279_v1, 16 }
  0x24   : >> { %v7298_v19 = vld [vmem:[%s7176_s28 + $0x28] sm:$0xf]  ;;  %v2757_v20 = vrot.slane %v2756_v2, 4  ;;  %v2767_v22 = vrot.slane %v2766_v3, 4  ;;  %v2776_v25 = vrot.slane %v2774_v5, 4  ;;  %v2779_v27 = vrot.slane %v2777_v11, 5 }
  0x25   : >> { %9436 = vst [vmem:[#allocation17_spill] sm:$0xff] %v7298_v19  ;;  %v2785_v28 = vrot.slane %v2783_v12, 5  ;;  %v2789_v30 = vrot.slane %v2787_v15, 4  ;;  %v7303_v32 = vld [vmem:[%s7176_s28 + $0x24] sm:$0xf]  ;;  %v2795_v39 = vrot.slane %v2793_v18, 5  ;;  %v5511_v43 = vcombine.low %v7284_v9, %v7298_v19 }
  0x26   : >> { %v2762_v34 = vsel %vm7288_vm3, %v2757_v20, %v2761_v57  ;;  %v2772_v35 = vsel %vm7288_vm3, %v2767_v22, %v2771_v62  ;;  %v7312_v44 = vld [vmem:[%s7176_s28 + $0x28] sm:$0xf]  ;;  %v7315_v46 = vld [vmem:[%s7176_s28 + $0x2c] sm:$0x1]  ;;  %v2780_v48 = vor.u32 %v2779_v27, %v2776_v25  ;;  %v7319_v54 = vld [vmem:[%s7176_s28 + $0x30] sm:$0xf] }
  0x27   : >> { %v5770_v47 = vcombine.low %v2762_v34, %v2772_v35  ;;  %v2790_v49 = vor.u32 %v2789_v30, %v2785_v28  ;;  %9437 = vst [vmem:[#allocation18_spill] sm:$0xff] %v7319_v54  ;;  %v7322_v56 = vld [vmem:[%s7176_s28 + $0x34] sm:$0xf]  ;;  %6243 = vmatmul.mubr.msk.bf16.gmra.mrb[4].mxu1 %vm412_vm0, %v5511_v43  ;;  %v2798_v62 = vshrl.u32 %v7303_v32, 16  ;;  %v2801_v63 = vshll.u32 %v7303_v32, 16  ;;  %v6897_v30 = vld [vmem:[%s9353_s2 + $0x58] sm:$0xff]  }
  0x28   : >> { %9438 = vst [vmem:[#allocation19_spill] sm:$0xff] %v7322_v56  ;;  %v7330_v2 = vld [vmem:[%s7176_s28 + $0x30] sm:$0xf]  ;;  %v2781_v3 = vrot.slane %v2780_v48, 4  ;;  %v2807_v11 = vshll.u32 %v7312_v44, 16  ;;  %v2811_v12 = vshrl.u32 %v7312_v44, 16  ;;  %v5512_v25 = vcombine.low %v7319_v54, %v7322_v56 }
  0x29   : >> { %6418 = vmatprep.mubr.msk.bf16.mxu0 %vm412_vm0, %v5770_v47  ;;  %v2791_v5 = vrot.slane %v2790_v49, 4  ;;  %v7336_v15 = vld [vmem:[%s7176_s28 + $0x34] sm:$0xf]  ;;  %v2800_v18 = vrot.slane %v2798_v62, 4  ;;  %v2803_v20 = vrot.slane %v2801_v63, 5  ;;  %v2817_v22 = vshll.u32 %v7315_v46, 16 }
  0x2a   : >> { %v7342_v27 = vld [vmem:[%s7176_s28 + $0x38] sm:$0x1]  ;;  %v2786_v34 = vsel %vm7288_vm3, %v2781_v3, %v2785_v28  ;;  %v2809_v43 = vrot.slane %v2807_v11, 5  ;;  %v2813_v47 = vrot.slane %v2811_v12, 4  ;;  %6246 = vmatprep.mubr.msk.bf16.mxu1 %vm412_vm0, %v5512_v25  ;;  %v7354_v40 = vld [vmem:[%s7176_s28 + $0x3c] sm:$0xf] }
  0x2b   : >> { %v2796_v35 = vsel %vm7288_vm3, %v2791_v5, %v2795_v39  ;;  %v2804_v62 = vor.u32 %v2803_v20, %v2800_v18  ;;  %v2819_v63 = vrot.slane %v2817_v22, 5  ;;  %9439 = vst [vmem:[#allocation20_spill] sm:$0xff] %v7354_v40  ;;  %v7357_v37 = vld [vmem:[%s7176_s28 + $0x40] sm:$0xf]  ;;  %v2822_v3 = vshrl.u32 %v7330_v2, 16 }
  0x2c   : >> { %v5771_v48 = vcombine.low %v2786_v34, %v2796_v35  ;;  %9440 = vst [vmem:[#allocation21_spill] sm:$0xff] %v7357_v37  ;;  %v2814_v16 = vor.u32 %v2813_v47, %v2809_v43  ;;  %v2825_v11 = vshll.u32 %v7330_v2, 16  ;;  %v2831_v12 = vshll.u32 %v7336_v15, 16  ;;  %v7367_v20 = vld [vmem:[%s7176_s28 + $0x3c] sm:$0xf] }
  0x2d   : >> { %v2805_v5 = vrot.slane %v2804_v62, 4  ;;  %v2835_v18 = vshrl.u32 %v7336_v15, 16  ;;  %v7370_v22 = vld [vmem:[%s7176_s28 + $0x40] sm:$0xf]  ;;  %v2824_v34 = vrot.slane %v2822_v3, 4  ;;  %v2841_v35 = vshll.u32 %v7342_v27, 16 }
  0x2e   : >> { %6419 = vmatmul.mubr.msk.bf16.vlgmr.msra.gmra.mrb[0].mxu0 %vm412_vm0, %v5771_v48  ;;  %v2815_v25 = vrot.slane %v2814_v16, 4  ;;  %v5513_v47 = vcombine.low %v7354_v40, %v7357_v37  ;;  %v2827_v62 = vrot.slane %v2825_v11, 5  ;;  %v2833_v17 = vrot.slane %v2831_v12, 5  ;;  %v7379_v28 = vld [vmem:[%s7176_s28 + $0x44] sm:$0x1]  ;;  %v6908_v37 = vld [vmem:[%s9353_s2 + $0x18] sm:$0xff]  }
  0x2f   : >> { %6435 = vmatpush3.bf16.msra.mxu0 %v7201_v14  ;;  %v2810_v48 = vsel %vm7288_vm3, %v2805_v5, %v2809_v43  ;;  %v2837_v39 = vrot.slane %v2835_v18, 4  ;;  %v7384_v14 = vld [vmem:[%s9354_s3 + $0x50] sm:$0xff]   ;;  %v2843_v49 = vrot.slane %v2841_v35, 5  ;;  %v7391_v43 = vld [vmem:[%s7176_s28 + $0x48] sm:$0xf]  ;;  %v2846_v57 = vshrl.u32 %v7367_v20, 16 }
  0x30   : >> { %6436 = vmatprep.subr.bf16.mxu0 %v6897_v30  ;;  %v2820_v16 = vsel %vm7288_vm3, %v2815_v25, %v2819_v63  ;;  %6247 = vmatmul.mubr.msk.bf16.gmra.mrb[8].mxu1 %vm412_vm0, %v5513_v47  ;;  %9441 = vst [vmem:[#allocation22_spill] sm:$0xff] %v7391_v43  ;;  %v7394_v5 = vld [vmem:[%s7176_s28 + $0x4c] sm:$0xf]  ;;  %v2828_v12 = vor.u32 %v2827_v62, %v2824_v34  ;;  %v2849_v63 = vshll.u32 %v7367_v20, 16  ;;  %v2855_v25 = vshll.u32 %v7370_v22, 16 }
  0x31   : >> { %9442 = vst [vmem:[#allocation23_spill] sm:$0xff] %v7394_v5  ;;  %v5772_v11 = vcombine.low %v2810_v48, %v2820_v16  ;;  %v2838_v18 = vor.u32 %v2837_v39, %v2833_v17  ;;  %v2859_v35 = vshrl.u32 %v7370_v22, 16  ;;  %v2865_v34 = vshll.u32 %v7379_v28, 16  ;;  %v7406_v48 = vld [vmem:[%s7176_s28 + $0x48] sm:$0xf] }
  0x32   : >> { %v2829_v47 = vrot.slane %v2828_v12, 4  ;;  %v5514_v39 = vcombine.low %v7391_v43, %v7394_v5  ;;  %v2848_v62 = vrot.slane %v2846_v57, 4  ;;  %v2851_v16 = vrot.slane %v2849_v63, 5  ;;  %v7410_v12 = vld [vmem:[%s7176_s28 + $0x4c] sm:$0xf] }
  0x33   : >> { %6437 = vmatpush3.bf16.msra.mxu0 %v6897_v30  ;;  %6422 = vmatprep.mubr.msk.bf16.mxu0 %vm412_vm0, %v5772_v11  ;;  %v2839_v3 = vrot.slane %v2838_v18, 4  ;;  %v2857_v30 = vrot.slane %v2855_v25, 5  ;;  %v2861_v11 = vrot.slane %v2859_v35, 4  ;;  %v7420_v57 = vld [vmem:[%s7176_s28 + $0x50] sm:$0x1]  ;;  %v2867_v0 = vrot.slane %v2865_v34, 5 }
  0x34   : >> { %6454 = vmatprep.subr.bf16.mxu0 %v7384_v14  ;;  %v2834_v18 = vsel %vm7288_vm3, %v2829_v47, %v2833_v17  ;;  %6250 = vmatprep.mubr.msk.bf16.mxu1 %vm412_vm0, %v5514_v39  ;;  %v2852_v25 = vor.u32 %v2851_v16, %v2848_v62  ;;  %v7423_v53 = vld [vmem:[%s7176_s28 + $0x54] sm:$0xf]  ;;  %v7426_v31 = vld [vmem:[%s7176_s28 + $0x58] sm:$0xf]  ;;  %v2883_v39 = vshrl.u32 %v7410_v12, 16  ;;  %v2889_v62 = vshll.u32 %v7420_v57, 16 }
  0x35   : >> { %v2844_v58 = vsel %vm7288_vm3, %v2839_v3, %v2843_v49  ;;  %v2862_v35 = vor.u32 %v2861_v11, %v2857_v30  ;;  %9443 = vst [vmem:[#allocation24_spill] sm:$0xff] %v7423_v53  ;;  %9444 = vst [vmem:[#allocation25_spill] sm:$0xff] %v7426_v31  ;;  %v2870_v49 = vshrl.u32 %v7406_v48, 16  ;;  %v2873_v3 = vshll.u32 %v7406_v48, 16  ;;  %v7441_v16 = vld [vmem:[%s7176_s28 + $0x54] sm:$0xf] }
  0x36   : >> { %v5773_v63 = vcombine.low %v2834_v18, %v2844_v58  ;;  %v2879_v58 = vshll.u32 %v7410_v12, 16  ;;  %v2853_v47 = vrot.slane %v2852_v25, 4  ;;  %9445 = vst [vmem:[#allocation26_spill] sm:$0xff] %v7441_v16  ;;  %v5515_v4 = vcombine.low %v7423_v53, %v7426_v31  ;;  %v7446_v24 = vld [vmem:[%s7176_s28 + $0x58] sm:$0xf] }
  0x37   : >> { %v2863_v34 = vrot.slane %v2862_v35, 4  ;;  %v2872_v11 = vrot.slane %v2870_v49, 4  ;;  %v2875_v18 = vrot.slane %v2873_v3, 5  ;;  %9446 = vst [vmem:[#allocation27_spill] sm:$0xff] %v7446_v24  ;;  %v2885_v59 = vrot.slane %v2883_v39, 4 }
  0x38   : >> { %6423 = vmatmul.mubr.msk.bf16.gmra.mrb[4].mxu0 %vm412_vm0, %v5773_v63  ;;  %v2881_v17 = vrot.slane %v2879_v58, 5  ;;  %v2858_v63 = vsel %vm7288_vm3, %v2853_v47, %v2857_v30  ;;  %v7454_v52 = vld [vmem:[%s7176_s28 + $0x5c] sm:$0x1]  ;;  %v7457_v49 = vld [vmem:[%s7431_s23] sm:$0xf]  ;;  %v2891_v13 = vrot.slane %v2889_v62, 5  ;;  %6251 = vmatmul.mubr.msk.bf16.gmra.mrb[12].mxu1 %vm412_vm0, %v5515_v4 }
  0x39   : >> { %v2868_v25 = vsel %vm7288_vm3, %v2863_v34, %v2867_v0  ;;  %9447 = vst [vmem:[#allocation28_spill] sm:$0xff] %v7454_v52  ;;  %v2876_v8 = vor.u32 %v2875_v18, %v2872_v11  ;;  %v7462_v30 = vld [vmem:[%s7431_s23 + $0x4] sm:$0xf]  ;;  %v2894_v34 = vshrl.u32 %v7441_v16, 16  ;;  %v2897_v39 = vshll.u32 %v7441_v16, 16 }
  0x3a   : >> { %v5774_v3 = vcombine.low %v2858_v63, %v2868_v25  ;;  %v2886_v0 = vor.u32 %v2885_v59, %v2881_v17  ;;  %v7468_v63 = vld [vmem:[%s7176_s28 + $0x60] sm:$0xf]  ;;  %v2903_v4 = vshll.u32 %v7446_v24, 16  ;;  %v2907_v11 = vshrl.u32 %v7446_v24, 16  ;;  %v7475_v59 = vld [vmem:[%s7176_s28 + $0x64] sm:$0xf] }
  0x3b   : >> { %9448 = vst [vmem:[#allocation29_spill] sm:$0xff] %v7468_v63  ;;  %v2877_v62 = vrot.slane %v2876_v8, 4  ;;  %v2913_v18 = vshll.u32 %v7454_v52, 16  ;;  %9449 = vst [vmem:[#allocation30_spill] sm:$0xff] %v7475_v59  ;;  %v2896_v47 = vrot.slane %v2894_v34, 4  ;;  %v2899_v58 = vrot.slane %v2897_v39, 5 }
  0x3c   : >> { %6426 = vmatprep.mubr.msk.bf16.mxu0 %vm412_vm0, %v5774_v3  ;;  %v2887_v25 = vrot.slane %v2886_v0, 4  ;;  %v5526_v35 = vcombine.low %v7457_v49, %v7462_v30  ;;  %v7480_v26 = vld [vmem:[%s7176_s28 + $0x68] sm:$0x1]  ;;  %v7483_v6 = vld [vmem:[%s7431_s23 + $0xc] sm:$0xf]  ;;  %v2905_v3 = vrot.slane %v2903_v4, 5 }
  0x3d   : >> { %9450 = vst [vmem:[#allocation31_spill] sm:$0xff] %v7480_v26  ;;  %v2882_v8 = vsel %vm7288_vm3, %v2877_v62, %v2881_v17  ;;  %v2909_v7 = vrot.slane %v2907_v11, 4  ;;  %v2915_v5 = vrot.slane %v2913_v18, 5  ;;  %v7488_v43 = vld [vmem:[%s7431_s23 + $0x10] sm:$0xf]  ;;  %v2900_v34 = vor.u32 %v2899_v58, %v2896_v47 }
  0x3e   : >> { %v2892_v0 = vsel %vm7288_vm3, %v2887_v25, %v2891_v13  ;;  %6258 = vmatprep.mubr.msk.bf16.mxu1 %vm412_vm0, %v5526_v35  ;;  %v2918_v11 = vshrl.u32 %v7468_v63, 16  ;;  %v2921_v40 = vshll.u32 %v7468_v63, 16  ;;  %v2927_v13 = vshll.u32 %v7475_v59, 16  ;;  %v5650_v35 = vld [vmem:[%s7431_s23 + $0xc] sm:$0xf] }
  0x3f   : >> { %v5775_v17 = vcombine.low %v2882_v8, %v2892_v0  ;;  %v2910_v62 = vor.u32 %v2909_v7, %v2905_v3  ;;  %v2901_v18 = vrot.slane %v2900_v34, 4  ;;  %v2931_v58 = vshrl.u32 %v7475_v59, 16  ;;  %v5651_v47 = vld [vmem:[%s7431_s23 + $0x10] sm:$0xf]  ;;  %v5652_v25 = vld [vmem:[%s7431_s23 + $0x14] sm:$0x1] }
  0x40   : >> { %v7504_v39 = vld [vmem:[%s7431_s23 + $0x18] sm:$0xf]  ;;  %v2920_v8 = vrot.slane %v2918_v11, 4  ;;  %v2937_v0 = vshll.u32 %v7480_v26, 16  ;;  %v5527_v34 = vcombine.low %v7483_v6, %v7488_v43  ;;  %v7511_v4 = vld [vmem:[%s7431_s23 + $0x1c] sm:$0xf] }
  0x41   : >> { %6427 = vmatmul.mubr.msk.bf16.gmra.mrb[8].mxu0 %vm412_vm0, %v5775_v17  ;;  %v2911_v7 = vrot.slane %v2910_v62, 4  ;;  %v2906_v56 = vsel %vm7288_vm3, %v2901_v18, %v2905_v3  ;;  %v2923_v54 = vrot.slane %v2921_v40, 5  ;;  %v2929_v17 = vrot.slane %v2927_v13, 5  ;;  %v5653_v11 = vld [vmem:[%s7431_s23 + $0x18] sm:$0xf] }
  0x42   : >> { %v2933_v62 = vrot.slane %v2931_v58, 4  ;;  %v2939_v9 = vrot.slane %v2937_v0, 5  ;;  %6259 = vmatmul.mubr.msk.bf16.vlgmr.msra.gmra.mrb[0].mxu1 %vm412_vm0, %v5527_v34  ;;  %v5654_v61 = vld [vmem:[%s7431_s23 + $0x1c] sm:$0xf]  ;;  %v7535_v58 = vld [vmem:[%s7431_s23 + $0x24] sm:$0xf] }
  0x43   : >> { %v2916_v19 = vsel %vm7288_vm3, %v2911_v7, %v2915_v5  ;;  %v2924_v3 = vor.u32 %v2923_v54, %v2920_v8  ;;  %6275 = vmatpush3.bf16.msra.mxu1 %v7243_v41  ;;  %v5655_v5 = vld [vmem:[%s7431_s23 + $0x20] sm:$0x1]  ;;  %v5788_v7 = vrot.slane %v5650_v35, 9  ;;  %v3129_v0 = vrot.slane %v5651_v47, 5  ;;  %v7545_v8 = vld [vmem:[%s9354_s3 + $0x10] sm:$0xff]  }
  0x44   : >> { %v5776_v42 = vcombine.low %v2906_v56, %v2916_v19  ;;  %v2934_v40 = vor.u32 %v2933_v62, %v2929_v17  ;;  %v3132_v19 = vrot.slane %v5652_v25, 5  ;;  %v5528_v54 = vcombine.low %v7504_v39, %v7511_v4  ;;  %v7540_v56 = vld [vmem:[%s7431_s23 + $0x28] sm:$0xf]  ;;  %6276 = vmatprep.subr.bf16.mxu1 %v6908_v37  ;;  %v5656_v25 = vld [vmem:[%s7431_s23 + $0x24] sm:$0xf] }
  0x45   : >> { %v2925_v41 = vrot.slane %v2924_v3, 4  ;;  %v5657_v62 = vld [vmem:[%s7431_s23 + $0x28] sm:$0xf]  ;;  %v3130_v18 = vsel %vm7528_vm6, %v5788_v7, %v3129_v0  ;;  %v3131_v45 = vrot.slane %v3129_v0, 4  ;;  %v5789_v3 = vrot.slane %v5653_v11, 9 }
  0x46   : >> { %6430 = vmatprep.mubr.msk.bf16.mxu0 %vm412_vm0, %v5776_v42  ;;  %v2935_v34 = vrot.slane %v2934_v40, 4  ;;  %6262 = vmatprep.mubr.msk.bf16.mxu1 %vm412_vm0, %v5528_v54  ;;  %v5658_v40 = vld [vmem:[%s7431_s23 + $0x2c] sm:$0x1]  ;;  %v3136_v50 = vrot.slane %v5654_v61, 5  ;;  %v3139_v31 = vrot.slane %v5655_v5, 5  ;;  %v5529_v42 = vcombine.low %v7535_v58, %v7540_v56 }
  0x47   : >> { %v2930_v35 = vsel %vm7288_vm3, %v2925_v41, %v2929_v17  ;;  %v7562_v7 = vld [vmem:[%s7431_s23 + $0x30] sm:$0xf]  ;;  %v7565_v0 = vld [vmem:[%s7431_s23 + $0x34] sm:$0xf]  ;;  %6277 = vmatpush3.bf16.msra.mxu1 %v6908_v37  ;;  %v3133_v11 = vsel %vm7528_vm6, %v3131_v45, %v3132_v19  ;;  %v5661_v61 = vld [vmem:[%s7431_s23 + $0x38] sm:$0x1] }
  0x48   : >> { %v2940_v47 = vsel %vm7288_vm3, %v2935_v34, %v2939_v9  ;;  %v5659_v41 = vld [vmem:[%s7431_s23 + $0x30] sm:$0xf]  ;;  %v5660_v9 = vld [vmem:[%s7431_s23 + $0x34] sm:$0xf]  ;;  %6294 = vmatprep.subr.bf16.mxu1 %v7545_v8  ;;  %v5800_v5 = vcombine.low %v3130_v18, %v3133_v11  ;;  %v3137_v34 = vsel %vm7528_vm6, %v5789_v3, %v3136_v50  ;;  %v3138_v37 = vrot.slane %v3136_v50, 4 }
  0x49   : >> { %v5777_v54 = vcombine.low %v2930_v35, %v2940_v47  ;;  %v7580_v47 = vld [vmem:[%s7431_s23 + $0x3c] sm:$0xf]  ;;  %v7583_v45 = vld [vmem:[%s7431_s23 + $0x40] sm:$0xf]  ;;  %v5790_v18 = vrot.slane %v5656_v25, 9  ;;  %v3143_v11 = vrot.slane %v5657_v62, 5  ;;  %v5530_v3 = vcombine.low %v7562_v7, %v7565_v0 }
  0x4a   : >> { %6263 = vmatmul.mubr.msk.bf16.gmra.mrb[4].mxu1 %vm412_vm0, %v5529_v42  ;;  %v3146_v17 = vrot.slane %v5658_v40, 5  ;;  %v3140_v50 = vsel %vm7528_vm6, %v3138_v37, %v3139_v31  ;;  %v5662_v53 = vld [vmem:[%s7431_s23 + $0x3c] sm:$0xf]  ;;  %v5663_v40 = vld [vmem:[%s7431_s23 + $0x40] sm:$0xf]  ;;  %v5791_v31 = vrot.slane %v5659_v41, 9 }
  0x4b   : >> { %6431 = vmatmul.mubr.msk.bf16.gmra.mrb[12].mxu0 %vm412_vm0, %v5777_v54  ;;  %v5801_v42 = vcombine.low %v3137_v34, %v3140_v50  ;;  %v3144_v19 = vsel %vm7528_vm6, %v5790_v18, %v3143_v11  ;;  %v3145_v25 = vrot.slane %v3143_v11, 4  ;;  %6266 = vmatprep.mubr.msk.bf16.mxu1 %vm412_vm0, %v5530_v3  ;;  %v3150_v37 = vrot.slane %v5660_v9, 5  ;;  %v7614_v3 = vld [vmem:[%s7431_s23 + $0x48] sm:$0xf]  ;;  %v7617_v35 = vld [vmem:[%s7431_s23 + $0x4c] sm:$0xf] }
  0x4c   : >> { %6438 = vmatprep.mubr.msk.bf16.mxu0 %vm412_vm0, %v5800_v5  ;;  %v5664_v5 = vld [vmem:[%s7431_s23 + $0x44] sm:$0x1]  ;;  %v3153_v26 = vrot.slane %v5661_v61, 5  ;;  %v5531_v54 = vcombine.low %v7580_v47, %v7583_v45  ;;  %v5792_v61 = vrot.slane %v5662_v53, 9  ;;  %v6909_v11 = vld [vmem:[%s9354_s3 + $0x58] sm:$0xff]   ;;  %v9453_v63 = vshrl.u32 %v7457_v49, 16 }
  0x4d   : >> { %v3147_v34 = vsel %vm7528_vm6, %v3145_v25, %v3146_v17  ;;  %v7611_v41 = vsel %vm7528_vm6, %v5791_v31, %v3150_v37  ;;  %v3152_v9 = vrot.slane %v3150_v37, 4  ;;  %v3157_v17 = vrot.slane %v5663_v40, 5  ;;  %v5667_v50 = vld [vmem:[%s7431_s23 + $0x50] sm:$0x1]  ;;  %v7642_v40 = vld [vmem:[%s7431_s23 + $0x54] sm:$0xf] }
  0x4e   : >> { %v5802_v62 = vcombine.low %v3144_v19, %v3147_v34  ;;  %v3160_v25 = vrot.slane %v5664_v5, 5  ;;  %v5532_v19 = vcombine.low %v7614_v3, %v7617_v35  ;;  %v5665_v34 = vld [vmem:[%s7431_s23 + $0x48] sm:$0xf]  ;;  %v5666_v5 = vld [vmem:[%s7431_s23 + $0x4c] sm:$0xf]  ;;  %v3167_v18 = vrot.slane %v5667_v50, 5 }
  0x4f   : >> { %v3154_v53 = vsel %vm7528_vm6, %v3152_v9, %v3153_v26  ;;  %v3158_v26 = vsel %vm7528_vm6, %v5792_v61, %v3157_v17  ;;  %v3159_v9 = vrot.slane %v3157_v17, 4  ;;  %v5793_v37 = vrot.slane %v5665_v34, 9  ;;  %v7645_v59 = vld [vmem:[%s7431_s23 + $0x58] sm:$0xf]  ;;  %v5668_v61 = vld [vmem:[%s7431_s23 + $0x54] sm:$0xf] }
  0x50   : >> { %v5803_v31 = vcombine.low %v7611_v41, %v3154_v53  ;;  %v7656_v17 = vld [vmem:[%s9353_s2 + $0x60] sm:$0xff]   ;;  %v5669_v34 = vld [vmem:[%s7431_s23 + $0x58] sm:$0xf]  ;;  %v5670_v53 = vld [vmem:[%s7431_s23 + $0x5c] sm:$0x1]  ;;  %v713_v52 = vrot.slane %v9453_v63, 4 }
  0x51   : >> { %v7674_v21 = vld [vmem:[%s7431_s23 + $0x8] sm:$0x1]  ;;  %v3171_v50 = vrot.slane %v5669_v34, 5  ;;  %v3174_v38 = vrot.slane %v5670_v53, 5  ;;  %v9454_v24 = vshll.u32 %v7457_v49, 16 }
  0x52   : >> { %6267 = vmatmul.mubr.msk.bf16.gmra.mrb[8].mxu1 %vm412_vm0, %v5531_v54  ;;  %v5533_v54 = vcombine.low %v7642_v40, %v7645_v59  ;;  %v730_v36 = vshll.u32 %v7674_v21, 16  ;;  %v5673_v34 = vld [vmem:[%s7431_s23 + $0x68] sm:$0x1]  ;;  %v7693_v51 = vld [vmem:[%s7431_s23 + $0x14] sm:$0x1] }
  0x53   : >> { %6439 = vmatmul.mubr.msk.bf16.vlgmr.msra.gmra.mrb[0].mxu0 %vm412_vm0, %v5801_v42  ;;  %v3164_v42 = vrot.slane %v5666_v5, 5  ;;  %6270 = vmatprep.mubr.msk.bf16.mxu1 %vm412_vm0, %v5532_v19  ;;  %v5794_v19 = vrot.slane %v5668_v61, 9  ;;  %v716_v5 = vrot.slane %v9454_v24, 5  ;;  %v3173_v49 = vrot.slane %v3171_v50, 4 }
  0x54   : >> { %6455 = vmatpush3.bf16.msra.mxu0 %v7384_v14  ;;  %6442 = vmatprep.mubr.msk.bf16.mxu0 %vm412_vm0, %v5802_v62  ;;  %v3161_v14 = vsel %vm7528_vm6, %v3159_v9, %v3160_v25  ;;  %v5671_v62 = vld [vmem:[%s7431_s23 + $0x60] sm:$0xf] }
  0x55   : >> { %6456 = vmatprep.subr.bf16.mxu0 %v6909_v11  ;;  %v5804_v41 = vcombine.low %v3158_v26, %v3161_v14  ;;  %v7671_v25 = vsel %vm7528_vm6, %v5793_v37, %v3164_v42  ;;  %v3166_v9 = vrot.slane %v3164_v42, 4  ;;  %v5672_v26 = vld [vmem:[%s7431_s23 + $0x64] sm:$0xf]  ;;  %v720_v37 = vshll.u32 %v7462_v30, 16 }
  0x56   : >> { %v9455_v42 = vshrl.u32 %v7462_v30, 16  ;;  %v3172_v63 = vsel %vm7528_vm6, %v5794_v19, %v3171_v50  ;;  %v717_v24 = vor.u32 %v716_v5, %v713_v52  ;;  %v3178_v16 = vrot.slane %v5672_v26, 5 }
  0x57   : >> { %v3168_v14 = vsel %vm7528_vm6, %v3166_v9, %v3167_v18  ;;  %v722_v18 = vrot.slane %v720_v37, 5  ;;  %v5795_v9 = vrot.slane %v5671_v62, 9  ;;  %v3175_v30 = vsel %vm7528_vm6, %v3173_v49, %v3174_v38 }
  0x58   : >> { %6457 = vmatpush3.bf16.msra.mxu0 %v6909_v11  ;;  %v726_v61 = vrot.slane %v9455_v42, 4  ;;  %v5805_v53 = vcombine.low %v7671_v25, %v3168_v14  ;;  %v732_v11 = vrot.slane %v730_v36, 5  ;;  %v718_v25 = vrot.slane %v717_v24, 4 }
  0x59   : >> { %6474 = vmatprep.subr.bf16.mxu0 %v7656_v17  ;;  %v3181_v14 = vrot.slane %v5673_v34, 5  ;;  %v9456_v50 = vshrl.u32 %v7483_v6, 16  ;;  %v5806_v5 = vcombine.low %v3172_v63, %v3175_v30  ;;  %v7705_v36 = vsel %vm7528_vm6, %v5795_v9, %v3178_v16 }
  0x5a   : >> { %6271 = vmatmul.mubr.msk.bf16.gmra.mrb[12].mxu1 %vm412_vm0, %v5533_v54  ;;  %v727_v19 = vor.u32 %v726_v61, %v722_v18  ;;  %v723_v54 = vsel %vm7288_vm3, %v718_v25, %v722_v18  ;;  %v9457_v38 = vshll.u32 %v7483_v6, 16  ;;  %v744_v26 = vshll.u32 %v7488_v43, 16  ;;  %v7724_v18 = vld [vmem:[%s7431_s23 + $0x20] sm:$0x1] }
  0x5b   : >> { %6443 = vmatmul.mubr.msk.bf16.gmra.mrb[4].mxu0 %vm412_vm0, %v5803_v31  ;;  %v737_v52 = vrot.slane %v9456_v50, 4  ;;  %v3180_v31 = vrot.slane %v3178_v16, 4  ;;  %v9458_v37 = vshrl.u32 %v7488_v43, 16  ;;  %v754_v34 = vshll.u32 %v7693_v51, 16 }
  0x5c   : >> { %6446 = vmatprep.mubr.msk.bf16.mxu0 %vm412_vm0, %v5804_v41  ;;  %v740_v62 = vrot.slane %v9457_v38, 5  ;;  %v728_v41 = vrot.slane %v727_v19, 4  ;;  %v5818_v16 = vrot.slane %v7213_v23, 9  ;;  %v746_v6 = vrot.slane %v744_v26, 5 }
  0x5d   : >> { %v750_v42 = vrot.slane %v9458_v37, 4  ;;  %v7716_v61 = vsel %vm7528_vm6, %v3180_v31, %v3181_v14  ;;  %v3371_v24 = vrot.slane %v7225_v29, 5  ;;  %v756_v9 = vrot.slane %v754_v34, 5 }
  0x5e   : >> { %v5807_v63 = vcombine.low %v7705_v36, %v7716_v61  ;;  %v741_v49 = vor.u32 %v740_v62, %v737_v52  ;;  %v733_v43 = vsel %vm7288_vm3, %v728_v41, %v732_v11  ;;  %v9459_v30 = vshrl.u32 %v7504_v39, 16 }
  0x5f   : >> { %v9460_v14 = vshll.u32 %v7504_v39, 16  ;;  %v5548_v23 = vcombine.low %v723_v54, %v733_v43  ;;  %v751_v31 = vor.u32 %v750_v42, %v746_v6  ;;  %v3372_v52 = vsel %vm7528_vm6, %v5818_v16, %v3371_v24 }
  0x60   : >> { %v761_v25 = vrot.slane %v9459_v30, 4  ;;  %v742_v19 = vrot.slane %v741_v49, 4  ;;  %v3373_v36 = vrot.slane %v3371_v24, 4  ;;  %v768_v38 = vshll.u32 %v7511_v4, 16 }
  0x61   : >> { %v764_v50 = vrot.slane %v9460_v14, 5  ;;  %v9461_v62 = vshrl.u32 %v7511_v4, 16  ;;  %6278 = vmatprep.mubr.msk.bf16.mxu1 %vm412_vm0, %v5548_v23  ;;  %v752_v54 = vrot.slane %v751_v31, 4  ;;  %v778_v26 = vshll.u32 %v7724_v18, 16 }
  0x62   : >> { %v747_v39 = vsel %vm7288_vm3, %v742_v19, %v746_v6  ;;  %v5819_v37 = vrot.slane %v7266_v55, 9  ;;  %v9462_v42 = vrot.slane %v7230_v33, 5  ;;  %v770_v61 = vrot.slane %v768_v38, 5  ;;  %v7759_v33 = vld [vmem:[%s7431_s23 + $0x2c] sm:$0x1] }
  0x63   : >> { %v765_v29 = vor.u32 %v764_v50, %v761_v25  ;;  %v774_v11 = vrot.slane %v9461_v62, 4  ;;  %6447 = vmatmul.mubr.msk.bf16.gmra.mrb[8].mxu0 %vm412_vm0, %v5805_v53  ;;  %v9463_v53 = vrot.slane %v7270_v60, 5  ;;  %v757_v16 = vsel %vm7288_vm3, %v752_v54, %v756_v9  ;;  %v6914_v60 = vld [vmem:[%s9354_s3 + $0x18] sm:$0xff]  }
  0x64   : >> { %6450 = vmatprep.mubr.msk.bf16.mxu0 %vm412_vm0, %v5806_v5  ;;  %v3375_v4 = vsel %vm7528_vm6, %v3373_v36, %v9462_v42  ;;  %v780_v6 = vrot.slane %v778_v26, 5  ;;  %v5549_v5 = vcombine.low %v747_v39, %v757_v16  ;;  %v9465_v25 = vrot.slane %v7279_v1, 5  ;;  %v7790_v42 = vld [vmem:[%s7431_s23 + $0x38] sm:$0x1] }
  0x65   : >> { %v766_v41 = vrot.slane %v765_v29, 4  ;;  %v3380_v34 = vrot.slane %v9463_v53, 4  ;;  %v5830_v49 = vcombine.low %v3372_v52, %v3375_v4  ;;  %v9464_v24 = vmov %v9463_v53 }
  0x66   : >> { %v7756_v55 = vsel %vm7528_vm6, %v5819_v37, %v9464_v24  ;;  %v775_v30 = vor.u32 %v774_v11, %v770_v61  ;;  %v9466_v50 = vshrl.u32 %v7535_v58, 16  ;;  %v9467_v19 = vshll.u32 %v7535_v58, 16  ;;  %6279 = vmatmul.mubr.msk.bf16.vlgmr.msra.gmra.mrb[0].mxu1 %vm412_vm0, %v5549_v5 }
  0x67   : >> { %v771_v43 = vsel %vm7288_vm3, %v766_v41, %v770_v61  ;;  %v7767_v9 = vsel %vm7528_vm6, %v3380_v34, %v9465_v25  ;;  %v792_v1 = vshll.u32 %v7540_v56, 16  ;;  %v9468_v36 = vshrl.u32 %v7540_v56, 16  ;;  %6295 = vmatpush3.bf16.msra.mxu1 %v7545_v8  ;;  %v7799_v8 = vld [vmem:[%s9353_s2 + $0x20] sm:$0xff]  }
  0x68   : >> { %v5831_v14 = vcombine.low %v7756_v55, %v7767_v9  ;;  %v785_v23 = vrot.slane %v9466_v50, 4  ;;  %v788_v31 = vrot.slane %v9467_v19, 5  ;;  %v776_v52 = vrot.slane %v775_v30, 4  ;;  %6296 = vmatprep.subr.bf16.mxu1 %v6914_v60 }
  0x69   : >> { %v798_v29 = vrot.slane %v9468_v36, 4  ;;  %v802_v38 = vshll.u32 %v7759_v33, 16  ;;  %v5820_v62 = vrot.slane %v7303_v32, 9  ;;  %v794_v39 = vrot.slane %v792_v1, 5 }
  0x6a   : >> { %v789_v11 = vor.u32 %v788_v31, %v785_v23  ;;  %v3385_v54 = vrot.slane %v7312_v44, 5  ;;  %v3388_v58 = vrot.slane %v7315_v46, 5  ;;  %v781_v26 = vsel %vm7288_vm3, %v776_v52, %v780_v6  ;;  %v7821_v31 = vld [vmem:[%s7431_s23 + $0x44] sm:$0x1] }
  0x6b   : >> { %v804_v37 = vrot.slane %v802_v38, 5  ;;  %v9469_v56 = vshrl.u32 %v7562_v7, 16  ;;  %v9470_v41 = vshll.u32 %v7562_v7, 16  ;;  %6451 = vmatmul.mubr.msk.bf16.gmra.mrb[12].mxu0 %vm412_vm0, %v5807_v63  ;;  %v5550_v44 = vcombine.low %v771_v43, %v781_v26  ;;  %6297 = vmatpush3.bf16.msra.mxu1 %v6914_v60 }
  0x6c   : >> { %v790_v46 = vrot.slane %v789_v11, 4  ;;  %v799_v61 = vor.u32 %v798_v29, %v794_v39  ;;  %v3386_v53 = vsel %vm7528_vm6, %v5820_v62, %v3385_v54  ;;  %6458 = vmatprep.mubr.msk.bf16.mxu0 %vm412_vm0, %v5830_v49  ;;  %v3387_v34 = vrot.slane %v3385_v54, 4  ;;  %6314 = vmatprep.subr.bf16.mxu1 %v7799_v8 }
  0x6d   : >> { %v809_v4 = vrot.slane %v9469_v56, 4  ;;  %v812_v32 = vrot.slane %v9470_v41, 5  ;;  %v816_v7 = vshll.u32 %v7565_v0, 16  ;;  %v9471_v6 = vshrl.u32 %v7565_v0, 16  ;;  %6282 = vmatprep.mubr.msk.bf16.mxu1 %vm412_vm0, %v5550_v44 }
  0x6e   : >> { %v795_v63 = vsel %vm7288_vm3, %v790_v46, %v794_v39  ;;  %v800_v55 = vrot.slane %v799_v61, 4  ;;  %v826_v5 = vshll.u32 %v7790_v42, 16  ;;  %v5821_v43 = vrot.slane %v7330_v2, 9  ;;  %v7850_v46 = vld [vmem:[%s7431_s23 + $0x50] sm:$0x1] }
  0x6f   : >> { %v813_v16 = vor.u32 %v812_v32, %v809_v4  ;;  %v822_v24 = vrot.slane %v9471_v6, 4  ;;  %v3389_v49 = vsel %vm7528_vm6, %v3387_v34, %v3388_v58  ;;  %v818_v25 = vrot.slane %v816_v7, 5 }
  0x70   : >> { %v3392_v0 = vrot.slane %v7336_v15, 5  ;;  %v805_v9 = vsel %vm7288_vm3, %v800_v55, %v804_v37  ;;  %v5832_v50 = vcombine.low %v3386_v53, %v3389_v49  ;;  %v828_v23 = vrot.slane %v826_v5, 5 }
  0x71   : >> { %v814_v30 = vrot.slane %v813_v16, 4  ;;  %v3395_v19 = vrot.slane %v7342_v27, 5  ;;  %v5551_v2 = vcombine.low %v795_v63, %v805_v9  ;;  %v823_v1 = vor.u32 %v822_v24, %v818_v25  ;;  %v6915_v27 = vld [vmem:[%s9353_s2 + $0x68] sm:$0xff]  }
  0x72   : >> { %v3393_v52 = vsel %vm7528_vm6, %v5821_v43, %v3392_v0  ;;  %v3394_v15 = vrot.slane %v3392_v0, 4  ;;  %v9472_v36 = vshrl.u32 %v7580_v47, 16  ;;  %v9473_v38 = vshll.u32 %v7580_v47, 16 }
  0x73   : >> { %v819_v60 = vsel %vm7288_vm3, %v814_v30, %v818_v25  ;;  %v840_v11 = vshll.u32 %v7583_v45, 16  ;;  %6283 = vmatmul.mubr.msk.bf16.gmra.mrb[4].mxu1 %vm412_vm0, %v5551_v2  ;;  %v824_v39 = vrot.slane %v823_v1, 4  ;;  %v9474_v54 = vshrl.u32 %v7583_v45, 16  ;;  %6459 = vmatmul.mubr.msk.bf16.vlgmr.msra.gmra.mrb[0].mxu0 %vm412_vm0, %v5831_v14 }
  0x74   : >> { %v833_v29 = vrot.slane %v9472_v36, 4  ;;  %v836_v62 = vrot.slane %v9473_v38, 5  ;;  %v850_v26 = vshll.u32 %v7821_v31, 16  ;;  %v5822_v37 = vrot.slane %v7367_v20, 9  ;;  %6475 = vmatpush3.bf16.msra.mxu0 %v7656_v17  ;;  %6462 = vmatprep.mubr.msk.bf16.mxu0 %vm412_vm0, %v5832_v50 }
  0x75   : >> { %v846_v58 = vrot.slane %v9474_v54, 4  ;;  %v3396_v47 = vsel %vm7528_vm6, %v3394_v15, %v3395_v19  ;;  %v842_v4 = vrot.slane %v840_v11, 5  ;;  %v3399_v41 = vrot.slane %v7370_v22, 5  ;;  %6476 = vmatprep.subr.bf16.mxu0 %v6915_v27  ;;  %v7857_v22 = vld [vmem:[%s9354_s3 + $0x60] sm:$0xff]  }
  0x76   : >> { %v837_v56 = vor.u32 %v836_v62, %v833_v29  ;;  %v829_v45 = vsel %vm7288_vm3, %v824_v39, %v828_v23  ;;  %v5833_v32 = vcombine.low %v3393_v52, %v3396_v47  ;;  %v852_v44 = vrot.slane %v850_v26, 5  ;;  %v7879_v52 = vld [vmem:[%s7431_s23 + $0x5c] sm:$0x1]  ;;  %v9481_v26 = vld [vmem:[#allocation26_spill] sm:$0xff]  ;;  %v7900_v47 = vld [vmem:[%s7176_s28 + $0x8] sm:$0x1] }
  0x77   : >> { %v3402_v20 = vrot.slane %v7379_v28, 5  ;;  %v5552_v14 = vcombine.low %v819_v60, %v829_v45  ;;  %v847_v53 = vor.u32 %v846_v58, %v842_v4  ;;  %v3400_v34 = vsel %vm7528_vm6, %v5822_v37, %v3399_v41  ;;  %v9482_v45 = vld [vmem:[#allocation27_spill] sm:$0xff] }
  0x78   : >> { %v838_v61 = vrot.slane %v837_v56, 4  ;;  %v3401_v17 = vrot.slane %v3399_v41, 4  ;;  %v9475_v16 = vshrl.u32 %v7614_v3, 16  ;;  %v9476_v28 = vshll.u32 %v7614_v3, 16  ;;  %6477 = vmatpush3.bf16.msra.mxu0 %v6915_v27 }
  0x79   : >> { %v864_v24 = vshll.u32 %v7617_v35, 16  ;;  %6286 = vmatprep.mubr.msk.bf16.mxu1 %vm412_vm0, %v5552_v14  ;;  %v848_v55 = vrot.slane %v847_v53, 4  ;;  %v9477_v5 = vshrl.u32 %v7617_v35, 16  ;;  %v874_v49 = vshll.u32 %v7850_v46, 16  ;;  %6494 = vmatprep.subr.bf16.mxu0 %v7857_v22  ;;  %v9483_v14 = vld [vmem:[#allocation28_spill] sm:$0xff] }
  0x7a   : >> { %v857_v7 = vrot.slane %v9475_v16, 4  ;;  %v860_v6 = vrot.slane %v9476_v28, 5  ;;  %v843_v63 = vsel %vm7288_vm3, %v838_v61, %v842_v4  ;;  %v3403_v30 = vsel %vm7528_vm6, %v3401_v17, %v3402_v20  ;;  %v7907_v53 = vld [vmem:[%s7176_s28 + $0x14] sm:$0x1]  ;;  %v7913_v28 = vld [vmem:[%s7431_s23 + $0x18] sm:$0xf] }
  0x7b   : >> { %v870_v43 = vrot.slane %v9477_v5, 4  ;;  %v866_v3 = vrot.slane %v864_v24, 5  ;;  %v5823_v0 = vrot.slane %v7406_v48, 9  ;;  %v853_v9 = vsel %vm7288_vm3, %v848_v55, %v852_v44  ;;  %6463 = vmatmul.mubr.msk.bf16.gmra.mrb[4].mxu0 %vm412_vm0, %v5833_v32  ;;  %v9484_v24 = vld [vmem:[#allocation29_spill] sm:$0xff]  ;;  %v9485_v55 = vld [vmem:[#allocation30_spill] sm:$0xff] }
  0x7c   : >> { %v861_v25 = vor.u32 %v860_v6, %v857_v7  ;;  %v5834_v50 = vcombine.low %v3400_v34, %v3403_v30  ;;  %v876_v23 = vrot.slane %v874_v49, 5  ;;  %v3406_v19 = vrot.slane %v7410_v12, 5 }
  0x7d   : >> { %v5553_v35 = vcombine.low %v843_v63, %v853_v9  ;;  %v871_v60 = vor.u32 %v870_v43, %v866_v3  ;;  %v3409_v1 = vrot.slane %v7420_v57, 5  ;;  %v9478_v36 = vshrl.u32 %v7642_v40, 16  ;;  %v9486_v43 = vld [vmem:[#allocation31_spill] sm:$0xff]  ;;  %v7925_v9 = vld [vmem:[%s7431_s23 + $0x1c] sm:$0xf] }
  0x7e   : >> { %v862_v2 = vrot.slane %v861_v25, 4  ;;  %v3407_v48 = vsel %vm7528_vm6, %v5823_v0, %v3406_v19  ;;  %v3408_v15 = vrot.slane %v3406_v19, 4  ;;  %v9479_v12 = vshll.u32 %v7642_v40, 16  ;;  %6466 = vmatprep.mubr.msk.bf16.mxu0 %vm412_vm0, %v5834_v50  ;;  %v9487_v50 = vld [vmem:[#allocation24_spill] sm:$0xff] }
  0x7f   : >> { %v881_v29 = vrot.slane %v9478_v36, 4  ;;  %6287 = vmatmul.mubr.msk.bf16.gmra.mrb[8].mxu1 %vm412_vm0, %v5553_v35  ;;  %v872_v62 = vrot.slane %v871_v60, 4  ;;  %v888_v11 = vshll.u32 %v7645_v59, 16  ;;  %v9480_v27 = vshrl.u32 %v7645_v59, 16  ;;  %v9488_v60 = vld [vmem:[#allocation25_spill] sm:$0xff] }
  0x80   : >> { %v884_v38 = vrot.slane %v9479_v12, 5  ;;  %v867_v57 = vsel %vm7288_vm3, %v862_v2, %v866_v3  ;;  %v3410_v54 = vsel %vm7528_vm6, %v3408_v15, %v3409_v1  ;;  %v898_v40 = vshll.u32 %v7879_v52, 16  ;;  %v9489_v15 = vld [vmem:[#allocation10_spill] sm:$0xff] }
  0x81   : >> { %v894_v39 = vrot.slane %v9480_v27, 4  ;;  %v5824_v37 = vrot.slane %v9481_v26, 9  ;;  %v877_v56 = vsel %vm7288_vm3, %v872_v62, %v876_v23  ;;  %v5835_v4 = vcombine.low %v3407_v48, %v3410_v54  ;;  %v7948_v54 = vld [vmem:[%s7176_s28 + $0x20] sm:$0x1]  ;;  %v9493_v26 = vld [vmem:[#allocation15_spill] sm:$0xff] }
  0x82   : >> { %v885_v58 = vor.u32 %v884_v38, %v881_v29  ;;  %v890_v41 = vrot.slane %v888_v11, 5  ;;  %v3413_v32 = vrot.slane %v9482_v45, 5  ;;  %v5554_v59 = vcombine.low %v867_v57, %v877_v56  ;;  %v9490_v38 = vld [vmem:[#allocation9_spill] sm:$0xff]  ;;  %v9491_v57 = vld [vmem:[#allocation6_spill] sm:$0xff] }
  0x83   : >> { %v900_v20 = vrot.slane %v898_v40, 5  ;;  %v3416_v61 = vrot.slane %v9483_v14, 5  ;;  %v1100_v7 = vshll.u32 %v7900_v47, 16  ;;  %v5825_v63 = vrot.slane %v9484_v24, 9  ;;  %6467 = vmatmul.mubr.msk.bf16.gmra.mrb[8].mxu0 %vm412_vm0, %v5835_v4  ;;  %v9494_v4 = vld [vmem:[#allocation11_spill] sm:$0xff] }
  0x84   : >> { %v886_v44 = vrot.slane %v885_v58, 4  ;;  %v895_v34 = vor.u32 %v894_v39, %v890_v41  ;;  %v3414_v17 = vsel %vm7528_vm6, %v5824_v37, %v3413_v32  ;;  %v3415_v16 = vrot.slane %v3413_v32, 4  ;;  %6290 = vmatprep.mubr.msk.bf16.mxu1 %vm412_vm0, %v5554_v59  ;;  %v7951_v58 = vld [vmem:[%s7431_s23 + $0x24] sm:$0xf]  ;;  %v7960_v32 = vld [vmem:[%s7431_s23 + $0x28] sm:$0xf] }
  0x85   : >> { %v3420_v5 = vrot.slane %v9485_v55, 5  ;;  %v3423_v49 = vrot.slane %v9486_v43, 5  ;;  %v1102_v3 = vrot.slane %v1100_v7, 5  ;;  %v1124_v0 = vshll.u32 %v7907_v53, 16  ;;  %v7963_v59 = vld [vmem:[%s7176_s28 + $0x2c] sm:$0x1] }
  0x86   : >> { %v891_v6 = vsel %vm7288_vm3, %v886_v44, %v890_v41  ;;  %v896_v30 = vrot.slane %v895_v34, 4  ;;  %v3417_v25 = vsel %vm7528_vm6, %v3415_v16, %v3416_v61  ;;  %v1252_v23 = vshll.u32 %v9487_v50, 16  ;;  %v9496_v44 = vld [vmem:[#allocation13_spill] sm:$0xff]  ;;  %v7980_v55 = vld [vmem:[%s7431_s23 + $0x30] sm:$0xf] }
  0x87   : >> { %v5836_v19 = vcombine.low %v3414_v17, %v3417_v25  ;;  %v3421_v35 = vsel %vm7528_vm6, %v5825_v63, %v3420_v5  ;;  %v3422_v2 = vrot.slane %v3420_v5, 4  ;;  %v1262_v1 = vshrl.u32 %v9488_v60, 16  ;;  %v7974_v16 = vld [vmem:[%s7176_s28 + $0x1c] sm:$0xf]  ;;  %v7983_v5 = vld [vmem:[%s7431_s23 + $0x34] sm:$0xf] }
  0x88   : >> { %v901_v48 = vsel %vm7288_vm3, %v896_v30, %v900_v20  ;;  %v1103_v36 = vsel %vm7288_vm3, %v9489_v15, %v1102_v3  ;;  %v1126_v29 = vrot.slane %v1124_v0, 5  ;;  %v9492_v62 = vsel %vm7288_vm3, %v9490_v38, %v9491_v57  ;;  %v9497_v20 = vld [vmem:[#allocation8_spill] sm:$0xff]  ;;  %v9505_v57 = vld [vmem:[#allocation17_spill] sm:$0xff] }
  0x89   : >> { %v5555_v12 = vcombine.low %v891_v6, %v901_v48  ;;  %6470 = vmatprep.mubr.msk.bf16.mxu0 %vm412_vm0, %v5836_v19  ;;  %v5570_v11 = vcombine.low %v9492_v62, %v1103_v36  ;;  %v3424_v27 = vsel %vm7528_vm6, %v3422_v2, %v3423_v49  ;;  %v5904_v39 = vcombine.low %v7913_v28, %v7925_v9  ;;  %v9500_v6 = vld [vmem:[#allocation12_spill] sm:$0xff]  ;;  %v8099_v19 = vld [vmem:[%s7431_s23 + $0x58] sm:$0xf]  ;;  %v9520_v49 = vld [vmem:[#allocation23_spill] sm:$0xff] }
  0x8a   : >> { %v5837_v40 = vcombine.low %v3421_v35, %v3424_v27  ;;  %v1127_v37 = vsel %vm7288_vm3, %v9493_v26, %v1126_v29  ;;  %v9495_v41 = vshrl.u32 %v9494_v4, 16  ;;  %v9498_v14 = vsel %vm7288_vm3, %v9496_v44, %v9497_v20  ;;  %v9502_v35 = vld [vmem:[#allocation16_spill] sm:$0xff] }
  0x8b   : >> { %6291 = vmatmul.mubr.msk.bf16.gmra.mrb[12].mxu1 %vm412_vm0, %v5555_v12  ;;  %v5571_v61 = vcombine.low %v9498_v14, %v1127_v37  ;;  %v9499_v34 = vshll.u32 %v9494_v4, 16  ;;  %v1138_v7 = vshll.u32 %v7974_v16, 16  ;;  %v9501_v24 = vshrl.u32 %v9500_v6, 16  ;;  %v7996_v12 = vld [vmem:[%s7176_s28 + $0x28] sm:$0xf] }
  0x8c   : >> { %v1131_v45 = vrot.slane %v9495_v41, 4  ;;  %6298 = vmatprep.mubr.msk.bf16.mxu1 %vm412_vm0, %v5570_v11  ;;  %v1148_v30 = vshll.u32 %v7948_v54, 16  ;;  %v9503_v2 = vshrl.u32 %v9502_v35, 16  ;;  %v9504_v36 = vshll.u32 %v9502_v35, 16  ;;  %6471 = vmatmul.mubr.msk.bf16.gmra.mrb[12].mxu0 %vm412_vm0, %v5837_v40  ;;  %v8010_v14 = vld [vmem:[%s7176_s28 + $0x38] sm:$0x1] }
  0x8d   : >> { %v1134_v17 = vrot.slane %v9499_v34, 5  ;;  %v1144_v63 = vrot.slane %v9501_v24, 4  ;;  %v1140_v0 = vrot.slane %v1138_v7, 5  ;;  %v1162_v38 = vshll.u32 %v7996_v12, 16  ;;  %6478 = vmatprep.mubr.msk.bf16.mxu0 %vm412_vm0, %v5904_v39  ;;  %v8016_v6 = vld [vmem:[%s7431_s23 + $0x3c] sm:$0xf] }
  0x8e   : >> { %v1155_v48 = vrot.slane %v9503_v2, 4  ;;  %v1150_v15 = vrot.slane %v1148_v30, 5  ;;  %v1158_v29 = vrot.slane %v9504_v36, 5  ;;  %v9506_v62 = vshrl.u32 %v9505_v57, 16  ;;  %v6922_v39 = vld [vmem:[%s9353_s2 + $0x28] sm:$0xff]   ;;  %v9507_v30 = vld [vmem:[#allocation18_spill] sm:$0xff] }
  0x8f   : >> { %v1135_v3 = vor.u32 %v1134_v17, %v1131_v45  ;;  %v1145_v26 = vor.u32 %v1144_v63, %v1140_v0  ;;  %v5905_v37 = vcombine.low %v7951_v58, %v7960_v32  ;;  %v1172_v4 = vshll.u32 %v7963_v59, 16  ;;  %v9510_v57 = vld [vmem:[#allocation19_spill] sm:$0xff] }
  0x90   : >> { %v1168_v11 = vrot.slane %v9506_v62, 4  ;;  %v1159_v45 = vor.u32 %v1158_v29, %v1155_v48  ;;  %v1164_v44 = vrot.slane %v1162_v38, 5  ;;  %v5906_v20 = vcombine.low %v7980_v55, %v7983_v5  ;;  %v8032_v29 = vld [vmem:[%s7176_s28 + $0x34] sm:$0xf] }
  0x91   : >> { %v1136_v27 = vrot.slane %v1135_v3, 4  ;;  %v1146_v34 = vrot.slane %v1145_v26, 4  ;;  %v1174_v17 = vrot.slane %v1172_v4, 5  ;;  %v9508_v3 = vshrl.u32 %v9507_v30, 16 }
  0x92   : >> { %v1160_v24 = vrot.slane %v1159_v45, 4  ;;  %v1169_v63 = vor.u32 %v1168_v11, %v1164_v44  ;;  %v9509_v2 = vshll.u32 %v9507_v30, 16  ;;  %v1186_v38 = vshll.u32 %v8032_v29, 16  ;;  %v8042_v30 = vld [vmem:[%s7176_s28 + $0x44] sm:$0x1] }
  0x93   : >> { %v1141_v40 = vsel %vm7288_vm3, %v1136_v27, %v1140_v0  ;;  %v1179_v35 = vrot.slane %v9508_v3, 4  ;;  %v8026_v0 = vld [vmem:[%s7431_s23 + $0x40] sm:$0xf]  ;;  %6299 = vmatmul.mubr.msk.bf16.vlgmr.msra.gmra.mrb[0].mxu1 %vm412_vm0, %v5571_v61  ;;  %v1151_v36 = vsel %vm7288_vm3, %v1146_v34, %v1150_v15  ;;  %v9511_v62 = vshrl.u32 %v9510_v57, 16  ;;  %v6924_v15 = vld [vmem:[%s9354_s3 + $0x68] sm:$0xff]  }
  0x94   : >> { %v1182_v48 = vrot.slane %v9509_v2, 5  ;;  %v1196_v27 = vshll.u32 %v8010_v14, 16  ;;  %v5572_v26 = vcombine.low %v1141_v40, %v1151_v36  ;;  %6315 = vmatpush3.bf16.msra.mxu1 %v7799_v8  ;;  %v1165_v4 = vsel %vm7288_vm3, %v1160_v24, %v1164_v44  ;;  %6479 = vmatmul.mubr.msk.bf16.vlgmr.msra.gmra.mrb[0].mxu0 %vm412_vm0, %v5905_v37  ;;  %v8093_v37 = vld [vmem:[%s7431_s23 + $0x54] sm:$0xf] }
  0x95   : >> { %v1192_v11 = vrot.slane %v9511_v62, 4  ;;  %v1170_v45 = vrot.slane %v1169_v63, 4  ;;  %v1188_v40 = vrot.slane %v1186_v38, 5  ;;  %6316 = vmatprep.subr.bf16.mxu1 %v6922_v39  ;;  %v5907_v24 = vcombine.low %v8016_v6, %v8026_v0  ;;  %v9512_v38 = vld [vmem:[#allocation20_spill] sm:$0xff]  ;;  %6495 = vmatpush3.bf16.msra.mxu0 %v7857_v22 }
  0x96   : >> { %v1183_v61 = vor.u32 %v1182_v48, %v1179_v35  ;;  %v1198_v2 = vrot.slane %v1196_v27, 5  ;;  %6302 = vmatprep.mubr.msk.bf16.mxu1 %vm412_vm0, %v5572_v26  ;;  %v8058_v35 = vld [vmem:[%s9354_s3 + $0x20] sm:$0xff]   ;;  %v9513_v57 = vshrl.u32 %v9512_v38, 16  ;;  %v9514_v62 = vshll.u32 %v9512_v38, 16  ;;  %v8066_v26 = vld [vmem:[%s7431_s23 + $0x48] sm:$0xf]  ;;  %6482 = vmatprep.mubr.msk.bf16.mxu0 %vm412_vm0, %v5906_v20 }
  0x97   : >> { %v1175_v8 = vsel %vm7288_vm3, %v1170_v45, %v1174_v17  ;;  %v1193_v36 = vor.u32 %v1192_v11, %v1188_v40  ;;  %v8069_v45 = vld [vmem:[%s7431_s23 + $0x4c] sm:$0xf]  ;;  %v8080_v11 = vld [vmem:[%s7176_s28 + $0x40] sm:$0xf]  ;;  %v8087_v63 = vld [vmem:[%s7176_s28 + $0x50] sm:$0x1]  ;;  %6496 = vmatprep.subr.bf16.mxu0 %v6924_v15 }
  0x98   : >> { %v1184_v44 = vrot.slane %v1183_v61, 4  ;;  %v5573_v48 = vcombine.low %v1165_v4, %v1175_v8  ;;  %v1203_v17 = vrot.slane %v9513_v57, 4  ;;  %v1206_v27 = vrot.slane %v9514_v62, 5  ;;  %v8074_v61 = vld [vmem:[%s9353_s2 + $0x70] sm:$0xff]   ;;  %v9515_v8 = vld [vmem:[#allocation21_spill] sm:$0xff]  ;;  %6317 = vmatpush3.bf16.msra.mxu1 %v6922_v39 }
  0x99   : >> { %v1210_v4 = vshll.u32 %v8080_v11, 16  ;;  %v9516_v38 = vshrl.u32 %v9515_v8, 16  ;;  %v1220_v62 = vshll.u32 %v8042_v30, 16  ;;  %v1194_v22 = vrot.slane %v1193_v36, 4  ;;  %6334 = vmatprep.subr.bf16.mxu1 %v8058_v35  ;;  %6497 = vmatpush3.bf16.msra.mxu0 %v6924_v15 }
  0x9a   : >> { %v1189_v3 = vsel %vm7288_vm3, %v1184_v44, %v1188_v40  ;;  %v1207_v34 = vor.u32 %v1206_v27, %v1203_v17  ;;  %v5908_v8 = vcombine.low %v8066_v26, %v8069_v45  ;;  %v9517_v44 = vld [vmem:[#allocation22_spill] sm:$0xff]  ;;  %v9521_v43 = vshrl.u32 %v9520_v49, 16  ;;  %6514 = vmatprep.subr.bf16.mxu0 %v8074_v61 }
  0x9b   : >> { %v1216_v57 = vrot.slane %v9516_v38, 4  ;;  %v1212_v7 = vrot.slane %v1210_v4, 5  ;;  %v1222_v41 = vrot.slane %v1220_v62, 5  ;;  %6303 = vmatmul.mubr.msk.bf16.gmra.mrb[4].mxu1 %vm412_vm0, %v5573_v48  ;;  %v1199_v40 = vsel %vm7288_vm3, %v1194_v22, %v1198_v2  ;;  %v8110_v38 = vld [vmem:[%s7176_s28 + $0x4c] sm:$0xf] }
  0x9c   : >> { %v1208_v39 = vrot.slane %v1207_v34, 4  ;;  %v9518_v36 = vshrl.u32 %v9517_v44, 16  ;;  %v9519_v27 = vshll.u32 %v9517_v44, 16  ;;  %v5574_v62 = vcombine.low %v1189_v3, %v1199_v40  ;;  %v8119_v44 = vld [vmem:[%s7176_s28 + $0x5c] sm:$0x1]  ;;  %6483 = vmatmul.mubr.msk.bf16.gmra.mrb[4].mxu0 %vm412_vm0, %v5907_v24 }
  0x9d   : >> { %v1217_v20 = vor.u32 %v1216_v57, %v1212_v7  ;;  %v1234_v25 = vshll.u32 %v8110_v38, 16  ;;  %v1240_v48 = vrot.slane %v9521_v43, 4  ;;  %v5909_v15 = vcombine.low %v8093_v37, %v8099_v19  ;;  %v8128_v57 = vld [vmem:[%s7431_s23 + $0x60] sm:$0xf]  ;;  %6486 = vmatprep.mubr.msk.bf16.mxu0 %vm412_vm0, %v5908_v8  ;;  %v8156_v34 = vld [vmem:[%s7431_s23 + $0x70] sm:$0xf] }
  0x9e   : >> { %v1227_v17 = vrot.slane %v9518_v36, 4  ;;  %v1230_v4 = vrot.slane %v9519_v27, 5  ;;  %v1244_v36 = vshll.u32 %v8087_v63, 16  ;;  %6306 = vmatprep.mubr.msk.bf16.mxu1 %vm412_vm0, %v5574_v62  ;;  %v1213_v3 = vsel %vm7288_vm3, %v1208_v39, %v1212_v7  ;;  %v8140_v39 = vld [vmem:[%s7176_s28 + $0x58] sm:$0xf] }
  0x9f   : >> { %v1218_v43 = vrot.slane %v1217_v20, 4  ;;  %v1236_v49 = vrot.slane %v1234_v25, 5  ;;  %v1254_v20 = vrot.slane %v1252_v23, 5  ;;  %v1258_v24 = vshll.u32 %v8140_v39, 16 }
  0xa0   : >> { %v1231_v22 = vor.u32 %v1230_v4, %v1227_v17  ;;  %v1246_v17 = vrot.slane %v1244_v36, 5  ;;  %v9522_v4 = vshrl.u32 %v9487_v50, 16  ;;  %v1264_v27 = vrot.slane %v1262_v1, 4 }
  0xa1   : >> { %v1223_v7 = vsel %vm7288_vm3, %v1218_v43, %v1222_v41  ;;  %v1241_v25 = vor.u32 %v1240_v48, %v1236_v49  ;;  %v1268_v41 = vshll.u32 %v8119_v44, 16  ;;  %v1260_v48 = vrot.slane %v1258_v24, 5  ;;  %v8153_v43 = vld [vmem:[%s7431_s23 + $0x6c] sm:$0xf] }
  0xa2   : >> { %v1232_v40 = vrot.slane %v1231_v22, 4  ;;  %v1251_v62 = vrot.slane %v9522_v4, 4  ;;  %v8144_v22 = vld [vmem:[%s7431_s23 + $0x64] sm:$0xf]  ;;  %v5575_v36 = vcombine.low %v1213_v3, %v1223_v7 }
  0xa3   : >> { %v1242_v50 = vrot.slane %v1241_v25, 4  ;;  %v1270_v1 = vrot.slane %v1268_v41, 5  ;;  %v5910_v3 = vcombine.low %v8128_v57, %v8144_v22  ;;  %v6974_v25 = vld [vmem:[%s7431_s23] sm:$0xf]  ;;  %v6975_v4 = vld [vmem:[%s7431_s23 + $0x4] sm:$0xf] }
  0xa4   : >> { %v1237_v8 = vsel %vm7288_vm3, %v1232_v40, %v1236_v49  ;;  %v1255_v23 = vor.u32 %v1254_v20, %v1251_v62  ;;  %6307 = vmatmul.mubr.msk.bf16.gmra.mrb[8].mxu1 %vm412_vm0, %v5575_v36  ;;  %v1265_v62 = vor.u32 %v1264_v27, %v1260_v48  ;;  %v5588_v20 = vrot.slane %v6974_v25, 9  ;;  %v8169_v41 = vld [vmem:[%s7176_s28 + $0x18] sm:$0xf]  ;;  %6487 = vmatmul.mubr.msk.bf16.gmra.mrb[8].mxu0 %vm412_vm0, %v5909_v15  ;;  %v8196_v27 = vld [vmem:[%s7176_s28 + $0x24] sm:$0xf] }
  0xa5   : >> { %v1247_v49 = vsel %vm7288_vm3, %v1242_v50, %v1246_v17  ;;  %v1463_v2 = vrot.slane %v6975_v4, 5  ;;  %v1466_v36 = vrot.slane %v7674_v21, 5  ;;  %6490 = vmatprep.mubr.msk.bf16.mxu0 %vm412_vm0, %v5910_v3  ;;  %9524 = vst [vmem:[#allocation27_spill] sm:$0xff] %v8196_v27  ;;  %v8218_v50 = vld [vmem:[%s7176_s28 + $0x30] sm:$0xf]  ;;  %v1487_v17 = vrot.slane %v7759_v33, 5 }
  0xa6   : >> { %v1256_v40 = vrot.slane %v1255_v23, 4  ;;  %v5576_v24 = vcombine.low %v1237_v8, %v1247_v49  ;;  %v1266_v60 = vrot.slane %v1265_v62, 4  ;;  %v5911_v8 = vcombine.low %v8153_v43, %v8156_v34  ;;  %v8183_v23 = vld [vmem:[%s7176_s28 + $0x1c] sm:$0xf]  ;;  %v6976_v49 = vld [vmem:[%s7431_s23 + $0xc] sm:$0xf] }
  0xa7   : >> { %v1464_v4 = vsel %vm7528_vm6, %v5588_v20, %v1463_v2  ;;  %v1465_v21 = vrot.slane %v1463_v2, 4  ;;  %9523 = vst [vmem:[#allocation26_spill] sm:$0xff] %v8183_v23  ;;  %v5589_v15 = vrot.slane %v6976_v49, 9  ;;  %v1473_v2 = vrot.slane %v7693_v51, 5  ;;  %9526 = vst [vmem:[#allocation29_spill] sm:$0xff] %v8218_v50 }
  0xa8   : >> { %v1261_v7 = vsel %vm7288_vm3, %v1256_v40, %v1260_v48  ;;  %6310 = vmatprep.mubr.msk.bf16.mxu1 %vm412_vm0, %v5576_v24  ;;  %v1271_v48 = vsel %vm7288_vm3, %v1266_v60, %v1270_v1  ;;  %v6977_v40 = vld [vmem:[%s7431_s23 + $0x10] sm:$0xf]  ;;  %v8199_v60 = vld [vmem:[%s7176_s28 + $0x28] sm:$0xf]  ;;  %v5926_v49 = vcombine.low %v8169_v41, %v8183_v23  ;;  %v1515_v23 = vrot.slane %v7879_v52, 5 }
  0xa9   : >> { %v1470_v62 = vrot.slane %v6977_v40, 5  ;;  %v5577_v25 = vcombine.low %v1261_v7, %v1271_v48  ;;  %v1467_v20 = vsel %vm7528_vm6, %v1465_v21, %v1466_v36  ;;  %9525 = vst [vmem:[#allocation28_spill] sm:$0xff] %v8199_v60  ;;  %v6978_v36 = vld [vmem:[%s7431_s23 + $0x18] sm:$0xf]  ;;  %v6979_v48 = vld [vmem:[%s7431_s23 + $0x1c] sm:$0xf] }
  0xaa   : >> { %v5600_v1 = vcombine.low %v1464_v4, %v1467_v20  ;;  %v5590_v21 = vrot.slane %v6978_v36, 9  ;;  %v1477_v40 = vrot.slane %v6979_v48, 5  ;;  %v1480_v4 = vrot.slane %v7724_v18, 5  ;;  %v8221_v36 = vld [vmem:[%s7176_s28 + $0x34] sm:$0xf] }
  0xab   : >> { %v1472_v3 = vrot.slane %v1470_v62, 4  ;;  %v1471_v20 = vsel %vm7528_vm6, %v5589_v15, %v1470_v62  ;;  %9527 = vst [vmem:[#allocation30_spill] sm:$0xff] %v8221_v36  ;;  %v6980_v62 = vld [vmem:[%s7431_s23 + $0x24] sm:$0xf]  ;;  %v8238_v15 = vld [vmem:[%s7176_s28 + $0x3c] sm:$0xf] }
  0xac   : >> { %6311 = vmatmul.mubr.msk.bf16.gmra.mrb[12].mxu1 %vm412_vm0, %v5577_v25  ;;  %v1478_v18 = vsel %vm7528_vm6, %v5590_v21, %v1477_v40  ;;  %v5591_v48 = vrot.slane %v6980_v62, 9  ;;  %v6981_v25 = vld [vmem:[%s7431_s23 + $0x28] sm:$0xf]  ;;  %6491 = vmatmul.mubr.msk.bf16.gmra.mrb[12].mxu0 %vm412_vm0, %v5911_v8  ;;  %v6982_v8 = vld [vmem:[%s7431_s23 + $0x30] sm:$0xf] }
  0xad   : >> { %6318 = vmatprep.mubr.msk.bf16.mxu1 %vm412_vm0, %v5600_v1  ;;  %v1474_v51 = vsel %vm7528_vm6, %v1472_v3, %v1473_v2  ;;  %v1479_v1 = vrot.slane %v1477_v40, 4  ;;  %v1484_v24 = vrot.slane %v6981_v25, 5  ;;  %v5928_v40 = vcombine.low %v8218_v50, %v8221_v36  ;;  %v8241_v2 = vld [vmem:[%s7176_s28 + $0x40] sm:$0xf]  ;;  %6498 = vmatprep.mubr.msk.bf16.mxu0 %vm412_vm0, %v5926_v49  ;;  %v8267_v3 = vld [vmem:[%s7176_s28 + $0x4c] sm:$0xf] }
  0xae   : >> { %v5601_v56 = vcombine.low %v1471_v20, %v1474_v51  ;;  %9528 = vst [vmem:[#allocation31_spill] sm:$0xff] %v8241_v2  ;;  %v5592_v51 = vrot.slane %v6982_v8, 9  ;;  %v6983_v20 = vld [vmem:[%s7431_s23 + $0x34] sm:$0xf]  ;;  %v1494_v49 = vrot.slane %v7790_v42, 5  ;;  %9530 = vst [vmem:[#allocation25_spill] sm:$0xff] %v8267_v3 }
  0xaf   : >> { %v1481_v21 = vsel %vm7528_vm6, %v1479_v1, %v1480_v4  ;;  %v1486_v33 = vrot.slane %v1484_v24, 4  ;;  %v1491_v4 = vrot.slane %v6983_v20, 5  ;;  %v8248_v1 = vsel %vm7528_vm6, %v5591_v48, %v1484_v24  ;;  %v8264_v48 = vld [vmem:[%s7176_s28 + $0x48] sm:$0xf]  ;;  %v6984_v62 = vld [vmem:[%s7431_s23 + $0x3c] sm:$0xf] }
  0xb0   : >> { %v5602_v25 = vcombine.low %v1478_v18, %v1481_v21  ;;  %v6934_v18 = vld [vmem:[%s9354_s3 + $0x28] sm:$0xff]   ;;  %9529 = vst [vmem:[#allocation24_spill] sm:$0xff] %v8264_v48  ;;  %v5593_v7 = vrot.slane %v6984_v62, 9  ;;  %v1501_v36 = vrot.slane %v7821_v31, 5  ;;  %v8287_v31 = vld [vmem:[%s7176_s28 + $0x58] sm:$0xf] }
  0xb1   : >> { %v8258_v21 = vsel %vm7528_vm6, %v1486_v33, %v1487_v17  ;;  %v1493_v8 = vrot.slane %v1491_v4, 4  ;;  %v6985_v17 = vld [vmem:[%s7431_s23 + $0x40] sm:$0xf] }
  0xb2   : >> { %v1498_v33 = vrot.slane %v6985_v17, 5  ;;  %v5603_v24 = vcombine.low %v8248_v1, %v8258_v21  ;;  %v8284_v17 = vld [vmem:[%s7176_s28 + $0x54] sm:$0xf] }
  0xb3   : >> { %v1495_v42 = vsel %vm7528_vm6, %v1493_v8, %v1494_v49  ;;  %v6986_v49 = vld [vmem:[%s7431_s23 + $0x48] sm:$0xf]  ;;  %v6987_v8 = vld [vmem:[%s7431_s23 + $0x4c] sm:$0xf] }
  0xb4   : >> { %6319 = vmatmul.mubr.msk.bf16.vlgmr.msra.gmra.mrb[0].mxu1 %vm412_vm0, %v5601_v56  ;;  %v1492_v56 = vsel %vm7528_vm6, %v5592_v51, %v1491_v4  ;;  %v1500_v20 = vrot.slane %v1498_v33, 4  ;;  %v6936_v4 = vld [vmem:[%s9353_s2 + $0x78] sm:$0xff]   ;;  %v8298_v1 = vsel %vm7528_vm6, %v5593_v7, %v1498_v33  ;;  %v5594_v21 = vrot.slane %v6986_v49, 9  ;;  %v8320_v49 = vld [vmem:[%s7176_s28 + $0x60] sm:$0xf]  ;;  %v8333_v33 = vld [vmem:[%s9354_s3 + $0x70] sm:$0xff]  }
  0xb5   : >> { %6322 = vmatprep.mubr.msk.bf16.mxu1 %vm412_vm0, %v5602_v25  ;;  %6335 = vmatpush3.bf16.msra.mxu1 %v8058_v35  ;;  %v1505_v62 = vrot.slane %v6987_v8, 5  ;;  %v1508_v35 = vrot.slane %v7850_v46, 5  ;;  %v8306_v25 = vld [vmem:[%s9353_s2 + $0x30] sm:$0xff]   ;;  %v9531_v51 = vcombine.low %v8196_v27, %v8199_v60  ;;  %v5604_v50 = vcombine.low %v1492_v56, %v1495_v42  ;;  %v8323_v8 = vld [vmem:[%s7176_s28 + $0x64] sm:$0xf] }
  0xb6   : >> { %6336 = vmatprep.subr.bf16.mxu1 %v6934_v18  ;;  %v8314_v7 = vsel %vm7528_vm6, %v1500_v20, %v1501_v36  ;;  %v6988_v56 = vld [vmem:[%s7431_s23 + $0x54] sm:$0xf]  ;;  %v6989_v36 = vld [vmem:[%s7431_s23 + $0x58] sm:$0xf]  ;;  %v8342_v20 = vld [vmem:[%s7176_s28 + $0x6c] sm:$0xf] }
  0xb7   : >> { %6499 = vmatmul.mubr.msk.bf16.vlgmr.msra.gmra.mrb[0].mxu0 %vm412_vm0, %v9531_v51  ;;  %v1507_v42 = vrot.slane %v1505_v62, 4  ;;  %v5595_v51 = vrot.slane %v6988_v56, 9  ;;  %v5605_v46 = vcombine.low %v8298_v1, %v8314_v7  ;;  %v1512_v60 = vrot.slane %v6989_v36, 5  ;;  %v8345_v56 = vld [vmem:[%s7176_s28 + $0x70] sm:$0xf]  ;;  %v9532_v7 = vld [vmem:[#allocation3_spill] sm:$0xff] }
  0xb8   : >> { %6515 = vmatpush3.bf16.msra.mxu0 %v8074_v61  ;;  %6502 = vmatprep.mubr.msk.bf16.mxu0 %vm412_vm0, %v5928_v40  ;;  %v1506_v61 = vsel %vm7528_vm6, %v5594_v21, %v1505_v62  ;;  %v9533_v62 = vrot.slane %v9532_v7, 5 }
  0xb9   : >> { %6516 = vmatprep.subr.bf16.mxu0 %v6936_v4  ;;  %6337 = vmatpush3.bf16.msra.mxu1 %v6934_v18  ;;  %v1509_v27 = vsel %vm7528_vm6, %v1507_v42, %v1508_v35  ;;  %v9534_v18 = vld [vmem:[#allocation2_spill] sm:$0xff]  ;;  %v1514_v40 = vrot.slane %v1512_v60, 4  ;;  %v1708_v42 = vrot.slane %v7900_v47, 5  ;;  %v9537_v35 = vld [vmem:[#allocation7_spill] sm:$0xff]  ;;  %v9543_v47 = vshll.u32 %v7913_v28, 16 }
  0xba   : >> { %v9535_v21 = vrot.slane %v9534_v18, 9  ;;  %6354 = vmatprep.subr.bf16.mxu1 %v8306_v25  ;;  %v5606_v7 = vcombine.low %v1506_v61, %v1509_v27  ;;  %v8368_v18 = vsel %vm7528_vm6, %v5595_v51, %v1512_v60  ;;  %v9538_v27 = vld [vmem:[#allocation5_spill] sm:$0xff]  ;;  %v1715_v51 = vrot.slane %v7907_v53, 5  ;;  %v9545_v53 = vld [vmem:[#allocation14_spill] sm:$0xff] }
  0xbb   : >> { %v8379_v52 = vsel %vm7528_vm6, %v9537_v35, %v1708_v42  ;;  %v8394_v35 = vsel %vm7528_vm6, %v1514_v40, %v1515_v23  ;;  %v4055_v23 = vshll.u32 %v7925_v9, 16  ;;  %v9546_v40 = vshrl.u32 %v7925_v9, 16  ;;  %v6990_v42 = vld [vmem:[%s7176_s28 + $0x18] sm:$0xf] }
  0xbc   : >> { %v8358_v36 = vsel %vm7528_vm6, %v9535_v21, %v9533_v62  ;;  %6323 = vmatmul.mubr.msk.bf16.gmra.mrb[4].mxu1 %vm412_vm0, %v5603_v24  ;;  %6517 = vmatpush3.bf16.msra.mxu0 %v6936_v4  ;;  %v8374_v21 = vld [vmem:[%s7431_s23 + $0x20] sm:$0x1]  ;;  %v9540_v4 = vld [vmem:[#allocation4_spill] sm:$0xff]  ;;  %v4051_v62 = vrot.slane %v9543_v47, 5  ;;  %v5620_v1 = vrot.slane %v6990_v42, 9  ;;  %v9549_v42 = vshll.u32 %v7951_v58, 16 }
  0xbd   : >> { %6326 = vmatprep.mubr.msk.bf16.mxu1 %vm412_vm0, %v5604_v50  ;;  %9536 = vst [vmem:[#allocation10_spill] sm:$0xff] %v8374_v21  ;;  %v9539_v50 = vrot.slane %v9538_v27, 5  ;;  %v9541_v61 = vrot.slane %v9540_v4, 9  ;;  %6534 = vmatprep.subr.bf16.mxu0 %v8333_v33  ;;  %v9542_v27 = vshrl.u32 %v7913_v28, 16  ;;  %v4061_v24 = vrot.slane %v9546_v40, 4 }
  0xbe   : >> { %v9547_v28 = vcombine.low %v8264_v48, %v8267_v3  ;;  %v4057_v40 = vrot.slane %v4055_v23, 5  ;;  %v9548_v3 = vshrl.u32 %v7951_v58, 16  ;;  %v4079_v9 = vshll.u32 %v7960_v32, 16 }
  0xbf   : >> { %v8388_v60 = vsel %vm7528_vm6, %v9541_v61, %v9539_v50  ;;  %v4048_v4 = vrot.slane %v9542_v27, 4  ;;  %v9544_v50 = vcombine.low %v8238_v15, %v8241_v2  ;;  %v8409_v61 = vsel %vm7528_vm6, %v9545_v53, %v1715_v51  ;;  %v8424_v53 = vld [vmem:[%s7431_s23 + $0x2c] sm:$0x1] }
  0xc0   : >> { %v4065_v27 = vshll.u32 %v8374_v21, 16  ;;  %v1719_v51 = vrot.slane %v7974_v16, 5  ;;  %v1722_v21 = vrot.slane %v7948_v54, 5  ;;  %v4072_v48 = vrot.slane %v9548_v3, 4 }
  0xc1   : >> { %6503 = vmatmul.mubr.msk.bf16.gmra.mrb[4].mxu0 %vm412_vm0, %v9544_v50  ;;  %v4052_v50 = vor.u32 %v4051_v62, %v4048_v4  ;;  %v4075_v4 = vrot.slane %v9549_v42, 5  ;;  %v4062_v16 = vor.u32 %v4061_v24, %v4057_v40  ;;  %v9550_v23 = vshrl.u32 %v7960_v32, 16 }
  0xc2   : >> { %6506 = vmatprep.mubr.msk.bf16.mxu0 %vm412_vm0, %v9547_v28  ;;  %v5607_v28 = vcombine.low %v8368_v18, %v8394_v35  ;;  %v1721_v62 = vrot.slane %v1719_v51, 4  ;;  %v4089_v54 = vshll.u32 %v8424_v53, 16  ;;  %v4067_v3 = vrot.slane %v4065_v27, 5  ;;  %v6991_v35 = vld [vmem:[%s7176_s28 + $0x24] sm:$0xf] }
  0xc3   : >> { %v4053_v47 = vrot.slane %v4052_v50, 4  ;;  %v4085_v2 = vrot.slane %v9550_v23, 4  ;;  %v8442_v18 = vsel %vm7528_vm6, %v5620_v1, %v1719_v51  ;;  %v4076_v58 = vor.u32 %v4075_v4, %v4072_v48  ;;  %v8460_v4 = vld [vmem:[%s7431_s23 + $0x38] sm:$0x1] }
  0xc4   : >> { %6327 = vmatmul.mubr.msk.bf16.gmra.mrb[8].mxu1 %vm412_vm0, %v5605_v46  ;;  %v5621_v50 = vrot.slane %v6991_v35, 9  ;;  %v4063_v24 = vrot.slane %v4062_v16, 4  ;;  %v8449_v32 = vsel %vm7528_vm6, %v1721_v62, %v1722_v21  ;;  %v4081_v42 = vrot.slane %v4079_v9, 5 }
  0xc5   : >> { %6330 = vmatprep.mubr.msk.bf16.mxu1 %vm412_vm0, %v5606_v7  ;;  %v4058_v46 = vsel %vm7288_vm3, %v4053_v47, %v4057_v40  ;;  %v4077_v23 = vrot.slane %v4076_v58, 4  ;;  %v1726_v7 = vrot.slane %v7996_v12, 5  ;;  %v1729_v27 = vrot.slane %v7963_v59, 5 }
  0xc6   : >> { %v9551_v1 = vshrl.u32 %v7980_v55, 16  ;;  %v9552_v48 = vcombine.low %v8284_v17, %v8287_v31  ;;  %v4086_v47 = vor.u32 %v4085_v2, %v4081_v42  ;;  %v4091_v40 = vrot.slane %v4089_v54, 5 }
  0xc7   : >> { %v9553_v21 = vshll.u32 %v7980_v55, 16  ;;  %v4103_v62 = vshll.u32 %v7983_v5, 16  ;;  %v9554_v59 = vcombine.low %v8320_v49, %v8323_v8  ;;  %v4068_v12 = vsel %vm7288_vm3, %v4063_v24, %v4067_v3 }
  0xc8   : >> { %v4096_v51 = vrot.slane %v9551_v1, 4  ;;  %v5632_v2 = vcombine.low %v8442_v18, %v8449_v32  ;;  %v8475_v16 = vsel %vm7528_vm6, %v5621_v50, %v1726_v7  ;;  %v1728_v55 = vrot.slane %v1726_v7, 4 }
  0xc9   : >> { %6507 = vmatmul.mubr.msk.bf16.gmra.mrb[8].mxu0 %vm412_vm0, %v9552_v48  ;;  %v4099_v9 = vrot.slane %v9553_v21, 5  ;;  %v4087_v54 = vrot.slane %v4086_v47, 4  ;;  %v4105_v35 = vrot.slane %v4103_v62, 5  ;;  %v9555_v1 = vshrl.u32 %v7983_v5, 16  ;;  %v6992_v5 = vld [vmem:[%s7176_s28 + $0x30] sm:$0xf] }
  0xca   : >> { %6510 = vmatprep.mubr.msk.bf16.mxu0 %vm412_vm0, %v9554_v59  ;;  %v4082_v21 = vsel %vm7288_vm3, %v4077_v23, %v4081_v42  ;;  %v8483_v3 = vsel %vm7528_vm6, %v1728_v55, %v1729_v27  ;;  %v4113_v18 = vshll.u32 %v8460_v4, 16  ;;  %v1733_v50 = vrot.slane %v8032_v29, 5  ;;  %v8492_v47 = vld [vmem:[%s7431_s23 + $0x44] sm:$0x1] }
  0xcb   : >> { %v4100_v58 = vor.u32 %v4099_v9, %v4096_v51  ;;  %v4109_v48 = vrot.slane %v9555_v1, 4  ;;  %v4092_v24 = vsel %vm7288_vm3, %v4087_v54, %v4091_v40  ;;  %v5622_v51 = vrot.slane %v6992_v5, 9 }
  0xcc   : >> { %6331 = vmatmul.mubr.msk.bf16.gmra.mrb[12].mxu1 %vm412_vm0, %v5607_v28  ;;  %v9556_v42 = vcombine.low %v8358_v36, %v8379_v52  ;;  %v5948_v23 = vcombine.low %v4058_v46, %v4068_v12  ;;  %v5633_v29 = vcombine.low %v8475_v16, %v8483_v3  ;;  %v4115_v28 = vrot.slane %v4113_v18, 5 }
  0xcd   : >> { %v4101_v32 = vrot.slane %v4100_v58, 4  ;;  %v4110_v7 = vor.u32 %v4109_v48, %v4105_v35  ;;  %v1735_v27 = vrot.slane %v1733_v50, 4  ;;  %v5949_v9 = vcombine.low %v4082_v21, %v4092_v24  ;;  %v6993_v48 = vld [vmem:[%s7176_s28 + $0x3c] sm:$0xf] }
  0xce   : >> { %6338 = vmatprep.mubr.msk.bf16.mxu1 %vm412_vm0, %v9556_v42  ;;  %v1736_v62 = vrot.slane %v8010_v14, 5  ;;  %v9557_v59 = vshrl.u32 %v8016_v6, 16  ;;  %v9558_v54 = vshll.u32 %v8016_v6, 16  ;;  %v4127_v52 = vshll.u32 %v8026_v0, 16  ;;  %v6942_v42 = vld [vmem:[%s9353_s2 + $0x38] sm:$0xff]  }
  0xcf   : >> { %v4111_v40 = vrot.slane %v4110_v7, 4  ;;  %v9559_v46 = vshrl.u32 %v8026_v0, 16  ;;  %v4137_v58 = vshll.u32 %v8492_v47, 16  ;;  %v9560_v1 = vcombine.low %v8342_v20, %v8345_v56 }
  0xd0   : >> { %v4120_v55 = vrot.slane %v9557_v59, 4  ;;  %v4123_v36 = vrot.slane %v9558_v54, 5  ;;  %v4106_v14 = vsel %vm7288_vm3, %v4101_v32, %v4105_v35  ;;  %v8517_v6 = vsel %vm7528_vm6, %v5622_v51, %v1733_v50  ;;  %v8529_v35 = vld [vmem:[%s7431_s23 + $0x50] sm:$0x1] }
  0xd1   : >> { %v4133_v12 = vrot.slane %v9559_v46, 4  ;;  %6511 = vmatmul.mubr.msk.bf16.gmra.mrb[12].mxu0 %vm412_vm0, %v9560_v1  ;;  %v5623_v21 = vrot.slane %v6993_v48, 9  ;;  %v1740_v18 = vrot.slane %v8080_v11, 5  ;;  %v4116_v0 = vsel %vm7288_vm3, %v4111_v40, %v4115_v28  ;;  %v6994_v48 = vld [vmem:[%s7176_s28 + $0x48] sm:$0xf] }
  0xd2   : >> { %6518 = vmatprep.mubr.msk.bf16.mxu0 %vm412_vm0, %v5948_v23  ;;  %v8526_v24 = vsel %vm7528_vm6, %v1735_v27, %v1736_v62  ;;  %v4124_v7 = vor.u32 %v4123_v36, %v4120_v55  ;;  %v4129_v5 = vrot.slane %v4127_v52, 5  ;;  %v4139_v32 = vrot.slane %v4137_v58, 5 }
  0xd3   : >> { %v8533_v50 = vsel %vm7528_vm6, %v5623_v21, %v1740_v18  ;;  %v1742_v51 = vrot.slane %v1740_v18, 4  ;;  %v1743_v11 = vrot.slane %v8042_v30, 5  ;;  %v9561_v27 = vshrl.u32 %v8066_v26, 16  ;;  %v8571_v18 = vld [vmem:[%s7431_s23 + $0x5c] sm:$0x1] }
  0xd4   : >> { %v4125_v23 = vrot.slane %v4124_v7, 4  ;;  %v4134_v28 = vor.u32 %v4133_v12, %v4129_v5  ;;  %v9562_v62 = vshll.u32 %v8066_v26, 16  ;;  %v9563_v55 = vcombine.low %v8388_v60, %v8409_v61  ;;  %v8578_v7 = vld [vmem:[%s9354_s3 + $0x30] sm:$0xff]  }
  0xd5   : >> { %v4144_v40 = vrot.slane %v9561_v27, 4  ;;  %v8549_v30 = vsel %vm7528_vm6, %v1742_v51, %v1743_v11  ;;  %v4151_v54 = vshll.u32 %v8069_v45, 16  ;;  %v9564_v36 = vshrl.u32 %v8069_v45, 16  ;;  %v6943_v45 = vld [vmem:[%s9354_s3 + $0x78] sm:$0xff]  }
  0xd6   : >> { %v4147_v59 = vrot.slane %v9562_v62, 5  ;;  %6339 = vmatmul.mubr.msk.bf16.vlgmr.msra.gmra.mrb[0].mxu1 %vm412_vm0, %v9563_v55  ;;  %v4161_v46 = vshll.u32 %v8529_v35, 16  ;;  %v5950_v26 = vcombine.low %v4106_v14, %v4116_v0  ;;  %v5634_v60 = vcombine.low %v8517_v6, %v8526_v24 }
  0xd7   : >> { %v4157_v52 = vrot.slane %v9564_v36, 4  ;;  %6342 = vmatprep.mubr.msk.bf16.mxu1 %vm412_vm0, %v5632_v2  ;;  %6355 = vmatpush3.bf16.msra.mxu1 %v8306_v25  ;;  %v4135_v61 = vrot.slane %v4134_v28, 4  ;;  %v4130_v58 = vsel %vm7288_vm3, %v4125_v23, %v4129_v5  ;;  %v4153_v1 = vrot.slane %v4151_v54, 5  ;;  %v6995_v54 = vld [vmem:[%s7176_s28 + $0x54] sm:$0xf] }
  0xd8   : >> { %v4148_v12 = vor.u32 %v4147_v59, %v4144_v40  ;;  %6356 = vmatprep.subr.bf16.mxu1 %v6942_v42  ;;  %v5624_v2 = vrot.slane %v6994_v48, 9  ;;  %v1747_v21 = vrot.slane %v8110_v38, 5  ;;  %v5635_v14 = vcombine.low %v8533_v50, %v8549_v30 }
  0xd9   : >> { %v4140_v25 = vsel %vm7288_vm3, %v4135_v61, %v4139_v32  ;;  %v9565_v0 = vshrl.u32 %v8093_v37, 16  ;;  %6519 = vmatmul.mubr.msk.bf16.vlgmr.msra.gmra.mrb[0].mxu0 %vm412_vm0, %v5949_v9  ;;  %v4158_v38 = vor.u32 %v4157_v52, %v4153_v1  ;;  %v4163_v5 = vrot.slane %v4161_v46, 5  ;;  %v8611_v61 = vld [vmem:[%s7431_s23 + $0x68] sm:$0x1] }
  0xda   : >> { %v4149_v6 = vrot.slane %v4148_v12, 4  ;;  %v1749_v51 = vrot.slane %v1747_v21, 4  ;;  %v1750_v32 = vrot.slane %v8087_v63, 5  ;;  %6535 = vmatpush3.bf16.msra.mxu0 %v8333_v33  ;;  %6522 = vmatprep.mubr.msk.bf16.mxu0 %vm412_vm0, %v5950_v26  ;;  %v5951_v11 = vcombine.low %v4130_v58, %v4140_v25 }
  0xdb   : >> { %v4168_v24 = vrot.slane %v9565_v0, 4  ;;  %v9566_v23 = vshll.u32 %v8093_v37, 16  ;;  %v4175_v27 = vshll.u32 %v8099_v19, 16  ;;  %v9567_v40 = vshrl.u32 %v8099_v19, 16  ;;  %6536 = vmatprep.subr.bf16.mxu0 %v6943_v45  ;;  %6357 = vmatpush3.bf16.msra.mxu1 %v6942_v42  ;;  %v8597_v37 = vld [vmem:[%s9353_s2 + $0x80] sm:$0xff]  }
  0xdc   : >> { %v4154_v9 = vsel %vm7288_vm3, %v4149_v6, %v4153_v1  ;;  %v4159_v59 = vrot.slane %v4158_v38, 4  ;;  %v1748_v63 = vsel %vm7528_vm6, %v5624_v2, %v1747_v21  ;;  %v4185_v33 = vshll.u32 %v8571_v18, 16  ;;  %6374 = vmatprep.subr.bf16.mxu1 %v8578_v7  ;;  %v8632_v38 = vld [vmem:[%s7431_s23 + $0x74] sm:$0x1] }
  0xdd   : >> { %v4171_v28 = vrot.slane %v9566_v23, 5  ;;  %v4181_v62 = vrot.slane %v9567_v40, 4  ;;  %v4177_v19 = vrot.slane %v4175_v27, 5  ;;  %v5625_v36 = vrot.slane %v6995_v54, 9 }
  0xde   : >> { %v1754_v52 = vrot.slane %v8140_v39, 5  ;;  %6343 = vmatmul.mubr.msk.bf16.gmra.mrb[4].mxu1 %vm412_vm0, %v5633_v29  ;;  %v4164_v42 = vsel %vm7288_vm3, %v4159_v59, %v4163_v5  ;;  %v1751_v46 = vsel %vm7528_vm6, %v1749_v51, %v1750_v32  ;;  %v4187_v26 = vrot.slane %v4185_v33, 5  ;;  %6537 = vmatpush3.bf16.msra.mxu0 %v6943_v45 }
  0xdf   : >> { %v4172_v55 = vor.u32 %v4171_v28, %v4168_v24  ;;  %v9568_v12 = vshrl.u32 %v8128_v57, 16  ;;  %6346 = vmatprep.mubr.msk.bf16.mxu1 %vm412_vm0, %v5634_v60  ;;  %v5952_v39 = vcombine.low %v4154_v9, %v4164_v42  ;;  %v4182_v48 = vor.u32 %v4181_v62, %v4177_v19  ;;  %6554 = vmatprep.subr.bf16.mxu0 %v8597_v37  ;;  %v8645_v28 = vld [vmem:[%s7431_s23 + $0x10] sm:$0xf]  ;;  %v8656_v42 = vld [vmem:[%s7176_s28 + $0x20] sm:$0x1] }
  0xe0   : >> { %v1757_v16 = vrot.slane %v8119_v44, 5  ;;  %v1756_v3 = vrot.slane %v1754_v52, 4  ;;  %v9569_v29 = vshll.u32 %v8128_v57, 16  ;;  %v4199_v21 = vshll.u32 %v8144_v22, 16 }
  0xe1   : >> { %v4192_v58 = vrot.slane %v9568_v12, 4  ;;  %v4173_v1 = vrot.slane %v4172_v55, 4  ;;  %v9570_v25 = vshrl.u32 %v8144_v22, 16  ;;  %v5636_v60 = vcombine.low %v1748_v63, %v1751_v46  ;;  %6523 = vmatmul.mubr.msk.bf16.gmra.mrb[4].mxu0 %vm412_vm0, %v5951_v11  ;;  %v8642_v11 = vld [vmem:[%s7431_s23 + $0xc] sm:$0xf] }
  0xe2   : >> { %v4195_v2 = vrot.slane %v9569_v29, 5  ;;  %v4183_v0 = vrot.slane %v4182_v48, 4  ;;  %v8625_v45 = vsel %vm7528_vm6, %v5625_v36, %v1754_v52  ;;  %v4209_v44 = vshll.u32 %v8611_v61, 16  ;;  %6526 = vmatprep.mubr.msk.bf16.mxu0 %vm412_vm0, %v5952_v39 }
  0xe3   : >> { %v4205_v6 = vrot.slane %v9570_v25, 4  ;;  %v4178_v57 = vsel %vm7288_vm3, %v4173_v1, %v4177_v19  ;;  %v4201_v22 = vrot.slane %v4199_v21, 5  ;;  %v9571_v5 = vshrl.u32 %v8153_v43, 16 }
  0xe4   : >> { %v4196_v24 = vor.u32 %v4195_v2, %v4192_v58  ;;  %v4188_v32 = vsel %vm7288_vm3, %v4183_v0, %v4187_v26  ;;  %v1758_v23 = vsel %vm7528_vm6, %v1756_v3, %v1757_v16  ;;  %v5704_v27 = vcombine.low %v8642_v11, %v8645_v28  ;;  %v9576_v16 = vld [vmem:[#allocation26_spill] sm:$0xff] }
  0xe5   : >> { %v4216_v51 = vrot.slane %v9571_v5, 4  ;;  %v9572_v40 = vshll.u32 %v8153_v43, 16  ;;  %v4206_v59 = vor.u32 %v4205_v6, %v4201_v22  ;;  %v4211_v63 = vrot.slane %v4209_v44, 5 }
  0xe6   : >> { %v4197_v9 = vrot.slane %v4196_v24, 4  ;;  %v4223_v33 = vshll.u32 %v8156_v34, 16  ;;  %v5953_v55 = vcombine.low %v4178_v57, %v4188_v32  ;;  %v9573_v54 = vshrl.u32 %v8156_v34, 16  ;;  %6347 = vmatmul.mubr.msk.bf16.gmra.mrb[8].mxu1 %vm412_vm0, %v5635_v14  ;;  %v9578_v24 = vld [vmem:[#allocation27_spill] sm:$0xff] }
  0xe7   : >> { %v4219_v62 = vrot.slane %v9572_v40, 5  ;;  %v4233_v52 = vshll.u32 %v8632_v38, 16  ;;  %v4207_v46 = vrot.slane %v4206_v59, 4  ;;  %v9574_v12 = vshrl.u32 %v8169_v41, 16  ;;  %6350 = vmatprep.mubr.msk.bf16.mxu1 %vm412_vm0, %v5636_v60  ;;  %v9581_v40 = vld [vmem:[#allocation28_spill] sm:$0xff] }
  0xe8   : >> { %v4229_v36 = vrot.slane %v9573_v54, 4  ;;  %v4202_v43 = vsel %vm7288_vm3, %v4197_v9, %v4201_v22  ;;  %v4225_v26 = vrot.slane %v4223_v33, 5  ;;  %v9575_v1 = vshll.u32 %v8169_v41, 16  ;;  %v8677_v41 = vld [vmem:[%s7176_s28 + $0x2c] sm:$0x1] }
  0xe9   : >> { %v4220_v19 = vor.u32 %v4219_v62, %v4216_v51  ;;  %v4418_v58 = vrot.slane %v9574_v12, 4  ;;  %v4235_v39 = vrot.slane %v4233_v52, 5  ;;  %v4425_v50 = vshll.u32 %v9576_v16, 16  ;;  %6527 = vmatmul.mubr.msk.bf16.gmra.mrb[8].mxu0 %vm412_vm0, %v5953_v55  ;;  %v8691_v59 = vld [vmem:[%s7431_s23 + $0x18] sm:$0xf] }
  0xea   : >> { %v4421_v48 = vrot.slane %v9575_v1, 5  ;;  %v4212_v30 = vsel %vm7288_vm3, %v4207_v46, %v4211_v63  ;;  %v4230_v14 = vor.u32 %v4229_v36, %v4225_v26  ;;  %v9577_v3 = vshrl.u32 %v9576_v16, 16  ;;  %v8694_v63 = vld [vmem:[%s7431_s23 + $0x1c] sm:$0xf] }
  0xeb   : >> { %v4221_v34 = vrot.slane %v4220_v19, 4  ;;  %v4435_v2 = vshll.u32 %v8656_v42, 16  ;;  %v5637_v21 = vcombine.low %v8625_v45, %v1758_v23  ;;  %v5954_v25 = vcombine.low %v4202_v43, %v4212_v30 }
  0xec   : >> { %v4431_v29 = vrot.slane %v9577_v3, 4  ;;  %v4422_v6 = vor.u32 %v4421_v48, %v4418_v58  ;;  %v4427_v60 = vrot.slane %v4425_v50, 5  ;;  %v4231_v44 = vrot.slane %v4230_v14, 4  ;;  %v9586_v14 = vld [vmem:[#allocation30_spill] sm:$0xff] }
  0xed   : >> { %v4226_v0 = vsel %vm7288_vm3, %v4221_v34, %v4225_v26  ;;  %v4437_v57 = vrot.slane %v4435_v2, 5  ;;  %v9579_v22 = vshrl.u32 %v9578_v24, 16  ;;  %6530 = vmatprep.mubr.msk.bf16.mxu0 %vm412_vm0, %v5954_v25  ;;  %v9580_v32 = vshll.u32 %v9578_v24, 16  ;;  %v8704_v26 = vld [vmem:[%s7176_s28 + $0x38] sm:$0x1] }
  0xee   : >> { %v4423_v45 = vrot.slane %v4422_v6, 4  ;;  %v4432_v51 = vor.u32 %v4431_v29, %v4427_v60  ;;  %v4449_v62 = vshll.u32 %v9581_v40, 16  ;;  %v4236_v9 = vsel %vm7288_vm3, %v4231_v44, %v4235_v39  ;;  %6351 = vmatmul.mubr.msk.bf16.gmra.mrb[12].mxu1 %vm412_vm0, %v5637_v21  ;;  %v9583_v34 = vld [vmem:[#allocation29_spill] sm:$0xff]  ;;  %v8722_v44 = vld [vmem:[%s7431_s23 + $0x24] sm:$0xf] }
  0xef   : >> { %v4442_v5 = vrot.slane %v9579_v22, 4  ;;  %v4445_v23 = vrot.slane %v9580_v32, 5  ;;  %v5705_v33 = vcombine.low %v8691_v59, %v8694_v63  ;;  %v9582_v55 = vshrl.u32 %v9581_v40, 16  ;;  %6358 = vmatprep.mubr.msk.bf16.mxu1 %vm412_vm0, %v5704_v27  ;;  %v8725_v24 = vld [vmem:[%s7431_s23 + $0x28] sm:$0xf] }
  0xf0   : >> { %v4459_v54 = vshll.u32 %v8677_v41, 16  ;;  %v5955_v36 = vcombine.low %v4226_v0, %v4236_v9  ;;  %v4428_v52 = vsel %vm7288_vm3, %v4423_v45, %v4427_v60  ;;  %v4433_v43 = vrot.slane %v4432_v51, 4  ;;  %v8719_v0 = vld [vmem:[%s7176_s28 + $0x44] sm:$0x1] }
  0xf1   : >> { %v4455_v19 = vrot.slane %v9582_v55, 4  ;;  %v4446_v46 = vor.u32 %v4445_v23, %v4442_v5  ;;  %v4451_v12 = vrot.slane %v4449_v62, 5  ;;  %v9584_v39 = vshrl.u32 %v9583_v34, 16  ;;  %v9590_v55 = vld [vmem:[#allocation31_spill] sm:$0xff] }
  0xf2   : >> { %v4461_v58 = vrot.slane %v4459_v54, 5  ;;  %v9585_v48 = vshll.u32 %v9583_v34, 16  ;;  %v4438_v50 = vsel %vm7288_vm3, %v4433_v43, %v4437_v57  ;;  %v4473_v3 = vshll.u32 %v9586_v14, 16  ;;  %6531 = vmatmul.mubr.msk.bf16.gmra.mrb[12].mxu0 %vm412_vm0, %v5955_v36  ;;  %v6952_v34 = vld [vmem:[%s9354_s3 + $0x38] sm:$0xff]  }
  0xf3   : >> { %v4466_v1 = vrot.slane %v9584_v39, 4  ;;  %v4447_v30 = vrot.slane %v4446_v46, 4  ;;  %v9587_v29 = vshrl.u32 %v9586_v14, 16  ;;  %v5970_v21 = vcombine.low %v4428_v52, %v4438_v50  ;;  %v8750_v39 = vld [vmem:[%s7176_s28 + $0x50] sm:$0x1] }
  0xf4   : >> { %v4469_v16 = vrot.slane %v9585_v48, 5  ;;  %v4456_v25 = vor.u32 %v4455_v19, %v4451_v12  ;;  %v4483_v60 = vshll.u32 %v8704_v26, 16  ;;  %v5706_v27 = vcombine.low %v8722_v44, %v8725_v24 }
  0xf5   : >> { %v4479_v2 = vrot.slane %v9587_v29, 4  ;;  %v4452_v57 = vsel %vm7288_vm3, %v4447_v30, %v4451_v12  ;;  %v4475_v22 = vrot.slane %v4473_v3, 5  ;;  %v9588_v5 = vshrl.u32 %v8238_v15, 16  ;;  %6538 = vmatprep.mubr.msk.bf16.mxu0 %vm412_vm0, %v5970_v21  ;;  %v9595_v21 = vld [vmem:[#allocation25_spill] sm:$0xff] }
  0xf6   : >> { %v4470_v6 = vor.u32 %v4469_v16, %v4466_v1  ;;  %v4457_v51 = vrot.slane %v4456_v25, 4  ;;  %v4485_v23 = vrot.slane %v4483_v60, 5  ;;  %v9589_v40 = vshll.u32 %v8238_v15, 16  ;;  %6359 = vmatmul.mubr.msk.bf16.vlgmr.msra.gmra.mrb[0].mxu1 %vm412_vm0, %v5705_v33 }
  0xf7   : >> { %v4490_v45 = vrot.slane %v9588_v5, 4  ;;  %v4480_v9 = vor.u32 %v4479_v2, %v4475_v22  ;;  %v4497_v19 = vshll.u32 %v9590_v55, 16  ;;  %v9591_v54 = vshrl.u32 %v9590_v55, 16  ;;  %6362 = vmatprep.mubr.msk.bf16.mxu1 %vm412_vm0, %v5706_v27  ;;  %6375 = vmatpush3.bf16.msra.mxu1 %v8578_v7  ;;  %v8766_v5 = vld [vmem:[%s7431_s23 + $0x30] sm:$0xf] }
  0xf8   : >> { %v4471_v32 = vrot.slane %v4470_v6, 4  ;;  %v4493_v62 = vrot.slane %v9589_v40, 5  ;;  %v4507_v43 = vshll.u32 %v8719_v0, 16  ;;  %v4597_v46 = vshrl.u32 %v8345_v56, 16  ;;  %6376 = vmatprep.subr.bf16.mxu1 %v6952_v34  ;;  %v8777_v40 = vld [vmem:[%s7176_s28 + $0x5c] sm:$0x1] }
  0xf9   : >> { %v4503_v52 = vrot.slane %v9591_v54, 4  ;;  %v4462_v36 = vsel %vm7288_vm3, %v4457_v51, %v4461_v58  ;;  %v4481_v48 = vrot.slane %v4480_v9, 4  ;;  %v4499_v16 = vrot.slane %v4497_v19, 5  ;;  %v9592_v58 = vld [vmem:[#allocation24_spill] sm:$0xff]  ;;  %9597 = vst [vmem:[#allocation9_spill] sm:$0xff] %v8777_v40 }
  0xfa   : >> { %v4476_v12 = vsel %vm7288_vm3, %v4471_v32, %v4475_v22  ;;  %v4494_v15 = vor.u32 %v4493_v62, %v4490_v45  ;;  %v5971_v1 = vcombine.low %v4452_v57, %v4462_v36  ;;  %v4509_v50 = vrot.slane %v4507_v43, 5  ;;  %v8769_v45 = vld [vmem:[%s7431_s23 + $0x34] sm:$0xf] }
  0xfb   : >> { %v9593_v14 = vshrl.u32 %v9592_v58, 16  ;;  %v9594_v29 = vshll.u32 %v9592_v58, 16  ;;  %v4521_v25 = vshll.u32 %v9595_v21, 16  ;;  %v4486_v6 = vsel %vm7288_vm3, %v4481_v48, %v4485_v23  ;;  %v6953_v23 = vld [vmem:[%s9353_s2 + $0x88] sm:$0xff]   ;;  %6377 = vmatpush3.bf16.msra.mxu1 %v6952_v34 }
  0xfc   : >> { %v4495_v30 = vrot.slane %v4494_v15, 4  ;;  %v4504_v60 = vor.u32 %v4503_v52, %v4499_v16  ;;  %v9596_v33 = vshrl.u32 %v9595_v21, 16  ;;  %v4531_v22 = vshll.u32 %v8750_v39, 16  ;;  %v8786_v52 = vld [vmem:[%s9353_s2 + $0x40] sm:$0xff]   ;;  %6539 = vmatmul.mubr.msk.bf16.vlgmr.msra.gmra.mrb[0].mxu0 %vm412_vm0, %v5971_v1 }
  0xfd   : >> { %v4514_v3 = vrot.slane %v9593_v14, 4  ;;  %v4517_v2 = vrot.slane %v9594_v29, 5  ;;  %v5707_v51 = vcombine.low %v8766_v5, %v8769_v45  ;;  %v5972_v32 = vcombine.low %v4476_v12, %v4486_v6  ;;  %6555 = vmatpush3.bf16.msra.mxu0 %v8597_v37  ;;  %v8815_v6 = vld [vmem:[%s9354_s3 + $0x80] sm:$0xff]   ;;  %6394 = vmatprep.subr.bf16.mxu1 %v8786_v52 }
  0xfe   : >> { %v4527_v57 = vrot.slane %v9596_v33, 4  ;;  %v4523_v7 = vrot.slane %v4521_v25, 5  ;;  %v4500_v62 = vsel %vm7288_vm3, %v4495_v30, %v4499_v16  ;;  %v4505_v9 = vrot.slane %v4504_v60, 4  ;;  %v8795_v16 = vld [vmem:[%s7431_s23 + $0x3c] sm:$0xf]  ;;  %6556 = vmatprep.subr.bf16.mxu0 %v6953_v23 }
  0xff   : >> { %v4518_v27 = vor.u32 %v4517_v2, %v4514_v3  ;;  %v4533_v55 = vrot.slane %v4531_v22, 5  ;;  %v9598_v19 = vshrl.u32 %v8284_v17, 16  ;;  %v9599_v12 = vshll.u32 %v8284_v17, 16  ;;  %6542 = vmatprep.mubr.msk.bf16.mxu0 %vm412_vm0, %v5972_v32  ;;  %v8798_v30 = vld [vmem:[%s7431_s23 + $0x40] sm:$0xf]  ;;  %6363 = vmatmul.mubr.msk.bf16.gmra.mrb[4].mxu1 %vm412_vm0, %v5707_v51 }
 0x100   : >> { %v4528_v36 = vor.u32 %v4527_v57, %v4523_v7  ;;  %v4545_v48 = vshll.u32 %v8287_v31, 16  ;;  %v5708_v58 = vcombine.low %v8795_v16, %v8798_v30  ;;  %v4510_v1 = vsel %vm7288_vm3, %v4505_v9, %v4509_v50  ;;  %v8810_v25 = vld [vmem:[%s7176_s28 + $0x68] sm:$0x1] }
 0x101   : >> { %v4538_v54 = vrot.slane %v9598_v19, 4  ;;  %v4519_v43 = vrot.slane %v4518_v27, 4  ;;  %v4541_v15 = vrot.slane %v9599_v12, 5  ;;  %v9600_v17 = vshrl.u32 %v8287_v31, 16  ;;  %9601 = vst [vmem:[#allocation6_spill] sm:$0xff] %v8810_v25  ;;  %6557 = vmatpush3.bf16.msra.mxu0 %v6953_v23 }
 0x102   : >> { %v4555_v3 = vshll.u32 %v8777_v40, 16  ;;  %v5973_v29 = vcombine.low %v4500_v62, %v4510_v1  ;;  %v4529_v2 = vrot.slane %v4528_v36, 4  ;;  %v4547_v50 = vrot.slane %v4545_v48, 5  ;;  %6366 = vmatprep.mubr.msk.bf16.mxu1 %vm412_vm0, %v5708_v58  ;;  %v8834_v51 = vld [vmem:[%s7431_s23 + $0x48] sm:$0xf]  ;;  %6574 = vmatprep.subr.bf16.mxu0 %v8815_v6 }
 0x103   : >> { %v4551_v14 = vrot.slane %v9600_v17, 4  ;;  %v4524_v37 = vsel %vm7288_vm3, %v4519_v43, %v4523_v7  ;;  %v4542_v21 = vor.u32 %v4541_v15, %v4538_v54  ;;  %v9602_v60 = vshrl.u32 %v8320_v49, 16  ;;  %v8831_v43 = vld [vmem:[%s7176_s28 + $0x74] sm:$0x1]  ;;  %v8837_v36 = vld [vmem:[%s7431_s23 + $0x4c] sm:$0xf] }
 0x104   : >> { %v4557_v31 = vrot.slane %v4555_v3, 5  ;;  %v9603_v57 = vshll.u32 %v8320_v49, 16  ;;  %v4534_v34 = vsel %vm7288_vm3, %v4529_v2, %v4533_v55  ;;  %v4569_v27 = vshll.u32 %v8323_v8, 16  ;;  %9605 = vst [vmem:[#allocation15_spill] sm:$0xff] %v8831_v43  ;;  %6543 = vmatmul.mubr.msk.bf16.gmra.mrb[4].mxu0 %vm412_vm0, %v5973_v29 }
 0x105   : >> { %v4562_v33 = vrot.slane %v9602_v60, 4  ;;  %v4543_v32 = vrot.slane %v4542_v21, 4  ;;  %v9604_v7 = vshrl.u32 %v8323_v8, 16  ;;  %v5974_v9 = vcombine.low %v4524_v37, %v4534_v34  ;;  %v8858_v60 = vld [vmem:[%s7431_s23 + $0x58] sm:$0xf] }
 0x106   : >> { %v4565_v22 = vrot.slane %v9603_v57, 5  ;;  %v4552_v19 = vor.u32 %v4551_v14, %v4547_v50  ;;  %v4579_v54 = vshll.u32 %v8810_v25, 16  ;;  %v5709_v55 = vcombine.low %v8834_v51, %v8837_v36  ;;  %9608 = vst [vmem:[#allocation11_spill] sm:$0xff] %v8858_v60 }
 0x107   : >> { %v4575_v62 = vrot.slane %v9604_v7, 4  ;;  %v4548_v8 = vsel %vm7288_vm3, %v4543_v32, %v4547_v50  ;;  %v4571_v12 = vrot.slane %v4569_v27, 5  ;;  %v9606_v23 = vshrl.u32 %v8342_v20, 16  ;;  %6546 = vmatprep.mubr.msk.bf16.mxu0 %vm412_vm0, %v5974_v9  ;;  %v8855_v50 = vld [vmem:[%s7431_s23 + $0x54] sm:$0xf] }
 0x108   : >> { %v4566_v49 = vor.u32 %v4565_v22, %v4562_v33  ;;  %v4553_v48 = vrot.slane %v4552_v19, 4  ;;  %v4581_v1 = vrot.slane %v4579_v54, 5  ;;  %v9607_v17 = vshll.u32 %v8342_v20, 16  ;;  %v8865_v33 = vld [vmem:[%s7431_s23 + $0x60] sm:$0xf]  ;;  %6367 = vmatmul.mubr.msk.bf16.gmra.mrb[8].mxu1 %vm412_vm0, %v5709_v55 }
 0x109   : >> { %v4586_v15 = vrot.slane %v9606_v23, 4  ;;  %v4576_v3 = vor.u32 %v4575_v62, %v4571_v12  ;;  %v4593_v37 = vshll.u32 %v8345_v56, 16  ;;  %v4599_v2 = vrot.slane %v4597_v46, 4  ;;  %9609 = vst [vmem:[#allocation13_spill] sm:$0xff] %v8865_v33  ;;  %v8868_v56 = vld [vmem:[%s7431_s23 + $0x64] sm:$0xf] }
 0x10a   : >> { %v4567_v58 = vrot.slane %v4566_v49, 4  ;;  %v4589_v14 = vrot.slane %v9607_v17, 5  ;;  %v4603_v21 = vshll.u32 %v8831_v43, 16  ;;  %v5710_v20 = vcombine.low %v8855_v50, %v8858_v60  ;;  %9610 = vst [vmem:[#allocation8_spill] sm:$0xff] %v8868_v56  ;;  %v8875_v32 = vld [vmem:[%s7176_s28 + $0xc] sm:$0xf] }
 0x10b   : >> { %v4558_v29 = vsel %vm7288_vm3, %v4553_v48, %v4557_v31  ;;  %v5711_v46 = vcombine.low %v8865_v33, %v8868_v56  ;;  %v4577_v34 = vrot.slane %v4576_v3, 4  ;;  %v8878_v27 = vld [vmem:[%s7176_s28 + $0x10] sm:$0xf]  ;;  %v4595_v7 = vrot.slane %v4593_v37, 5  ;;  %v7014_v9 = vld [vmem:[%s7431_s23 + $0x18] sm:$0xf] }
 0x10c   : >> { %v4590_v57 = vor.u32 %v4589_v14, %v4586_v15  ;;  %v4572_v22 = vsel %vm7288_vm3, %v4567_v58, %v4571_v12  ;;  %v5726_v31 = vcombine.low %v8875_v32, %v8878_v27  ;;  %v5975_v62 = vcombine.low %v4548_v8, %v4558_v29  ;;  %v7015_v49 = vld [vmem:[%s7431_s23 + $0x1c] sm:$0xf]  ;;  %v9611_v23 = vld [vmem:[#allocation10_spill] sm:$0xff]  ;;  %6370 = vmatprep.mubr.msk.bf16.mxu1 %vm412_vm0, %v5710_v20  ;;  %v8890_v14 = vld [vmem:[%s7176_s28 + $0x18] sm:$0xf] }
 0x10d   : >> { %v5988_v19 = vrot.slane %v7014_v9, 9  ;;  %v4795_v54 = vrot.slane %v7015_v49, 5  ;;  %v4798_v15 = vrot.slane %v9611_v23, 5  ;;  %v4582_v12 = vsel %vm7288_vm3, %v4577_v34, %v4581_v1  ;;  %v8893_v3 = vld [vmem:[%s7176_s28 + $0x1c] sm:$0xf] }
 0x10e   : >> { %v4591_v48 = vrot.slane %v4590_v57, 4  ;;  %v4600_v58 = vor.u32 %v4599_v2, %v4595_v7  ;;  %v4605_v17 = vrot.slane %v4603_v21, 5  ;;  %v5976_v8 = vcombine.low %v4572_v22, %v4582_v12  ;;  %v7018_v29 = vld [vmem:[%s7431_s23 + $0x24] sm:$0xf]  ;;  %v7019_v21 = vld [vmem:[%s7431_s23 + $0x28] sm:$0xf]  ;;  %6547 = vmatmul.mubr.msk.bf16.gmra.mrb[8].mxu0 %vm412_vm0, %v5975_v62 }
 0x10f   : >> { %v4797_v37 = vrot.slane %v4795_v54, 4  ;;  %v5989_v1 = vrot.slane %v7018_v29, 9  ;;  %v8900_v2 = vsel %vm7528_vm6, %v5988_v19, %v4795_v54  ;;  %v4802_v20 = vrot.slane %v7019_v21, 5  ;;  %v8909_v9 = vld [vmem:[%s7176_s28 + $0x24] sm:$0xf] }
 0x110   : >> { %v4601_v57 = vrot.slane %v4600_v58, 4  ;;  %v4805_v22 = vrot.slane %v8424_v53, 5  ;;  %v8912_v49 = vld [vmem:[%s7176_s28 + $0x28] sm:$0xf]  ;;  %v7022_v12 = vld [vmem:[%s7431_s23 + $0x30] sm:$0xf]  ;;  %v4596_v53 = vsel %vm7288_vm3, %v4591_v48, %v4595_v7  ;;  %6550 = vmatprep.mubr.msk.bf16.mxu0 %vm412_vm0, %v5976_v8  ;;  %6371 = vmatmul.mubr.msk.bf16.gmra.mrb[12].mxu1 %vm412_vm0, %v5711_v46  ;;  %v9612_v25 = vcombine.low %v8890_v14, %v8893_v3 }
 0x111   : >> { %v8906_v34 = vsel %vm7528_vm6, %v4797_v37, %v4798_v15  ;;  %v5990_v19 = vrot.slane %v7022_v12, 9  ;;  %v7023_v54 = vld [vmem:[%s7431_s23 + $0x34] sm:$0xf]  ;;  %v4804_v37 = vrot.slane %v4802_v20, 4  ;;  %v4812_v29 = vrot.slane %v8460_v4, 5  ;;  %6378 = vmatprep.mubr.msk.bf16.mxu1 %vm412_vm0, %v5726_v31 }
 0x112   : >> { %v4809_v58 = vrot.slane %v7023_v54, 5  ;;  %v4606_v15 = vsel %vm7288_vm3, %v4601_v57, %v4605_v17  ;;  %v6000_v21 = vcombine.low %v8900_v2, %v8906_v34  ;;  %v8929_v12 = vsel %vm7528_vm6, %v5989_v1, %v4802_v20  ;;  %v8932_v62 = vld [vmem:[%s7176_s28 + $0x30] sm:$0xf]  ;;  %v8935_v7 = vld [vmem:[%s7176_s28 + $0x34] sm:$0xf] }
 0x113   : >> { %v8941_v17 = vsel %vm7528_vm6, %v4804_v37, %v4805_v22  ;;  %v7026_v8 = vld [vmem:[%s7431_s23 + $0x3c] sm:$0xf]  ;;  %v7027_v2 = vld [vmem:[%s7431_s23 + $0x40] sm:$0xf]  ;;  %v4819_v1 = vrot.slane %v8492_v47, 5  ;;  %v5977_v20 = vcombine.low %v4596_v53, %v4606_v15  ;;  %v2393_v43 = vshrl.u32 %v8645_v28, 16 }
 0x114   : >> { %v4811_v4 = vrot.slane %v4809_v58, 4  ;;  %v5991_v57 = vrot.slane %v7026_v8, 9  ;;  %v4816_v34 = vrot.slane %v7027_v2, 5  ;;  %v8948_v54 = vsel %vm7528_vm6, %v5990_v19, %v4809_v58  ;;  %v8951_v23 = vld [vmem:[%s7176_s28 + $0x3c] sm:$0xf] }
 0x115   : >> { %v8954_v48 = vld [vmem:[%s7176_s28 + $0x40] sm:$0xf]  ;;  %v7030_v37 = vld [vmem:[%s7431_s23 + $0x48] sm:$0xf]  ;;  %v7031_v53 = vld [vmem:[%s7431_s23 + $0x4c] sm:$0xf] }
 0x116   : >> { %v5992_v8 = vrot.slane %v7030_v37, 9  ;;  %v8967_v19 = vsel %vm7528_vm6, %v4811_v4, %v4812_v29  ;;  %v4818_v58 = vrot.slane %v4816_v34, 4  ;;  %v4823_v15 = vrot.slane %v7031_v53, 5  ;;  %v7032_v37 = vld [vmem:[%s7431_s23 + $0x54] sm:$0xf]  ;;  %6551 = vmatmul.mubr.msk.bf16.gmra.mrb[12].mxu0 %vm412_vm0, %v5977_v20 }
 0x117   : >> { %v8976_v46 = vsel %vm7528_vm6, %v5991_v57, %v4816_v34  ;;  %v4826_v2 = vrot.slane %v8529_v35, 5  ;;  %v5993_v22 = vrot.slane %v7032_v37, 9  ;;  %v7033_v29 = vld [vmem:[%s7431_s23 + $0x58] sm:$0xf]  ;;  %v8986_v32 = vld [vmem:[%s7176_s28 + $0x48] sm:$0xf]  ;;  %v6002_v34 = vcombine.low %v8948_v54, %v8967_v19  ;;  %6558 = vmatprep.mubr.msk.bf16.mxu0 %vm412_vm0, %v6000_v21 }
 0x118   : >> { %v4830_v4 = vrot.slane %v7033_v29, 5  ;;  %v8983_v53 = vsel %vm7528_vm6, %v4818_v58, %v4819_v1  ;;  %v8989_v27 = vld [vmem:[%s7176_s28 + $0x4c] sm:$0xf]  ;;  %v4825_v57 = vrot.slane %v4823_v15, 4  ;;  %v4833_v35 = vrot.slane %v8571_v18, 5  ;;  %6379 = vmatmul.mubr.msk.bf16.vlgmr.msra.gmra.mrb[0].mxu1 %vm412_vm0, %v9612_v25 }
 0x119   : >> { %v8998_v37 = vsel %vm7528_vm6, %v5992_v8, %v4823_v15  ;;  %v9001_v1 = vld [vmem:[%s7176_s28 + $0x54] sm:$0xf]  ;;  %v9004_v58 = vld [vmem:[%s7176_s28 + $0x58] sm:$0xf]  ;;  %v7038_v19 = vld [vmem:[%s7431_s23 + $0x64] sm:$0xf]  ;;  %6395 = vmatpush3.bf16.msra.mxu1 %v8786_v52 }
 0x11a   : >> { %v4832_v31 = vrot.slane %v4830_v4, 4  ;;  %v9013_v54 = vsel %vm7528_vm6, %v4825_v57, %v4826_v2  ;;  %v9017_v8 = vsel %vm7528_vm6, %v5993_v22, %v4830_v4  ;;  %v4837_v15 = vrot.slane %v7038_v19, 5  ;;  %v7039_v20 = vld [vmem:[%s7431_s23 + $0x60] sm:$0xf]  ;;  %v6964_v22 = vld [vmem:[%s9353_s2 + $0x48] sm:$0xff]  }
 0x11b   : >> { %v5994_v47 = vrot.slane %v7039_v20, 9  ;;  %v2380_v18 = vshrl.u32 %v8642_v11, 16  ;;  %v2383_v2 = vshll.u32 %v8642_v11, 16  ;;  %v9032_v4 = vld [vmem:[%s7176_s28 + $0x60] sm:$0xf]  ;;  %v2389_v19 = vshll.u32 %v8645_v28, 16  ;;  %6396 = vmatprep.subr.bf16.mxu1 %v6964_v22 }
 0x11c   : >> { %v9023_v29 = vsel %vm7528_vm6, %v4832_v31, %v4833_v35  ;;  %v9035_v57 = vld [vmem:[%s7176_s28 + $0x64] sm:$0xf]  ;;  %v4839_v31 = vrot.slane %v4837_v15, 4  ;;  %v4840_v35 = vrot.slane %v8611_v61, 5  ;;  %v7042_v61 = vld [vmem:[%s7431_s23 + $0x14] sm:$0x1]  ;;  %v9613_v11 = vcombine.low %v8909_v9, %v8912_v49 }
 0x11d   : >> { %v2382_v20 = vrot.slane %v2380_v18, 4  ;;  %v2385_v55 = vrot.slane %v2383_v2, 5  ;;  %v6005_v21 = vcombine.low %v9017_v8, %v9023_v29  ;;  %v2391_v56 = vrot.slane %v2389_v19, 5  ;;  %v7043_v33 = vld [vmem:[%s7431_s23 + $0x70] sm:$0xf]  ;;  %6397 = vmatpush3.bf16.msra.mxu1 %v6964_v22 }
 0x11e   : >> { %v2399_v40 = vshll.u32 %v7042_v61, 16  ;;  %v4844_v60 = vrot.slane %v7043_v33, 5  ;;  %6382 = vmatprep.mubr.msk.bf16.mxu1 %vm412_vm0, %v9613_v11  ;;  %v9059_v28 = vsel %vm7528_vm6, %v5994_v47, %v4837_v15  ;;  %v2395_v14 = vrot.slane %v2393_v43, 4  ;;  %v7044_v3 = vld [vmem:[%s7431_s23 + $0x6c] sm:$0xf] }
 0x11f   : >> { %v2386_v25 = vor.u32 %v2385_v55, %v2382_v20  ;;  %v5995_v18 = vrot.slane %v7044_v3, 9  ;;  %v6965_v33 = vld [vmem:[%s9354_s3 + $0x88] sm:$0xff]   ;;  %v9067_v9 = vsel %vm7528_vm6, %v4839_v31, %v4840_v35  ;;  %v4847_v52 = vrot.slane %v8632_v38, 5  ;;  %v7045_v35 = vld [vmem:[%s7431_s23 + $0x20] sm:$0x1] }
 0x120   : >> { %v4846_v49 = vrot.slane %v4844_v60, 4  ;;  %v2404_v47 = vshrl.u32 %v8691_v59, 16  ;;  %v2396_v55 = vor.u32 %v2395_v14, %v2391_v56  ;;  %v2407_v43 = vshll.u32 %v8691_v59, 16  ;;  %v7046_v3 = vld [vmem:[%s7176_s28 + $0x18] sm:$0xf] }
 0x121   : >> { %v2387_v15 = vrot.slane %v2386_v25, 4  ;;  %v2413_v2 = vshll.u32 %v8694_v63, 16  ;;  %v9614_v19 = vcombine.low %v8929_v12, %v8941_v17  ;;  %v2401_v11 = vrot.slane %v2399_v40, 5 }
 0x122   : >> { %v2406_v20 = vrot.slane %v2404_v47, 4  ;;  %v2417_v31 = vshrl.u32 %v8694_v63, 16  ;;  %v2423_v38 = vshll.u32 %v7045_v35, 16  ;;  %v6006_v59 = vcombine.low %v9059_v28, %v9067_v9 }
 0x123   : >> { %6559 = vmatmul.mubr.msk.bf16.vlgmr.msra.gmra.mrb[0].mxu0 %vm412_vm0, %v9614_v19  ;;  %v2397_v61 = vrot.slane %v2396_v55, 4  ;;  %v9085_v12 = vsel %vm7528_vm6, %v5995_v18, %v4844_v60  ;;  %v2409_v40 = vrot.slane %v2407_v43, 5  ;;  %v2392_v63 = vsel %vm7288_vm3, %v2387_v15, %v2391_v56  ;;  %v7047_v55 = vld [vmem:[%s7176_s28 + $0x1c] sm:$0xf] }
 0x124   : >> { %6575 = vmatpush3.bf16.msra.mxu0 %v8815_v6  ;;  %6562 = vmatprep.mubr.msk.bf16.mxu0 %vm412_vm0, %v6002_v34  ;;  %v9091_v6 = vsel %vm7528_vm6, %v4846_v49, %v4847_v52  ;;  %v2415_v17 = vrot.slane %v2413_v2, 5  ;;  %v2419_v34 = vrot.slane %v2417_v31, 4  ;;  %v2425_v14 = vrot.slane %v2423_v38, 5 }
 0x125   : >> { %6576 = vmatprep.subr.bf16.mxu0 %v6965_v33  ;;  %v2410_v25 = vor.u32 %v2409_v40, %v2406_v20  ;;  %v6018_v47 = vrot.slane %v7046_v3, 9  ;;  %v5037_v19 = vrot.slane %v7047_v55, 5  ;;  %v9615_v60 = vcombine.low %v8932_v62, %v8935_v7 }
 0x126   : >> { %v2402_v56 = vsel %vm7288_vm3, %v2397_v61, %v2401_v11  ;;  %v2420_v22 = vor.u32 %v2419_v34, %v2415_v17  ;;  %v2428_v18 = vshrl.u32 %v8722_v44, 16  ;;  %v2431_v49 = vshll.u32 %v8722_v44, 16 }
 0x127   : >> { %6383 = vmatmul.mubr.msk.bf16.gmra.mrb[4].mxu1 %vm412_vm0, %v9615_v60  ;;  %v9616_v52 = vcombine.low %v8951_v23, %v8954_v48  ;;  %v2411_v15 = vrot.slane %v2410_v25, 4  ;;  %v5039_v43 = vrot.slane %v5037_v19, 4  ;;  %v5040_v62 = vrot.slane %v8656_v42, 5  ;;  %v7050_v25 = vld [vmem:[%s7176_s28 + $0x28] sm:$0xf] }
 0x128   : >> { %6577 = vmatpush3.bf16.msra.mxu0 %v6965_v33  ;;  %v2437_v7 = vshll.u32 %v8725_v24, 16  ;;  %v2421_v2 = vrot.slane %v2420_v22, 4  ;;  %v2430_v11 = vrot.slane %v2428_v18, 4  ;;  %v2433_v20 = vrot.slane %v2431_v49, 5  ;;  %v7048_v33 = vld [vmem:[%s7431_s23 + $0x2c] sm:$0x1] }
 0x129   : >> { %6386 = vmatprep.mubr.msk.bf16.mxu1 %vm412_vm0, %v9616_v52  ;;  %v2441_v31 = vshrl.u32 %v8725_v24, 16  ;;  %v9110_v44 = vcombine.low %v2392_v63, %v2402_v56  ;;  %v6007_v23 = vcombine.low %v9085_v12, %v9091_v6  ;;  %v2447_v35 = vshll.u32 %v7048_v33, 16  ;;  %v7053_v33 = vld [vmem:[%s7176_s28 + $0x34] sm:$0xf]  ;;  %v7057_v6 = vld [vmem:[%s7431_s23 + $0x50] sm:$0x1] }
 0x12a   : >> { %v2439_v48 = vrot.slane %v2437_v7, 5  ;;  %v9617_v42 = vcombine.low %v8976_v46, %v8983_v53  ;;  %v2416_v38 = vsel %vm7288_vm3, %v2411_v15, %v2415_v17  ;;  %v9123_v24 = vsel %vm7528_vm6, %v6018_v47, %v5037_v19  ;;  %v7049_v53 = vld [vmem:[%s7176_s28 + $0x24] sm:$0xf] }
 0x12b   : >> { %v2434_v61 = vor.u32 %v2433_v20, %v2430_v11  ;;  %v2443_v40 = vrot.slane %v2441_v31, 4  ;;  %v9618_v63 = vcombine.low %v8998_v37, %v9013_v54  ;;  %v2426_v34 = vsel %vm7288_vm3, %v2421_v2, %v2425_v14  ;;  %v7052_v20 = vld [vmem:[%s7176_s28 + $0x30] sm:$0xf] }
 0x12c   : >> { %6563 = vmatmul.mubr.msk.bf16.gmra.mrb[4].mxu0 %vm412_vm0, %v9617_v42  ;;  %v9133_v46 = vsel %vm7528_vm6, %v5039_v43, %v5040_v62  ;;  %v6019_v17 = vrot.slane %v7049_v53, 9  ;;  %v5044_v3 = vrot.slane %v7050_v25, 5  ;;  %v5047_v19 = vrot.slane %v8677_v41, 5 }
 0x12d   : >> { %6566 = vmatprep.mubr.msk.bf16.mxu0 %vm412_vm0, %v9618_v63  ;;  %v2435_v47 = vrot.slane %v2434_v61, 4  ;;  %v2444_v55 = vor.u32 %v2443_v40, %v2439_v48  ;;  %v2452_v37 = vshrl.u32 %v8766_v5, 16  ;;  %v2449_v54 = vrot.slane %v2447_v35, 5 }
 0x12e   : >> { %v5046_v60 = vrot.slane %v5044_v3, 4  ;;  %v2455_v56 = vshll.u32 %v8766_v5, 16  ;;  %v2461_v14 = vshll.u32 %v8769_v45, 16  ;;  %v9619_v22 = vcombine.low %v8986_v32, %v8989_v27  ;;  %v7051_v27 = vld [vmem:[%s7431_s23 + $0x38] sm:$0x1] }
 0x12f   : >> { %v6030_v18 = vcombine.low %v9123_v24, %v9133_v46  ;;  %v2445_v49 = vrot.slane %v2444_v55, 4  ;;  %v2454_v52 = vrot.slane %v2452_v37, 4  ;;  %v2465_v41 = vshrl.u32 %v8769_v45, 16  ;;  %v7058_v46 = vld [vmem:[%s7176_s28 + $0x48] sm:$0xf] }
 0x130   : >> { %6387 = vmatmul.mubr.msk.bf16.gmra.mrb[8].mxu1 %vm412_vm0, %v9619_v22  ;;  %v9620_v15 = vcombine.low %v9001_v1, %v9004_v58  ;;  %v9152_v5 = vcombine.low %v2416_v38, %v2426_v34  ;;  %v2457_v43 = vrot.slane %v2455_v56, 5  ;;  %v9154_v32 = vrot.slane %v2461_v14, 5 }
 0x131   : >> { %v2471_v62 = vshll.u32 %v7051_v27, 16  ;;  %v2440_v7 = vsel %vm7288_vm3, %v2435_v47, %v2439_v48  ;;  %v9161_v2 = vsel %vm7528_vm6, %v6019_v17, %v5044_v3  ;;  %v9165_v45 = vsel %vm7528_vm6, %v5046_v60, %v5047_v19  ;;  %v7055_v19 = vld [vmem:[%s7176_s28 + $0x3c] sm:$0xf] }
 0x132   : >> { %6390 = vmatprep.mubr.msk.bf16.mxu1 %vm412_vm0, %v9620_v15  ;;  %v2467_v1 = vrot.slane %v2465_v41, 4  ;;  %v2450_v58 = vsel %vm7288_vm3, %v2445_v49, %v2449_v54  ;;  %v2458_v11 = vor.u32 %v2457_v43, %v2454_v52  ;;  %v6020_v31 = vrot.slane %v7052_v20, 9  ;;  %v7056_v54 = vld [vmem:[%s7176_s28 + $0x40] sm:$0xf]  ;;  %v7059_v20 = vld [vmem:[%s7176_s28 + $0x4c] sm:$0xf] }
 0x133   : >> { %v5051_v35 = vrot.slane %v7053_v33, 5  ;;  %v9176_v42 = vrot.slane %v2471_v62, 5  ;;  %v2476_v38 = vshrl.u32 %v8795_v16, 16  ;;  %v2479_v61 = vshll.u32 %v8795_v16, 16 }
 0x134   : >> { %6567 = vmatmul.mubr.msk.bf16.gmra.mrb[8].mxu0 %vm412_vm0, %v6005_v21  ;;  %v2468_v48 = vor.u32 %v2467_v1, %v9154_v32  ;;  %v9184_v40 = vrot.slane %v2458_v11, 4  ;;  %v5054_v29 = vrot.slane %v8704_v26, 5  ;;  %v2485_v8 = vshll.u32 %v8798_v30, 16 }
 0x135   : >> { %6570 = vmatprep.mubr.msk.bf16.mxu0 %vm412_vm0, %v6006_v59  ;;  %v5053_v63 = vrot.slane %v5051_v35, 4  ;;  %v2478_v34 = vrot.slane %v2476_v38, 4  ;;  %v2481_v53 = vrot.slane %v2479_v61, 5  ;;  %v2489_v17 = vshrl.u32 %v8798_v30, 16  ;;  %v7054_v59 = vld [vmem:[%s7431_s23 + $0x44] sm:$0x1] }
 0x136   : >> { %v9188_v21 = vrot.slane %v2468_v48, 4  ;;  %v5750_v16 = vcombine.low %v2440_v7, %v2450_v58  ;;  %v6031_v28 = vcombine.low %v9161_v2, %v9165_v45  ;;  %v9193_v9 = vrot.slane %v2485_v8, 5  ;;  %v7061_v2 = vld [vmem:[%s7176_s28 + $0x58] sm:$0xf] }
 0x137   : >> { %v2495_v25 = vshll.u32 %v7054_v59, 16  ;;  %v9621_v26 = vcombine.low %v9032_v4, %v9035_v57  ;;  %v2464_v3 = vsel %vm7288_vm3, %v9184_v40, %v9154_v32  ;;  %v9206_v30 = vsel %vm7528_vm6, %v6020_v31, %v5051_v35 }
 0x138   : >> { %v2482_v47 = vor.u32 %v2481_v53, %v2478_v34  ;;  %v2491_v55 = vrot.slane %v2489_v17, 4  ;;  %v2474_v4 = vsel %vm7288_vm3, %v9188_v21, %v9176_v42  ;;  %v5055_v57 = vsel %vm7528_vm6, %v5053_v63, %v5054_v29  ;;  %v9622_v63 = vld [vmem:[#allocation11_spill] sm:$0xff]  ;;  %v7060_v17 = vld [vmem:[%s7431_s23 + $0x5c] sm:$0x1] }
 0x139   : >> { %6391 = vmatmul.mubr.msk.bf16.gmra.mrb[12].mxu1 %vm412_vm0, %v9621_v26  ;;  %v6021_v37 = vrot.slane %v7055_v19, 9  ;;  %v5058_v60 = vrot.slane %v7056_v54, 5  ;;  %v5061_v22 = vrot.slane %v8719_v0, 5  ;;  %v2497_v49 = vrot.slane %v2495_v25, 5 }
 0x13a   : >> { %6398 = vmatprep.mubr.msk.bf16.mxu1 %vm412_vm0, %v9110_v44  ;;  %v2483_v56 = vrot.slane %v2482_v47, 4  ;;  %v2492_v14 = vor.u32 %v2491_v55, %v9193_v9  ;;  %v2500_v44 = vshrl.u32 %v8834_v51, 16  ;;  %v2503_v41 = vshll.u32 %v8834_v51, 16 }
 0x13b   : >> { %v5060_v52 = vrot.slane %v5058_v60, 4  ;;  %v2509_v15 = vshll.u32 %v8837_v36, 16  ;;  %v6032_v43 = vcombine.low %v9206_v30, %v5055_v57  ;;  %v2513_v0 = vshrl.u32 %v8837_v36, 16  ;;  %v9623_v57 = vld [vmem:[#allocation13_spill] sm:$0xff] }
 0x13c   : >> { %6571 = vmatmul.mubr.msk.bf16.gmra.mrb[12].mxu0 %vm412_vm0, %v6007_v23  ;;  %v2493_v32 = vrot.slane %v2492_v14, 4  ;;  %v2502_v27 = vrot.slane %v2500_v44, 4  ;;  %v9235_v51 = vsel %vm7528_vm6, %v6021_v37, %v5058_v60  ;;  %v2505_v62 = vrot.slane %v2503_v41, 5  ;;  %v7062_v37 = vld [vmem:[%s7176_s28 + $0x54] sm:$0xf]  ;;  %v9624_v60 = vld [vmem:[#allocation9_spill] sm:$0xff] }
 0x13d   : >> { %6578 = vmatprep.mubr.msk.bf16.mxu0 %vm412_vm0, %v6030_v18  ;;  %v9237_v12 = vrot.slane %v2509_v15, 5  ;;  %v2519_v23 = vshll.u32 %v7057_v6, 16  ;;  %v2488_v7 = vsel %vm7288_vm3, %v2483_v56, %v9193_v9  ;;  %v9245_v36 = vsel %vm7528_vm6, %v5060_v52, %v5061_v22  ;;  %v9625_v22 = vld [vmem:[#allocation8_spill] sm:$0xff]  ;;  %v7064_v6 = vld [vmem:[%s7176_s28 + $0x60] sm:$0xf] }
 0x13e   : >> { %v2515_v24 = vrot.slane %v2513_v0, 4  ;;  %v6022_v18 = vrot.slane %v7058_v46, 9  ;;  %v2498_v1 = vsel %vm7288_vm3, %v2493_v32, %v2497_v49  ;;  %v2506_v58 = vor.u32 %v2505_v62, %v2502_v27  ;;  %v7063_v0 = vld [vmem:[%s7431_s23 + $0x68] sm:$0x1]  ;;  %v7065_v46 = vld [vmem:[%s7176_s28 + $0x64] sm:$0xf] }
 0x13f   : >> { %v2521_v11 = vrot.slane %v2519_v23, 5  ;;  %v5065_v31 = vrot.slane %v7059_v20, 5  ;;  %v5068_v35 = vrot.slane %v8750_v39, 5  ;;  %v2524_v48 = vshrl.u32 %v8855_v50, 16  ;;  %v9626_v20 = vld [vmem:[#allocation6_spill] sm:$0xff] }
 0x140   : >> { %v2516_v33 = vor.u32 %v2515_v24, %v9237_v12  ;;  %v2527_v42 = vshll.u32 %v8855_v50, 16  ;;  %v2507_v38 = vrot.slane %v2506_v58, 4  ;;  %v2533_v29 = vshll.u32 %v9622_v63, 16 }
 0x141   : >> { %6399 = vmatmul.mubr.msk.bf16.vlgmr.msra.gmra.mrb[0].mxu1 %vm412_vm0, %v9152_v5  ;;  %v5066_v61 = vsel %vm7528_vm6, %v6022_v18, %v5065_v31  ;;  %v5067_v40 = vrot.slane %v5065_v31, 4  ;;  %v2526_v5 = vrot.slane %v2524_v48, 4  ;;  %v2537_v34 = vshrl.u32 %v9622_v63, 16 }
 0x142   : >> { %6402 = vmatprep.mubr.msk.bf16.mxu1 %vm412_vm0, %v5750_v16  ;;  %v2517_v8 = vrot.slane %v2516_v33, 4  ;;  %v2529_v21 = vrot.slane %v2527_v42, 5  ;;  %v5751_v39 = vcombine.low %v2464_v3, %v2474_v4  ;;  %v2535_v50 = vrot.slane %v2533_v29, 5  ;;  %v7066_v42 = vld [vmem:[%s7176_s28 + $0x70] sm:$0xf] }
 0x143   : >> { %v5069_v53 = vsel %vm7528_vm6, %v5067_v40, %v5068_v35  ;;  %v2543_v16 = vshll.u32 %v7060_v17, 16  ;;  %v5752_v9 = vcombine.low %v2488_v7, %v2498_v1  ;;  %v6033_v59 = vcombine.low %v9235_v51, %v9245_v36 }
 0x144   : >> { %6579 = vmatmul.mubr.msk.bf16.vlgmr.msra.gmra.mrb[0].mxu0 %vm412_vm0, %v6031_v28  ;;  %v2530_v25 = vor.u32 %v2529_v21, %v2526_v5  ;;  %v2539_v26 = vrot.slane %v2537_v34, 4  ;;  %v2512_v3 = vsel %vm7288_vm3, %v2507_v38, %v9237_v12  ;;  %v2522_v30 = vsel %vm7288_vm3, %v2517_v8, %v2521_v11  ;;  %v7067_v8 = vld [vmem:[%s7176_s28 + $0x6c] sm:$0xf]  ;;  %s6048_s28 = sshll.u32 %s7082_s16, 7  ;;  %s297_s16 = sadd.s32 1, %s7082_s16  }
 0x145   : >> { %6582 = vmatprep.mubr.msk.bf16.mxu0 %vm412_vm0, %v6032_v43  ;;  %v6034_v47 = vcombine.low %v5066_v61, %v5069_v53  ;;  %v5072_v45 = vrot.slane %v7061_v2, 5  ;;  %v2545_v4 = vrot.slane %v2543_v16, 5  ;;  %v2548_v19 = vshrl.u32 %v9623_v57, 16  ;;  %v9627_v21 = vld [vmem:[#allocation15_spill] sm:$0xff]  ;;  %s9323_s23 = scalar_lea.vmem %s7131_s27, %s6048_s28  ;;  %p294_p4 = scmp.ge.s32.totalorder %s297_s16, 2  }
 0x146   : >> { %v2531_v55 = vrot.slane %v2530_v25, 4  ;;  %v2540_v28 = vor.u32 %v2539_v26, %v2535_v50  ;;  %v6023_v54 = vrot.slane %v7062_v37, 9  ;;  %v5075_v56 = vrot.slane %v9624_v60, 5 }
 0x147   : >> { %v2551_v14 = vshll.u32 %v9623_v57, 16  ;;  %v2557_v44 = vshll.u32 %v9625_v22, 16  ;;  %v5074_v52 = vrot.slane %v5072_v45, 4  ;;  %v2550_v41 = vrot.slane %v2548_v19, 4 }
 0x148   : >> { %v2541_v49 = vrot.slane %v2540_v28, 4  ;;  %v2561_v15 = vshrl.u32 %v9625_v22, 16  ;;  %v2536_v43 = vsel %vm7288_vm3, %v2531_v55, %v2535_v50  ;;  %v2567_v51 = vshll.u32 %v7063_v0, 16 }
 0x149   : >> { %6403 = vmatmul.mubr.msk.bf16.gmra.mrb[4].mxu1 %vm412_vm0, %v5751_v39  ;;  %v2553_v32 = vrot.slane %v2551_v14, 5  ;;  %v2559_v27 = vrot.slane %v2557_v44, 5  ;;  %v6024_v23 = vrot.slane %v7064_v6, 9  ;;  %v5753_v7 = vcombine.low %v2512_v3, %v2522_v30 }
 0x14a   : >> { %6406 = vmatprep.mubr.msk.bf16.mxu1 %vm412_vm0, %v5752_v9  ;;  %v2546_v62 = vsel %vm7288_vm3, %v2541_v49, %v2545_v4  ;;  %v2563_v12 = vrot.slane %v2561_v15, 4  ;;  %v5073_v36 = vsel %vm7528_vm6, %v6023_v54, %v5072_v45  ;;  %v5079_v18 = vrot.slane %v7065_v46, 5 }
 0x14b   : >> { %v2554_v24 = vor.u32 %v2553_v32, %v2550_v41  ;;  %v5754_v1 = vcombine.low %v2536_v43, %v2546_v62  ;;  %v5076_v58 = vsel %vm7528_vm6, %v5074_v52, %v5075_v56  ;;  %v5082_v31 = vrot.slane %v9626_v20, 5 }
 0x14c   : >> { %6583 = vmatmul.mubr.msk.bf16.gmra.mrb[4].mxu0 %vm412_vm0, %v6033_v59  ;;  %v2564_v11 = vor.u32 %v2563_v12, %v2559_v27  ;;  %v2569_v35 = vrot.slane %v2567_v51, 5  ;;  %v5081_v48 = vrot.slane %v5079_v18, 4  ;;  %v5086_v38 = vrot.slane %v7066_v42, 5 }
 0x14d   : >> { %6586 = vmatprep.mubr.msk.bf16.mxu0 %vm412_vm0, %v6034_v47  ;;  %v2555_v33 = vrot.slane %v2554_v24, 4  ;;  %v5080_v40 = vsel %vm7528_vm6, %v6024_v23, %v5079_v18  ;;  %v6035_v29 = vcombine.low %v5073_v36, %v5076_v58  ;;  %v6025_v5 = vrot.slane %v7067_v8, 9 }
 0x14e   : >> { %v2565_v61 = vrot.slane %v2564_v11, 4  ;;  %v5083_v63 = vsel %vm7528_vm6, %v5081_v48, %v5082_v31  ;;  %v5089_v34 = vrot.slane %v9627_v21, 5  ;;  %v5088_v17 = vrot.slane %v5086_v38, 4 }
 0x14f   : >> { %v2560_v39 = vsel %vm7288_vm3, %v2555_v33, %v2559_v27  ;;  %v6036_v50 = vcombine.low %v5080_v40, %v5083_v63  ;;  %v5087_v9 = vsel %vm7528_vm6, %v6025_v5, %v5086_v38 }
 0x150   : >> { %v2570_v53 = vsel %vm7288_vm3, %v2565_v61, %v2569_v35  ;;  %v5090_v59 = vsel %vm7528_vm6, %v5088_v17, %v5089_v34 }
 0x151   : >> { %6407 = vmatmul.mubr.msk.bf16.gmra.mrb[8].mxu1 %vm412_vm0, %v5753_v7  ;;  %v5755_v16 = vcombine.low %v2560_v39, %v2570_v53  ;;  %v6037_v25 = vcombine.low %v5087_v9, %v5090_v59 }
 0x152   : >> { %6410 = vmatprep.mubr.msk.bf16.mxu1 %vm412_vm0, %v5754_v1 }
 0x154   : >> { %6587 = vmatmul.mubr.msk.bf16.gmra.mrb[8].mxu0 %vm412_vm0, %v6035_v29 }
 0x155   : >> { %6590 = vmatprep.mubr.msk.bf16.mxu0 %vm412_vm0, %v6036_v50 }
 0x159   : >> { %6411 = vmatmul.mubr.msk.bf16.gmra.mrb[12].mxu1 %vm412_vm0, %v5755_v16 }
 0x15c   : >> { %6591 = vmatmul.mubr.msk.bf16.gmra.mrb[12].mxu0 %vm412_vm0, %v6037_v25 }
 0x214   : >> { %v6400_v10 = vpop.f32.mrb[0].mxu1 }
 0x215   : >> { %v2670_v26 = vpop.f32.mrb[1].mxu1 }
 0x216   : >> { %v6401_v3 = vpop.f32.mrb[2].mxu1 }
 0x217   : >> { %v2673_v30 = vpop.f32.mrb[3].mxu1  ;;  %v6580_v47 = vpop.f32.mrb[0].mxu0 }
 0x218   : >> { %v6594_v2 = vadd.f32 %v6580_v47, %v6400_v10  ;;  %v5190_v13 = vpop.f32.mrb[1].mxu0 }
 0x219   : >> { %v6595_v45 = vadd.f32 %v5190_v13, %v2670_v26  ;;  %v6581_v55 = vpop.f32.mrb[2].mxu0 }
 0x21a   : >> { %5273 = vst [vmem:[%s9323_s23 + $0x10] sm:$0xff] %v6594_v2  ;;  %v6596_v28 = vadd.f32 %v6581_v55, %v6401_v3  ;;  %v5193_v4 = vpop.f32.mrb[3].mxu0  ;;  %v5314_v44 = vmul.f32 %v6594_v2, %v6594_v2 }
 0x21b   : >> { %5271 = vst [vmem:[%s9323_s23] sm:$0xff] %v6595_v45  ;;  %v6597_v19 = vadd.f32 %v5193_v4, %v2673_v30  ;;  %v5312_v54 = vmul.f32 %v6595_v45, %v6595_v45 }
 0x21c   : >> { %v6404_v57 = vpop.f32.mrb[4].mxu1  ;;  %5274 = vst [vmem:[%s9323_s23 + $0x18] sm:$0xff] %v6596_v28  ;;  %v5315_v32 = vmul.f32 %v6596_v28, %v6596_v28 }
 0x21d   : >> { %v2686_v37 = vpop.f32.mrb[5].mxu1  ;;  %5272 = vst [vmem:[%s9323_s23 + $0x8] sm:$0xff] %v6597_v19  ;;  %v5288_v56 = vadd.f32 %v6597_v19, %v6595_v45  ;;  %v5313_v14 = vmul.f32 %v6597_v19, %v6597_v19 }
 0x21e   : >> { %v6405_v60 = vpop.f32.mrb[6].mxu1 }
 0x21f   : >> { %v2689_v22 = vpop.f32.mrb[7].mxu1  ;;  %v5289_v49 = vadd.f32 %v6594_v2, %v5288_v56  ;;  %v5328_v52 = vadd.f32 %v5313_v14, %v5312_v54  ;;  %v6584_v41 = vpop.f32.mrb[4].mxu0 }
 0x220   : >> { %v6598_v15 = vadd.f32 %v6584_v41, %v6404_v57  ;;  %v5206_v43 = vpop.f32.mrb[5].mxu0 }
 0x221   : >> { %v5329_v27 = vadd.f32 %v5328_v52, %v5314_v44  ;;  %v6599_v0 = vadd.f32 %v5206_v43, %v2686_v37  ;;  %v5290_v51 = vadd.f32 %v6596_v28, %v5289_v49  ;;  %v6585_v62 = vpop.f32.mrb[6].mxu0 }
 0x222   : >> { %5277 = vst [vmem:[%s9323_s23 + $0x30] sm:$0xff] %v6598_v15  ;;  %v6600_v12 = vadd.f32 %v6585_v62, %v6405_v60  ;;  %v5209_v6 = vpop.f32.mrb[7].mxu0  ;;  %v5318_v33 = vmul.f32 %v6598_v15, %v6598_v15 }
 0x223   : >> { %5275 = vst [vmem:[%s9323_s23 + $0x20] sm:$0xff] %v6599_v0  ;;  %v5291_v7 = vadd.f32 %v6599_v0, %v5290_v51  ;;  %v5316_v36 = vmul.f32 %v6599_v0, %v6599_v0  ;;  %v5330_v24 = vadd.f32 %v5329_v27, %v5315_v32  ;;  %v6601_v46 = vadd.f32 %v5209_v6, %v2689_v22 }
 0x224   : >> { %v6408_v23 = vpop.f32.mrb[8].mxu1  ;;  %5278 = vst [vmem:[%s9323_s23 + $0x38] sm:$0xff] %v6600_v12  ;;  %v5319_v40 = vmul.f32 %v6600_v12, %v6600_v12 }
 0x225   : >> { %v2702_v18 = vpop.f32.mrb[9].mxu1  ;;  %v5331_v1 = vadd.f32 %v5330_v24, %v5316_v36  ;;  %5276 = vst [vmem:[%s9323_s23 + $0x28] sm:$0xff] %v6601_v46  ;;  %v5292_v11 = vadd.f32 %v6601_v46, %v5291_v7  ;;  %v5317_v20 = vmul.f32 %v6601_v46, %v6601_v46 }
 0x226   : >> { %v6409_v58 = vpop.f32.mrb[10].mxu1 }
 0x227   : >> { %v2705_v31 = vpop.f32.mrb[11].mxu1  ;;  %v5293_v35 = vadd.f32 %v6598_v15, %v5292_v11  ;;  %v5332_v48 = vadd.f32 %v5331_v1, %v5317_v20  ;;  %v6588_v42 = vpop.f32.mrb[8].mxu0 }
 0x228   : >> { %v6602_v38 = vadd.f32 %v6588_v42, %v6408_v23  ;;  %v5222_v61 = vpop.f32.mrb[9].mxu0 }
 0x229   : >> { %v5333_v63 = vadd.f32 %v5332_v48, %v5318_v33  ;;  %v6603_v29 = vadd.f32 %v5222_v61, %v2702_v18  ;;  %v5294_v8 = vadd.f32 %v6600_v12, %v5293_v35  ;;  %v6589_v5 = vpop.f32.mrb[10].mxu0 }
 0x22a   : >> { %5281 = vst [vmem:[%s9323_s23 + $0x50] sm:$0xff] %v6602_v38  ;;  %v6604_v21 = vadd.f32 %v6589_v5, %v6409_v58  ;;  %v5225_v34 = vpop.f32.mrb[11].mxu0  ;;  %v5322_v30 = vmul.f32 %v6602_v38, %v6602_v38  ;;  %v5287_v58 = vld [vmem:[%s7136_s30] sm:$0x1] }
 0x22b   : >> { %5279 = vst [vmem:[%s9323_s23 + $0x40] sm:$0xff] %v6603_v29  ;;  %v5295_v53 = vadd.f32 %v6603_v29, %v5294_v8  ;;  %v5320_v50 = vmul.f32 %v6603_v29, %v6603_v29  ;;  %v5334_v17 = vadd.f32 %v5333_v63, %v5319_v40  ;;  %v6605_v16 = vadd.f32 %v5225_v34, %v2705_v31  ;;  %v5311_v31 = vld [vmem:[%s7152_s15] sm:$0x1] }
 0x22c   : >> { %v6412_v39 = vpop.f32.mrb[12].mxu1  ;;  %5282 = vst [vmem:[%s9323_s23 + $0x58] sm:$0xff] %v6604_v21  ;;  %v5323_v28 = vmul.f32 %v6604_v21, %v6604_v21 }
 0x22d   : >> { %v2718_v9 = vpop.f32.mrb[13].mxu1  ;;  %v5335_v59 = vadd.f32 %v5334_v17, %v5320_v50  ;;  %5280 = vst [vmem:[%s9323_s23 + $0x48] sm:$0xff] %v6605_v16  ;;  %v5296_v10 = vadd.f32 %v6605_v16, %v5295_v53  ;;  %v5321_v26 = vmul.f32 %v6605_v16, %v6605_v16 }
 0x22e   : >> { %v6413_v25 = vpop.f32.mrb[14].mxu1 }
 0x22f   : >> { %v2721_v3 = vpop.f32.mrb[15].mxu1  ;;  %v5297_v47 = vadd.f32 %v6602_v38, %v5296_v10  ;;  %v5336_v2 = vadd.f32 %v5335_v59, %v5321_v26  ;;  %v6592_v13 = vpop.f32.mrb[12].mxu0 }
 0x230   : >> { %v6606_v45 = vadd.f32 %v6592_v13, %v6412_v39  ;;  %v5238_v55 = vpop.f32.mrb[13].mxu0 }
 0x231   : >> { %v5337_v4 = vadd.f32 %v5336_v2, %v5322_v30  ;;  %v6607_v57 = vadd.f32 %v5238_v55, %v2718_v9  ;;  %v5298_v19 = vadd.f32 %v6604_v21, %v5297_v47  ;;  %v6593_v37 = vpop.f32.mrb[14].mxu0 }
 0x232   : >> { %5285 = vst [vmem:[%s9323_s23 + $0x70] sm:$0xff] %v6606_v45  ;;  %v6608_v54 = vadd.f32 %v6593_v37, %v6413_v25  ;;  %v5241_v60 = vpop.f32.mrb[15].mxu0  ;;  %v5326_v15 = vmul.f32 %v6606_v45, %v6606_v45 }
 0x233   : >> { %5283 = vst [vmem:[%s9323_s23 + $0x60] sm:$0xff] %v6607_v57  ;;  %v5299_v56 = vadd.f32 %v6607_v57, %v5298_v19  ;;  %v5324_v14 = vmul.f32 %v6607_v57, %v6607_v57  ;;  %v5338_v22 = vadd.f32 %v5337_v4, %v5323_v28  ;;  %v6609_v44 = vadd.f32 %v5241_v60, %v2721_v3 }
 0x234   : >> { %5286 = vst [vmem:[%s9323_s23 + $0x78] sm:$0xff] %v6608_v54  ;;  %v5327_v27 = vmul.f32 %v6608_v54, %v6608_v54 }
 0x235   : >> { %v5339_v49 = vadd.f32 %v5338_v22, %v5324_v14  ;;  %5284 = vst [vmem:[%s9323_s23 + $0x68] sm:$0xff] %v6609_v44  ;;  %v5300_v52 = vadd.f32 %v6609_v44, %v5299_v56  ;;  %v5325_v41 = vmul.f32 %v6609_v44, %v6609_v44 }
 0x237   : >> { %v5301_v43 = vadd.f32 %v6606_v45, %v5300_v52  ;;  %v5340_v32 = vadd.f32 %v5339_v49, %v5325_v41 }
 0x239   : >> { %v5302_v0 = vadd.f32 %v6608_v54, %v5301_v43  ;;  %v5341_v51 = vadd.f32 %v5340_v32, %v5326_v15 }
 0x23b   : >> { %v5303_v62 = vrot.slane %v5302_v0, 4  ;;  %v5342_v12 = vadd.f32 %v5341_v51, %v5327_v27 }
 0x23d   : >> { %v5304_v6 = vadd.f32 %v5303_v62, %v5302_v0  ;;  %v5343_v23 = vrot.slane %v5342_v12, 4 }
 0x23f   : >> { %v5305_v7 = vrot.slane %v5304_v6, 2  ;;  %v5344_v36 = vadd.f32 %v5343_v23, %v5342_v12 }
 0x241   : >> { %v5306_v24 = vadd.f32 %v5305_v7, %v5304_v6  ;;  %v5345_v46 = vrot.slane %v5344_v36, 2 }
 0x243   : >> { %v5307_v18 = vrot.slane %v5306_v24, 1  ;;  %v5346_v1 = vadd.f32 %v5345_v46, %v5344_v36 }
 0x245   : >> { %v5308_v11 = vadd.f32 %v5307_v18, %v5306_v24  ;;  %v5347_v20 = vrot.slane %v5346_v1, 1  ;;  %296 = sbr.rel (!%p294_p4) target bundleno = 19 (0x13), region = 123 }
 0x247   : >> { %v5309_v33 = vadd.f32 %v5308_v11, %v5287_v58  ;;  %v5348_v35 = vadd.f32 %v5347_v20, %v5346_v1 }
 0x249   : >> { %5310 = vst [vmem:[%s7136_s30] sm:$0x1] %v5309_v33  ;;  %v5349_v48 = vadd.f32 %v5348_v35, %v5311_v31 }
 0x24b   : >> { %5350 = vst [vmem:[%s7152_s15] sm:$0x1] %v5349_v48 }
 0x24c PF: > { %s17_s21 = sadd.s32 1, %s7078_s21  }
 0x24d   : > { %p14_p5 = scmp.ge.s32.totalorder %s17_s21, 4  }
 0x24f   :  { %16 = sbr.rel (!%p14_p5) target bundleno = 1 (0x1), region = 134 }

</bundles_post_ra>
